<compile_context>
chip_gen: v7x
topology: tpu7x:2x2x1
jax: 0.10.0
libtpu: 0.0.40
codegen_flags: <defaults>
</compile_context>

<pallas_src>
import functools

import jax
import jax.numpy as jnp
import numpy as np
from jax.experimental import pallas as pl
from jax.experimental.pallas import tpu as pltpu


# ----------------------------------------------------------------------------
# Architecture (stand-in for the smp vgg16_bn U-Net, num_layers = 2)
# ----------------------------------------------------------------------------
ENC_CH = [8, 16]        # encoder stage channels
BOT_CH = 32             # bottleneck channels
DEC_CH = [16, 8]        # stand-in for DECODER_CHANNELS[:num_layers]


# ----------------------------------------------------------------------------
# In-kernel building blocks: every tensor is a (channels, H*W) tile
# ----------------------------------------------------------------------------
def _conv3x3(inputs, b_ref, rc_ref, side, *, relu):
    """Zero-padded 3x3 conv (+bias, optional ReLU) on a flat (C, side*side) tile.

    inputs: list of (x, w_ref); the conv input is their channel concatenation.
      x     : (Cin_i, HW) float32 value
      w_ref : (9, Cout, Cin_i) bfloat16 ref, tap-major (tap = (di+1)*3 + (dj+1))
    b_ref : (Cout, 1) float32 ref
    rc_ref: (2, HW) int32 ref holding (row, col) of every flat position.
    """
    hw = side * side
    cout = b_ref.shape[0]
    row = rc_ref[0:1, :]                                   # (1, HW) i32
    col = rc_ref[1:2, :]

    # Cast each MXU operand to bf16 ONCE; the 9 taps reuse it.  Cin==1 inputs
    # stay f32 and go through the VPU (K=1 MXU contraction is degenerate).
    prepped = []
    for x, w_ref in inputs:
        if x.shape[0] == 1:
            prepped.append((x.astype(jnp.float32), w_ref, True))
        else:
            prepped.append((x.astype(jnp.bfloat16), w_ref, False))

    acc = jnp.zeros((cout, hw), jnp.float32)
    t = 0
    for di in (-1, 0, 1):
        for dj in (-1, 0, 1):
            shift = di * side + dj
            valid = ((row >= -di) & (row < side - di) &
                     (col >= -dj) & (col < side - dj))     # (1, HW) bool
            for x, w_ref, use_vpu in prepped:
                xs = x if shift == 0 else jnp.roll(x, -shift, axis=1)
                xs = jnp.where(valid, xs, 0)               # zero padding
                wt = w_ref[t]                              # (Cout, Cin) bf16
                if use_vpu:
                    acc = acc + wt.astype(jnp.float32) * xs
                else:
                    acc = acc + jnp.dot(wt, xs,
                                        preferred_element_type=jnp.float32)
            t += 1
    acc = acc + b_ref[...]
    return jnp.maximum(acc, 0.0) if relu else acc


def _maxpool2(x, psel_ref, side):
    """2x2/stride-2 max pool: elementwise max of 4 shifts + one-hot selection."""
    m = jnp.maximum(jnp.maximum(x, jnp.roll(x, -1, axis=1)),
                    jnp.maximum(jnp.roll(x, -side, axis=1),
                                jnp.roll(x, -(side + 1), axis=1)))
    return jnp.dot(m.astype(jnp.bfloat16), psel_ref[...],
                   preferred_element_type=jnp.float32)


def _upsample2(x, usel_ref):
    """2x nearest-neighbour upsample as a one-hot selection matmul."""
    return jnp.dot(x.astype(jnp.bfloat16), usel_ref[...],
                   preferred_element_type=jnp.float32)


def _gather_features(fm, seq, map_size):
    """_extract_features semantics: fm (E, HW) f32, seq (2, L) f32 -> (E, L)."""
    hw = fm.shape[1]
    length = seq.shape[1]
    idx = (((seq + 1.0) * map_size) * 0.5).astype(jnp.int32)   # trunc == .long()
    idx = jnp.clip(idx, 0, map_size - 1)
    flat = idx[0:1, :] * map_size + idx[1:2, :]                # (1, L)
    pos = jax.lax.broadcasted_iota(jnp.int32, (hw, length), 0)
    onehot = (pos == flat).astype(jnp.float32)                 # (HW, L)
    return jnp.dot(fm, onehot, preferred_element_type=jnp.float32,
                   precision=jax.lax.Precision.HIGHEST)


def _unet_feature_map(img_ref, consts, side):
    """Full mini U-Net on one image tile; returns the (E, HW) feature map."""
    (w_e0, b_e0, w_e1, b_e1, w_bt, b_bt,
     w_d1u, w_d1s, b_d1, w_d0u, w_d0s, b_d0, w_hd, b_hd,
     rc_a, rc_b, rc_c, pool_a, pool_b, up_c, up_b) = consts
    s, s2, s4 = side, side // 2, side // 4

    x = img_ref[...].astype(jnp.float32)                          # (Cin, S*S)
    x0 = _conv3x3([(x, w_e0)], b_e0, rc_a, s, relu=True)          # (8,  S*S)
    x1 = _conv3x3([(_maxpool2(x0, pool_a, s), w_e1)],
                  b_e1, rc_b, s2, relu=True)                      # (16, S*S/4)
    x2 = _conv3x3([(_maxpool2(x1, pool_b, s2), w_bt)],
                  b_bt, rc_c, s4, relu=True)                      # (32, S*S/16)
    d1 = _conv3x3([(_upsample2(x2, up_c), w_d1u), (x1, w_d1s)],
                  b_d1, rc_b, s2, relu=True)                      # (16, S*S/4)
    d0 = _conv3x3([(_upsample2(d1, up_b), w_d0u), (x0, w_d0s)],
                  b_d0, rc_a, s, relu=True)                       # (8,  S*S)
    return _conv3x3([(d0, w_hd)], b_hd, rc_a, s, relu=False)      # (E,  S*S)


def _forward_kernel(seq_ref, img_ref, *rest, side):
    *consts, feat_ref = rest
    fm = _unet_feature_map(img_ref, consts, side)
    feat_ref[...] = _gather_features(fm, seq_ref[...], side)


def _encode_kernel(img_ref, *rest, side):
    *consts, fm_ref = rest
    fm_ref[...] = _unet_feature_map(img_ref, consts, side)


def _extract_kernel(seq_ref, fm_ref, out_ref, *, map_size):
    out_ref[...] = _gather_features(fm_ref[...].astype(jnp.float32),
                                    seq_ref[...], map_size)


# ----------------------------------------------------------------------------
# Host-side constants / parameter packing
# ----------------------------------------------------------------------------
def _const_spec(a):
    zeros = (0,) * a.ndim
    return pl.BlockSpec(a.shape, lambda b, _z=zeros: _z)


@functools.lru_cache(maxsize=None)
def _spatial_constants_np(side):
    """(row, col) tables + one-hot pool / upsample selection matrices.

    Pure numpy (host-side) so the lru_cache never holds JAX tracers; jnp
    conversion happens per-call in _spatial_constants.
    """
    def rc(s):
        p = np.arange(s * s, dtype=np.int32)
        return np.stack([p // s, p % s], axis=0).astype(np.int32)

    def pool_sel(s):
        so = s // 2
        sel = np.zeros((s * s, so * so), np.float32)
        q = np.arange(so * so)
        sel[(q // so) * 2 * s + (q % so) * 2, q] = 1.0
        return sel

    def up_sel(s):
        so = 2 * s
        sel = np.zeros((s * s, so * so), np.float32)
        q = np.arange(so * so)
        sel[((q // so) // 2) * s + ((q % so) // 2), q] = 1.0
        return sel

    return dict(rc_a=rc(side), rc_b=rc(side // 2), rc_c=rc(side // 4),
                pool_a=pool_sel(side), pool_b=pool_sel(side // 2),
                up_c=up_sel(side // 4), up_b=up_sel(side // 2))


def _spatial_constants(side):
    c = _spatial_constants_np(side)
    return dict(
        rc_a=jnp.asarray(c["rc_a"]),
        rc_b=jnp.asarray(c["rc_b"]),
        rc_c=jnp.asarray(c["rc_c"]),
        pool_a=jnp.asarray(c["pool_a"]).astype(jnp.bfloat16),
        pool_b=jnp.asarray(c["pool_b"]).astype(jnp.bfloat16),
        up_c=jnp.asarray(c["up_c"]).astype(jnp.bfloat16),
        up_b=jnp.asarray(c["up_b"]).astype(jnp.bfloat16),
    )


def _kernel_params(params):
    """HWIO f32 weights -> tap-major (9, Cout, Cin) bf16; biases -> (Cout,1) f32."""
    def w_t(w):
        _, _, cin, cout = w.shape
        return jnp.transpose(w.reshape(9, cin, cout), (0, 2, 1)).astype(jnp.bfloat16)

    def b_t(b):
        return b.reshape(-1, 1).astype(jnp.float32)

    w_d1, b_d1 = params["dec1"]
    w_d0, b_d0 = params["dec0"]
    return dict(
        w_e0=w_t(params["enc0"][0]), b_e0=b_t(params["enc0"][1]),
        w_e1=w_t(params["enc1"][0]), b_e1=b_t(params["enc1"][1]),
        w_bt=w_t(params["bott"][0]), b_bt=b_t(params["bott"][1]),
        w_d1u=w_t(w_d1[:, :, :BOT_CH, :]), w_d1s=w_t(w_d1[:, :, BOT_CH:, :]),
        b_d1=b_t(b_d1),
        w_d0u=w_t(w_d0[:, :, :DEC_CH[0], :]), w_d0s=w_t(w_d0[:, :, DEC_CH[0]:, :]),
        b_d0=b_t(b_d0),
        w_hd=w_t(params["head"][0]), b_hd=b_t(params["head"][1]),
    )


def _const_inputs(params, side):
    kp = _kernel_params(params)
    cs = _spatial_constants(side)
    return (kp["w_e0"], kp["b_e0"], kp["w_e1"], kp["b_e1"],
            kp["w_bt"], kp["b_bt"],
            kp["w_d1u"], kp["w_d1s"], kp["b_d1"],
            kp["w_d0u"], kp["w_d0s"], kp["b_d0"],
            kp["w_hd"], kp["b_hd"],
            cs["rc_a"], cs["rc_b"], cs["rc_c"],
            cs["pool_a"], cs["pool_b"], cs["up_c"], cs["up_b"])


# ----------------------------------------------------------------------------
# Module-level API (mirrors UNetEncoder)
# ----------------------------------------------------------------------------
def _conv_init(key, cin, cout):
    kw, kb = jax.random.split(key)
    w = jax.random.normal(kw, (3, 3, cin, cout), jnp.float32) * np.sqrt(
        2.0 / (9 * cin))
    b = jax.random.normal(kb, (cout,), jnp.float32) * 0.01
    return w, b


def init_params(key, in_channels, encode_dim):
    keys = jax.random.split(key, 6)
    return {
        "enc0": _conv_init(keys[0], in_channels, ENC_CH[0]),
        "enc1": _conv_init(keys[1], ENC_CH[0], ENC_CH[1]),
        "bott": _conv_init(keys[2], ENC_CH[1], BOT_CH),
        "dec1": _conv_init(keys[3], BOT_CH + ENC_CH[1], DEC_CH[0]),
        "dec0": _conv_init(keys[4], DEC_CH[0] + ENC_CH[0], DEC_CH[1]),
        "head": _conv_init(keys[5], DEC_CH[1], encode_dim),
    }


def encode(params, images):
    """images (B, Cin, H, W) -> feature_maps (B, encode_dim, H, W) (NCHW)."""
    B, c_in, H, W = images.shape
    assert H == W and H % 4 == 0, "Images must be square with side % 4 == 0"
    consts = _const_inputs(params, H)
    E = params["head"][0].shape[-1]
    img_flat = images.reshape(B, c_in, H * W).astype(jnp.float32)
    fm = pl.pallas_call(
        functools.partial(_encode_kernel, side=H),
        out_shape=jax.ShapeDtypeStruct((B, E, H * W), jnp.float32),
        grid=(B,),
        in_specs=[pl.BlockSpec((None, c_in, H * W), lambda b: (b, 0, 0))]
                 + [_const_spec(a) for a in consts],
        out_specs=pl.BlockSpec((None, E, H * W), lambda b: (b, 0, 0)),
        compiler_params=pltpu.CompilerParams(
            dimension_semantics=("parallel",)),
    )(img_flat, *consts)
    return fm.reshape(B, E, H, W)          # NCHW, pure reshape (no transpose)


def extract_features(feature_maps, sequences):
    """feature_maps (B, C, H, W), sequences (B, 2, L) -> features (B, C, L)."""
    B, C, H, W = feature_maps.shape
    L = sequences.shape[-1]
    fm_flat = feature_maps.reshape(B, C, H * W).astype(jnp.float32)
    return pl.pallas_call(
        functools.partial(_extract_kernel, map_size=W),
        out_shape=jax.ShapeDtypeStruct((B, C, L), jnp.float32),
        grid=(B,),
        in_specs=[pl.BlockSpec((None, 2, L), lambda b: (b, 0, 0)),
                  pl.BlockSpec((None, C, H * W), lambda b: (b, 0, 0))],
        out_specs=pl.BlockSpec((None, C, L), lambda b: (b, 0, 0)),
        compiler_params=pltpu.CompilerParams(
            dimension_semantics=("parallel",)),
    )(sequences.astype(jnp.float32), fm_flat)


def unet_encoder_forward(params, sequences, images, feature_maps=None):
    assert sequences.shape[1] == 2, \
        "Sequences must be of shape (batch_size, 2, seq_length)"
    assert images.shape[-2] == images.shape[-1], "Images must be square"
    if feature_maps is not None:
        return extract_features(feature_maps, sequences)

    B, c_in, H, W = images.shape
    assert H % 4 == 0, "Image side must be divisible by 4 (two 2x poolings)"
    L = sequences.shape[-1]
    E = params["head"][0].shape[-1]
    consts = _const_inputs(params, H)
    img_flat = images.reshape(B, c_in, H * W).astype(jnp.float32)
    return pl.pallas_call(
        functools.partial(_forward_kernel, side=H),
        out_shape=jax.ShapeDtypeStruct((B, E, L), jnp.float32),
        grid=(B,),
        in_specs=[pl.BlockSpec((None, 2, L), lambda b: (b, 0, 0)),
                  pl.BlockSpec((None, c_in, H * W), lambda b: (b, 0, 0))]
                 + [_const_spec(a) for a in consts],
        out_specs=pl.BlockSpec((None, E, L), lambda b: (b, 0, 0)),
        compiler_params=pltpu.CompilerParams(
            dimension_semantics=("parallel",)),
    )(sequences.astype(jnp.float32), img_flat, *consts)


# ----------------------------------------------------------------------------
# Pure-JAX f32 reference of the same architecture (testing only)
# ----------------------------------------------------------------------------
def _reference_forward(params, sequences, images):
    x = jnp.transpose(images, (0, 2, 3, 1)).astype(jnp.float32)   # NHWC

    def conv(x, w, b, relu=True):
        y = jax.lax.conv_general_dilated(
            x, w, (1, 1), "SAME",
            dimension_numbers=("NHWC", "HWIO", "NHWC"),
            precision=jax.lax.Precision.HIGHEST) + b
        return jnp.maximum(y, 0.0) if relu else y

    def pool(x):
        B, H, W, C = x.shape
        return x.reshape(B, H // 2, 2, W // 2, 2, C).max(axis=(2, 4))

    def up(x):
        return jnp.repeat(jnp.repeat(x, 2, axis=1), 2, axis=2)

    x0 = conv(x, *params["enc0"])
    x1 = conv(pool(x0), *params["enc1"])
    x2 = conv(pool(x1), *params["bott"])
    d1 = conv(jnp.concatenate([up(x2), x1], axis=-1), *params["dec1"])
    d0 = conv(jnp.concatenate([up(d1), x0], axis=-1), *params["dec0"])
    fm = conv(d0, *params["head"], relu=False)
    fm_nchw = jnp.transpose(fm, (0, 3, 1, 2))                     # (B, E, H, W)

    ms = fm_nchw.shape[-1]
    idx = jnp.clip((((sequences + 1.0) * ms) * 0.5).astype(jnp.int32), 0, ms - 1)
    feats = jnp.stack([fm_nchw[b][:, idx[b, 0], idx[b, 1]]
                       for b in range(fm_nchw.shape[0])])
    return feats, fm_nchw


# ----------------------------------------------------------------------------
if __name__ == "__main__":
    B, C_in, H, L = 2, 1, 16, 8
    encode_dim = 32

    key = jax.random.PRNGKey(0)
    k_seq, k_img, k_par = jax.random.split(key, 3)
    sequences = jax.random.uniform(
        k_seq, (B, 2, L), jnp.float32, minval=-1.0, maxval=1.0)
    images = jax.random.normal(k_img, (B, C_in, H, H), jnp.float32)
    params = init_params(k_par, C_in, encode_dim)

    fwd = jax.jit(unet_encoder_forward)
    features = jax.block_until_ready(fwd(params, sequences, images))
    assert features.shape == (B, encode_dim, L), features.shape

    # Architecture / wiring check vs a pure-JAX f32 reference (tolerance covers
    # the bf16 MXU operands used inside the fused kernel).
    feats_ref, fm_ref = _reference_forward(params, sequences, images)
    feats_ref = jax.block_until_ready(feats_ref)
    np.testing.assert_allclose(np.asarray(features), np.asarray(feats_ref),
                               rtol=5e-2, atol=2e-1)

    # encode() path (NCHW feature maps straight out of the fused Pallas U-Net).
    fm_pallas = jax.block_until_ready(jax.jit(encode)(params, images))
    assert fm_pallas.shape == (B, encode_dim, H, H), fm_pallas.shape
    np.testing.assert_allclose(np.asarray(fm_pallas), np.asarray(fm_ref),
                               rtol=5e-2, atol=2e-1)

    # _extract_features when feature maps are supplied: the gather is realised
    # as an f32 one-hot matmul (HIGHEST precision) and must match a direct
    # gather up to f32-matmul rounding.
    feats_given = jax.block_until_ready(
        unet_encoder_forward(params, sequences, images, feature_maps=fm_ref))
    idx = np.clip((((np.asarray(sequences) + 1.0) * H) * 0.5).astype(np.int64),
                  0, H - 1)
    ref_gather = np.stack([np.asarray(fm_ref)[b][:, idx[b, 0], idx[b, 1]]
                           for b in range(B)])
    np.testing.assert_allclose(np.asarray(feats_given), ref_gather,
                               rtol=1e-3, atol=1e-3)

    print("KERNEL_OK")
</pallas_src>

<mosaic_0001>
module attributes {stable_mosaic.version = 11 : i64} {
  func.func @_forward_kernel(%arg0: i32, %arg1: memref<1x2x8xf32, #tpu.memory_space<vmem>>, %arg2: memref<1x1x256xf32, #tpu.memory_space<vmem>>, %arg3: memref<9x8x1xbf16, #tpu.memory_space<vmem>>, %arg4: memref<8x1xf32, #tpu.memory_space<vmem>>, %arg5: memref<9x16x8xbf16, #tpu.memory_space<vmem>>, %arg6: memref<16x1xf32, #tpu.memory_space<vmem>>, %arg7: memref<9x32x16xbf16, #tpu.memory_space<vmem>>, %arg8: memref<32x1xf32, #tpu.memory_space<vmem>>, %arg9: memref<9x16x32xbf16, #tpu.memory_space<vmem>>, %arg10: memref<9x16x16xbf16, #tpu.memory_space<vmem>>, %arg11: memref<16x1xf32, #tpu.memory_space<vmem>>, %arg12: memref<9x8x16xbf16, #tpu.memory_space<vmem>>, %arg13: memref<9x8x8xbf16, #tpu.memory_space<vmem>>, %arg14: memref<8x1xf32, #tpu.memory_space<vmem>>, %arg15: memref<9x32x8xbf16, #tpu.memory_space<vmem>>, %arg16: memref<32x1xf32, #tpu.memory_space<vmem>>, %arg17: memref<2x256xi32, #tpu.memory_space<vmem>>, %arg18: memref<2x64xi32, #tpu.memory_space<vmem>>, %arg19: memref<2x16xi32, #tpu.memory_space<vmem>>, %arg20: memref<256x64xbf16, #tpu.memory_space<vmem>>, %arg21: memref<64x16xbf16, #tpu.memory_space<vmem>>, %arg22: memref<16x64xbf16, #tpu.memory_space<vmem>>, %arg23: memref<64x256xbf16, #tpu.memory_space<vmem>>, %arg24: memref<1x32x8xf32, #tpu.memory_space<vmem>>) attributes {dimension_semantics = [#tpu.dimension_semantics<parallel>], iteration_bounds = array<i64: 2>, scalar_prefetch = 0 : i64, scratch_operands = 0 : i64, tpu.core_type = #tpu.core_type<tc>, window_params = [{transform_indices = @transform_0, window_bounds = array<i64: 1, 2, 8>}, {transform_indices = @transform_1, window_bounds = array<i64: 1, 1, 256>}, {pipeline_mode = #tpu.pipeline_mode<synchronous>, transform_indices = @transform_2, window_bounds = array<i64: 9, 8, 1>}, {pipeline_mode = #tpu.pipeline_mode<synchronous>, transform_indices = @transform_3, window_bounds = array<i64: 8, 1>}, {pipeline_mode = #tpu.pipeline_mode<synchronous>, transform_indices = @transform_4, window_bounds = array<i64: 9, 16, 8>}, {pipeline_mode = #tpu.pipeline_mode<synchronous>, transform_indices = @transform_5, window_bounds = array<i64: 16, 1>}, {pipeline_mode = #tpu.pipeline_mode<synchronous>, transform_indices = @transform_6, window_bounds = array<i64: 9, 32, 16>}, {pipeline_mode = #tpu.pipeline_mode<synchronous>, transform_indices = @transform_7, window_bounds = array<i64: 32, 1>}, {pipeline_mode = #tpu.pipeline_mode<synchronous>, transform_indices = @transform_8, window_bounds = array<i64: 9, 16, 32>}, {pipeline_mode = #tpu.pipeline_mode<synchronous>, transform_indices = @transform_9, window_bounds = array<i64: 9, 16, 16>}, {pipeline_mode = #tpu.pipeline_mode<synchronous>, transform_indices = @transform_10, window_bounds = array<i64: 16, 1>}, {pipeline_mode = #tpu.pipeline_mode<synchronous>, transform_indices = @transform_11, window_bounds = array<i64: 9, 8, 16>}, {pipeline_mode = #tpu.pipeline_mode<synchronous>, transform_indices = @transform_12, window_bounds = array<i64: 9, 8, 8>}, {pipeline_mode = #tpu.pipeline_mode<synchronous>, transform_indices = @transform_13, window_bounds = array<i64: 8, 1>}, {pipeline_mode = #tpu.pipeline_mode<synchronous>, transform_indices = @transform_14, window_bounds = array<i64: 9, 32, 8>}, {pipeline_mode = #tpu.pipeline_mode<synchronous>, transform_indices = @transform_15, window_bounds = array<i64: 32, 1>}, {pipeline_mode = #tpu.pipeline_mode<synchronous>, transform_indices = @transform_16, window_bounds = array<i64: 2, 256>}, {pipeline_mode = #tpu.pipeline_mode<synchronous>, transform_indices = @transform_17, window_bounds = array<i64: 2, 64>}, {pipeline_mode = #tpu.pipeline_mode<synchronous>, transform_indices = @transform_18, window_bounds = array<i64: 2, 16>}, {pipeline_mode = #tpu.pipeline_mode<synchronous>, transform_indices = @transform_19, window_bounds = array<i64: 256, 64>}, {pipeline_mode = #tpu.pipeline_mode<synchronous>, transform_indices = @transform_20, window_bounds = array<i64: 64, 16>}, {pipeline_mode = #tpu.pipeline_mode<synchronous>, transform_indices = @transform_21, window_bounds = array<i64: 16, 64>}, {pipeline_mode = #tpu.pipeline_mode<synchronous>, transform_indices = @transform_22, window_bounds = array<i64: 64, 256>}, {transform_indices = @transform_23, window_bounds = array<i64: 1, 32, 8>}]} {
    %c0 = arith.constant 0 : index
    %c0_0 = arith.constant 0 : index
    %c0_1 = arith.constant 0 : index
    %0 = vector.load %arg2[%c0, %c0_0, %c0_1] : memref<1x1x256xf32, #tpu.memory_space<vmem>>, vector<1x1x256xf32>
    %1 = vector.shape_cast %0 : vector<1x1x256xf32> to vector<1x256xf32>
    %c0_2 = arith.constant 0 : index
    %c0_3 = arith.constant 0 : index
    %2 = vector.load %arg17[%c0_2, %c0_3] : memref<2x256xi32, #tpu.memory_space<vmem>>, vector<1x256xi32>
    %c1 = arith.constant 1 : index
    %c0_4 = arith.constant 0 : index
    %3 = vector.load %arg17[%c1, %c0_4] : memref<2x256xi32, #tpu.memory_space<vmem>>, vector<1x256xi32>
    %cst = arith.constant 0.000000e+00 : f32
    %4 = vector.broadcast %cst : f32 to vector<8x256xf32>
    %c1_i32 = arith.constant 1 : i32
    %5 = vector.broadcast %c1_i32 : i32 to vector<1x256xi32>
    %6 = arith.cmpi sge, %2, %5 : vector<1x256xi32>
    %c17_i32 = arith.constant 17 : i32
    %7 = vector.broadcast %c17_i32 : i32 to vector<1x256xi32>
    %8 = arith.cmpi slt, %2, %7 : vector<1x256xi32>
    %9 = arith.andi %6, %8 : vector<1x256xi1>
    %c1_i32_5 = arith.constant 1 : i32
    %10 = vector.broadcast %c1_i32_5 : i32 to vector<1x256xi32>
    %11 = arith.cmpi sge, %3, %10 : vector<1x256xi32>
    %12 = arith.andi %9, %11 : vector<1x256xi1>
    %c17_i32_6 = arith.constant 17 : i32
    %13 = vector.broadcast %c17_i32_6 : i32 to vector<1x256xi32>
    %14 = arith.cmpi slt, %3, %13 : vector<1x256xi32>
    %15 = arith.andi %12, %14 : vector<1x256xi1>
    %16 = vector.extract_strided_slice %1 {offsets = [0, 239], sizes = [1, 17], strides = [1, 1]} : vector<1x256xf32> to vector<1x17xf32>
    %17 = vector.extract_strided_slice %1 {offsets = [0, 0], sizes = [1, 239], strides = [1, 1]} : vector<1x256xf32> to vector<1x239xf32>
    %18 = tpu.concatenate %16, %17 in 1 : vector<1x17xf32>, vector<1x239xf32> -> vector<1x256xf32>
    %c0_i32 = arith.constant 0 : i32
    %19 = arith.sitofp %c0_i32 : i32 to f32
    %20 = vector.broadcast %19 : f32 to vector<1x256xf32>
    %21 = arith.select %15, %18, %20 : vector<1x256xi1>, vector<1x256xf32>
    %c0_7 = arith.constant 0 : index
    %c0_8 = arith.constant 0 : index
    %c0_9 = arith.constant 0 : index
    %22 = vector.load %arg3[%c0_7, %c0_8, %c0_9] : memref<9x8x1xbf16, #tpu.memory_space<vmem>>, vector<1x8x1xbf16>
    %23 = vector.shape_cast %22 : vector<1x8x1xbf16> to vector<8x1xbf16>
    %24 = arith.extf %23 : vector<8x1xbf16> to vector<8x1xf32>
    %25 = vector.broadcast %24 : vector<8x1xf32> to vector<8x256xf32>
    %26 = vector.broadcast %21 : vector<1x256xf32> to vector<8x256xf32>
    %27 = arith.mulf %25, %26 : vector<8x256xf32>
    %28 = arith.addf %4, %27 : vector<8x256xf32>
    %c1_i32_10 = arith.constant 1 : i32
    %29 = vector.broadcast %c1_i32_10 : i32 to vector<1x256xi32>
    %30 = arith.cmpi sge, %2, %29 : vector<1x256xi32>
    %c17_i32_11 = arith.constant 17 : i32
    %31 = vector.broadcast %c17_i32_11 : i32 to vector<1x256xi32>
    %32 = arith.cmpi slt, %2, %31 : vector<1x256xi32>
    %33 = arith.andi %30, %32 : vector<1x256xi1>
    %c0_i32_12 = arith.constant 0 : i32
    %34 = vector.broadcast %c0_i32_12 : i32 to vector<1x256xi32>
    %35 = arith.cmpi sge, %3, %34 : vector<1x256xi32>
    %36 = arith.andi %33, %35 : vector<1x256xi1>
    %c16_i32 = arith.constant 16 : i32
    %37 = vector.broadcast %c16_i32 : i32 to vector<1x256xi32>
    %38 = arith.cmpi slt, %3, %37 : vector<1x256xi32>
    %39 = arith.andi %36, %38 : vector<1x256xi1>
    %40 = vector.extract_strided_slice %1 {offsets = [0, 240], sizes = [1, 16], strides = [1, 1]} : vector<1x256xf32> to vector<1x16xf32>
    %41 = vector.extract_strided_slice %1 {offsets = [0, 0], sizes = [1, 240], strides = [1, 1]} : vector<1x256xf32> to vector<1x240xf32>
    %42 = tpu.concatenate %40, %41 in 1 : vector<1x16xf32>, vector<1x240xf32> -> vector<1x256xf32>
    %c0_i32_13 = arith.constant 0 : i32
    %43 = arith.sitofp %c0_i32_13 : i32 to f32
    %44 = vector.broadcast %43 : f32 to vector<1x256xf32>
    %45 = arith.select %39, %42, %44 : vector<1x256xi1>, vector<1x256xf32>
    %c1_14 = arith.constant 1 : index
    %c0_15 = arith.constant 0 : index
    %c0_16 = arith.constant 0 : index
    %46 = vector.load %arg3[%c1_14, %c0_15, %c0_16] : memref<9x8x1xbf16, #tpu.memory_space<vmem>>, vector<1x8x1xbf16>
    %47 = vector.shape_cast %46 : vector<1x8x1xbf16> to vector<8x1xbf16>
    %48 = arith.extf %47 : vector<8x1xbf16> to vector<8x1xf32>
    %49 = vector.broadcast %48 : vector<8x1xf32> to vector<8x256xf32>
    %50 = vector.broadcast %45 : vector<1x256xf32> to vector<8x256xf32>
    %51 = arith.mulf %49, %50 : vector<8x256xf32>
    %52 = arith.addf %28, %51 : vector<8x256xf32>
    %c1_i32_17 = arith.constant 1 : i32
    %53 = vector.broadcast %c1_i32_17 : i32 to vector<1x256xi32>
    %54 = arith.cmpi sge, %2, %53 : vector<1x256xi32>
    %c17_i32_18 = arith.constant 17 : i32
    %55 = vector.broadcast %c17_i32_18 : i32 to vector<1x256xi32>
    %56 = arith.cmpi slt, %2, %55 : vector<1x256xi32>
    %57 = arith.andi %54, %56 : vector<1x256xi1>
    %c-1_i32 = arith.constant -1 : i32
    %58 = vector.broadcast %c-1_i32 : i32 to vector<1x256xi32>
    %59 = arith.cmpi sge, %3, %58 : vector<1x256xi32>
    %60 = arith.andi %57, %59 : vector<1x256xi1>
    %c15_i32 = arith.constant 15 : i32
    %61 = vector.broadcast %c15_i32 : i32 to vector<1x256xi32>
    %62 = arith.cmpi slt, %3, %61 : vector<1x256xi32>
    %63 = arith.andi %60, %62 : vector<1x256xi1>
    %64 = vector.extract_strided_slice %1 {offsets = [0, 241], sizes = [1, 15], strides = [1, 1]} : vector<1x256xf32> to vector<1x15xf32>
    %65 = vector.extract_strided_slice %1 {offsets = [0, 0], sizes = [1, 241], strides = [1, 1]} : vector<1x256xf32> to vector<1x241xf32>
    %66 = tpu.concatenate %64, %65 in 1 : vector<1x15xf32>, vector<1x241xf32> -> vector<1x256xf32>
    %c0_i32_19 = arith.constant 0 : i32
    %67 = arith.sitofp %c0_i32_19 : i32 to f32
    %68 = vector.broadcast %67 : f32 to vector<1x256xf32>
    %69 = arith.select %63, %66, %68 : vector<1x256xi1>, vector<1x256xf32>
    %c2 = arith.constant 2 : index
    %c0_20 = arith.constant 0 : index
    %c0_21 = arith.constant 0 : index
    %70 = vector.load %arg3[%c2, %c0_20, %c0_21] : memref<9x8x1xbf16, #tpu.memory_space<vmem>>, vector<1x8x1xbf16>
    %71 = vector.shape_cast %70 : vector<1x8x1xbf16> to vector<8x1xbf16>
    %72 = arith.extf %71 : vector<8x1xbf16> to vector<8x1xf32>
    %73 = vector.broadcast %72 : vector<8x1xf32> to vector<8x256xf32>
    %74 = vector.broadcast %69 : vector<1x256xf32> to vector<8x256xf32>
    %75 = arith.mulf %73, %74 : vector<8x256xf32>
    %76 = arith.addf %52, %75 : vector<8x256xf32>
    %c0_i32_22 = arith.constant 0 : i32
    %77 = vector.broadcast %c0_i32_22 : i32 to vector<1x256xi32>
    %78 = arith.cmpi sge, %2, %77 : vector<1x256xi32>
    %c16_i32_23 = arith.constant 16 : i32
    %79 = vector.broadcast %c16_i32_23 : i32 to vector<1x256xi32>
    %80 = arith.cmpi slt, %2, %79 : vector<1x256xi32>
    %81 = arith.andi %78, %80 : vector<1x256xi1>
    %c1_i32_24 = arith.constant 1 : i32
    %82 = vector.broadcast %c1_i32_24 : i32 to vector<1x256xi32>
    %83 = arith.cmpi sge, %3, %82 : vector<1x256xi32>
    %84 = arith.andi %81, %83 : vector<1x256xi1>
    %c17_i32_25 = arith.constant 17 : i32
    %85 = vector.broadcast %c17_i32_25 : i32 to vector<1x256xi32>
    %86 = arith.cmpi slt, %3, %85 : vector<1x256xi32>
    %87 = arith.andi %84, %86 : vector<1x256xi1>
    %88 = vector.extract_strided_slice %1 {offsets = [0, 255], sizes = [1, 1], strides = [1, 1]} : vector<1x256xf32> to vector<1x1xf32>
    %89 = vector.extract_strided_slice %1 {offsets = [0, 0], sizes = [1, 255], strides = [1, 1]} : vector<1x256xf32> to vector<1x255xf32>
    %90 = tpu.concatenate %88, %89 in 1 : vector<1x1xf32>, vector<1x255xf32> -> vector<1x256xf32>
    %c0_i32_26 = arith.constant 0 : i32
    %91 = arith.sitofp %c0_i32_26 : i32 to f32
    %92 = vector.broadcast %91 : f32 to vector<1x256xf32>
    %93 = arith.select %87, %90, %92 : vector<1x256xi1>, vector<1x256xf32>
    %c3 = arith.constant 3 : index
    %c0_27 = arith.constant 0 : index
    %c0_28 = arith.constant 0 : index
    %94 = vector.load %arg3[%c3, %c0_27, %c0_28] : memref<9x8x1xbf16, #tpu.memory_space<vmem>>, vector<1x8x1xbf16>
    %95 = vector.shape_cast %94 : vector<1x8x1xbf16> to vector<8x1xbf16>
    %96 = arith.extf %95 : vector<8x1xbf16> to vector<8x1xf32>
    %97 = vector.broadcast %96 : vector<8x1xf32> to vector<8x256xf32>
    %98 = vector.broadcast %93 : vector<1x256xf32> to vector<8x256xf32>
    %99 = arith.mulf %97, %98 : vector<8x256xf32>
    %100 = arith.addf %76, %99 : vector<8x256xf32>
    %c0_i32_29 = arith.constant 0 : i32
    %101 = vector.broadcast %c0_i32_29 : i32 to vector<1x256xi32>
    %102 = arith.cmpi sge, %2, %101 : vector<1x256xi32>
    %c16_i32_30 = arith.constant 16 : i32
    %103 = vector.broadcast %c16_i32_30 : i32 to vector<1x256xi32>
    %104 = arith.cmpi slt, %2, %103 : vector<1x256xi32>
    %105 = arith.andi %102, %104 : vector<1x256xi1>
    %c0_i32_31 = arith.constant 0 : i32
    %106 = vector.broadcast %c0_i32_31 : i32 to vector<1x256xi32>
    %107 = arith.cmpi sge, %3, %106 : vector<1x256xi32>
    %108 = arith.andi %105, %107 : vector<1x256xi1>
    %c16_i32_32 = arith.constant 16 : i32
    %109 = vector.broadcast %c16_i32_32 : i32 to vector<1x256xi32>
    %110 = arith.cmpi slt, %3, %109 : vector<1x256xi32>
    %111 = arith.andi %108, %110 : vector<1x256xi1>
    %c0_i32_33 = arith.constant 0 : i32
    %112 = arith.sitofp %c0_i32_33 : i32 to f32
    %113 = vector.broadcast %112 : f32 to vector<1x256xf32>
    %114 = arith.select %111, %1, %113 : vector<1x256xi1>, vector<1x256xf32>
    %c4 = arith.constant 4 : index
    %c0_34 = arith.constant 0 : index
    %c0_35 = arith.constant 0 : index
    %115 = vector.load %arg3[%c4, %c0_34, %c0_35] : memref<9x8x1xbf16, #tpu.memory_space<vmem>>, vector<1x8x1xbf16>
    %116 = vector.shape_cast %115 : vector<1x8x1xbf16> to vector<8x1xbf16>
    %117 = arith.extf %116 : vector<8x1xbf16> to vector<8x1xf32>
    %118 = vector.broadcast %117 : vector<8x1xf32> to vector<8x256xf32>
    %119 = vector.broadcast %114 : vector<1x256xf32> to vector<8x256xf32>
    %120 = arith.mulf %118, %119 : vector<8x256xf32>
    %121 = arith.addf %100, %120 : vector<8x256xf32>
    %c0_i32_36 = arith.constant 0 : i32
    %122 = vector.broadcast %c0_i32_36 : i32 to vector<1x256xi32>
    %123 = arith.cmpi sge, %2, %122 : vector<1x256xi32>
    %c16_i32_37 = arith.constant 16 : i32
    %124 = vector.broadcast %c16_i32_37 : i32 to vector<1x256xi32>
    %125 = arith.cmpi slt, %2, %124 : vector<1x256xi32>
    %126 = arith.andi %123, %125 : vector<1x256xi1>
    %c-1_i32_38 = arith.constant -1 : i32
    %127 = vector.broadcast %c-1_i32_38 : i32 to vector<1x256xi32>
    %128 = arith.cmpi sge, %3, %127 : vector<1x256xi32>
    %129 = arith.andi %126, %128 : vector<1x256xi1>
    %c15_i32_39 = arith.constant 15 : i32
    %130 = vector.broadcast %c15_i32_39 : i32 to vector<1x256xi32>
    %131 = arith.cmpi slt, %3, %130 : vector<1x256xi32>
    %132 = arith.andi %129, %131 : vector<1x256xi1>
    %133 = vector.extract_strided_slice %1 {offsets = [0, 1], sizes = [1, 255], strides = [1, 1]} : vector<1x256xf32> to vector<1x255xf32>
    %134 = vector.extract_strided_slice %1 {offsets = [0, 0], sizes = [1, 1], strides = [1, 1]} : vector<1x256xf32> to vector<1x1xf32>
    %135 = tpu.concatenate %133, %134 in 1 : vector<1x255xf32>, vector<1x1xf32> -> vector<1x256xf32>
    %c0_i32_40 = arith.constant 0 : i32
    %136 = arith.sitofp %c0_i32_40 : i32 to f32
    %137 = vector.broadcast %136 : f32 to vector<1x256xf32>
    %138 = arith.select %132, %135, %137 : vector<1x256xi1>, vector<1x256xf32>
    %c5 = arith.constant 5 : index
    %c0_41 = arith.constant 0 : index
    %c0_42 = arith.constant 0 : index
    %139 = vector.load %arg3[%c5, %c0_41, %c0_42] : memref<9x8x1xbf16, #tpu.memory_space<vmem>>, vector<1x8x1xbf16>
    %140 = vector.shape_cast %139 : vector<1x8x1xbf16> to vector<8x1xbf16>
    %141 = arith.extf %140 : vector<8x1xbf16> to vector<8x1xf32>
    %142 = vector.broadcast %141 : vector<8x1xf32> to vector<8x256xf32>
    %143 = vector.broadcast %138 : vector<1x256xf32> to vector<8x256xf32>
    %144 = arith.mulf %142, %143 : vector<8x256xf32>
    %145 = arith.addf %121, %144 : vector<8x256xf32>
    %c-1_i32_43 = arith.constant -1 : i32
    %146 = vector.broadcast %c-1_i32_43 : i32 to vector<1x256xi32>
    %147 = arith.cmpi sge, %2, %146 : vector<1x256xi32>
    %c15_i32_44 = arith.constant 15 : i32
    %148 = vector.broadcast %c15_i32_44 : i32 to vector<1x256xi32>
    %149 = arith.cmpi slt, %2, %148 : vector<1x256xi32>
    %150 = arith.andi %147, %149 : vector<1x256xi1>
    %c1_i32_45 = arith.constant 1 : i32
    %151 = vector.broadcast %c1_i32_45 : i32 to vector<1x256xi32>
    %152 = arith.cmpi sge, %3, %151 : vector<1x256xi32>
    %153 = arith.andi %150, %152 : vector<1x256xi1>
    %c17_i32_46 = arith.constant 17 : i32
    %154 = vector.broadcast %c17_i32_46 : i32 to vector<1x256xi32>
    %155 = arith.cmpi slt, %3, %154 : vector<1x256xi32>
    %156 = arith.andi %153, %155 : vector<1x256xi1>
    %157 = vector.extract_strided_slice %1 {offsets = [0, 15], sizes = [1, 241], strides = [1, 1]} : vector<1x256xf32> to vector<1x241xf32>
    %158 = vector.extract_strided_slice %1 {offsets = [0, 0], sizes = [1, 15], strides = [1, 1]} : vector<1x256xf32> to vector<1x15xf32>
    %159 = tpu.concatenate %157, %158 in 1 : vector<1x241xf32>, vector<1x15xf32> -> vector<1x256xf32>
    %c0_i32_47 = arith.constant 0 : i32
    %160 = arith.sitofp %c0_i32_47 : i32 to f32
    %161 = vector.broadcast %160 : f32 to vector<1x256xf32>
    %162 = arith.select %156, %159, %161 : vector<1x256xi1>, vector<1x256xf32>
    %c6 = arith.constant 6 : index
    %c0_48 = arith.constant 0 : index
    %c0_49 = arith.constant 0 : index
    %163 = vector.load %arg3[%c6, %c0_48, %c0_49] : memref<9x8x1xbf16, #tpu.memory_space<vmem>>, vector<1x8x1xbf16>
    %164 = vector.shape_cast %163 : vector<1x8x1xbf16> to vector<8x1xbf16>
    %165 = arith.extf %164 : vector<8x1xbf16> to vector<8x1xf32>
    %166 = vector.broadcast %165 : vector<8x1xf32> to vector<8x256xf32>
    %167 = vector.broadcast %162 : vector<1x256xf32> to vector<8x256xf32>
    %168 = arith.mulf %166, %167 : vector<8x256xf32>
    %169 = arith.addf %145, %168 : vector<8x256xf32>
    %c-1_i32_50 = arith.constant -1 : i32
    %170 = vector.broadcast %c-1_i32_50 : i32 to vector<1x256xi32>
    %171 = arith.cmpi sge, %2, %170 : vector<1x256xi32>
    %c15_i32_51 = arith.constant 15 : i32
    %172 = vector.broadcast %c15_i32_51 : i32 to vector<1x256xi32>
    %173 = arith.cmpi slt, %2, %172 : vector<1x256xi32>
    %174 = arith.andi %171, %173 : vector<1x256xi1>
    %c0_i32_52 = arith.constant 0 : i32
    %175 = vector.broadcast %c0_i32_52 : i32 to vector<1x256xi32>
    %176 = arith.cmpi sge, %3, %175 : vector<1x256xi32>
    %177 = arith.andi %174, %176 : vector<1x256xi1>
    %c16_i32_53 = arith.constant 16 : i32
    %178 = vector.broadcast %c16_i32_53 : i32 to vector<1x256xi32>
    %179 = arith.cmpi slt, %3, %178 : vector<1x256xi32>
    %180 = arith.andi %177, %179 : vector<1x256xi1>
    %181 = vector.extract_strided_slice %1 {offsets = [0, 16], sizes = [1, 240], strides = [1, 1]} : vector<1x256xf32> to vector<1x240xf32>
    %182 = vector.extract_strided_slice %1 {offsets = [0, 0], sizes = [1, 16], strides = [1, 1]} : vector<1x256xf32> to vector<1x16xf32>
    %183 = tpu.concatenate %181, %182 in 1 : vector<1x240xf32>, vector<1x16xf32> -> vector<1x256xf32>
    %c0_i32_54 = arith.constant 0 : i32
    %184 = arith.sitofp %c0_i32_54 : i32 to f32
    %185 = vector.broadcast %184 : f32 to vector<1x256xf32>
    %186 = arith.select %180, %183, %185 : vector<1x256xi1>, vector<1x256xf32>
    %c7 = arith.constant 7 : index
    %c0_55 = arith.constant 0 : index
    %c0_56 = arith.constant 0 : index
    %187 = vector.load %arg3[%c7, %c0_55, %c0_56] : memref<9x8x1xbf16, #tpu.memory_space<vmem>>, vector<1x8x1xbf16>
    %188 = vector.shape_cast %187 : vector<1x8x1xbf16> to vector<8x1xbf16>
    %189 = arith.extf %188 : vector<8x1xbf16> to vector<8x1xf32>
    %190 = vector.broadcast %189 : vector<8x1xf32> to vector<8x256xf32>
    %191 = vector.broadcast %186 : vector<1x256xf32> to vector<8x256xf32>
    %192 = arith.mulf %190, %191 : vector<8x256xf32>
    %193 = arith.addf %169, %192 : vector<8x256xf32>
    %c-1_i32_57 = arith.constant -1 : i32
    %194 = vector.broadcast %c-1_i32_57 : i32 to vector<1x256xi32>
    %195 = arith.cmpi sge, %2, %194 : vector<1x256xi32>
    %c15_i32_58 = arith.constant 15 : i32
    %196 = vector.broadcast %c15_i32_58 : i32 to vector<1x256xi32>
    %197 = arith.cmpi slt, %2, %196 : vector<1x256xi32>
    %198 = arith.andi %195, %197 : vector<1x256xi1>
    %c-1_i32_59 = arith.constant -1 : i32
    %199 = vector.broadcast %c-1_i32_59 : i32 to vector<1x256xi32>
    %200 = arith.cmpi sge, %3, %199 : vector<1x256xi32>
    %201 = arith.andi %198, %200 : vector<1x256xi1>
    %c15_i32_60 = arith.constant 15 : i32
    %202 = vector.broadcast %c15_i32_60 : i32 to vector<1x256xi32>
    %203 = arith.cmpi slt, %3, %202 : vector<1x256xi32>
    %204 = arith.andi %201, %203 : vector<1x256xi1>
    %205 = vector.extract_strided_slice %1 {offsets = [0, 17], sizes = [1, 239], strides = [1, 1]} : vector<1x256xf32> to vector<1x239xf32>
    %206 = vector.extract_strided_slice %1 {offsets = [0, 0], sizes = [1, 17], strides = [1, 1]} : vector<1x256xf32> to vector<1x17xf32>
    %207 = tpu.concatenate %205, %206 in 1 : vector<1x239xf32>, vector<1x17xf32> -> vector<1x256xf32>
    %c0_i32_61 = arith.constant 0 : i32
    %208 = arith.sitofp %c0_i32_61 : i32 to f32
    %209 = vector.broadcast %208 : f32 to vector<1x256xf32>
    %210 = arith.select %204, %207, %209 : vector<1x256xi1>, vector<1x256xf32>
    %c8 = arith.constant 8 : index
    %c0_62 = arith.constant 0 : index
    %c0_63 = arith.constant 0 : index
    %211 = vector.load %arg3[%c8, %c0_62, %c0_63] : memref<9x8x1xbf16, #tpu.memory_space<vmem>>, vector<1x8x1xbf16>
    %212 = vector.shape_cast %211 : vector<1x8x1xbf16> to vector<8x1xbf16>
    %213 = arith.extf %212 : vector<8x1xbf16> to vector<8x1xf32>
    %214 = vector.broadcast %213 : vector<8x1xf32> to vector<8x256xf32>
    %215 = vector.broadcast %210 : vector<1x256xf32> to vector<8x256xf32>
    %216 = arith.mulf %214, %215 : vector<8x256xf32>
    %217 = arith.addf %193, %216 : vector<8x256xf32>
    %c0_64 = arith.constant 0 : index
    %c0_65 = arith.constant 0 : index
    %218 = vector.load %arg4[%c0_64, %c0_65] : memref<8x1xf32, #tpu.memory_space<vmem>>, vector<8x1xf32>
    %219 = vector.broadcast %218 : vector<8x1xf32> to vector<8x256xf32>
    %220 = arith.addf %217, %219 : vector<8x256xf32>
    %cst_66 = arith.constant 0.000000e+00 : f32
    %221 = vector.broadcast %cst_66 : f32 to vector<8x256xf32>
    %222 = arith.maximumf %220, %221 : vector<8x256xf32>
    %223 = vector.extract_strided_slice %222 {offsets = [0, 1], sizes = [8, 255], strides = [1, 1]} : vector<8x256xf32> to vector<8x255xf32>
    %224 = vector.extract_strided_slice %222 {offsets = [0, 0], sizes = [8, 1], strides = [1, 1]} : vector<8x256xf32> to vector<8x1xf32>
    %225 = tpu.concatenate %223, %224 in 1 : vector<8x255xf32>, vector<8x1xf32> -> vector<8x256xf32>
    %226 = arith.maximumf %222, %225 : vector<8x256xf32>
    %227 = vector.extract_strided_slice %222 {offsets = [0, 16], sizes = [8, 240], strides = [1, 1]} : vector<8x256xf32> to vector<8x240xf32>
    %228 = vector.extract_strided_slice %222 {offsets = [0, 0], sizes = [8, 16], strides = [1, 1]} : vector<8x256xf32> to vector<8x16xf32>
    %229 = tpu.concatenate %227, %228 in 1 : vector<8x240xf32>, vector<8x16xf32> -> vector<8x256xf32>
    %230 = vector.extract_strided_slice %222 {offsets = [0, 17], sizes = [8, 239], strides = [1, 1]} : vector<8x256xf32> to vector<8x239xf32>
    %231 = vector.extract_strided_slice %222 {offsets = [0, 0], sizes = [8, 17], strides = [1, 1]} : vector<8x256xf32> to vector<8x17xf32>
    %232 = tpu.concatenate %230, %231 in 1 : vector<8x239xf32>, vector<8x17xf32> -> vector<8x256xf32>
    %233 = arith.maximumf %229, %232 : vector<8x256xf32>
    %234 = arith.maximumf %226, %233 : vector<8x256xf32>
    %235 = arith.truncf %234 : vector<8x256xf32> to vector<8x256xbf16>
    %c0_67 = arith.constant 0 : index
    %c0_68 = arith.constant 0 : index
    %236 = vector.load %arg20[%c0_67, %c0_68] : memref<256x64xbf16, #tpu.memory_space<vmem>>, vector<256x64xbf16>
    %cst_69 = arith.constant dense<0.000000e+00> : vector<8x64xf32>
    %237 = tpu.matmul %235, %236, %cst_69 {dimension_numbers = #tpu.dot_dimension_numbers<[1], [0], [0], [1], [0, 0, 1, 1], [], []>} : vector<8x256xbf16>, vector<256x64xbf16>, vector<8x64xf32> -> vector<8x64xf32>
    %c0_70 = arith.constant 0 : index
    %c0_71 = arith.constant 0 : index
    %238 = vector.load %arg18[%c0_70, %c0_71] : memref<2x64xi32, #tpu.memory_space<vmem>>, vector<1x64xi32>
    %c1_72 = arith.constant 1 : index
    %c0_73 = arith.constant 0 : index
    %239 = vector.load %arg18[%c1_72, %c0_73] : memref<2x64xi32, #tpu.memory_space<vmem>>, vector<1x64xi32>
    %240 = arith.truncf %237 : vector<8x64xf32> to vector<8x64xbf16>
    %cst_74 = arith.constant 0.000000e+00 : f32
    %241 = vector.broadcast %cst_74 : f32 to vector<16x64xf32>
    %c1_i32_75 = arith.constant 1 : i32
    %242 = vector.broadcast %c1_i32_75 : i32 to vector<1x64xi32>
    %243 = arith.cmpi sge, %238, %242 : vector<1x64xi32>
    %c9_i32 = arith.constant 9 : i32
    %244 = vector.broadcast %c9_i32 : i32 to vector<1x64xi32>
    %245 = arith.cmpi slt, %238, %244 : vector<1x64xi32>
    %246 = arith.andi %243, %245 : vector<1x64xi1>
    %c1_i32_76 = arith.constant 1 : i32
    %247 = vector.broadcast %c1_i32_76 : i32 to vector<1x64xi32>
    %248 = arith.cmpi sge, %239, %247 : vector<1x64xi32>
    %249 = arith.andi %246, %248 : vector<1x64xi1>
    %c9_i32_77 = arith.constant 9 : i32
    %250 = vector.broadcast %c9_i32_77 : i32 to vector<1x64xi32>
    %251 = arith.cmpi slt, %239, %250 : vector<1x64xi32>
    %252 = arith.andi %249, %251 : vector<1x64xi1>
    %253 = vector.extract_strided_slice %240 {offsets = [0, 55], sizes = [8, 9], strides = [1, 1]} : vector<8x64xbf16> to vector<8x9xbf16>
    %254 = vector.extract_strided_slice %240 {offsets = [0, 0], sizes = [8, 55], strides = [1, 1]} : vector<8x64xbf16> to vector<8x55xbf16>
    %255 = tpu.concatenate %253, %254 in 1 : vector<8x9xbf16>, vector<8x55xbf16> -> vector<8x64xbf16>
    %c0_i32_78 = arith.constant 0 : i32
    %256 = arith.sitofp %c0_i32_78 : i32 to bf16
    %257 = vector.shape_cast %252 : vector<1x64xi1> to vector<1x64xi1>
    %258 = vector.broadcast %257 : vector<1x64xi1> to vector<8x64xi1>
    %259 = vector.broadcast %256 : bf16 to vector<8x64xbf16>
    %260 = arith.select %258, %255, %259 : vector<8x64xi1>, vector<8x64xbf16>
    %c0_79 = arith.constant 0 : index
    %c0_80 = arith.constant 0 : index
    %c0_81 = arith.constant 0 : index
    %261 = vector.load %arg5[%c0_79, %c0_80, %c0_81] : memref<9x16x8xbf16, #tpu.memory_space<vmem>>, vector<1x16x8xbf16>
    %262 = vector.shape_cast %261 : vector<1x16x8xbf16> to vector<16x8xbf16>
    %cst_82 = arith.constant dense<0.000000e+00> : vector<16x64xf32>
    %263 = tpu.matmul %262, %260, %cst_82 {dimension_numbers = #tpu.dot_dimension_numbers<[1], [0], [0], [1], [0, 0, 1, 1], [], []>} : vector<16x8xbf16>, vector<8x64xbf16>, vector<16x64xf32> -> vector<16x64xf32>
    %264 = arith.addf %241, %263 : vector<16x64xf32>
    %c1_i32_83 = arith.constant 1 : i32
    %265 = vector.broadcast %c1_i32_83 : i32 to vector<1x64xi32>
    %266 = arith.cmpi sge, %238, %265 : vector<1x64xi32>
    %c9_i32_84 = arith.constant 9 : i32
    %267 = vector.broadcast %c9_i32_84 : i32 to vector<1x64xi32>
    %268 = arith.cmpi slt, %238, %267 : vector<1x64xi32>
    %269 = arith.andi %266, %268 : vector<1x64xi1>
    %c0_i32_85 = arith.constant 0 : i32
    %270 = vector.broadcast %c0_i32_85 : i32 to vector<1x64xi32>
    %271 = arith.cmpi sge, %239, %270 : vector<1x64xi32>
    %272 = arith.andi %269, %271 : vector<1x64xi1>
    %c8_i32 = arith.constant 8 : i32
    %273 = vector.broadcast %c8_i32 : i32 to vector<1x64xi32>
    %274 = arith.cmpi slt, %239, %273 : vector<1x64xi32>
    %275 = arith.andi %272, %274 : vector<1x64xi1>
    %276 = vector.extract_strided_slice %240 {offsets = [0, 56], sizes = [8, 8], strides = [1, 1]} : vector<8x64xbf16> to vector<8x8xbf16>
    %277 = vector.extract_strided_slice %240 {offsets = [0, 0], sizes = [8, 56], strides = [1, 1]} : vector<8x64xbf16> to vector<8x56xbf16>
    %278 = tpu.concatenate %276, %277 in 1 : vector<8x8xbf16>, vector<8x56xbf16> -> vector<8x64xbf16>
    %c0_i32_86 = arith.constant 0 : i32
    %279 = arith.sitofp %c0_i32_86 : i32 to bf16
    %280 = vector.shape_cast %275 : vector<1x64xi1> to vector<1x64xi1>
    %281 = vector.broadcast %280 : vector<1x64xi1> to vector<8x64xi1>
    %282 = vector.broadcast %279 : bf16 to vector<8x64xbf16>
    %283 = arith.select %281, %278, %282 : vector<8x64xi1>, vector<8x64xbf16>
    %c1_87 = arith.constant 1 : index
    %c0_88 = arith.constant 0 : index
    %c0_89 = arith.constant 0 : index
    %284 = vector.load %arg5[%c1_87, %c0_88, %c0_89] : memref<9x16x8xbf16, #tpu.memory_space<vmem>>, vector<1x16x8xbf16>
    %285 = vector.shape_cast %284 : vector<1x16x8xbf16> to vector<16x8xbf16>
    %cst_90 = arith.constant dense<0.000000e+00> : vector<16x64xf32>
    %286 = tpu.matmul %285, %283, %cst_90 {dimension_numbers = #tpu.dot_dimension_numbers<[1], [0], [0], [1], [0, 0, 1, 1], [], []>} : vector<16x8xbf16>, vector<8x64xbf16>, vector<16x64xf32> -> vector<16x64xf32>
    %287 = arith.addf %264, %286 : vector<16x64xf32>
    %c1_i32_91 = arith.constant 1 : i32
    %288 = vector.broadcast %c1_i32_91 : i32 to vector<1x64xi32>
    %289 = arith.cmpi sge, %238, %288 : vector<1x64xi32>
    %c9_i32_92 = arith.constant 9 : i32
    %290 = vector.broadcast %c9_i32_92 : i32 to vector<1x64xi32>
    %291 = arith.cmpi slt, %238, %290 : vector<1x64xi32>
    %292 = arith.andi %289, %291 : vector<1x64xi1>
    %c-1_i32_93 = arith.constant -1 : i32
    %293 = vector.broadcast %c-1_i32_93 : i32 to vector<1x64xi32>
    %294 = arith.cmpi sge, %239, %293 : vector<1x64xi32>
    %295 = arith.andi %292, %294 : vector<1x64xi1>
    %c7_i32 = arith.constant 7 : i32
    %296 = vector.broadcast %c7_i32 : i32 to vector<1x64xi32>
    %297 = arith.cmpi slt, %239, %296 : vector<1x64xi32>
    %298 = arith.andi %295, %297 : vector<1x64xi1>
    %299 = vector.extract_strided_slice %240 {offsets = [0, 57], sizes = [8, 7], strides = [1, 1]} : vector<8x64xbf16> to vector<8x7xbf16>
    %300 = vector.extract_strided_slice %240 {offsets = [0, 0], sizes = [8, 57], strides = [1, 1]} : vector<8x64xbf16> to vector<8x57xbf16>
    %301 = tpu.concatenate %299, %300 in 1 : vector<8x7xbf16>, vector<8x57xbf16> -> vector<8x64xbf16>
    %c0_i32_94 = arith.constant 0 : i32
    %302 = arith.sitofp %c0_i32_94 : i32 to bf16
    %303 = vector.shape_cast %298 : vector<1x64xi1> to vector<1x64xi1>
    %304 = vector.broadcast %303 : vector<1x64xi1> to vector<8x64xi1>
    %305 = vector.broadcast %302 : bf16 to vector<8x64xbf16>
    %306 = arith.select %304, %301, %305 : vector<8x64xi1>, vector<8x64xbf16>
    %c2_95 = arith.constant 2 : index
    %c0_96 = arith.constant 0 : index
    %c0_97 = arith.constant 0 : index
    %307 = vector.load %arg5[%c2_95, %c0_96, %c0_97] : memref<9x16x8xbf16, #tpu.memory_space<vmem>>, vector<1x16x8xbf16>
    %308 = vector.shape_cast %307 : vector<1x16x8xbf16> to vector<16x8xbf16>
    %cst_98 = arith.constant dense<0.000000e+00> : vector<16x64xf32>
    %309 = tpu.matmul %308, %306, %cst_98 {dimension_numbers = #tpu.dot_dimension_numbers<[1], [0], [0], [1], [0, 0, 1, 1], [], []>} : vector<16x8xbf16>, vector<8x64xbf16>, vector<16x64xf32> -> vector<16x64xf32>
    %310 = arith.addf %287, %309 : vector<16x64xf32>
    %c0_i32_99 = arith.constant 0 : i32
    %311 = vector.broadcast %c0_i32_99 : i32 to vector<1x64xi32>
    %312 = arith.cmpi sge, %238, %311 : vector<1x64xi32>
    %c8_i32_100 = arith.constant 8 : i32
    %313 = vector.broadcast %c8_i32_100 : i32 to vector<1x64xi32>
    %314 = arith.cmpi slt, %238, %313 : vector<1x64xi32>
    %315 = arith.andi %312, %314 : vector<1x64xi1>
    %c1_i32_101 = arith.constant 1 : i32
    %316 = vector.broadcast %c1_i32_101 : i32 to vector<1x64xi32>
    %317 = arith.cmpi sge, %239, %316 : vector<1x64xi32>
    %318 = arith.andi %315, %317 : vector<1x64xi1>
    %c9_i32_102 = arith.constant 9 : i32
    %319 = vector.broadcast %c9_i32_102 : i32 to vector<1x64xi32>
    %320 = arith.cmpi slt, %239, %319 : vector<1x64xi32>
    %321 = arith.andi %318, %320 : vector<1x64xi1>
    %322 = vector.extract_strided_slice %240 {offsets = [0, 63], sizes = [8, 1], strides = [1, 1]} : vector<8x64xbf16> to vector<8x1xbf16>
    %323 = vector.extract_strided_slice %240 {offsets = [0, 0], sizes = [8, 63], strides = [1, 1]} : vector<8x64xbf16> to vector<8x63xbf16>
    %324 = tpu.concatenate %322, %323 in 1 : vector<8x1xbf16>, vector<8x63xbf16> -> vector<8x64xbf16>
    %c0_i32_103 = arith.constant 0 : i32
    %325 = arith.sitofp %c0_i32_103 : i32 to bf16
    %326 = vector.shape_cast %321 : vector<1x64xi1> to vector<1x64xi1>
    %327 = vector.broadcast %326 : vector<1x64xi1> to vector<8x64xi1>
    %328 = vector.broadcast %325 : bf16 to vector<8x64xbf16>
    %329 = arith.select %327, %324, %328 : vector<8x64xi1>, vector<8x64xbf16>
    %c3_104 = arith.constant 3 : index
    %c0_105 = arith.constant 0 : index
    %c0_106 = arith.constant 0 : index
    %330 = vector.load %arg5[%c3_104, %c0_105, %c0_106] : memref<9x16x8xbf16, #tpu.memory_space<vmem>>, vector<1x16x8xbf16>
    %331 = vector.shape_cast %330 : vector<1x16x8xbf16> to vector<16x8xbf16>
    %cst_107 = arith.constant dense<0.000000e+00> : vector<16x64xf32>
    %332 = tpu.matmul %331, %329, %cst_107 {dimension_numbers = #tpu.dot_dimension_numbers<[1], [0], [0], [1], [0, 0, 1, 1], [], []>} : vector<16x8xbf16>, vector<8x64xbf16>, vector<16x64xf32> -> vector<16x64xf32>
    %333 = arith.addf %310, %332 : vector<16x64xf32>
    %c0_i32_108 = arith.constant 0 : i32
    %334 = vector.broadcast %c0_i32_108 : i32 to vector<1x64xi32>
    %335 = arith.cmpi sge, %238, %334 : vector<1x64xi32>
    %c8_i32_109 = arith.constant 8 : i32
    %336 = vector.broadcast %c8_i32_109 : i32 to vector<1x64xi32>
    %337 = arith.cmpi slt, %238, %336 : vector<1x64xi32>
    %338 = arith.andi %335, %337 : vector<1x64xi1>
    %c0_i32_110 = arith.constant 0 : i32
    %339 = vector.broadcast %c0_i32_110 : i32 to vector<1x64xi32>
    %340 = arith.cmpi sge, %239, %339 : vector<1x64xi32>
    %341 = arith.andi %338, %340 : vector<1x64xi1>
    %c8_i32_111 = arith.constant 8 : i32
    %342 = vector.broadcast %c8_i32_111 : i32 to vector<1x64xi32>
    %343 = arith.cmpi slt, %239, %342 : vector<1x64xi32>
    %344 = arith.andi %341, %343 : vector<1x64xi1>
    %c0_i32_112 = arith.constant 0 : i32
    %345 = arith.sitofp %c0_i32_112 : i32 to bf16
    %346 = vector.shape_cast %344 : vector<1x64xi1> to vector<1x64xi1>
    %347 = vector.broadcast %346 : vector<1x64xi1> to vector<8x64xi1>
    %348 = vector.broadcast %345 : bf16 to vector<8x64xbf16>
    %349 = arith.select %347, %240, %348 : vector<8x64xi1>, vector<8x64xbf16>
    %c4_113 = arith.constant 4 : index
    %c0_114 = arith.constant 0 : index
    %c0_115 = arith.constant 0 : index
    %350 = vector.load %arg5[%c4_113, %c0_114, %c0_115] : memref<9x16x8xbf16, #tpu.memory_space<vmem>>, vector<1x16x8xbf16>
    %351 = vector.shape_cast %350 : vector<1x16x8xbf16> to vector<16x8xbf16>
    %cst_116 = arith.constant dense<0.000000e+00> : vector<16x64xf32>
    %352 = tpu.matmul %351, %349, %cst_116 {dimension_numbers = #tpu.dot_dimension_numbers<[1], [0], [0], [1], [0, 0, 1, 1], [], []>} : vector<16x8xbf16>, vector<8x64xbf16>, vector<16x64xf32> -> vector<16x64xf32>
    %353 = arith.addf %333, %352 : vector<16x64xf32>
    %c0_i32_117 = arith.constant 0 : i32
    %354 = vector.broadcast %c0_i32_117 : i32 to vector<1x64xi32>
    %355 = arith.cmpi sge, %238, %354 : vector<1x64xi32>
    %c8_i32_118 = arith.constant 8 : i32
    %356 = vector.broadcast %c8_i32_118 : i32 to vector<1x64xi32>
    %357 = arith.cmpi slt, %238, %356 : vector<1x64xi32>
    %358 = arith.andi %355, %357 : vector<1x64xi1>
    %c-1_i32_119 = arith.constant -1 : i32
    %359 = vector.broadcast %c-1_i32_119 : i32 to vector<1x64xi32>
    %360 = arith.cmpi sge, %239, %359 : vector<1x64xi32>
    %361 = arith.andi %358, %360 : vector<1x64xi1>
    %c7_i32_120 = arith.constant 7 : i32
    %362 = vector.broadcast %c7_i32_120 : i32 to vector<1x64xi32>
    %363 = arith.cmpi slt, %239, %362 : vector<1x64xi32>
    %364 = arith.andi %361, %363 : vector<1x64xi1>
    %365 = vector.extract_strided_slice %240 {offsets = [0, 1], sizes = [8, 63], strides = [1, 1]} : vector<8x64xbf16> to vector<8x63xbf16>
    %366 = vector.extract_strided_slice %240 {offsets = [0, 0], sizes = [8, 1], strides = [1, 1]} : vector<8x64xbf16> to vector<8x1xbf16>
    %367 = tpu.concatenate %365, %366 in 1 : vector<8x63xbf16>, vector<8x1xbf16> -> vector<8x64xbf16>
    %c0_i32_121 = arith.constant 0 : i32
    %368 = arith.sitofp %c0_i32_121 : i32 to bf16
    %369 = vector.shape_cast %364 : vector<1x64xi1> to vector<1x64xi1>
    %370 = vector.broadcast %369 : vector<1x64xi1> to vector<8x64xi1>
    %371 = vector.broadcast %368 : bf16 to vector<8x64xbf16>
    %372 = arith.select %370, %367, %371 : vector<8x64xi1>, vector<8x64xbf16>
    %c5_122 = arith.constant 5 : index
    %c0_123 = arith.constant 0 : index
    %c0_124 = arith.constant 0 : index
    %373 = vector.load %arg5[%c5_122, %c0_123, %c0_124] : memref<9x16x8xbf16, #tpu.memory_space<vmem>>, vector<1x16x8xbf16>
    %374 = vector.shape_cast %373 : vector<1x16x8xbf16> to vector<16x8xbf16>
    %cst_125 = arith.constant dense<0.000000e+00> : vector<16x64xf32>
    %375 = tpu.matmul %374, %372, %cst_125 {dimension_numbers = #tpu.dot_dimension_numbers<[1], [0], [0], [1], [0, 0, 1, 1], [], []>} : vector<16x8xbf16>, vector<8x64xbf16>, vector<16x64xf32> -> vector<16x64xf32>
    %376 = arith.addf %353, %375 : vector<16x64xf32>
    %c-1_i32_126 = arith.constant -1 : i32
    %377 = vector.broadcast %c-1_i32_126 : i32 to vector<1x64xi32>
    %378 = arith.cmpi sge, %238, %377 : vector<1x64xi32>
    %c7_i32_127 = arith.constant 7 : i32
    %379 = vector.broadcast %c7_i32_127 : i32 to vector<1x64xi32>
    %380 = arith.cmpi slt, %238, %379 : vector<1x64xi32>
    %381 = arith.andi %378, %380 : vector<1x64xi1>
    %c1_i32_128 = arith.constant 1 : i32
    %382 = vector.broadcast %c1_i32_128 : i32 to vector<1x64xi32>
    %383 = arith.cmpi sge, %239, %382 : vector<1x64xi32>
    %384 = arith.andi %381, %383 : vector<1x64xi1>
    %c9_i32_129 = arith.constant 9 : i32
    %385 = vector.broadcast %c9_i32_129 : i32 to vector<1x64xi32>
    %386 = arith.cmpi slt, %239, %385 : vector<1x64xi32>
    %387 = arith.andi %384, %386 : vector<1x64xi1>
    %388 = vector.extract_strided_slice %240 {offsets = [0, 7], sizes = [8, 57], strides = [1, 1]} : vector<8x64xbf16> to vector<8x57xbf16>
    %389 = vector.extract_strided_slice %240 {offsets = [0, 0], sizes = [8, 7], strides = [1, 1]} : vector<8x64xbf16> to vector<8x7xbf16>
    %390 = tpu.concatenate %388, %389 in 1 : vector<8x57xbf16>, vector<8x7xbf16> -> vector<8x64xbf16>
    %c0_i32_130 = arith.constant 0 : i32
    %391 = arith.sitofp %c0_i32_130 : i32 to bf16
    %392 = vector.shape_cast %387 : vector<1x64xi1> to vector<1x64xi1>
    %393 = vector.broadcast %392 : vector<1x64xi1> to vector<8x64xi1>
    %394 = vector.broadcast %391 : bf16 to vector<8x64xbf16>
    %395 = arith.select %393, %390, %394 : vector<8x64xi1>, vector<8x64xbf16>
    %c6_131 = arith.constant 6 : index
    %c0_132 = arith.constant 0 : index
    %c0_133 = arith.constant 0 : index
    %396 = vector.load %arg5[%c6_131, %c0_132, %c0_133] : memref<9x16x8xbf16, #tpu.memory_space<vmem>>, vector<1x16x8xbf16>
    %397 = vector.shape_cast %396 : vector<1x16x8xbf16> to vector<16x8xbf16>
    %cst_134 = arith.constant dense<0.000000e+00> : vector<16x64xf32>
    %398 = tpu.matmul %397, %395, %cst_134 {dimension_numbers = #tpu.dot_dimension_numbers<[1], [0], [0], [1], [0, 0, 1, 1], [], []>} : vector<16x8xbf16>, vector<8x64xbf16>, vector<16x64xf32> -> vector<16x64xf32>
    %399 = arith.addf %376, %398 : vector<16x64xf32>
    %c-1_i32_135 = arith.constant -1 : i32
    %400 = vector.broadcast %c-1_i32_135 : i32 to vector<1x64xi32>
    %401 = arith.cmpi sge, %238, %400 : vector<1x64xi32>
    %c7_i32_136 = arith.constant 7 : i32
    %402 = vector.broadcast %c7_i32_136 : i32 to vector<1x64xi32>
    %403 = arith.cmpi slt, %238, %402 : vector<1x64xi32>
    %404 = arith.andi %401, %403 : vector<1x64xi1>
    %c0_i32_137 = arith.constant 0 : i32
    %405 = vector.broadcast %c0_i32_137 : i32 to vector<1x64xi32>
    %406 = arith.cmpi sge, %239, %405 : vector<1x64xi32>
    %407 = arith.andi %404, %406 : vector<1x64xi1>
    %c8_i32_138 = arith.constant 8 : i32
    %408 = vector.broadcast %c8_i32_138 : i32 to vector<1x64xi32>
    %409 = arith.cmpi slt, %239, %408 : vector<1x64xi32>
    %410 = arith.andi %407, %409 : vector<1x64xi1>
    %411 = vector.extract_strided_slice %240 {offsets = [0, 8], sizes = [8, 56], strides = [1, 1]} : vector<8x64xbf16> to vector<8x56xbf16>
    %412 = vector.extract_strided_slice %240 {offsets = [0, 0], sizes = [8, 8], strides = [1, 1]} : vector<8x64xbf16> to vector<8x8xbf16>
    %413 = tpu.concatenate %411, %412 in 1 : vector<8x56xbf16>, vector<8x8xbf16> -> vector<8x64xbf16>
    %c0_i32_139 = arith.constant 0 : i32
    %414 = arith.sitofp %c0_i32_139 : i32 to bf16
    %415 = vector.shape_cast %410 : vector<1x64xi1> to vector<1x64xi1>
    %416 = vector.broadcast %415 : vector<1x64xi1> to vector<8x64xi1>
    %417 = vector.broadcast %414 : bf16 to vector<8x64xbf16>
    %418 = arith.select %416, %413, %417 : vector<8x64xi1>, vector<8x64xbf16>
    %c7_140 = arith.constant 7 : index
    %c0_141 = arith.constant 0 : index
    %c0_142 = arith.constant 0 : index
    %419 = vector.load %arg5[%c7_140, %c0_141, %c0_142] : memref<9x16x8xbf16, #tpu.memory_space<vmem>>, vector<1x16x8xbf16>
    %420 = vector.shape_cast %419 : vector<1x16x8xbf16> to vector<16x8xbf16>
    %cst_143 = arith.constant dense<0.000000e+00> : vector<16x64xf32>
    %421 = tpu.matmul %420, %418, %cst_143 {dimension_numbers = #tpu.dot_dimension_numbers<[1], [0], [0], [1], [0, 0, 1, 1], [], []>} : vector<16x8xbf16>, vector<8x64xbf16>, vector<16x64xf32> -> vector<16x64xf32>
    %422 = arith.addf %399, %421 : vector<16x64xf32>
    %c-1_i32_144 = arith.constant -1 : i32
    %423 = vector.broadcast %c-1_i32_144 : i32 to vector<1x64xi32>
    %424 = arith.cmpi sge, %238, %423 : vector<1x64xi32>
    %c7_i32_145 = arith.constant 7 : i32
    %425 = vector.broadcast %c7_i32_145 : i32 to vector<1x64xi32>
    %426 = arith.cmpi slt, %238, %425 : vector<1x64xi32>
    %427 = arith.andi %424, %426 : vector<1x64xi1>
    %c-1_i32_146 = arith.constant -1 : i32
    %428 = vector.broadcast %c-1_i32_146 : i32 to vector<1x64xi32>
    %429 = arith.cmpi sge, %239, %428 : vector<1x64xi32>
    %430 = arith.andi %427, %429 : vector<1x64xi1>
    %c7_i32_147 = arith.constant 7 : i32
    %431 = vector.broadcast %c7_i32_147 : i32 to vector<1x64xi32>
    %432 = arith.cmpi slt, %239, %431 : vector<1x64xi32>
    %433 = arith.andi %430, %432 : vector<1x64xi1>
    %434 = vector.extract_strided_slice %240 {offsets = [0, 9], sizes = [8, 55], strides = [1, 1]} : vector<8x64xbf16> to vector<8x55xbf16>
    %435 = vector.extract_strided_slice %240 {offsets = [0, 0], sizes = [8, 9], strides = [1, 1]} : vector<8x64xbf16> to vector<8x9xbf16>
    %436 = tpu.concatenate %434, %435 in 1 : vector<8x55xbf16>, vector<8x9xbf16> -> vector<8x64xbf16>
    %c0_i32_148 = arith.constant 0 : i32
    %437 = arith.sitofp %c0_i32_148 : i32 to bf16
    %438 = vector.shape_cast %433 : vector<1x64xi1> to vector<1x64xi1>
    %439 = vector.broadcast %438 : vector<1x64xi1> to vector<8x64xi1>
    %440 = vector.broadcast %437 : bf16 to vector<8x64xbf16>
    %441 = arith.select %439, %436, %440 : vector<8x64xi1>, vector<8x64xbf16>
    %c8_149 = arith.constant 8 : index
    %c0_150 = arith.constant 0 : index
    %c0_151 = arith.constant 0 : index
    %442 = vector.load %arg5[%c8_149, %c0_150, %c0_151] : memref<9x16x8xbf16, #tpu.memory_space<vmem>>, vector<1x16x8xbf16>
    %443 = vector.shape_cast %442 : vector<1x16x8xbf16> to vector<16x8xbf16>
    %cst_152 = arith.constant dense<0.000000e+00> : vector<16x64xf32>
    %444 = tpu.matmul %443, %441, %cst_152 {dimension_numbers = #tpu.dot_dimension_numbers<[1], [0], [0], [1], [0, 0, 1, 1], [], []>} : vector<16x8xbf16>, vector<8x64xbf16>, vector<16x64xf32> -> vector<16x64xf32>
    %445 = arith.addf %422, %444 : vector<16x64xf32>
    %c0_153 = arith.constant 0 : index
    %c0_154 = arith.constant 0 : index
    %446 = vector.load %arg6[%c0_153, %c0_154] : memref<16x1xf32, #tpu.memory_space<vmem>>, vector<16x1xf32>
    %447 = vector.broadcast %446 : vector<16x1xf32> to vector<16x64xf32>
    %448 = arith.addf %445, %447 : vector<16x64xf32>
    %cst_155 = arith.constant 0.000000e+00 : f32
    %449 = vector.broadcast %cst_155 : f32 to vector<16x64xf32>
    %450 = arith.maximumf %448, %449 : vector<16x64xf32>
    %451 = vector.extract_strided_slice %450 {offsets = [0, 1], sizes = [16, 63], strides = [1, 1]} : vector<16x64xf32> to vector<16x63xf32>
    %452 = vector.extract_strided_slice %450 {offsets = [0, 0], sizes = [16, 1], strides = [1, 1]} : vector<16x64xf32> to vector<16x1xf32>
    %453 = tpu.concatenate %451, %452 in 1 : vector<16x63xf32>, vector<16x1xf32> -> vector<16x64xf32>
    %454 = arith.maximumf %450, %453 : vector<16x64xf32>
    %455 = vector.extract_strided_slice %450 {offsets = [0, 8], sizes = [16, 56], strides = [1, 1]} : vector<16x64xf32> to vector<16x56xf32>
    %456 = vector.extract_strided_slice %450 {offsets = [0, 0], sizes = [16, 8], strides = [1, 1]} : vector<16x64xf32> to vector<16x8xf32>
    %457 = tpu.concatenate %455, %456 in 1 : vector<16x56xf32>, vector<16x8xf32> -> vector<16x64xf32>
    %458 = vector.extract_strided_slice %450 {offsets = [0, 9], sizes = [16, 55], strides = [1, 1]} : vector<16x64xf32> to vector<16x55xf32>
    %459 = vector.extract_strided_slice %450 {offsets = [0, 0], sizes = [16, 9], strides = [1, 1]} : vector<16x64xf32> to vector<16x9xf32>
    %460 = tpu.concatenate %458, %459 in 1 : vector<16x55xf32>, vector<16x9xf32> -> vector<16x64xf32>
    %461 = arith.maximumf %457, %460 : vector<16x64xf32>
    %462 = arith.maximumf %454, %461 : vector<16x64xf32>
    %463 = arith.truncf %462 : vector<16x64xf32> to vector<16x64xbf16>
    %c0_156 = arith.constant 0 : index
    %c0_157 = arith.constant 0 : index
    %464 = vector.load %arg21[%c0_156, %c0_157] : memref<64x16xbf16, #tpu.memory_space<vmem>>, vector<64x16xbf16>
    %cst_158 = arith.constant dense<0.000000e+00> : vector<16x16xf32>
    %465 = tpu.matmul %463, %464, %cst_158 {dimension_numbers = #tpu.dot_dimension_numbers<[1], [0], [0], [1], [0, 0, 1, 1], [], []>} : vector<16x64xbf16>, vector<64x16xbf16>, vector<16x16xf32> -> vector<16x16xf32>
    %c0_159 = arith.constant 0 : index
    %c0_160 = arith.constant 0 : index
    %466 = vector.load %arg19[%c0_159, %c0_160] : memref<2x16xi32, #tpu.memory_space<vmem>>, vector<1x16xi32>
    %c1_161 = arith.constant 1 : index
    %c0_162 = arith.constant 0 : index
    %467 = vector.load %arg19[%c1_161, %c0_162] : memref<2x16xi32, #tpu.memory_space<vmem>>, vector<1x16xi32>
    %468 = arith.truncf %465 : vector<16x16xf32> to vector<16x16xbf16>
    %cst_163 = arith.constant 0.000000e+00 : f32
    %469 = vector.broadcast %cst_163 : f32 to vector<32x16xf32>
    %c1_i32_164 = arith.constant 1 : i32
    %470 = vector.broadcast %c1_i32_164 : i32 to vector<1x16xi32>
    %471 = arith.cmpi sge, %466, %470 : vector<1x16xi32>
    %c5_i32 = arith.constant 5 : i32
    %472 = vector.broadcast %c5_i32 : i32 to vector<1x16xi32>
    %473 = arith.cmpi slt, %466, %472 : vector<1x16xi32>
    %474 = arith.andi %471, %473 : vector<1x16xi1>
    %c1_i32_165 = arith.constant 1 : i32
    %475 = vector.broadcast %c1_i32_165 : i32 to vector<1x16xi32>
    %476 = arith.cmpi sge, %467, %475 : vector<1x16xi32>
    %477 = arith.andi %474, %476 : vector<1x16xi1>
    %c5_i32_166 = arith.constant 5 : i32
    %478 = vector.broadcast %c5_i32_166 : i32 to vector<1x16xi32>
    %479 = arith.cmpi slt, %467, %478 : vector<1x16xi32>
    %480 = arith.andi %477, %479 : vector<1x16xi1>
    %481 = vector.extract_strided_slice %468 {offsets = [0, 11], sizes = [16, 5], strides = [1, 1]} : vector<16x16xbf16> to vector<16x5xbf16>
    %482 = vector.extract_strided_slice %468 {offsets = [0, 0], sizes = [16, 11], strides = [1, 1]} : vector<16x16xbf16> to vector<16x11xbf16>
    %483 = tpu.concatenate %481, %482 in 1 : vector<16x5xbf16>, vector<16x11xbf16> -> vector<16x16xbf16>
    %c0_i32_167 = arith.constant 0 : i32
    %484 = arith.sitofp %c0_i32_167 : i32 to bf16
    %485 = vector.shape_cast %480 : vector<1x16xi1> to vector<1x16xi1>
    %486 = vector.broadcast %485 : vector<1x16xi1> to vector<16x16xi1>
    %487 = vector.broadcast %484 : bf16 to vector<16x16xbf16>
    %488 = arith.select %486, %483, %487 : vector<16x16xi1>, vector<16x16xbf16>
    %c0_168 = arith.constant 0 : index
    %c0_169 = arith.constant 0 : index
    %c0_170 = arith.constant 0 : index
    %489 = vector.load %arg7[%c0_168, %c0_169, %c0_170] : memref<9x32x16xbf16, #tpu.memory_space<vmem>>, vector<1x32x16xbf16>
    %490 = vector.shape_cast %489 : vector<1x32x16xbf16> to vector<32x16xbf16>
    %cst_171 = arith.constant dense<0.000000e+00> : vector<32x16xf32>
    %491 = tpu.matmul %490, %488, %cst_171 {dimension_numbers = #tpu.dot_dimension_numbers<[1], [0], [0], [1], [0, 0, 1, 1], [], []>} : vector<32x16xbf16>, vector<16x16xbf16>, vector<32x16xf32> -> vector<32x16xf32>
    %492 = arith.addf %469, %491 : vector<32x16xf32>
    %c1_i32_172 = arith.constant 1 : i32
    %493 = vector.broadcast %c1_i32_172 : i32 to vector<1x16xi32>
    %494 = arith.cmpi sge, %466, %493 : vector<1x16xi32>
    %c5_i32_173 = arith.constant 5 : i32
    %495 = vector.broadcast %c5_i32_173 : i32 to vector<1x16xi32>
    %496 = arith.cmpi slt, %466, %495 : vector<1x16xi32>
    %497 = arith.andi %494, %496 : vector<1x16xi1>
    %c0_i32_174 = arith.constant 0 : i32
    %498 = vector.broadcast %c0_i32_174 : i32 to vector<1x16xi32>
    %499 = arith.cmpi sge, %467, %498 : vector<1x16xi32>
    %500 = arith.andi %497, %499 : vector<1x16xi1>
    %c4_i32 = arith.constant 4 : i32
    %501 = vector.broadcast %c4_i32 : i32 to vector<1x16xi32>
    %502 = arith.cmpi slt, %467, %501 : vector<1x16xi32>
    %503 = arith.andi %500, %502 : vector<1x16xi1>
    %504 = vector.extract_strided_slice %468 {offsets = [0, 12], sizes = [16, 4], strides = [1, 1]} : vector<16x16xbf16> to vector<16x4xbf16>
    %505 = vector.extract_strided_slice %468 {offsets = [0, 0], sizes = [16, 12], strides = [1, 1]} : vector<16x16xbf16> to vector<16x12xbf16>
    %506 = tpu.concatenate %504, %505 in 1 : vector<16x4xbf16>, vector<16x12xbf16> -> vector<16x16xbf16>
    %c0_i32_175 = arith.constant 0 : i32
    %507 = arith.sitofp %c0_i32_175 : i32 to bf16
    %508 = vector.shape_cast %503 : vector<1x16xi1> to vector<1x16xi1>
    %509 = vector.broadcast %508 : vector<1x16xi1> to vector<16x16xi1>
    %510 = vector.broadcast %507 : bf16 to vector<16x16xbf16>
    %511 = arith.select %509, %506, %510 : vector<16x16xi1>, vector<16x16xbf16>
    %c1_176 = arith.constant 1 : index
    %c0_177 = arith.constant 0 : index
    %c0_178 = arith.constant 0 : index
    %512 = vector.load %arg7[%c1_176, %c0_177, %c0_178] : memref<9x32x16xbf16, #tpu.memory_space<vmem>>, vector<1x32x16xbf16>
    %513 = vector.shape_cast %512 : vector<1x32x16xbf16> to vector<32x16xbf16>
    %cst_179 = arith.constant dense<0.000000e+00> : vector<32x16xf32>
    %514 = tpu.matmul %513, %511, %cst_179 {dimension_numbers = #tpu.dot_dimension_numbers<[1], [0], [0], [1], [0, 0, 1, 1], [], []>} : vector<32x16xbf16>, vector<16x16xbf16>, vector<32x16xf32> -> vector<32x16xf32>
    %515 = arith.addf %492, %514 : vector<32x16xf32>
    %c1_i32_180 = arith.constant 1 : i32
    %516 = vector.broadcast %c1_i32_180 : i32 to vector<1x16xi32>
    %517 = arith.cmpi sge, %466, %516 : vector<1x16xi32>
    %c5_i32_181 = arith.constant 5 : i32
    %518 = vector.broadcast %c5_i32_181 : i32 to vector<1x16xi32>
    %519 = arith.cmpi slt, %466, %518 : vector<1x16xi32>
    %520 = arith.andi %517, %519 : vector<1x16xi1>
    %c-1_i32_182 = arith.constant -1 : i32
    %521 = vector.broadcast %c-1_i32_182 : i32 to vector<1x16xi32>
    %522 = arith.cmpi sge, %467, %521 : vector<1x16xi32>
    %523 = arith.andi %520, %522 : vector<1x16xi1>
    %c3_i32 = arith.constant 3 : i32
    %524 = vector.broadcast %c3_i32 : i32 to vector<1x16xi32>
    %525 = arith.cmpi slt, %467, %524 : vector<1x16xi32>
    %526 = arith.andi %523, %525 : vector<1x16xi1>
    %527 = vector.extract_strided_slice %468 {offsets = [0, 13], sizes = [16, 3], strides = [1, 1]} : vector<16x16xbf16> to vector<16x3xbf16>
    %528 = vector.extract_strided_slice %468 {offsets = [0, 0], sizes = [16, 13], strides = [1, 1]} : vector<16x16xbf16> to vector<16x13xbf16>
    %529 = tpu.concatenate %527, %528 in 1 : vector<16x3xbf16>, vector<16x13xbf16> -> vector<16x16xbf16>
    %c0_i32_183 = arith.constant 0 : i32
    %530 = arith.sitofp %c0_i32_183 : i32 to bf16
    %531 = vector.shape_cast %526 : vector<1x16xi1> to vector<1x16xi1>
    %532 = vector.broadcast %531 : vector<1x16xi1> to vector<16x16xi1>
    %533 = vector.broadcast %530 : bf16 to vector<16x16xbf16>
    %534 = arith.select %532, %529, %533 : vector<16x16xi1>, vector<16x16xbf16>
    %c2_184 = arith.constant 2 : index
    %c0_185 = arith.constant 0 : index
    %c0_186 = arith.constant 0 : index
    %535 = vector.load %arg7[%c2_184, %c0_185, %c0_186] : memref<9x32x16xbf16, #tpu.memory_space<vmem>>, vector<1x32x16xbf16>
    %536 = vector.shape_cast %535 : vector<1x32x16xbf16> to vector<32x16xbf16>
    %cst_187 = arith.constant dense<0.000000e+00> : vector<32x16xf32>
    %537 = tpu.matmul %536, %534, %cst_187 {dimension_numbers = #tpu.dot_dimension_numbers<[1], [0], [0], [1], [0, 0, 1, 1], [], []>} : vector<32x16xbf16>, vector<16x16xbf16>, vector<32x16xf32> -> vector<32x16xf32>
    %538 = arith.addf %515, %537 : vector<32x16xf32>
    %c0_i32_188 = arith.constant 0 : i32
    %539 = vector.broadcast %c0_i32_188 : i32 to vector<1x16xi32>
    %540 = arith.cmpi sge, %466, %539 : vector<1x16xi32>
    %c4_i32_189 = arith.constant 4 : i32
    %541 = vector.broadcast %c4_i32_189 : i32 to vector<1x16xi32>
    %542 = arith.cmpi slt, %466, %541 : vector<1x16xi32>
    %543 = arith.andi %540, %542 : vector<1x16xi1>
    %c1_i32_190 = arith.constant 1 : i32
    %544 = vector.broadcast %c1_i32_190 : i32 to vector<1x16xi32>
    %545 = arith.cmpi sge, %467, %544 : vector<1x16xi32>
    %546 = arith.andi %543, %545 : vector<1x16xi1>
    %c5_i32_191 = arith.constant 5 : i32
    %547 = vector.broadcast %c5_i32_191 : i32 to vector<1x16xi32>
    %548 = arith.cmpi slt, %467, %547 : vector<1x16xi32>
    %549 = arith.andi %546, %548 : vector<1x16xi1>
    %550 = vector.extract_strided_slice %468 {offsets = [0, 15], sizes = [16, 1], strides = [1, 1]} : vector<16x16xbf16> to vector<16x1xbf16>
    %551 = vector.extract_strided_slice %468 {offsets = [0, 0], sizes = [16, 15], strides = [1, 1]} : vector<16x16xbf16> to vector<16x15xbf16>
    %552 = tpu.concatenate %550, %551 in 1 : vector<16x1xbf16>, vector<16x15xbf16> -> vector<16x16xbf16>
    %c0_i32_192 = arith.constant 0 : i32
    %553 = arith.sitofp %c0_i32_192 : i32 to bf16
    %554 = vector.shape_cast %549 : vector<1x16xi1> to vector<1x16xi1>
    %555 = vector.broadcast %554 : vector<1x16xi1> to vector<16x16xi1>
    %556 = vector.broadcast %553 : bf16 to vector<16x16xbf16>
    %557 = arith.select %555, %552, %556 : vector<16x16xi1>, vector<16x16xbf16>
    %c3_193 = arith.constant 3 : index
    %c0_194 = arith.constant 0 : index
    %c0_195 = arith.constant 0 : index
    %558 = vector.load %arg7[%c3_193, %c0_194, %c0_195] : memref<9x32x16xbf16, #tpu.memory_space<vmem>>, vector<1x32x16xbf16>
    %559 = vector.shape_cast %558 : vector<1x32x16xbf16> to vector<32x16xbf16>
    %cst_196 = arith.constant dense<0.000000e+00> : vector<32x16xf32>
    %560 = tpu.matmul %559, %557, %cst_196 {dimension_numbers = #tpu.dot_dimension_numbers<[1], [0], [0], [1], [0, 0, 1, 1], [], []>} : vector<32x16xbf16>, vector<16x16xbf16>, vector<32x16xf32> -> vector<32x16xf32>
    %561 = arith.addf %538, %560 : vector<32x16xf32>
    %c0_i32_197 = arith.constant 0 : i32
    %562 = vector.broadcast %c0_i32_197 : i32 to vector<1x16xi32>
    %563 = arith.cmpi sge, %466, %562 : vector<1x16xi32>
    %c4_i32_198 = arith.constant 4 : i32
    %564 = vector.broadcast %c4_i32_198 : i32 to vector<1x16xi32>
    %565 = arith.cmpi slt, %466, %564 : vector<1x16xi32>
    %566 = arith.andi %563, %565 : vector<1x16xi1>
    %c0_i32_199 = arith.constant 0 : i32
    %567 = vector.broadcast %c0_i32_199 : i32 to vector<1x16xi32>
    %568 = arith.cmpi sge, %467, %567 : vector<1x16xi32>
    %569 = arith.andi %566, %568 : vector<1x16xi1>
    %c4_i32_200 = arith.constant 4 : i32
    %570 = vector.broadcast %c4_i32_200 : i32 to vector<1x16xi32>
    %571 = arith.cmpi slt, %467, %570 : vector<1x16xi32>
    %572 = arith.andi %569, %571 : vector<1x16xi1>
    %c0_i32_201 = arith.constant 0 : i32
    %573 = arith.sitofp %c0_i32_201 : i32 to bf16
    %574 = vector.shape_cast %572 : vector<1x16xi1> to vector<1x16xi1>
    %575 = vector.broadcast %574 : vector<1x16xi1> to vector<16x16xi1>
    %576 = vector.broadcast %573 : bf16 to vector<16x16xbf16>
    %577 = arith.select %575, %468, %576 : vector<16x16xi1>, vector<16x16xbf16>
    %c4_202 = arith.constant 4 : index
    %c0_203 = arith.constant 0 : index
    %c0_204 = arith.constant 0 : index
    %578 = vector.load %arg7[%c4_202, %c0_203, %c0_204] : memref<9x32x16xbf16, #tpu.memory_space<vmem>>, vector<1x32x16xbf16>
    %579 = vector.shape_cast %578 : vector<1x32x16xbf16> to vector<32x16xbf16>
    %cst_205 = arith.constant dense<0.000000e+00> : vector<32x16xf32>
    %580 = tpu.matmul %579, %577, %cst_205 {dimension_numbers = #tpu.dot_dimension_numbers<[1], [0], [0], [1], [0, 0, 1, 1], [], []>} : vector<32x16xbf16>, vector<16x16xbf16>, vector<32x16xf32> -> vector<32x16xf32>
    %581 = arith.addf %561, %580 : vector<32x16xf32>
    %c0_i32_206 = arith.constant 0 : i32
    %582 = vector.broadcast %c0_i32_206 : i32 to vector<1x16xi32>
    %583 = arith.cmpi sge, %466, %582 : vector<1x16xi32>
    %c4_i32_207 = arith.constant 4 : i32
    %584 = vector.broadcast %c4_i32_207 : i32 to vector<1x16xi32>
    %585 = arith.cmpi slt, %466, %584 : vector<1x16xi32>
    %586 = arith.andi %583, %585 : vector<1x16xi1>
    %c-1_i32_208 = arith.constant -1 : i32
    %587 = vector.broadcast %c-1_i32_208 : i32 to vector<1x16xi32>
    %588 = arith.cmpi sge, %467, %587 : vector<1x16xi32>
    %589 = arith.andi %586, %588 : vector<1x16xi1>
    %c3_i32_209 = arith.constant 3 : i32
    %590 = vector.broadcast %c3_i32_209 : i32 to vector<1x16xi32>
    %591 = arith.cmpi slt, %467, %590 : vector<1x16xi32>
    %592 = arith.andi %589, %591 : vector<1x16xi1>
    %593 = vector.extract_strided_slice %468 {offsets = [0, 1], sizes = [16, 15], strides = [1, 1]} : vector<16x16xbf16> to vector<16x15xbf16>
    %594 = vector.extract_strided_slice %468 {offsets = [0, 0], sizes = [16, 1], strides = [1, 1]} : vector<16x16xbf16> to vector<16x1xbf16>
    %595 = tpu.concatenate %593, %594 in 1 : vector<16x15xbf16>, vector<16x1xbf16> -> vector<16x16xbf16>
    %c0_i32_210 = arith.constant 0 : i32
    %596 = arith.sitofp %c0_i32_210 : i32 to bf16
    %597 = vector.shape_cast %592 : vector<1x16xi1> to vector<1x16xi1>
    %598 = vector.broadcast %597 : vector<1x16xi1> to vector<16x16xi1>
    %599 = vector.broadcast %596 : bf16 to vector<16x16xbf16>
    %600 = arith.select %598, %595, %599 : vector<16x16xi1>, vector<16x16xbf16>
    %c5_211 = arith.constant 5 : index
    %c0_212 = arith.constant 0 : index
    %c0_213 = arith.constant 0 : index
    %601 = vector.load %arg7[%c5_211, %c0_212, %c0_213] : memref<9x32x16xbf16, #tpu.memory_space<vmem>>, vector<1x32x16xbf16>
    %602 = vector.shape_cast %601 : vector<1x32x16xbf16> to vector<32x16xbf16>
    %cst_214 = arith.constant dense<0.000000e+00> : vector<32x16xf32>
    %603 = tpu.matmul %602, %600, %cst_214 {dimension_numbers = #tpu.dot_dimension_numbers<[1], [0], [0], [1], [0, 0, 1, 1], [], []>} : vector<32x16xbf16>, vector<16x16xbf16>, vector<32x16xf32> -> vector<32x16xf32>
    %604 = arith.addf %581, %603 : vector<32x16xf32>
    %c-1_i32_215 = arith.constant -1 : i32
    %605 = vector.broadcast %c-1_i32_215 : i32 to vector<1x16xi32>
    %606 = arith.cmpi sge, %466, %605 : vector<1x16xi32>
    %c3_i32_216 = arith.constant 3 : i32
    %607 = vector.broadcast %c3_i32_216 : i32 to vector<1x16xi32>
    %608 = arith.cmpi slt, %466, %607 : vector<1x16xi32>
    %609 = arith.andi %606, %608 : vector<1x16xi1>
    %c1_i32_217 = arith.constant 1 : i32
    %610 = vector.broadcast %c1_i32_217 : i32 to vector<1x16xi32>
    %611 = arith.cmpi sge, %467, %610 : vector<1x16xi32>
    %612 = arith.andi %609, %611 : vector<1x16xi1>
    %c5_i32_218 = arith.constant 5 : i32
    %613 = vector.broadcast %c5_i32_218 : i32 to vector<1x16xi32>
    %614 = arith.cmpi slt, %467, %613 : vector<1x16xi32>
    %615 = arith.andi %612, %614 : vector<1x16xi1>
    %616 = vector.extract_strided_slice %468 {offsets = [0, 3], sizes = [16, 13], strides = [1, 1]} : vector<16x16xbf16> to vector<16x13xbf16>
    %617 = vector.extract_strided_slice %468 {offsets = [0, 0], sizes = [16, 3], strides = [1, 1]} : vector<16x16xbf16> to vector<16x3xbf16>
    %618 = tpu.concatenate %616, %617 in 1 : vector<16x13xbf16>, vector<16x3xbf16> -> vector<16x16xbf16>
    %c0_i32_219 = arith.constant 0 : i32
    %619 = arith.sitofp %c0_i32_219 : i32 to bf16
    %620 = vector.shape_cast %615 : vector<1x16xi1> to vector<1x16xi1>
    %621 = vector.broadcast %620 : vector<1x16xi1> to vector<16x16xi1>
    %622 = vector.broadcast %619 : bf16 to vector<16x16xbf16>
    %623 = arith.select %621, %618, %622 : vector<16x16xi1>, vector<16x16xbf16>
    %c6_220 = arith.constant 6 : index
    %c0_221 = arith.constant 0 : index
    %c0_222 = arith.constant 0 : index
    %624 = vector.load %arg7[%c6_220, %c0_221, %c0_222] : memref<9x32x16xbf16, #tpu.memory_space<vmem>>, vector<1x32x16xbf16>
    %625 = vector.shape_cast %624 : vector<1x32x16xbf16> to vector<32x16xbf16>
    %cst_223 = arith.constant dense<0.000000e+00> : vector<32x16xf32>
    %626 = tpu.matmul %625, %623, %cst_223 {dimension_numbers = #tpu.dot_dimension_numbers<[1], [0], [0], [1], [0, 0, 1, 1], [], []>} : vector<32x16xbf16>, vector<16x16xbf16>, vector<32x16xf32> -> vector<32x16xf32>
    %627 = arith.addf %604, %626 : vector<32x16xf32>
    %c-1_i32_224 = arith.constant -1 : i32
    %628 = vector.broadcast %c-1_i32_224 : i32 to vector<1x16xi32>
    %629 = arith.cmpi sge, %466, %628 : vector<1x16xi32>
    %c3_i32_225 = arith.constant 3 : i32
    %630 = vector.broadcast %c3_i32_225 : i32 to vector<1x16xi32>
    %631 = arith.cmpi slt, %466, %630 : vector<1x16xi32>
    %632 = arith.andi %629, %631 : vector<1x16xi1>
    %c0_i32_226 = arith.constant 0 : i32
    %633 = vector.broadcast %c0_i32_226 : i32 to vector<1x16xi32>
    %634 = arith.cmpi sge, %467, %633 : vector<1x16xi32>
    %635 = arith.andi %632, %634 : vector<1x16xi1>
    %c4_i32_227 = arith.constant 4 : i32
    %636 = vector.broadcast %c4_i32_227 : i32 to vector<1x16xi32>
    %637 = arith.cmpi slt, %467, %636 : vector<1x16xi32>
    %638 = arith.andi %635, %637 : vector<1x16xi1>
    %639 = vector.extract_strided_slice %468 {offsets = [0, 4], sizes = [16, 12], strides = [1, 1]} : vector<16x16xbf16> to vector<16x12xbf16>
    %640 = vector.extract_strided_slice %468 {offsets = [0, 0], sizes = [16, 4], strides = [1, 1]} : vector<16x16xbf16> to vector<16x4xbf16>
    %641 = tpu.concatenate %639, %640 in 1 : vector<16x12xbf16>, vector<16x4xbf16> -> vector<16x16xbf16>
    %c0_i32_228 = arith.constant 0 : i32
    %642 = arith.sitofp %c0_i32_228 : i32 to bf16
    %643 = vector.shape_cast %638 : vector<1x16xi1> to vector<1x16xi1>
    %644 = vector.broadcast %643 : vector<1x16xi1> to vector<16x16xi1>
    %645 = vector.broadcast %642 : bf16 to vector<16x16xbf16>
    %646 = arith.select %644, %641, %645 : vector<16x16xi1>, vector<16x16xbf16>
    %c7_229 = arith.constant 7 : index
    %c0_230 = arith.constant 0 : index
    %c0_231 = arith.constant 0 : index
    %647 = vector.load %arg7[%c7_229, %c0_230, %c0_231] : memref<9x32x16xbf16, #tpu.memory_space<vmem>>, vector<1x32x16xbf16>
    %648 = vector.shape_cast %647 : vector<1x32x16xbf16> to vector<32x16xbf16>
    %cst_232 = arith.constant dense<0.000000e+00> : vector<32x16xf32>
    %649 = tpu.matmul %648, %646, %cst_232 {dimension_numbers = #tpu.dot_dimension_numbers<[1], [0], [0], [1], [0, 0, 1, 1], [], []>} : vector<32x16xbf16>, vector<16x16xbf16>, vector<32x16xf32> -> vector<32x16xf32>
    %650 = arith.addf %627, %649 : vector<32x16xf32>
    %c-1_i32_233 = arith.constant -1 : i32
    %651 = vector.broadcast %c-1_i32_233 : i32 to vector<1x16xi32>
    %652 = arith.cmpi sge, %466, %651 : vector<1x16xi32>
    %c3_i32_234 = arith.constant 3 : i32
    %653 = vector.broadcast %c3_i32_234 : i32 to vector<1x16xi32>
    %654 = arith.cmpi slt, %466, %653 : vector<1x16xi32>
    %655 = arith.andi %652, %654 : vector<1x16xi1>
    %c-1_i32_235 = arith.constant -1 : i32
    %656 = vector.broadcast %c-1_i32_235 : i32 to vector<1x16xi32>
    %657 = arith.cmpi sge, %467, %656 : vector<1x16xi32>
    %658 = arith.andi %655, %657 : vector<1x16xi1>
    %c3_i32_236 = arith.constant 3 : i32
    %659 = vector.broadcast %c3_i32_236 : i32 to vector<1x16xi32>
    %660 = arith.cmpi slt, %467, %659 : vector<1x16xi32>
    %661 = arith.andi %658, %660 : vector<1x16xi1>
    %662 = vector.extract_strided_slice %468 {offsets = [0, 5], sizes = [16, 11], strides = [1, 1]} : vector<16x16xbf16> to vector<16x11xbf16>
    %663 = vector.extract_strided_slice %468 {offsets = [0, 0], sizes = [16, 5], strides = [1, 1]} : vector<16x16xbf16> to vector<16x5xbf16>
    %664 = tpu.concatenate %662, %663 in 1 : vector<16x11xbf16>, vector<16x5xbf16> -> vector<16x16xbf16>
    %c0_i32_237 = arith.constant 0 : i32
    %665 = arith.sitofp %c0_i32_237 : i32 to bf16
    %666 = vector.shape_cast %661 : vector<1x16xi1> to vector<1x16xi1>
    %667 = vector.broadcast %666 : vector<1x16xi1> to vector<16x16xi1>
    %668 = vector.broadcast %665 : bf16 to vector<16x16xbf16>
    %669 = arith.select %667, %664, %668 : vector<16x16xi1>, vector<16x16xbf16>
    %c8_238 = arith.constant 8 : index
    %c0_239 = arith.constant 0 : index
    %c0_240 = arith.constant 0 : index
    %670 = vector.load %arg7[%c8_238, %c0_239, %c0_240] : memref<9x32x16xbf16, #tpu.memory_space<vmem>>, vector<1x32x16xbf16>
    %671 = vector.shape_cast %670 : vector<1x32x16xbf16> to vector<32x16xbf16>
    %cst_241 = arith.constant dense<0.000000e+00> : vector<32x16xf32>
    %672 = tpu.matmul %671, %669, %cst_241 {dimension_numbers = #tpu.dot_dimension_numbers<[1], [0], [0], [1], [0, 0, 1, 1], [], []>} : vector<32x16xbf16>, vector<16x16xbf16>, vector<32x16xf32> -> vector<32x16xf32>
    %673 = arith.addf %650, %672 : vector<32x16xf32>
    %c0_242 = arith.constant 0 : index
    %c0_243 = arith.constant 0 : index
    %674 = vector.load %arg8[%c0_242, %c0_243] : memref<32x1xf32, #tpu.memory_space<vmem>>, vector<32x1xf32>
    %675 = vector.broadcast %674 : vector<32x1xf32> to vector<32x16xf32>
    %676 = arith.addf %673, %675 : vector<32x16xf32>
    %cst_244 = arith.constant 0.000000e+00 : f32
    %677 = vector.broadcast %cst_244 : f32 to vector<32x16xf32>
    %678 = arith.maximumf %676, %677 : vector<32x16xf32>
    %679 = arith.truncf %678 : vector<32x16xf32> to vector<32x16xbf16>
    %c0_245 = arith.constant 0 : index
    %c0_246 = arith.constant 0 : index
    %680 = vector.load %arg22[%c0_245, %c0_246] : memref<16x64xbf16, #tpu.memory_space<vmem>>, vector<16x64xbf16>
    %cst_247 = arith.constant dense<0.000000e+00> : vector<32x64xf32>
    %681 = tpu.matmul %679, %680, %cst_247 {dimension_numbers = #tpu.dot_dimension_numbers<[1], [0], [0], [1], [0, 0, 1, 1], [], []>} : vector<32x16xbf16>, vector<16x64xbf16>, vector<32x64xf32> -> vector<32x64xf32>
    %c0_248 = arith.constant 0 : index
    %c0_249 = arith.constant 0 : index
    %682 = vector.load %arg18[%c0_248, %c0_249] : memref<2x64xi32, #tpu.memory_space<vmem>>, vector<1x64xi32>
    %c1_250 = arith.constant 1 : index
    %c0_251 = arith.constant 0 : index
    %683 = vector.load %arg18[%c1_250, %c0_251] : memref<2x64xi32, #tpu.memory_space<vmem>>, vector<1x64xi32>
    %684 = arith.truncf %681 : vector<32x64xf32> to vector<32x64xbf16>
    %685 = arith.truncf %450 : vector<16x64xf32> to vector<16x64xbf16>
    %cst_252 = arith.constant 0.000000e+00 : f32
    %686 = vector.broadcast %cst_252 : f32 to vector<16x64xf32>
    %c1_i32_253 = arith.constant 1 : i32
    %687 = vector.broadcast %c1_i32_253 : i32 to vector<1x64xi32>
    %688 = arith.cmpi sge, %682, %687 : vector<1x64xi32>
    %c9_i32_254 = arith.constant 9 : i32
    %689 = vector.broadcast %c9_i32_254 : i32 to vector<1x64xi32>
    %690 = arith.cmpi slt, %682, %689 : vector<1x64xi32>
    %691 = arith.andi %688, %690 : vector<1x64xi1>
    %c1_i32_255 = arith.constant 1 : i32
    %692 = vector.broadcast %c1_i32_255 : i32 to vector<1x64xi32>
    %693 = arith.cmpi sge, %683, %692 : vector<1x64xi32>
    %694 = arith.andi %691, %693 : vector<1x64xi1>
    %c9_i32_256 = arith.constant 9 : i32
    %695 = vector.broadcast %c9_i32_256 : i32 to vector<1x64xi32>
    %696 = arith.cmpi slt, %683, %695 : vector<1x64xi32>
    %697 = arith.andi %694, %696 : vector<1x64xi1>
    %698 = vector.extract_strided_slice %684 {offsets = [0, 55], sizes = [32, 9], strides = [1, 1]} : vector<32x64xbf16> to vector<32x9xbf16>
    %699 = vector.extract_strided_slice %684 {offsets = [0, 0], sizes = [32, 55], strides = [1, 1]} : vector<32x64xbf16> to vector<32x55xbf16>
    %700 = tpu.concatenate %698, %699 in 1 : vector<32x9xbf16>, vector<32x55xbf16> -> vector<32x64xbf16>
    %c0_i32_257 = arith.constant 0 : i32
    %701 = arith.sitofp %c0_i32_257 : i32 to bf16
    %702 = vector.shape_cast %697 : vector<1x64xi1> to vector<1x64xi1>
    %703 = vector.broadcast %702 : vector<1x64xi1> to vector<32x64xi1>
    %704 = vector.broadcast %701 : bf16 to vector<32x64xbf16>
    %705 = arith.select %703, %700, %704 : vector<32x64xi1>, vector<32x64xbf16>
    %c0_258 = arith.constant 0 : index
    %c0_259 = arith.constant 0 : index
    %c0_260 = arith.constant 0 : index
    %706 = vector.load %arg9[%c0_258, %c0_259, %c0_260] : memref<9x16x32xbf16, #tpu.memory_space<vmem>>, vector<1x16x32xbf16>
    %707 = vector.shape_cast %706 : vector<1x16x32xbf16> to vector<16x32xbf16>
    %cst_261 = arith.constant dense<0.000000e+00> : vector<16x64xf32>
    %708 = tpu.matmul %707, %705, %cst_261 {dimension_numbers = #tpu.dot_dimension_numbers<[1], [0], [0], [1], [0, 0, 1, 1], [], []>} : vector<16x32xbf16>, vector<32x64xbf16>, vector<16x64xf32> -> vector<16x64xf32>
    %709 = arith.addf %686, %708 : vector<16x64xf32>
    %710 = vector.extract_strided_slice %685 {offsets = [0, 55], sizes = [16, 9], strides = [1, 1]} : vector<16x64xbf16> to vector<16x9xbf16>
    %711 = vector.extract_strided_slice %685 {offsets = [0, 0], sizes = [16, 55], strides = [1, 1]} : vector<16x64xbf16> to vector<16x55xbf16>
    %712 = tpu.concatenate %710, %711 in 1 : vector<16x9xbf16>, vector<16x55xbf16> -> vector<16x64xbf16>
    %c0_i32_262 = arith.constant 0 : i32
    %713 = arith.sitofp %c0_i32_262 : i32 to bf16
    %714 = vector.shape_cast %697 : vector<1x64xi1> to vector<1x64xi1>
    %715 = vector.broadcast %714 : vector<1x64xi1> to vector<16x64xi1>
    %716 = vector.broadcast %713 : bf16 to vector<16x64xbf16>
    %717 = arith.select %715, %712, %716 : vector<16x64xi1>, vector<16x64xbf16>
    %c0_263 = arith.constant 0 : index
    %c0_264 = arith.constant 0 : index
    %c0_265 = arith.constant 0 : index
    %718 = vector.load %arg10[%c0_263, %c0_264, %c0_265] : memref<9x16x16xbf16, #tpu.memory_space<vmem>>, vector<1x16x16xbf16>
    %719 = vector.shape_cast %718 : vector<1x16x16xbf16> to vector<16x16xbf16>
    %cst_266 = arith.constant dense<0.000000e+00> : vector<16x64xf32>
    %720 = tpu.matmul %719, %717, %cst_266 {dimension_numbers = #tpu.dot_dimension_numbers<[1], [0], [0], [1], [0, 0, 1, 1], [], []>} : vector<16x16xbf16>, vector<16x64xbf16>, vector<16x64xf32> -> vector<16x64xf32>
    %721 = arith.addf %709, %720 : vector<16x64xf32>
    %c1_i32_267 = arith.constant 1 : i32
    %722 = vector.broadcast %c1_i32_267 : i32 to vector<1x64xi32>
    %723 = arith.cmpi sge, %682, %722 : vector<1x64xi32>
    %c9_i32_268 = arith.constant 9 : i32
    %724 = vector.broadcast %c9_i32_268 : i32 to vector<1x64xi32>
    %725 = arith.cmpi slt, %682, %724 : vector<1x64xi32>
    %726 = arith.andi %723, %725 : vector<1x64xi1>
    %c0_i32_269 = arith.constant 0 : i32
    %727 = vector.broadcast %c0_i32_269 : i32 to vector<1x64xi32>
    %728 = arith.cmpi sge, %683, %727 : vector<1x64xi32>
    %729 = arith.andi %726, %728 : vector<1x64xi1>
    %c8_i32_270 = arith.constant 8 : i32
    %730 = vector.broadcast %c8_i32_270 : i32 to vector<1x64xi32>
    %731 = arith.cmpi slt, %683, %730 : vector<1x64xi32>
    %732 = arith.andi %729, %731 : vector<1x64xi1>
    %733 = vector.extract_strided_slice %684 {offsets = [0, 56], sizes = [32, 8], strides = [1, 1]} : vector<32x64xbf16> to vector<32x8xbf16>
    %734 = vector.extract_strided_slice %684 {offsets = [0, 0], sizes = [32, 56], strides = [1, 1]} : vector<32x64xbf16> to vector<32x56xbf16>
    %735 = tpu.concatenate %733, %734 in 1 : vector<32x8xbf16>, vector<32x56xbf16> -> vector<32x64xbf16>
    %c0_i32_271 = arith.constant 0 : i32
    %736 = arith.sitofp %c0_i32_271 : i32 to bf16
    %737 = vector.shape_cast %732 : vector<1x64xi1> to vector<1x64xi1>
    %738 = vector.broadcast %737 : vector<1x64xi1> to vector<32x64xi1>
    %739 = vector.broadcast %736 : bf16 to vector<32x64xbf16>
    %740 = arith.select %738, %735, %739 : vector<32x64xi1>, vector<32x64xbf16>
    %c1_272 = arith.constant 1 : index
    %c0_273 = arith.constant 0 : index
    %c0_274 = arith.constant 0 : index
    %741 = vector.load %arg9[%c1_272, %c0_273, %c0_274] : memref<9x16x32xbf16, #tpu.memory_space<vmem>>, vector<1x16x32xbf16>
    %742 = vector.shape_cast %741 : vector<1x16x32xbf16> to vector<16x32xbf16>
    %cst_275 = arith.constant dense<0.000000e+00> : vector<16x64xf32>
    %743 = tpu.matmul %742, %740, %cst_275 {dimension_numbers = #tpu.dot_dimension_numbers<[1], [0], [0], [1], [0, 0, 1, 1], [], []>} : vector<16x32xbf16>, vector<32x64xbf16>, vector<16x64xf32> -> vector<16x64xf32>
    %744 = arith.addf %721, %743 : vector<16x64xf32>
    %745 = vector.extract_strided_slice %685 {offsets = [0, 56], sizes = [16, 8], strides = [1, 1]} : vector<16x64xbf16> to vector<16x8xbf16>
    %746 = vector.extract_strided_slice %685 {offsets = [0, 0], sizes = [16, 56], strides = [1, 1]} : vector<16x64xbf16> to vector<16x56xbf16>
    %747 = tpu.concatenate %745, %746 in 1 : vector<16x8xbf16>, vector<16x56xbf16> -> vector<16x64xbf16>
    %c0_i32_276 = arith.constant 0 : i32
    %748 = arith.sitofp %c0_i32_276 : i32 to bf16
    %749 = vector.shape_cast %732 : vector<1x64xi1> to vector<1x64xi1>
    %750 = vector.broadcast %749 : vector<1x64xi1> to vector<16x64xi1>
    %751 = vector.broadcast %748 : bf16 to vector<16x64xbf16>
    %752 = arith.select %750, %747, %751 : vector<16x64xi1>, vector<16x64xbf16>
    %c1_277 = arith.constant 1 : index
    %c0_278 = arith.constant 0 : index
    %c0_279 = arith.constant 0 : index
    %753 = vector.load %arg10[%c1_277, %c0_278, %c0_279] : memref<9x16x16xbf16, #tpu.memory_space<vmem>>, vector<1x16x16xbf16>
    %754 = vector.shape_cast %753 : vector<1x16x16xbf16> to vector<16x16xbf16>
    %cst_280 = arith.constant dense<0.000000e+00> : vector<16x64xf32>
    %755 = tpu.matmul %754, %752, %cst_280 {dimension_numbers = #tpu.dot_dimension_numbers<[1], [0], [0], [1], [0, 0, 1, 1], [], []>} : vector<16x16xbf16>, vector<16x64xbf16>, vector<16x64xf32> -> vector<16x64xf32>
    %756 = arith.addf %744, %755 : vector<16x64xf32>
    %c1_i32_281 = arith.constant 1 : i32
    %757 = vector.broadcast %c1_i32_281 : i32 to vector<1x64xi32>
    %758 = arith.cmpi sge, %682, %757 : vector<1x64xi32>
    %c9_i32_282 = arith.constant 9 : i32
    %759 = vector.broadcast %c9_i32_282 : i32 to vector<1x64xi32>
    %760 = arith.cmpi slt, %682, %759 : vector<1x64xi32>
    %761 = arith.andi %758, %760 : vector<1x64xi1>
    %c-1_i32_283 = arith.constant -1 : i32
    %762 = vector.broadcast %c-1_i32_283 : i32 to vector<1x64xi32>
    %763 = arith.cmpi sge, %683, %762 : vector<1x64xi32>
    %764 = arith.andi %761, %763 : vector<1x64xi1>
    %c7_i32_284 = arith.constant 7 : i32
    %765 = vector.broadcast %c7_i32_284 : i32 to vector<1x64xi32>
    %766 = arith.cmpi slt, %683, %765 : vector<1x64xi32>
    %767 = arith.andi %764, %766 : vector<1x64xi1>
    %768 = vector.extract_strided_slice %684 {offsets = [0, 57], sizes = [32, 7], strides = [1, 1]} : vector<32x64xbf16> to vector<32x7xbf16>
    %769 = vector.extract_strided_slice %684 {offsets = [0, 0], sizes = [32, 57], strides = [1, 1]} : vector<32x64xbf16> to vector<32x57xbf16>
    %770 = tpu.concatenate %768, %769 in 1 : vector<32x7xbf16>, vector<32x57xbf16> -> vector<32x64xbf16>
    %c0_i32_285 = arith.constant 0 : i32
    %771 = arith.sitofp %c0_i32_285 : i32 to bf16
    %772 = vector.shape_cast %767 : vector<1x64xi1> to vector<1x64xi1>
    %773 = vector.broadcast %772 : vector<1x64xi1> to vector<32x64xi1>
    %774 = vector.broadcast %771 : bf16 to vector<32x64xbf16>
    %775 = arith.select %773, %770, %774 : vector<32x64xi1>, vector<32x64xbf16>
    %c2_286 = arith.constant 2 : index
    %c0_287 = arith.constant 0 : index
    %c0_288 = arith.constant 0 : index
    %776 = vector.load %arg9[%c2_286, %c0_287, %c0_288] : memref<9x16x32xbf16, #tpu.memory_space<vmem>>, vector<1x16x32xbf16>
    %777 = vector.shape_cast %776 : vector<1x16x32xbf16> to vector<16x32xbf16>
    %cst_289 = arith.constant dense<0.000000e+00> : vector<16x64xf32>
    %778 = tpu.matmul %777, %775, %cst_289 {dimension_numbers = #tpu.dot_dimension_numbers<[1], [0], [0], [1], [0, 0, 1, 1], [], []>} : vector<16x32xbf16>, vector<32x64xbf16>, vector<16x64xf32> -> vector<16x64xf32>
    %779 = arith.addf %756, %778 : vector<16x64xf32>
    %780 = vector.extract_strided_slice %685 {offsets = [0, 57], sizes = [16, 7], strides = [1, 1]} : vector<16x64xbf16> to vector<16x7xbf16>
    %781 = vector.extract_strided_slice %685 {offsets = [0, 0], sizes = [16, 57], strides = [1, 1]} : vector<16x64xbf16> to vector<16x57xbf16>
    %782 = tpu.concatenate %780, %781 in 1 : vector<16x7xbf16>, vector<16x57xbf16> -> vector<16x64xbf16>
    %c0_i32_290 = arith.constant 0 : i32
    %783 = arith.sitofp %c0_i32_290 : i32 to bf16
    %784 = vector.shape_cast %767 : vector<1x64xi1> to vector<1x64xi1>
    %785 = vector.broadcast %784 : vector<1x64xi1> to vector<16x64xi1>
    %786 = vector.broadcast %783 : bf16 to vector<16x64xbf16>
    %787 = arith.select %785, %782, %786 : vector<16x64xi1>, vector<16x64xbf16>
    %c2_291 = arith.constant 2 : index
    %c0_292 = arith.constant 0 : index
    %c0_293 = arith.constant 0 : index
    %788 = vector.load %arg10[%c2_291, %c0_292, %c0_293] : memref<9x16x16xbf16, #tpu.memory_space<vmem>>, vector<1x16x16xbf16>
    %789 = vector.shape_cast %788 : vector<1x16x16xbf16> to vector<16x16xbf16>
    %cst_294 = arith.constant dense<0.000000e+00> : vector<16x64xf32>
    %790 = tpu.matmul %789, %787, %cst_294 {dimension_numbers = #tpu.dot_dimension_numbers<[1], [0], [0], [1], [0, 0, 1, 1], [], []>} : vector<16x16xbf16>, vector<16x64xbf16>, vector<16x64xf32> -> vector<16x64xf32>
    %791 = arith.addf %779, %790 : vector<16x64xf32>
    %c0_i32_295 = arith.constant 0 : i32
    %792 = vector.broadcast %c0_i32_295 : i32 to vector<1x64xi32>
    %793 = arith.cmpi sge, %682, %792 : vector<1x64xi32>
    %c8_i32_296 = arith.constant 8 : i32
    %794 = vector.broadcast %c8_i32_296 : i32 to vector<1x64xi32>
    %795 = arith.cmpi slt, %682, %794 : vector<1x64xi32>
    %796 = arith.andi %793, %795 : vector<1x64xi1>
    %c1_i32_297 = arith.constant 1 : i32
    %797 = vector.broadcast %c1_i32_297 : i32 to vector<1x64xi32>
    %798 = arith.cmpi sge, %683, %797 : vector<1x64xi32>
    %799 = arith.andi %796, %798 : vector<1x64xi1>
    %c9_i32_298 = arith.constant 9 : i32
    %800 = vector.broadcast %c9_i32_298 : i32 to vector<1x64xi32>
    %801 = arith.cmpi slt, %683, %800 : vector<1x64xi32>
    %802 = arith.andi %799, %801 : vector<1x64xi1>
    %803 = vector.extract_strided_slice %684 {offsets = [0, 63], sizes = [32, 1], strides = [1, 1]} : vector<32x64xbf16> to vector<32x1xbf16>
    %804 = vector.extract_strided_slice %684 {offsets = [0, 0], sizes = [32, 63], strides = [1, 1]} : vector<32x64xbf16> to vector<32x63xbf16>
    %805 = tpu.concatenate %803, %804 in 1 : vector<32x1xbf16>, vector<32x63xbf16> -> vector<32x64xbf16>
    %c0_i32_299 = arith.constant 0 : i32
    %806 = arith.sitofp %c0_i32_299 : i32 to bf16
    %807 = vector.shape_cast %802 : vector<1x64xi1> to vector<1x64xi1>
    %808 = vector.broadcast %807 : vector<1x64xi1> to vector<32x64xi1>
    %809 = vector.broadcast %806 : bf16 to vector<32x64xbf16>
    %810 = arith.select %808, %805, %809 : vector<32x64xi1>, vector<32x64xbf16>
    %c3_300 = arith.constant 3 : index
    %c0_301 = arith.constant 0 : index
    %c0_302 = arith.constant 0 : index
    %811 = vector.load %arg9[%c3_300, %c0_301, %c0_302] : memref<9x16x32xbf16, #tpu.memory_space<vmem>>, vector<1x16x32xbf16>
    %812 = vector.shape_cast %811 : vector<1x16x32xbf16> to vector<16x32xbf16>
    %cst_303 = arith.constant dense<0.000000e+00> : vector<16x64xf32>
    %813 = tpu.matmul %812, %810, %cst_303 {dimension_numbers = #tpu.dot_dimension_numbers<[1], [0], [0], [1], [0, 0, 1, 1], [], []>} : vector<16x32xbf16>, vector<32x64xbf16>, vector<16x64xf32> -> vector<16x64xf32>
    %814 = arith.addf %791, %813 : vector<16x64xf32>
    %815 = vector.extract_strided_slice %685 {offsets = [0, 63], sizes = [16, 1], strides = [1, 1]} : vector<16x64xbf16> to vector<16x1xbf16>
    %816 = vector.extract_strided_slice %685 {offsets = [0, 0], sizes = [16, 63], strides = [1, 1]} : vector<16x64xbf16> to vector<16x63xbf16>
    %817 = tpu.concatenate %815, %816 in 1 : vector<16x1xbf16>, vector<16x63xbf16> -> vector<16x64xbf16>
    %c0_i32_304 = arith.constant 0 : i32
    %818 = arith.sitofp %c0_i32_304 : i32 to bf16
    %819 = vector.shape_cast %802 : vector<1x64xi1> to vector<1x64xi1>
    %820 = vector.broadcast %819 : vector<1x64xi1> to vector<16x64xi1>
    %821 = vector.broadcast %818 : bf16 to vector<16x64xbf16>
    %822 = arith.select %820, %817, %821 : vector<16x64xi1>, vector<16x64xbf16>
    %c3_305 = arith.constant 3 : index
    %c0_306 = arith.constant 0 : index
    %c0_307 = arith.constant 0 : index
    %823 = vector.load %arg10[%c3_305, %c0_306, %c0_307] : memref<9x16x16xbf16, #tpu.memory_space<vmem>>, vector<1x16x16xbf16>
    %824 = vector.shape_cast %823 : vector<1x16x16xbf16> to vector<16x16xbf16>
    %cst_308 = arith.constant dense<0.000000e+00> : vector<16x64xf32>
    %825 = tpu.matmul %824, %822, %cst_308 {dimension_numbers = #tpu.dot_dimension_numbers<[1], [0], [0], [1], [0, 0, 1, 1], [], []>} : vector<16x16xbf16>, vector<16x64xbf16>, vector<16x64xf32> -> vector<16x64xf32>
    %826 = arith.addf %814, %825 : vector<16x64xf32>
    %c0_i32_309 = arith.constant 0 : i32
    %827 = vector.broadcast %c0_i32_309 : i32 to vector<1x64xi32>
    %828 = arith.cmpi sge, %682, %827 : vector<1x64xi32>
    %c8_i32_310 = arith.constant 8 : i32
    %829 = vector.broadcast %c8_i32_310 : i32 to vector<1x64xi32>
    %830 = arith.cmpi slt, %682, %829 : vector<1x64xi32>
    %831 = arith.andi %828, %830 : vector<1x64xi1>
    %c0_i32_311 = arith.constant 0 : i32
    %832 = vector.broadcast %c0_i32_311 : i32 to vector<1x64xi32>
    %833 = arith.cmpi sge, %683, %832 : vector<1x64xi32>
    %834 = arith.andi %831, %833 : vector<1x64xi1>
    %c8_i32_312 = arith.constant 8 : i32
    %835 = vector.broadcast %c8_i32_312 : i32 to vector<1x64xi32>
    %836 = arith.cmpi slt, %683, %835 : vector<1x64xi32>
    %837 = arith.andi %834, %836 : vector<1x64xi1>
    %c0_i32_313 = arith.constant 0 : i32
    %838 = arith.sitofp %c0_i32_313 : i32 to bf16
    %839 = vector.shape_cast %837 : vector<1x64xi1> to vector<1x64xi1>
    %840 = vector.broadcast %839 : vector<1x64xi1> to vector<32x64xi1>
    %841 = vector.broadcast %838 : bf16 to vector<32x64xbf16>
    %842 = arith.select %840, %684, %841 : vector<32x64xi1>, vector<32x64xbf16>
    %c4_314 = arith.constant 4 : index
    %c0_315 = arith.constant 0 : index
    %c0_316 = arith.constant 0 : index
    %843 = vector.load %arg9[%c4_314, %c0_315, %c0_316] : memref<9x16x32xbf16, #tpu.memory_space<vmem>>, vector<1x16x32xbf16>
    %844 = vector.shape_cast %843 : vector<1x16x32xbf16> to vector<16x32xbf16>
    %cst_317 = arith.constant dense<0.000000e+00> : vector<16x64xf32>
    %845 = tpu.matmul %844, %842, %cst_317 {dimension_numbers = #tpu.dot_dimension_numbers<[1], [0], [0], [1], [0, 0, 1, 1], [], []>} : vector<16x32xbf16>, vector<32x64xbf16>, vector<16x64xf32> -> vector<16x64xf32>
    %846 = arith.addf %826, %845 : vector<16x64xf32>
    %c0_i32_318 = arith.constant 0 : i32
    %847 = arith.sitofp %c0_i32_318 : i32 to bf16
    %848 = vector.shape_cast %837 : vector<1x64xi1> to vector<1x64xi1>
    %849 = vector.broadcast %848 : vector<1x64xi1> to vector<16x64xi1>
    %850 = vector.broadcast %847 : bf16 to vector<16x64xbf16>
    %851 = arith.select %849, %685, %850 : vector<16x64xi1>, vector<16x64xbf16>
    %c4_319 = arith.constant 4 : index
    %c0_320 = arith.constant 0 : index
    %c0_321 = arith.constant 0 : index
    %852 = vector.load %arg10[%c4_319, %c0_320, %c0_321] : memref<9x16x16xbf16, #tpu.memory_space<vmem>>, vector<1x16x16xbf16>
    %853 = vector.shape_cast %852 : vector<1x16x16xbf16> to vector<16x16xbf16>
    %cst_322 = arith.constant dense<0.000000e+00> : vector<16x64xf32>
    %854 = tpu.matmul %853, %851, %cst_322 {dimension_numbers = #tpu.dot_dimension_numbers<[1], [0], [0], [1], [0, 0, 1, 1], [], []>} : vector<16x16xbf16>, vector<16x64xbf16>, vector<16x64xf32> -> vector<16x64xf32>
    %855 = arith.addf %846, %854 : vector<16x64xf32>
    %c0_i32_323 = arith.constant 0 : i32
    %856 = vector.broadcast %c0_i32_323 : i32 to vector<1x64xi32>
    %857 = arith.cmpi sge, %682, %856 : vector<1x64xi32>
    %c8_i32_324 = arith.constant 8 : i32
    %858 = vector.broadcast %c8_i32_324 : i32 to vector<1x64xi32>
    %859 = arith.cmpi slt, %682, %858 : vector<1x64xi32>
    %860 = arith.andi %857, %859 : vector<1x64xi1>
    %c-1_i32_325 = arith.constant -1 : i32
    %861 = vector.broadcast %c-1_i32_325 : i32 to vector<1x64xi32>
    %862 = arith.cmpi sge, %683, %861 : vector<1x64xi32>
    %863 = arith.andi %860, %862 : vector<1x64xi1>
    %c7_i32_326 = arith.constant 7 : i32
    %864 = vector.broadcast %c7_i32_326 : i32 to vector<1x64xi32>
    %865 = arith.cmpi slt, %683, %864 : vector<1x64xi32>
    %866 = arith.andi %863, %865 : vector<1x64xi1>
    %867 = vector.extract_strided_slice %684 {offsets = [0, 1], sizes = [32, 63], strides = [1, 1]} : vector<32x64xbf16> to vector<32x63xbf16>
    %868 = vector.extract_strided_slice %684 {offsets = [0, 0], sizes = [32, 1], strides = [1, 1]} : vector<32x64xbf16> to vector<32x1xbf16>
    %869 = tpu.concatenate %867, %868 in 1 : vector<32x63xbf16>, vector<32x1xbf16> -> vector<32x64xbf16>
    %c0_i32_327 = arith.constant 0 : i32
    %870 = arith.sitofp %c0_i32_327 : i32 to bf16
    %871 = vector.shape_cast %866 : vector<1x64xi1> to vector<1x64xi1>
    %872 = vector.broadcast %871 : vector<1x64xi1> to vector<32x64xi1>
    %873 = vector.broadcast %870 : bf16 to vector<32x64xbf16>
    %874 = arith.select %872, %869, %873 : vector<32x64xi1>, vector<32x64xbf16>
    %c5_328 = arith.constant 5 : index
    %c0_329 = arith.constant 0 : index
    %c0_330 = arith.constant 0 : index
    %875 = vector.load %arg9[%c5_328, %c0_329, %c0_330] : memref<9x16x32xbf16, #tpu.memory_space<vmem>>, vector<1x16x32xbf16>
    %876 = vector.shape_cast %875 : vector<1x16x32xbf16> to vector<16x32xbf16>
    %cst_331 = arith.constant dense<0.000000e+00> : vector<16x64xf32>
    %877 = tpu.matmul %876, %874, %cst_331 {dimension_numbers = #tpu.dot_dimension_numbers<[1], [0], [0], [1], [0, 0, 1, 1], [], []>} : vector<16x32xbf16>, vector<32x64xbf16>, vector<16x64xf32> -> vector<16x64xf32>
    %878 = arith.addf %855, %877 : vector<16x64xf32>
    %879 = vector.extract_strided_slice %685 {offsets = [0, 1], sizes = [16, 63], strides = [1, 1]} : vector<16x64xbf16> to vector<16x63xbf16>
    %880 = vector.extract_strided_slice %685 {offsets = [0, 0], sizes = [16, 1], strides = [1, 1]} : vector<16x64xbf16> to vector<16x1xbf16>
    %881 = tpu.concatenate %879, %880 in 1 : vector<16x63xbf16>, vector<16x1xbf16> -> vector<16x64xbf16>
    %c0_i32_332 = arith.constant 0 : i32
    %882 = arith.sitofp %c0_i32_332 : i32 to bf16
    %883 = vector.shape_cast %866 : vector<1x64xi1> to vector<1x64xi1>
    %884 = vector.broadcast %883 : vector<1x64xi1> to vector<16x64xi1>
    %885 = vector.broadcast %882 : bf16 to vector<16x64xbf16>
    %886 = arith.select %884, %881, %885 : vector<16x64xi1>, vector<16x64xbf16>
    %c5_333 = arith.constant 5 : index
    %c0_334 = arith.constant 0 : index
    %c0_335 = arith.constant 0 : index
    %887 = vector.load %arg10[%c5_333, %c0_334, %c0_335] : memref<9x16x16xbf16, #tpu.memory_space<vmem>>, vector<1x16x16xbf16>
    %888 = vector.shape_cast %887 : vector<1x16x16xbf16> to vector<16x16xbf16>
    %cst_336 = arith.constant dense<0.000000e+00> : vector<16x64xf32>
    %889 = tpu.matmul %888, %886, %cst_336 {dimension_numbers = #tpu.dot_dimension_numbers<[1], [0], [0], [1], [0, 0, 1, 1], [], []>} : vector<16x16xbf16>, vector<16x64xbf16>, vector<16x64xf32> -> vector<16x64xf32>
    %890 = arith.addf %878, %889 : vector<16x64xf32>
    %c-1_i32_337 = arith.constant -1 : i32
    %891 = vector.broadcast %c-1_i32_337 : i32 to vector<1x64xi32>
    %892 = arith.cmpi sge, %682, %891 : vector<1x64xi32>
    %c7_i32_338 = arith.constant 7 : i32
    %893 = vector.broadcast %c7_i32_338 : i32 to vector<1x64xi32>
    %894 = arith.cmpi slt, %682, %893 : vector<1x64xi32>
    %895 = arith.andi %892, %894 : vector<1x64xi1>
    %c1_i32_339 = arith.constant 1 : i32
    %896 = vector.broadcast %c1_i32_339 : i32 to vector<1x64xi32>
    %897 = arith.cmpi sge, %683, %896 : vector<1x64xi32>
    %898 = arith.andi %895, %897 : vector<1x64xi1>
    %c9_i32_340 = arith.constant 9 : i32
    %899 = vector.broadcast %c9_i32_340 : i32 to vector<1x64xi32>
    %900 = arith.cmpi slt, %683, %899 : vector<1x64xi32>
    %901 = arith.andi %898, %900 : vector<1x64xi1>
    %902 = vector.extract_strided_slice %684 {offsets = [0, 7], sizes = [32, 57], strides = [1, 1]} : vector<32x64xbf16> to vector<32x57xbf16>
    %903 = vector.extract_strided_slice %684 {offsets = [0, 0], sizes = [32, 7], strides = [1, 1]} : vector<32x64xbf16> to vector<32x7xbf16>
    %904 = tpu.concatenate %902, %903 in 1 : vector<32x57xbf16>, vector<32x7xbf16> -> vector<32x64xbf16>
    %c0_i32_341 = arith.constant 0 : i32
    %905 = arith.sitofp %c0_i32_341 : i32 to bf16
    %906 = vector.shape_cast %901 : vector<1x64xi1> to vector<1x64xi1>
    %907 = vector.broadcast %906 : vector<1x64xi1> to vector<32x64xi1>
    %908 = vector.broadcast %905 : bf16 to vector<32x64xbf16>
    %909 = arith.select %907, %904, %908 : vector<32x64xi1>, vector<32x64xbf16>
    %c6_342 = arith.constant 6 : index
    %c0_343 = arith.constant 0 : index
    %c0_344 = arith.constant 0 : index
    %910 = vector.load %arg9[%c6_342, %c0_343, %c0_344] : memref<9x16x32xbf16, #tpu.memory_space<vmem>>, vector<1x16x32xbf16>
    %911 = vector.shape_cast %910 : vector<1x16x32xbf16> to vector<16x32xbf16>
    %cst_345 = arith.constant dense<0.000000e+00> : vector<16x64xf32>
    %912 = tpu.matmul %911, %909, %cst_345 {dimension_numbers = #tpu.dot_dimension_numbers<[1], [0], [0], [1], [0, 0, 1, 1], [], []>} : vector<16x32xbf16>, vector<32x64xbf16>, vector<16x64xf32> -> vector<16x64xf32>
    %913 = arith.addf %890, %912 : vector<16x64xf32>
    %914 = vector.extract_strided_slice %685 {offsets = [0, 7], sizes = [16, 57], strides = [1, 1]} : vector<16x64xbf16> to vector<16x57xbf16>
    %915 = vector.extract_strided_slice %685 {offsets = [0, 0], sizes = [16, 7], strides = [1, 1]} : vector<16x64xbf16> to vector<16x7xbf16>
    %916 = tpu.concatenate %914, %915 in 1 : vector<16x57xbf16>, vector<16x7xbf16> -> vector<16x64xbf16>
    %c0_i32_346 = arith.constant 0 : i32
    %917 = arith.sitofp %c0_i32_346 : i32 to bf16
    %918 = vector.shape_cast %901 : vector<1x64xi1> to vector<1x64xi1>
    %919 = vector.broadcast %918 : vector<1x64xi1> to vector<16x64xi1>
    %920 = vector.broadcast %917 : bf16 to vector<16x64xbf16>
    %921 = arith.select %919, %916, %920 : vector<16x64xi1>, vector<16x64xbf16>
    %c6_347 = arith.constant 6 : index
    %c0_348 = arith.constant 0 : index
    %c0_349 = arith.constant 0 : index
    %922 = vector.load %arg10[%c6_347, %c0_348, %c0_349] : memref<9x16x16xbf16, #tpu.memory_space<vmem>>, vector<1x16x16xbf16>
    %923 = vector.shape_cast %922 : vector<1x16x16xbf16> to vector<16x16xbf16>
    %cst_350 = arith.constant dense<0.000000e+00> : vector<16x64xf32>
    %924 = tpu.matmul %923, %921, %cst_350 {dimension_numbers = #tpu.dot_dimension_numbers<[1], [0], [0], [1], [0, 0, 1, 1], [], []>} : vector<16x16xbf16>, vector<16x64xbf16>, vector<16x64xf32> -> vector<16x64xf32>
    %925 = arith.addf %913, %924 : vector<16x64xf32>
    %c-1_i32_351 = arith.constant -1 : i32
    %926 = vector.broadcast %c-1_i32_351 : i32 to vector<1x64xi32>
    %927 = arith.cmpi sge, %682, %926 : vector<1x64xi32>
    %c7_i32_352 = arith.constant 7 : i32
    %928 = vector.broadcast %c7_i32_352 : i32 to vector<1x64xi32>
    %929 = arith.cmpi slt, %682, %928 : vector<1x64xi32>
    %930 = arith.andi %927, %929 : vector<1x64xi1>
    %c0_i32_353 = arith.constant 0 : i32
    %931 = vector.broadcast %c0_i32_353 : i32 to vector<1x64xi32>
    %932 = arith.cmpi sge, %683, %931 : vector<1x64xi32>
    %933 = arith.andi %930, %932 : vector<1x64xi1>
    %c8_i32_354 = arith.constant 8 : i32
    %934 = vector.broadcast %c8_i32_354 : i32 to vector<1x64xi32>
    %935 = arith.cmpi slt, %683, %934 : vector<1x64xi32>
    %936 = arith.andi %933, %935 : vector<1x64xi1>
    %937 = vector.extract_strided_slice %684 {offsets = [0, 8], sizes = [32, 56], strides = [1, 1]} : vector<32x64xbf16> to vector<32x56xbf16>
    %938 = vector.extract_strided_slice %684 {offsets = [0, 0], sizes = [32, 8], strides = [1, 1]} : vector<32x64xbf16> to vector<32x8xbf16>
    %939 = tpu.concatenate %937, %938 in 1 : vector<32x56xbf16>, vector<32x8xbf16> -> vector<32x64xbf16>
    %c0_i32_355 = arith.constant 0 : i32
    %940 = arith.sitofp %c0_i32_355 : i32 to bf16
    %941 = vector.shape_cast %936 : vector<1x64xi1> to vector<1x64xi1>
    %942 = vector.broadcast %941 : vector<1x64xi1> to vector<32x64xi1>
    %943 = vector.broadcast %940 : bf16 to vector<32x64xbf16>
    %944 = arith.select %942, %939, %943 : vector<32x64xi1>, vector<32x64xbf16>
    %c7_356 = arith.constant 7 : index
    %c0_357 = arith.constant 0 : index
    %c0_358 = arith.constant 0 : index
    %945 = vector.load %arg9[%c7_356, %c0_357, %c0_358] : memref<9x16x32xbf16, #tpu.memory_space<vmem>>, vector<1x16x32xbf16>
    %946 = vector.shape_cast %945 : vector<1x16x32xbf16> to vector<16x32xbf16>
    %cst_359 = arith.constant dense<0.000000e+00> : vector<16x64xf32>
    %947 = tpu.matmul %946, %944, %cst_359 {dimension_numbers = #tpu.dot_dimension_numbers<[1], [0], [0], [1], [0, 0, 1, 1], [], []>} : vector<16x32xbf16>, vector<32x64xbf16>, vector<16x64xf32> -> vector<16x64xf32>
    %948 = arith.addf %925, %947 : vector<16x64xf32>
    %949 = vector.extract_strided_slice %685 {offsets = [0, 8], sizes = [16, 56], strides = [1, 1]} : vector<16x64xbf16> to vector<16x56xbf16>
    %950 = vector.extract_strided_slice %685 {offsets = [0, 0], sizes = [16, 8], strides = [1, 1]} : vector<16x64xbf16> to vector<16x8xbf16>
    %951 = tpu.concatenate %949, %950 in 1 : vector<16x56xbf16>, vector<16x8xbf16> -> vector<16x64xbf16>
    %c0_i32_360 = arith.constant 0 : i32
    %952 = arith.sitofp %c0_i32_360 : i32 to bf16
    %953 = vector.shape_cast %936 : vector<1x64xi1> to vector<1x64xi1>
    %954 = vector.broadcast %953 : vector<1x64xi1> to vector<16x64xi1>
    %955 = vector.broadcast %952 : bf16 to vector<16x64xbf16>
    %956 = arith.select %954, %951, %955 : vector<16x64xi1>, vector<16x64xbf16>
    %c7_361 = arith.constant 7 : index
    %c0_362 = arith.constant 0 : index
    %c0_363 = arith.constant 0 : index
    %957 = vector.load %arg10[%c7_361, %c0_362, %c0_363] : memref<9x16x16xbf16, #tpu.memory_space<vmem>>, vector<1x16x16xbf16>
    %958 = vector.shape_cast %957 : vector<1x16x16xbf16> to vector<16x16xbf16>
    %cst_364 = arith.constant dense<0.000000e+00> : vector<16x64xf32>
    %959 = tpu.matmul %958, %956, %cst_364 {dimension_numbers = #tpu.dot_dimension_numbers<[1], [0], [0], [1], [0, 0, 1, 1], [], []>} : vector<16x16xbf16>, vector<16x64xbf16>, vector<16x64xf32> -> vector<16x64xf32>
    %960 = arith.addf %948, %959 : vector<16x64xf32>
    %c-1_i32_365 = arith.constant -1 : i32
    %961 = vector.broadcast %c-1_i32_365 : i32 to vector<1x64xi32>
    %962 = arith.cmpi sge, %682, %961 : vector<1x64xi32>
    %c7_i32_366 = arith.constant 7 : i32
    %963 = vector.broadcast %c7_i32_366 : i32 to vector<1x64xi32>
    %964 = arith.cmpi slt, %682, %963 : vector<1x64xi32>
    %965 = arith.andi %962, %964 : vector<1x64xi1>
    %c-1_i32_367 = arith.constant -1 : i32
    %966 = vector.broadcast %c-1_i32_367 : i32 to vector<1x64xi32>
    %967 = arith.cmpi sge, %683, %966 : vector<1x64xi32>
    %968 = arith.andi %965, %967 : vector<1x64xi1>
    %c7_i32_368 = arith.constant 7 : i32
    %969 = vector.broadcast %c7_i32_368 : i32 to vector<1x64xi32>
    %970 = arith.cmpi slt, %683, %969 : vector<1x64xi32>
    %971 = arith.andi %968, %970 : vector<1x64xi1>
    %972 = vector.extract_strided_slice %684 {offsets = [0, 9], sizes = [32, 55], strides = [1, 1]} : vector<32x64xbf16> to vector<32x55xbf16>
    %973 = vector.extract_strided_slice %684 {offsets = [0, 0], sizes = [32, 9], strides = [1, 1]} : vector<32x64xbf16> to vector<32x9xbf16>
    %974 = tpu.concatenate %972, %973 in 1 : vector<32x55xbf16>, vector<32x9xbf16> -> vector<32x64xbf16>
    %c0_i32_369 = arith.constant 0 : i32
    %975 = arith.sitofp %c0_i32_369 : i32 to bf16
    %976 = vector.shape_cast %971 : vector<1x64xi1> to vector<1x64xi1>
    %977 = vector.broadcast %976 : vector<1x64xi1> to vector<32x64xi1>
    %978 = vector.broadcast %975 : bf16 to vector<32x64xbf16>
    %979 = arith.select %977, %974, %978 : vector<32x64xi1>, vector<32x64xbf16>
    %c8_370 = arith.constant 8 : index
    %c0_371 = arith.constant 0 : index
    %c0_372 = arith.constant 0 : index
    %980 = vector.load %arg9[%c8_370, %c0_371, %c0_372] : memref<9x16x32xbf16, #tpu.memory_space<vmem>>, vector<1x16x32xbf16>
    %981 = vector.shape_cast %980 : vector<1x16x32xbf16> to vector<16x32xbf16>
    %cst_373 = arith.constant dense<0.000000e+00> : vector<16x64xf32>
    %982 = tpu.matmul %981, %979, %cst_373 {dimension_numbers = #tpu.dot_dimension_numbers<[1], [0], [0], [1], [0, 0, 1, 1], [], []>} : vector<16x32xbf16>, vector<32x64xbf16>, vector<16x64xf32> -> vector<16x64xf32>
    %983 = arith.addf %960, %982 : vector<16x64xf32>
    %984 = vector.extract_strided_slice %685 {offsets = [0, 9], sizes = [16, 55], strides = [1, 1]} : vector<16x64xbf16> to vector<16x55xbf16>
    %985 = vector.extract_strided_slice %685 {offsets = [0, 0], sizes = [16, 9], strides = [1, 1]} : vector<16x64xbf16> to vector<16x9xbf16>
    %986 = tpu.concatenate %984, %985 in 1 : vector<16x55xbf16>, vector<16x9xbf16> -> vector<16x64xbf16>
    %c0_i32_374 = arith.constant 0 : i32
    %987 = arith.sitofp %c0_i32_374 : i32 to bf16
    %988 = vector.shape_cast %971 : vector<1x64xi1> to vector<1x64xi1>
    %989 = vector.broadcast %988 : vector<1x64xi1> to vector<16x64xi1>
    %990 = vector.broadcast %987 : bf16 to vector<16x64xbf16>
    %991 = arith.select %989, %986, %990 : vector<16x64xi1>, vector<16x64xbf16>
    %c8_375 = arith.constant 8 : index
    %c0_376 = arith.constant 0 : index
    %c0_377 = arith.constant 0 : index
    %992 = vector.load %arg10[%c8_375, %c0_376, %c0_377] : memref<9x16x16xbf16, #tpu.memory_space<vmem>>, vector<1x16x16xbf16>
    %993 = vector.shape_cast %992 : vector<1x16x16xbf16> to vector<16x16xbf16>
    %cst_378 = arith.constant dense<0.000000e+00> : vector<16x64xf32>
    %994 = tpu.matmul %993, %991, %cst_378 {dimension_numbers = #tpu.dot_dimension_numbers<[1], [0], [0], [1], [0, 0, 1, 1], [], []>} : vector<16x16xbf16>, vector<16x64xbf16>, vector<16x64xf32> -> vector<16x64xf32>
    %995 = arith.addf %983, %994 : vector<16x64xf32>
    %c0_379 = arith.constant 0 : index
    %c0_380 = arith.constant 0 : index
    %996 = vector.load %arg11[%c0_379, %c0_380] : memref<16x1xf32, #tpu.memory_space<vmem>>, vector<16x1xf32>
    %997 = vector.broadcast %996 : vector<16x1xf32> to vector<16x64xf32>
    %998 = arith.addf %995, %997 : vector<16x64xf32>
    %cst_381 = arith.constant 0.000000e+00 : f32
    %999 = vector.broadcast %cst_381 : f32 to vector<16x64xf32>
    %1000 = arith.maximumf %998, %999 : vector<16x64xf32>
    %1001 = arith.truncf %1000 : vector<16x64xf32> to vector<16x64xbf16>
    %c0_382 = arith.constant 0 : index
    %c0_383 = arith.constant 0 : index
    %1002 = vector.load %arg23[%c0_382, %c0_383] : memref<64x256xbf16, #tpu.memory_space<vmem>>, vector<64x256xbf16>
    %cst_384 = arith.constant dense<0.000000e+00> : vector<16x256xf32>
    %1003 = tpu.matmul %1001, %1002, %cst_384 {dimension_numbers = #tpu.dot_dimension_numbers<[1], [0], [0], [1], [0, 0, 1, 1], [], []>} : vector<16x64xbf16>, vector<64x256xbf16>, vector<16x256xf32> -> vector<16x256xf32>
    %c0_385 = arith.constant 0 : index
    %c0_386 = arith.constant 0 : index
    %1004 = vector.load %arg17[%c0_385, %c0_386] : memref<2x256xi32, #tpu.memory_space<vmem>>, vector<1x256xi32>
    %c1_387 = arith.constant 1 : index
    %c0_388 = arith.constant 0 : index
    %1005 = vector.load %arg17[%c1_387, %c0_388] : memref<2x256xi32, #tpu.memory_space<vmem>>, vector<1x256xi32>
    %1006 = arith.truncf %1003 : vector<16x256xf32> to vector<16x256xbf16>
    %1007 = arith.truncf %222 : vector<8x256xf32> to vector<8x256xbf16>
    %cst_389 = arith.constant 0.000000e+00 : f32
    %1008 = vector.broadcast %cst_389 : f32 to vector<8x256xf32>
    %c1_i32_390 = arith.constant 1 : i32
    %1009 = vector.broadcast %c1_i32_390 : i32 to vector<1x256xi32>
    %1010 = arith.cmpi sge, %1004, %1009 : vector<1x256xi32>
    %c17_i32_391 = arith.constant 17 : i32
    %1011 = vector.broadcast %c17_i32_391 : i32 to vector<1x256xi32>
    %1012 = arith.cmpi slt, %1004, %1011 : vector<1x256xi32>
    %1013 = arith.andi %1010, %1012 : vector<1x256xi1>
    %c1_i32_392 = arith.constant 1 : i32
    %1014 = vector.broadcast %c1_i32_392 : i32 to vector<1x256xi32>
    %1015 = arith.cmpi sge, %1005, %1014 : vector<1x256xi32>
    %1016 = arith.andi %1013, %1015 : vector<1x256xi1>
    %c17_i32_393 = arith.constant 17 : i32
    %1017 = vector.broadcast %c17_i32_393 : i32 to vector<1x256xi32>
    %1018 = arith.cmpi slt, %1005, %1017 : vector<1x256xi32>
    %1019 = arith.andi %1016, %1018 : vector<1x256xi1>
    %1020 = vector.extract_strided_slice %1006 {offsets = [0, 239], sizes = [16, 17], strides = [1, 1]} : vector<16x256xbf16> to vector<16x17xbf16>
    %1021 = vector.extract_strided_slice %1006 {offsets = [0, 0], sizes = [16, 239], strides = [1, 1]} : vector<16x256xbf16> to vector<16x239xbf16>
    %1022 = tpu.concatenate %1020, %1021 in 1 : vector<16x17xbf16>, vector<16x239xbf16> -> vector<16x256xbf16>
    %c0_i32_394 = arith.constant 0 : i32
    %1023 = arith.sitofp %c0_i32_394 : i32 to bf16
    %1024 = vector.shape_cast %1019 : vector<1x256xi1> to vector<1x256xi1>
    %1025 = vector.broadcast %1024 : vector<1x256xi1> to vector<16x256xi1>
    %1026 = vector.broadcast %1023 : bf16 to vector<16x256xbf16>
    %1027 = arith.select %1025, %1022, %1026 : vector<16x256xi1>, vector<16x256xbf16>
    %c0_395 = arith.constant 0 : index
    %c0_396 = arith.constant 0 : index
    %c0_397 = arith.constant 0 : index
    %1028 = vector.load %arg12[%c0_395, %c0_396, %c0_397] : memref<9x8x16xbf16, #tpu.memory_space<vmem>>, vector<1x8x16xbf16>
    %1029 = vector.shape_cast %1028 : vector<1x8x16xbf16> to vector<8x16xbf16>
    %cst_398 = arith.constant dense<0.000000e+00> : vector<8x256xf32>
    %1030 = tpu.matmul %1029, %1027, %cst_398 {dimension_numbers = #tpu.dot_dimension_numbers<[1], [0], [0], [1], [0, 0, 1, 1], [], []>} : vector<8x16xbf16>, vector<16x256xbf16>, vector<8x256xf32> -> vector<8x256xf32>
    %1031 = arith.addf %1008, %1030 : vector<8x256xf32>
    %1032 = vector.extract_strided_slice %1007 {offsets = [0, 239], sizes = [8, 17], strides = [1, 1]} : vector<8x256xbf16> to vector<8x17xbf16>
    %1033 = vector.extract_strided_slice %1007 {offsets = [0, 0], sizes = [8, 239], strides = [1, 1]} : vector<8x256xbf16> to vector<8x239xbf16>
    %1034 = tpu.concatenate %1032, %1033 in 1 : vector<8x17xbf16>, vector<8x239xbf16> -> vector<8x256xbf16>
    %c0_i32_399 = arith.constant 0 : i32
    %1035 = arith.sitofp %c0_i32_399 : i32 to bf16
    %1036 = vector.shape_cast %1019 : vector<1x256xi1> to vector<1x256xi1>
    %1037 = vector.broadcast %1036 : vector<1x256xi1> to vector<8x256xi1>
    %1038 = vector.broadcast %1035 : bf16 to vector<8x256xbf16>
    %1039 = arith.select %1037, %1034, %1038 : vector<8x256xi1>, vector<8x256xbf16>
    %c0_400 = arith.constant 0 : index
    %c0_401 = arith.constant 0 : index
    %c0_402 = arith.constant 0 : index
    %1040 = vector.load %arg13[%c0_400, %c0_401, %c0_402] : memref<9x8x8xbf16, #tpu.memory_space<vmem>>, vector<1x8x8xbf16>
    %1041 = vector.shape_cast %1040 : vector<1x8x8xbf16> to vector<8x8xbf16>
    %cst_403 = arith.constant dense<0.000000e+00> : vector<8x256xf32>
    %1042 = tpu.matmul %1041, %1039, %cst_403 {dimension_numbers = #tpu.dot_dimension_numbers<[1], [0], [0], [1], [0, 0, 1, 1], [], []>} : vector<8x8xbf16>, vector<8x256xbf16>, vector<8x256xf32> -> vector<8x256xf32>
    %1043 = arith.addf %1031, %1042 : vector<8x256xf32>
    %c1_i32_404 = arith.constant 1 : i32
    %1044 = vector.broadcast %c1_i32_404 : i32 to vector<1x256xi32>
    %1045 = arith.cmpi sge, %1004, %1044 : vector<1x256xi32>
    %c17_i32_405 = arith.constant 17 : i32
    %1046 = vector.broadcast %c17_i32_405 : i32 to vector<1x256xi32>
    %1047 = arith.cmpi slt, %1004, %1046 : vector<1x256xi32>
    %1048 = arith.andi %1045, %1047 : vector<1x256xi1>
    %c0_i32_406 = arith.constant 0 : i32
    %1049 = vector.broadcast %c0_i32_406 : i32 to vector<1x256xi32>
    %1050 = arith.cmpi sge, %1005, %1049 : vector<1x256xi32>
    %1051 = arith.andi %1048, %1050 : vector<1x256xi1>
    %c16_i32_407 = arith.constant 16 : i32
    %1052 = vector.broadcast %c16_i32_407 : i32 to vector<1x256xi32>
    %1053 = arith.cmpi slt, %1005, %1052 : vector<1x256xi32>
    %1054 = arith.andi %1051, %1053 : vector<1x256xi1>
    %1055 = vector.extract_strided_slice %1006 {offsets = [0, 240], sizes = [16, 16], strides = [1, 1]} : vector<16x256xbf16> to vector<16x16xbf16>
    %1056 = vector.extract_strided_slice %1006 {offsets = [0, 0], sizes = [16, 240], strides = [1, 1]} : vector<16x256xbf16> to vector<16x240xbf16>
    %1057 = tpu.concatenate %1055, %1056 in 1 : vector<16x16xbf16>, vector<16x240xbf16> -> vector<16x256xbf16>
    %c0_i32_408 = arith.constant 0 : i32
    %1058 = arith.sitofp %c0_i32_408 : i32 to bf16
    %1059 = vector.shape_cast %1054 : vector<1x256xi1> to vector<1x256xi1>
    %1060 = vector.broadcast %1059 : vector<1x256xi1> to vector<16x256xi1>
    %1061 = vector.broadcast %1058 : bf16 to vector<16x256xbf16>
    %1062 = arith.select %1060, %1057, %1061 : vector<16x256xi1>, vector<16x256xbf16>
    %c1_409 = arith.constant 1 : index
    %c0_410 = arith.constant 0 : index
    %c0_411 = arith.constant 0 : index
    %1063 = vector.load %arg12[%c1_409, %c0_410, %c0_411] : memref<9x8x16xbf16, #tpu.memory_space<vmem>>, vector<1x8x16xbf16>
    %1064 = vector.shape_cast %1063 : vector<1x8x16xbf16> to vector<8x16xbf16>
    %cst_412 = arith.constant dense<0.000000e+00> : vector<8x256xf32>
    %1065 = tpu.matmul %1064, %1062, %cst_412 {dimension_numbers = #tpu.dot_dimension_numbers<[1], [0], [0], [1], [0, 0, 1, 1], [], []>} : vector<8x16xbf16>, vector<16x256xbf16>, vector<8x256xf32> -> vector<8x256xf32>
    %1066 = arith.addf %1043, %1065 : vector<8x256xf32>
    %1067 = vector.extract_strided_slice %1007 {offsets = [0, 240], sizes = [8, 16], strides = [1, 1]} : vector<8x256xbf16> to vector<8x16xbf16>
    %1068 = vector.extract_strided_slice %1007 {offsets = [0, 0], sizes = [8, 240], strides = [1, 1]} : vector<8x256xbf16> to vector<8x240xbf16>
    %1069 = tpu.concatenate %1067, %1068 in 1 : vector<8x16xbf16>, vector<8x240xbf16> -> vector<8x256xbf16>
    %c0_i32_413 = arith.constant 0 : i32
    %1070 = arith.sitofp %c0_i32_413 : i32 to bf16
    %1071 = vector.shape_cast %1054 : vector<1x256xi1> to vector<1x256xi1>
    %1072 = vector.broadcast %1071 : vector<1x256xi1> to vector<8x256xi1>
    %1073 = vector.broadcast %1070 : bf16 to vector<8x256xbf16>
    %1074 = arith.select %1072, %1069, %1073 : vector<8x256xi1>, vector<8x256xbf16>
    %c1_414 = arith.constant 1 : index
    %c0_415 = arith.constant 0 : index
    %c0_416 = arith.constant 0 : index
    %1075 = vector.load %arg13[%c1_414, %c0_415, %c0_416] : memref<9x8x8xbf16, #tpu.memory_space<vmem>>, vector<1x8x8xbf16>
    %1076 = vector.shape_cast %1075 : vector<1x8x8xbf16> to vector<8x8xbf16>
    %cst_417 = arith.constant dense<0.000000e+00> : vector<8x256xf32>
    %1077 = tpu.matmul %1076, %1074, %cst_417 {dimension_numbers = #tpu.dot_dimension_numbers<[1], [0], [0], [1], [0, 0, 1, 1], [], []>} : vector<8x8xbf16>, vector<8x256xbf16>, vector<8x256xf32> -> vector<8x256xf32>
    %1078 = arith.addf %1066, %1077 : vector<8x256xf32>
    %c1_i32_418 = arith.constant 1 : i32
    %1079 = vector.broadcast %c1_i32_418 : i32 to vector<1x256xi32>
    %1080 = arith.cmpi sge, %1004, %1079 : vector<1x256xi32>
    %c17_i32_419 = arith.constant 17 : i32
    %1081 = vector.broadcast %c17_i32_419 : i32 to vector<1x256xi32>
    %1082 = arith.cmpi slt, %1004, %1081 : vector<1x256xi32>
    %1083 = arith.andi %1080, %1082 : vector<1x256xi1>
    %c-1_i32_420 = arith.constant -1 : i32
    %1084 = vector.broadcast %c-1_i32_420 : i32 to vector<1x256xi32>
    %1085 = arith.cmpi sge, %1005, %1084 : vector<1x256xi32>
    %1086 = arith.andi %1083, %1085 : vector<1x256xi1>
    %c15_i32_421 = arith.constant 15 : i32
    %1087 = vector.broadcast %c15_i32_421 : i32 to vector<1x256xi32>
    %1088 = arith.cmpi slt, %1005, %1087 : vector<1x256xi32>
    %1089 = arith.andi %1086, %1088 : vector<1x256xi1>
    %1090 = vector.extract_strided_slice %1006 {offsets = [0, 241], sizes = [16, 15], strides = [1, 1]} : vector<16x256xbf16> to vector<16x15xbf16>
    %1091 = vector.extract_strided_slice %1006 {offsets = [0, 0], sizes = [16, 241], strides = [1, 1]} : vector<16x256xbf16> to vector<16x241xbf16>
    %1092 = tpu.concatenate %1090, %1091 in 1 : vector<16x15xbf16>, vector<16x241xbf16> -> vector<16x256xbf16>
    %c0_i32_422 = arith.constant 0 : i32
    %1093 = arith.sitofp %c0_i32_422 : i32 to bf16
    %1094 = vector.shape_cast %1089 : vector<1x256xi1> to vector<1x256xi1>
    %1095 = vector.broadcast %1094 : vector<1x256xi1> to vector<16x256xi1>
    %1096 = vector.broadcast %1093 : bf16 to vector<16x256xbf16>
    %1097 = arith.select %1095, %1092, %1096 : vector<16x256xi1>, vector<16x256xbf16>
    %c2_423 = arith.constant 2 : index
    %c0_424 = arith.constant 0 : index
    %c0_425 = arith.constant 0 : index
    %1098 = vector.load %arg12[%c2_423, %c0_424, %c0_425] : memref<9x8x16xbf16, #tpu.memory_space<vmem>>, vector<1x8x16xbf16>
    %1099 = vector.shape_cast %1098 : vector<1x8x16xbf16> to vector<8x16xbf16>
    %cst_426 = arith.constant dense<0.000000e+00> : vector<8x256xf32>
    %1100 = tpu.matmul %1099, %1097, %cst_426 {dimension_numbers = #tpu.dot_dimension_numbers<[1], [0], [0], [1], [0, 0, 1, 1], [], []>} : vector<8x16xbf16>, vector<16x256xbf16>, vector<8x256xf32> -> vector<8x256xf32>
    %1101 = arith.addf %1078, %1100 : vector<8x256xf32>
    %1102 = vector.extract_strided_slice %1007 {offsets = [0, 241], sizes = [8, 15], strides = [1, 1]} : vector<8x256xbf16> to vector<8x15xbf16>
    %1103 = vector.extract_strided_slice %1007 {offsets = [0, 0], sizes = [8, 241], strides = [1, 1]} : vector<8x256xbf16> to vector<8x241xbf16>
    %1104 = tpu.concatenate %1102, %1103 in 1 : vector<8x15xbf16>, vector<8x241xbf16> -> vector<8x256xbf16>
    %c0_i32_427 = arith.constant 0 : i32
    %1105 = arith.sitofp %c0_i32_427 : i32 to bf16
    %1106 = vector.shape_cast %1089 : vector<1x256xi1> to vector<1x256xi1>
    %1107 = vector.broadcast %1106 : vector<1x256xi1> to vector<8x256xi1>
    %1108 = vector.broadcast %1105 : bf16 to vector<8x256xbf16>
    %1109 = arith.select %1107, %1104, %1108 : vector<8x256xi1>, vector<8x256xbf16>
    %c2_428 = arith.constant 2 : index
    %c0_429 = arith.constant 0 : index
    %c0_430 = arith.constant 0 : index
    %1110 = vector.load %arg13[%c2_428, %c0_429, %c0_430] : memref<9x8x8xbf16, #tpu.memory_space<vmem>>, vector<1x8x8xbf16>
    %1111 = vector.shape_cast %1110 : vector<1x8x8xbf16> to vector<8x8xbf16>
    %cst_431 = arith.constant dense<0.000000e+00> : vector<8x256xf32>
    %1112 = tpu.matmul %1111, %1109, %cst_431 {dimension_numbers = #tpu.dot_dimension_numbers<[1], [0], [0], [1], [0, 0, 1, 1], [], []>} : vector<8x8xbf16>, vector<8x256xbf16>, vector<8x256xf32> -> vector<8x256xf32>
    %1113 = arith.addf %1101, %1112 : vector<8x256xf32>
    %c0_i32_432 = arith.constant 0 : i32
    %1114 = vector.broadcast %c0_i32_432 : i32 to vector<1x256xi32>
    %1115 = arith.cmpi sge, %1004, %1114 : vector<1x256xi32>
    %c16_i32_433 = arith.constant 16 : i32
    %1116 = vector.broadcast %c16_i32_433 : i32 to vector<1x256xi32>
    %1117 = arith.cmpi slt, %1004, %1116 : vector<1x256xi32>
    %1118 = arith.andi %1115, %1117 : vector<1x256xi1>
    %c1_i32_434 = arith.constant 1 : i32
    %1119 = vector.broadcast %c1_i32_434 : i32 to vector<1x256xi32>
    %1120 = arith.cmpi sge, %1005, %1119 : vector<1x256xi32>
    %1121 = arith.andi %1118, %1120 : vector<1x256xi1>
    %c17_i32_435 = arith.constant 17 : i32
    %1122 = vector.broadcast %c17_i32_435 : i32 to vector<1x256xi32>
    %1123 = arith.cmpi slt, %1005, %1122 : vector<1x256xi32>
    %1124 = arith.andi %1121, %1123 : vector<1x256xi1>
    %1125 = vector.extract_strided_slice %1006 {offsets = [0, 255], sizes = [16, 1], strides = [1, 1]} : vector<16x256xbf16> to vector<16x1xbf16>
    %1126 = vector.extract_strided_slice %1006 {offsets = [0, 0], sizes = [16, 255], strides = [1, 1]} : vector<16x256xbf16> to vector<16x255xbf16>
    %1127 = tpu.concatenate %1125, %1126 in 1 : vector<16x1xbf16>, vector<16x255xbf16> -> vector<16x256xbf16>
    %c0_i32_436 = arith.constant 0 : i32
    %1128 = arith.sitofp %c0_i32_436 : i32 to bf16
    %1129 = vector.shape_cast %1124 : vector<1x256xi1> to vector<1x256xi1>
    %1130 = vector.broadcast %1129 : vector<1x256xi1> to vector<16x256xi1>
    %1131 = vector.broadcast %1128 : bf16 to vector<16x256xbf16>
    %1132 = arith.select %1130, %1127, %1131 : vector<16x256xi1>, vector<16x256xbf16>
    %c3_437 = arith.constant 3 : index
    %c0_438 = arith.constant 0 : index
    %c0_439 = arith.constant 0 : index
    %1133 = vector.load %arg12[%c3_437, %c0_438, %c0_439] : memref<9x8x16xbf16, #tpu.memory_space<vmem>>, vector<1x8x16xbf16>
    %1134 = vector.shape_cast %1133 : vector<1x8x16xbf16> to vector<8x16xbf16>
    %cst_440 = arith.constant dense<0.000000e+00> : vector<8x256xf32>
    %1135 = tpu.matmul %1134, %1132, %cst_440 {dimension_numbers = #tpu.dot_dimension_numbers<[1], [0], [0], [1], [0, 0, 1, 1], [], []>} : vector<8x16xbf16>, vector<16x256xbf16>, vector<8x256xf32> -> vector<8x256xf32>
    %1136 = arith.addf %1113, %1135 : vector<8x256xf32>
    %1137 = vector.extract_strided_slice %1007 {offsets = [0, 255], sizes = [8, 1], strides = [1, 1]} : vector<8x256xbf16> to vector<8x1xbf16>
    %1138 = vector.extract_strided_slice %1007 {offsets = [0, 0], sizes = [8, 255], strides = [1, 1]} : vector<8x256xbf16> to vector<8x255xbf16>
    %1139 = tpu.concatenate %1137, %1138 in 1 : vector<8x1xbf16>, vector<8x255xbf16> -> vector<8x256xbf16>
    %c0_i32_441 = arith.constant 0 : i32
    %1140 = arith.sitofp %c0_i32_441 : i32 to bf16
    %1141 = vector.shape_cast %1124 : vector<1x256xi1> to vector<1x256xi1>
    %1142 = vector.broadcast %1141 : vector<1x256xi1> to vector<8x256xi1>
    %1143 = vector.broadcast %1140 : bf16 to vector<8x256xbf16>
    %1144 = arith.select %1142, %1139, %1143 : vector<8x256xi1>, vector<8x256xbf16>
    %c3_442 = arith.constant 3 : index
    %c0_443 = arith.constant 0 : index
    %c0_444 = arith.constant 0 : index
    %1145 = vector.load %arg13[%c3_442, %c0_443, %c0_444] : memref<9x8x8xbf16, #tpu.memory_space<vmem>>, vector<1x8x8xbf16>
    %1146 = vector.shape_cast %1145 : vector<1x8x8xbf16> to vector<8x8xbf16>
    %cst_445 = arith.constant dense<0.000000e+00> : vector<8x256xf32>
    %1147 = tpu.matmul %1146, %1144, %cst_445 {dimension_numbers = #tpu.dot_dimension_numbers<[1], [0], [0], [1], [0, 0, 1, 1], [], []>} : vector<8x8xbf16>, vector<8x256xbf16>, vector<8x256xf32> -> vector<8x256xf32>
    %1148 = arith.addf %1136, %1147 : vector<8x256xf32>
    %c0_i32_446 = arith.constant 0 : i32
    %1149 = vector.broadcast %c0_i32_446 : i32 to vector<1x256xi32>
    %1150 = arith.cmpi sge, %1004, %1149 : vector<1x256xi32>
    %c16_i32_447 = arith.constant 16 : i32
    %1151 = vector.broadcast %c16_i32_447 : i32 to vector<1x256xi32>
    %1152 = arith.cmpi slt, %1004, %1151 : vector<1x256xi32>
    %1153 = arith.andi %1150, %1152 : vector<1x256xi1>
    %c0_i32_448 = arith.constant 0 : i32
    %1154 = vector.broadcast %c0_i32_448 : i32 to vector<1x256xi32>
    %1155 = arith.cmpi sge, %1005, %1154 : vector<1x256xi32>
    %1156 = arith.andi %1153, %1155 : vector<1x256xi1>
    %c16_i32_449 = arith.constant 16 : i32
    %1157 = vector.broadcast %c16_i32_449 : i32 to vector<1x256xi32>
    %1158 = arith.cmpi slt, %1005, %1157 : vector<1x256xi32>
    %1159 = arith.andi %1156, %1158 : vector<1x256xi1>
    %c0_i32_450 = arith.constant 0 : i32
    %1160 = arith.sitofp %c0_i32_450 : i32 to bf16
    %1161 = vector.shape_cast %1159 : vector<1x256xi1> to vector<1x256xi1>
    %1162 = vector.broadcast %1161 : vector<1x256xi1> to vector<16x256xi1>
    %1163 = vector.broadcast %1160 : bf16 to vector<16x256xbf16>
    %1164 = arith.select %1162, %1006, %1163 : vector<16x256xi1>, vector<16x256xbf16>
    %c4_451 = arith.constant 4 : index
    %c0_452 = arith.constant 0 : index
    %c0_453 = arith.constant 0 : index
    %1165 = vector.load %arg12[%c4_451, %c0_452, %c0_453] : memref<9x8x16xbf16, #tpu.memory_space<vmem>>, vector<1x8x16xbf16>
    %1166 = vector.shape_cast %1165 : vector<1x8x16xbf16> to vector<8x16xbf16>
    %cst_454 = arith.constant dense<0.000000e+00> : vector<8x256xf32>
    %1167 = tpu.matmul %1166, %1164, %cst_454 {dimension_numbers = #tpu.dot_dimension_numbers<[1], [0], [0], [1], [0, 0, 1, 1], [], []>} : vector<8x16xbf16>, vector<16x256xbf16>, vector<8x256xf32> -> vector<8x256xf32>
    %1168 = arith.addf %1148, %1167 : vector<8x256xf32>
    %c0_i32_455 = arith.constant 0 : i32
    %1169 = arith.sitofp %c0_i32_455 : i32 to bf16
    %1170 = vector.shape_cast %1159 : vector<1x256xi1> to vector<1x256xi1>
    %1171 = vector.broadcast %1170 : vector<1x256xi1> to vector<8x256xi1>
    %1172 = vector.broadcast %1169 : bf16 to vector<8x256xbf16>
    %1173 = arith.select %1171, %1007, %1172 : vector<8x256xi1>, vector<8x256xbf16>
    %c4_456 = arith.constant 4 : index
    %c0_457 = arith.constant 0 : index
    %c0_458 = arith.constant 0 : index
    %1174 = vector.load %arg13[%c4_456, %c0_457, %c0_458] : memref<9x8x8xbf16, #tpu.memory_space<vmem>>, vector<1x8x8xbf16>
    %1175 = vector.shape_cast %1174 : vector<1x8x8xbf16> to vector<8x8xbf16>
    %cst_459 = arith.constant dense<0.000000e+00> : vector<8x256xf32>
    %1176 = tpu.matmul %1175, %1173, %cst_459 {dimension_numbers = #tpu.dot_dimension_numbers<[1], [0], [0], [1], [0, 0, 1, 1], [], []>} : vector<8x8xbf16>, vector<8x256xbf16>, vector<8x256xf32> -> vector<8x256xf32>
    %1177 = arith.addf %1168, %1176 : vector<8x256xf32>
    %c0_i32_460 = arith.constant 0 : i32
    %1178 = vector.broadcast %c0_i32_460 : i32 to vector<1x256xi32>
    %1179 = arith.cmpi sge, %1004, %1178 : vector<1x256xi32>
    %c16_i32_461 = arith.constant 16 : i32
    %1180 = vector.broadcast %c16_i32_461 : i32 to vector<1x256xi32>
    %1181 = arith.cmpi slt, %1004, %1180 : vector<1x256xi32>
    %1182 = arith.andi %1179, %1181 : vector<1x256xi1>
    %c-1_i32_462 = arith.constant -1 : i32
    %1183 = vector.broadcast %c-1_i32_462 : i32 to vector<1x256xi32>
    %1184 = arith.cmpi sge, %1005, %1183 : vector<1x256xi32>
    %1185 = arith.andi %1182, %1184 : vector<1x256xi1>
    %c15_i32_463 = arith.constant 15 : i32
    %1186 = vector.broadcast %c15_i32_463 : i32 to vector<1x256xi32>
    %1187 = arith.cmpi slt, %1005, %1186 : vector<1x256xi32>
    %1188 = arith.andi %1185, %1187 : vector<1x256xi1>
    %1189 = vector.extract_strided_slice %1006 {offsets = [0, 1], sizes = [16, 255], strides = [1, 1]} : vector<16x256xbf16> to vector<16x255xbf16>
    %1190 = vector.extract_strided_slice %1006 {offsets = [0, 0], sizes = [16, 1], strides = [1, 1]} : vector<16x256xbf16> to vector<16x1xbf16>
    %1191 = tpu.concatenate %1189, %1190 in 1 : vector<16x255xbf16>, vector<16x1xbf16> -> vector<16x256xbf16>
    %c0_i32_464 = arith.constant 0 : i32
    %1192 = arith.sitofp %c0_i32_464 : i32 to bf16
    %1193 = vector.shape_cast %1188 : vector<1x256xi1> to vector<1x256xi1>
    %1194 = vector.broadcast %1193 : vector<1x256xi1> to vector<16x256xi1>
    %1195 = vector.broadcast %1192 : bf16 to vector<16x256xbf16>
    %1196 = arith.select %1194, %1191, %1195 : vector<16x256xi1>, vector<16x256xbf16>
    %c5_465 = arith.constant 5 : index
    %c0_466 = arith.constant 0 : index
    %c0_467 = arith.constant 0 : index
    %1197 = vector.load %arg12[%c5_465, %c0_466, %c0_467] : memref<9x8x16xbf16, #tpu.memory_space<vmem>>, vector<1x8x16xbf16>
    %1198 = vector.shape_cast %1197 : vector<1x8x16xbf16> to vector<8x16xbf16>
    %cst_468 = arith.constant dense<0.000000e+00> : vector<8x256xf32>
    %1199 = tpu.matmul %1198, %1196, %cst_468 {dimension_numbers = #tpu.dot_dimension_numbers<[1], [0], [0], [1], [0, 0, 1, 1], [], []>} : vector<8x16xbf16>, vector<16x256xbf16>, vector<8x256xf32> -> vector<8x256xf32>
    %1200 = arith.addf %1177, %1199 : vector<8x256xf32>
    %1201 = vector.extract_strided_slice %1007 {offsets = [0, 1], sizes = [8, 255], strides = [1, 1]} : vector<8x256xbf16> to vector<8x255xbf16>
    %1202 = vector.extract_strided_slice %1007 {offsets = [0, 0], sizes = [8, 1], strides = [1, 1]} : vector<8x256xbf16> to vector<8x1xbf16>
    %1203 = tpu.concatenate %1201, %1202 in 1 : vector<8x255xbf16>, vector<8x1xbf16> -> vector<8x256xbf16>
    %c0_i32_469 = arith.constant 0 : i32
    %1204 = arith.sitofp %c0_i32_469 : i32 to bf16
    %1205 = vector.shape_cast %1188 : vector<1x256xi1> to vector<1x256xi1>
    %1206 = vector.broadcast %1205 : vector<1x256xi1> to vector<8x256xi1>
    %1207 = vector.broadcast %1204 : bf16 to vector<8x256xbf16>
    %1208 = arith.select %1206, %1203, %1207 : vector<8x256xi1>, vector<8x256xbf16>
    %c5_470 = arith.constant 5 : index
    %c0_471 = arith.constant 0 : index
    %c0_472 = arith.constant 0 : index
    %1209 = vector.load %arg13[%c5_470, %c0_471, %c0_472] : memref<9x8x8xbf16, #tpu.memory_space<vmem>>, vector<1x8x8xbf16>
    %1210 = vector.shape_cast %1209 : vector<1x8x8xbf16> to vector<8x8xbf16>
    %cst_473 = arith.constant dense<0.000000e+00> : vector<8x256xf32>
    %1211 = tpu.matmul %1210, %1208, %cst_473 {dimension_numbers = #tpu.dot_dimension_numbers<[1], [0], [0], [1], [0, 0, 1, 1], [], []>} : vector<8x8xbf16>, vector<8x256xbf16>, vector<8x256xf32> -> vector<8x256xf32>
    %1212 = arith.addf %1200, %1211 : vector<8x256xf32>
    %c-1_i32_474 = arith.constant -1 : i32
    %1213 = vector.broadcast %c-1_i32_474 : i32 to vector<1x256xi32>
    %1214 = arith.cmpi sge, %1004, %1213 : vector<1x256xi32>
    %c15_i32_475 = arith.constant 15 : i32
    %1215 = vector.broadcast %c15_i32_475 : i32 to vector<1x256xi32>
    %1216 = arith.cmpi slt, %1004, %1215 : vector<1x256xi32>
    %1217 = arith.andi %1214, %1216 : vector<1x256xi1>
    %c1_i32_476 = arith.constant 1 : i32
    %1218 = vector.broadcast %c1_i32_476 : i32 to vector<1x256xi32>
    %1219 = arith.cmpi sge, %1005, %1218 : vector<1x256xi32>
    %1220 = arith.andi %1217, %1219 : vector<1x256xi1>
    %c17_i32_477 = arith.constant 17 : i32
    %1221 = vector.broadcast %c17_i32_477 : i32 to vector<1x256xi32>
    %1222 = arith.cmpi slt, %1005, %1221 : vector<1x256xi32>
    %1223 = arith.andi %1220, %1222 : vector<1x256xi1>
    %1224 = vector.extract_strided_slice %1006 {offsets = [0, 15], sizes = [16, 241], strides = [1, 1]} : vector<16x256xbf16> to vector<16x241xbf16>
    %1225 = vector.extract_strided_slice %1006 {offsets = [0, 0], sizes = [16, 15], strides = [1, 1]} : vector<16x256xbf16> to vector<16x15xbf16>
    %1226 = tpu.concatenate %1224, %1225 in 1 : vector<16x241xbf16>, vector<16x15xbf16> -> vector<16x256xbf16>
    %c0_i32_478 = arith.constant 0 : i32
    %1227 = arith.sitofp %c0_i32_478 : i32 to bf16
    %1228 = vector.shape_cast %1223 : vector<1x256xi1> to vector<1x256xi1>
    %1229 = vector.broadcast %1228 : vector<1x256xi1> to vector<16x256xi1>
    %1230 = vector.broadcast %1227 : bf16 to vector<16x256xbf16>
    %1231 = arith.select %1229, %1226, %1230 : vector<16x256xi1>, vector<16x256xbf16>
    %c6_479 = arith.constant 6 : index
    %c0_480 = arith.constant 0 : index
    %c0_481 = arith.constant 0 : index
    %1232 = vector.load %arg12[%c6_479, %c0_480, %c0_481] : memref<9x8x16xbf16, #tpu.memory_space<vmem>>, vector<1x8x16xbf16>
    %1233 = vector.shape_cast %1232 : vector<1x8x16xbf16> to vector<8x16xbf16>
    %cst_482 = arith.constant dense<0.000000e+00> : vector<8x256xf32>
    %1234 = tpu.matmul %1233, %1231, %cst_482 {dimension_numbers = #tpu.dot_dimension_numbers<[1], [0], [0], [1], [0, 0, 1, 1], [], []>} : vector<8x16xbf16>, vector<16x256xbf16>, vector<8x256xf32> -> vector<8x256xf32>
    %1235 = arith.addf %1212, %1234 : vector<8x256xf32>
    %1236 = vector.extract_strided_slice %1007 {offsets = [0, 15], sizes = [8, 241], strides = [1, 1]} : vector<8x256xbf16> to vector<8x241xbf16>
    %1237 = vector.extract_strided_slice %1007 {offsets = [0, 0], sizes = [8, 15], strides = [1, 1]} : vector<8x256xbf16> to vector<8x15xbf16>
    %1238 = tpu.concatenate %1236, %1237 in 1 : vector<8x241xbf16>, vector<8x15xbf16> -> vector<8x256xbf16>
    %c0_i32_483 = arith.constant 0 : i32
    %1239 = arith.sitofp %c0_i32_483 : i32 to bf16
    %1240 = vector.shape_cast %1223 : vector<1x256xi1> to vector<1x256xi1>
    %1241 = vector.broadcast %1240 : vector<1x256xi1> to vector<8x256xi1>
    %1242 = vector.broadcast %1239 : bf16 to vector<8x256xbf16>
    %1243 = arith.select %1241, %1238, %1242 : vector<8x256xi1>, vector<8x256xbf16>
    %c6_484 = arith.constant 6 : index
    %c0_485 = arith.constant 0 : index
    %c0_486 = arith.constant 0 : index
    %1244 = vector.load %arg13[%c6_484, %c0_485, %c0_486] : memref<9x8x8xbf16, #tpu.memory_space<vmem>>, vector<1x8x8xbf16>
    %1245 = vector.shape_cast %1244 : vector<1x8x8xbf16> to vector<8x8xbf16>
    %cst_487 = arith.constant dense<0.000000e+00> : vector<8x256xf32>
    %1246 = tpu.matmul %1245, %1243, %cst_487 {dimension_numbers = #tpu.dot_dimension_numbers<[1], [0], [0], [1], [0, 0, 1, 1], [], []>} : vector<8x8xbf16>, vector<8x256xbf16>, vector<8x256xf32> -> vector<8x256xf32>
    %1247 = arith.addf %1235, %1246 : vector<8x256xf32>
    %c-1_i32_488 = arith.constant -1 : i32
    %1248 = vector.broadcast %c-1_i32_488 : i32 to vector<1x256xi32>
    %1249 = arith.cmpi sge, %1004, %1248 : vector<1x256xi32>
    %c15_i32_489 = arith.constant 15 : i32
    %1250 = vector.broadcast %c15_i32_489 : i32 to vector<1x256xi32>
    %1251 = arith.cmpi slt, %1004, %1250 : vector<1x256xi32>
    %1252 = arith.andi %1249, %1251 : vector<1x256xi1>
    %c0_i32_490 = arith.constant 0 : i32
    %1253 = vector.broadcast %c0_i32_490 : i32 to vector<1x256xi32>
    %1254 = arith.cmpi sge, %1005, %1253 : vector<1x256xi32>
    %1255 = arith.andi %1252, %1254 : vector<1x256xi1>
    %c16_i32_491 = arith.constant 16 : i32
    %1256 = vector.broadcast %c16_i32_491 : i32 to vector<1x256xi32>
    %1257 = arith.cmpi slt, %1005, %1256 : vector<1x256xi32>
    %1258 = arith.andi %1255, %1257 : vector<1x256xi1>
    %1259 = vector.extract_strided_slice %1006 {offsets = [0, 16], sizes = [16, 240], strides = [1, 1]} : vector<16x256xbf16> to vector<16x240xbf16>
    %1260 = vector.extract_strided_slice %1006 {offsets = [0, 0], sizes = [16, 16], strides = [1, 1]} : vector<16x256xbf16> to vector<16x16xbf16>
    %1261 = tpu.concatenate %1259, %1260 in 1 : vector<16x240xbf16>, vector<16x16xbf16> -> vector<16x256xbf16>
    %c0_i32_492 = arith.constant 0 : i32
    %1262 = arith.sitofp %c0_i32_492 : i32 to bf16
    %1263 = vector.shape_cast %1258 : vector<1x256xi1> to vector<1x256xi1>
    %1264 = vector.broadcast %1263 : vector<1x256xi1> to vector<16x256xi1>
    %1265 = vector.broadcast %1262 : bf16 to vector<16x256xbf16>
    %1266 = arith.select %1264, %1261, %1265 : vector<16x256xi1>, vector<16x256xbf16>
    %c7_493 = arith.constant 7 : index
    %c0_494 = arith.constant 0 : index
    %c0_495 = arith.constant 0 : index
    %1267 = vector.load %arg12[%c7_493, %c0_494, %c0_495] : memref<9x8x16xbf16, #tpu.memory_space<vmem>>, vector<1x8x16xbf16>
    %1268 = vector.shape_cast %1267 : vector<1x8x16xbf16> to vector<8x16xbf16>
    %cst_496 = arith.constant dense<0.000000e+00> : vector<8x256xf32>
    %1269 = tpu.matmul %1268, %1266, %cst_496 {dimension_numbers = #tpu.dot_dimension_numbers<[1], [0], [0], [1], [0, 0, 1, 1], [], []>} : vector<8x16xbf16>, vector<16x256xbf16>, vector<8x256xf32> -> vector<8x256xf32>
    %1270 = arith.addf %1247, %1269 : vector<8x256xf32>
    %1271 = vector.extract_strided_slice %1007 {offsets = [0, 16], sizes = [8, 240], strides = [1, 1]} : vector<8x256xbf16> to vector<8x240xbf16>
    %1272 = vector.extract_strided_slice %1007 {offsets = [0, 0], sizes = [8, 16], strides = [1, 1]} : vector<8x256xbf16> to vector<8x16xbf16>
    %1273 = tpu.concatenate %1271, %1272 in 1 : vector<8x240xbf16>, vector<8x16xbf16> -> vector<8x256xbf16>
    %c0_i32_497 = arith.constant 0 : i32
    %1274 = arith.sitofp %c0_i32_497 : i32 to bf16
    %1275 = vector.shape_cast %1258 : vector<1x256xi1> to vector<1x256xi1>
    %1276 = vector.broadcast %1275 : vector<1x256xi1> to vector<8x256xi1>
    %1277 = vector.broadcast %1274 : bf16 to vector<8x256xbf16>
    %1278 = arith.select %1276, %1273, %1277 : vector<8x256xi1>, vector<8x256xbf16>
    %c7_498 = arith.constant 7 : index
    %c0_499 = arith.constant 0 : index
    %c0_500 = arith.constant 0 : index
    %1279 = vector.load %arg13[%c7_498, %c0_499, %c0_500] : memref<9x8x8xbf16, #tpu.memory_space<vmem>>, vector<1x8x8xbf16>
    %1280 = vector.shape_cast %1279 : vector<1x8x8xbf16> to vector<8x8xbf16>
    %cst_501 = arith.constant dense<0.000000e+00> : vector<8x256xf32>
    %1281 = tpu.matmul %1280, %1278, %cst_501 {dimension_numbers = #tpu.dot_dimension_numbers<[1], [0], [0], [1], [0, 0, 1, 1], [], []>} : vector<8x8xbf16>, vector<8x256xbf16>, vector<8x256xf32> -> vector<8x256xf32>
    %1282 = arith.addf %1270, %1281 : vector<8x256xf32>
    %c-1_i32_502 = arith.constant -1 : i32
    %1283 = vector.broadcast %c-1_i32_502 : i32 to vector<1x256xi32>
    %1284 = arith.cmpi sge, %1004, %1283 : vector<1x256xi32>
    %c15_i32_503 = arith.constant 15 : i32
    %1285 = vector.broadcast %c15_i32_503 : i32 to vector<1x256xi32>
    %1286 = arith.cmpi slt, %1004, %1285 : vector<1x256xi32>
    %1287 = arith.andi %1284, %1286 : vector<1x256xi1>
    %c-1_i32_504 = arith.constant -1 : i32
    %1288 = vector.broadcast %c-1_i32_504 : i32 to vector<1x256xi32>
    %1289 = arith.cmpi sge, %1005, %1288 : vector<1x256xi32>
    %1290 = arith.andi %1287, %1289 : vector<1x256xi1>
    %c15_i32_505 = arith.constant 15 : i32
    %1291 = vector.broadcast %c15_i32_505 : i32 to vector<1x256xi32>
    %1292 = arith.cmpi slt, %1005, %1291 : vector<1x256xi32>
    %1293 = arith.andi %1290, %1292 : vector<1x256xi1>
    %1294 = vector.extract_strided_slice %1006 {offsets = [0, 17], sizes = [16, 239], strides = [1, 1]} : vector<16x256xbf16> to vector<16x239xbf16>
    %1295 = vector.extract_strided_slice %1006 {offsets = [0, 0], sizes = [16, 17], strides = [1, 1]} : vector<16x256xbf16> to vector<16x17xbf16>
    %1296 = tpu.concatenate %1294, %1295 in 1 : vector<16x239xbf16>, vector<16x17xbf16> -> vector<16x256xbf16>
    %c0_i32_506 = arith.constant 0 : i32
    %1297 = arith.sitofp %c0_i32_506 : i32 to bf16
    %1298 = vector.shape_cast %1293 : vector<1x256xi1> to vector<1x256xi1>
    %1299 = vector.broadcast %1298 : vector<1x256xi1> to vector<16x256xi1>
    %1300 = vector.broadcast %1297 : bf16 to vector<16x256xbf16>
    %1301 = arith.select %1299, %1296, %1300 : vector<16x256xi1>, vector<16x256xbf16>
    %c8_507 = arith.constant 8 : index
    %c0_508 = arith.constant 0 : index
    %c0_509 = arith.constant 0 : index
    %1302 = vector.load %arg12[%c8_507, %c0_508, %c0_509] : memref<9x8x16xbf16, #tpu.memory_space<vmem>>, vector<1x8x16xbf16>
    %1303 = vector.shape_cast %1302 : vector<1x8x16xbf16> to vector<8x16xbf16>
    %cst_510 = arith.constant dense<0.000000e+00> : vector<8x256xf32>
    %1304 = tpu.matmul %1303, %1301, %cst_510 {dimension_numbers = #tpu.dot_dimension_numbers<[1], [0], [0], [1], [0, 0, 1, 1], [], []>} : vector<8x16xbf16>, vector<16x256xbf16>, vector<8x256xf32> -> vector<8x256xf32>
    %1305 = arith.addf %1282, %1304 : vector<8x256xf32>
    %1306 = vector.extract_strided_slice %1007 {offsets = [0, 17], sizes = [8, 239], strides = [1, 1]} : vector<8x256xbf16> to vector<8x239xbf16>
    %1307 = vector.extract_strided_slice %1007 {offsets = [0, 0], sizes = [8, 17], strides = [1, 1]} : vector<8x256xbf16> to vector<8x17xbf16>
    %1308 = tpu.concatenate %1306, %1307 in 1 : vector<8x239xbf16>, vector<8x17xbf16> -> vector<8x256xbf16>
    %c0_i32_511 = arith.constant 0 : i32
    %1309 = arith.sitofp %c0_i32_511 : i32 to bf16
    %1310 = vector.shape_cast %1293 : vector<1x256xi1> to vector<1x256xi1>
    %1311 = vector.broadcast %1310 : vector<1x256xi1> to vector<8x256xi1>
    %1312 = vector.broadcast %1309 : bf16 to vector<8x256xbf16>
    %1313 = arith.select %1311, %1308, %1312 : vector<8x256xi1>, vector<8x256xbf16>
    %c8_512 = arith.constant 8 : index
    %c0_513 = arith.constant 0 : index
    %c0_514 = arith.constant 0 : index
    %1314 = vector.load %arg13[%c8_512, %c0_513, %c0_514] : memref<9x8x8xbf16, #tpu.memory_space<vmem>>, vector<1x8x8xbf16>
    %1315 = vector.shape_cast %1314 : vector<1x8x8xbf16> to vector<8x8xbf16>
    %cst_515 = arith.constant dense<0.000000e+00> : vector<8x256xf32>
    %1316 = tpu.matmul %1315, %1313, %cst_515 {dimension_numbers = #tpu.dot_dimension_numbers<[1], [0], [0], [1], [0, 0, 1, 1], [], []>} : vector<8x8xbf16>, vector<8x256xbf16>, vector<8x256xf32> -> vector<8x256xf32>
    %1317 = arith.addf %1305, %1316 : vector<8x256xf32>
    %c0_516 = arith.constant 0 : index
    %c0_517 = arith.constant 0 : index
    %1318 = vector.load %arg14[%c0_516, %c0_517] : memref<8x1xf32, #tpu.memory_space<vmem>>, vector<8x1xf32>
    %1319 = vector.broadcast %1318 : vector<8x1xf32> to vector<8x256xf32>
    %1320 = arith.addf %1317, %1319 : vector<8x256xf32>
    %cst_518 = arith.constant 0.000000e+00 : f32
    %1321 = vector.broadcast %cst_518 : f32 to vector<8x256xf32>
    %1322 = arith.maximumf %1320, %1321 : vector<8x256xf32>
    %c0_519 = arith.constant 0 : index
    %c0_520 = arith.constant 0 : index
    %1323 = vector.load %arg17[%c0_519, %c0_520] : memref<2x256xi32, #tpu.memory_space<vmem>>, vector<1x256xi32>
    %c1_521 = arith.constant 1 : index
    %c0_522 = arith.constant 0 : index
    %1324 = vector.load %arg17[%c1_521, %c0_522] : memref<2x256xi32, #tpu.memory_space<vmem>>, vector<1x256xi32>
    %1325 = arith.truncf %1322 : vector<8x256xf32> to vector<8x256xbf16>
    %cst_523 = arith.constant 0.000000e+00 : f32
    %1326 = vector.broadcast %cst_523 : f32 to vector<32x256xf32>
    %c1_i32_524 = arith.constant 1 : i32
    %1327 = vector.broadcast %c1_i32_524 : i32 to vector<1x256xi32>
    %1328 = arith.cmpi sge, %1323, %1327 : vector<1x256xi32>
    %c17_i32_525 = arith.constant 17 : i32
    %1329 = vector.broadcast %c17_i32_525 : i32 to vector<1x256xi32>
    %1330 = arith.cmpi slt, %1323, %1329 : vector<1x256xi32>
    %1331 = arith.andi %1328, %1330 : vector<1x256xi1>
    %c1_i32_526 = arith.constant 1 : i32
    %1332 = vector.broadcast %c1_i32_526 : i32 to vector<1x256xi32>
    %1333 = arith.cmpi sge, %1324, %1332 : vector<1x256xi32>
    %1334 = arith.andi %1331, %1333 : vector<1x256xi1>
    %c17_i32_527 = arith.constant 17 : i32
    %1335 = vector.broadcast %c17_i32_527 : i32 to vector<1x256xi32>
    %1336 = arith.cmpi slt, %1324, %1335 : vector<1x256xi32>
    %1337 = arith.andi %1334, %1336 : vector<1x256xi1>
    %1338 = vector.extract_strided_slice %1325 {offsets = [0, 239], sizes = [8, 17], strides = [1, 1]} : vector<8x256xbf16> to vector<8x17xbf16>
    %1339 = vector.extract_strided_slice %1325 {offsets = [0, 0], sizes = [8, 239], strides = [1, 1]} : vector<8x256xbf16> to vector<8x239xbf16>
    %1340 = tpu.concatenate %1338, %1339 in 1 : vector<8x17xbf16>, vector<8x239xbf16> -> vector<8x256xbf16>
    %c0_i32_528 = arith.constant 0 : i32
    %1341 = arith.sitofp %c0_i32_528 : i32 to bf16
    %1342 = vector.shape_cast %1337 : vector<1x256xi1> to vector<1x256xi1>
    %1343 = vector.broadcast %1342 : vector<1x256xi1> to vector<8x256xi1>
    %1344 = vector.broadcast %1341 : bf16 to vector<8x256xbf16>
    %1345 = arith.select %1343, %1340, %1344 : vector<8x256xi1>, vector<8x256xbf16>
    %c0_529 = arith.constant 0 : index
    %c0_530 = arith.constant 0 : index
    %c0_531 = arith.constant 0 : index
    %1346 = vector.load %arg15[%c0_529, %c0_530, %c0_531] : memref<9x32x8xbf16, #tpu.memory_space<vmem>>, vector<1x32x8xbf16>
    %1347 = vector.shape_cast %1346 : vector<1x32x8xbf16> to vector<32x8xbf16>
    %cst_532 = arith.constant dense<0.000000e+00> : vector<32x256xf32>
    %1348 = tpu.matmul %1347, %1345, %cst_532 {dimension_numbers = #tpu.dot_dimension_numbers<[1], [0], [0], [1], [0, 0, 1, 1], [], []>} : vector<32x8xbf16>, vector<8x256xbf16>, vector<32x256xf32> -> vector<32x256xf32>
    %1349 = arith.addf %1326, %1348 : vector<32x256xf32>
    %c1_i32_533 = arith.constant 1 : i32
    %1350 = vector.broadcast %c1_i32_533 : i32 to vector<1x256xi32>
    %1351 = arith.cmpi sge, %1323, %1350 : vector<1x256xi32>
    %c17_i32_534 = arith.constant 17 : i32
    %1352 = vector.broadcast %c17_i32_534 : i32 to vector<1x256xi32>
    %1353 = arith.cmpi slt, %1323, %1352 : vector<1x256xi32>
    %1354 = arith.andi %1351, %1353 : vector<1x256xi1>
    %c0_i32_535 = arith.constant 0 : i32
    %1355 = vector.broadcast %c0_i32_535 : i32 to vector<1x256xi32>
    %1356 = arith.cmpi sge, %1324, %1355 : vector<1x256xi32>
    %1357 = arith.andi %1354, %1356 : vector<1x256xi1>
    %c16_i32_536 = arith.constant 16 : i32
    %1358 = vector.broadcast %c16_i32_536 : i32 to vector<1x256xi32>
    %1359 = arith.cmpi slt, %1324, %1358 : vector<1x256xi32>
    %1360 = arith.andi %1357, %1359 : vector<1x256xi1>
    %1361 = vector.extract_strided_slice %1325 {offsets = [0, 240], sizes = [8, 16], strides = [1, 1]} : vector<8x256xbf16> to vector<8x16xbf16>
    %1362 = vector.extract_strided_slice %1325 {offsets = [0, 0], sizes = [8, 240], strides = [1, 1]} : vector<8x256xbf16> to vector<8x240xbf16>
    %1363 = tpu.concatenate %1361, %1362 in 1 : vector<8x16xbf16>, vector<8x240xbf16> -> vector<8x256xbf16>
    %c0_i32_537 = arith.constant 0 : i32
    %1364 = arith.sitofp %c0_i32_537 : i32 to bf16
    %1365 = vector.shape_cast %1360 : vector<1x256xi1> to vector<1x256xi1>
    %1366 = vector.broadcast %1365 : vector<1x256xi1> to vector<8x256xi1>
    %1367 = vector.broadcast %1364 : bf16 to vector<8x256xbf16>
    %1368 = arith.select %1366, %1363, %1367 : vector<8x256xi1>, vector<8x256xbf16>
    %c1_538 = arith.constant 1 : index
    %c0_539 = arith.constant 0 : index
    %c0_540 = arith.constant 0 : index
    %1369 = vector.load %arg15[%c1_538, %c0_539, %c0_540] : memref<9x32x8xbf16, #tpu.memory_space<vmem>>, vector<1x32x8xbf16>
    %1370 = vector.shape_cast %1369 : vector<1x32x8xbf16> to vector<32x8xbf16>
    %cst_541 = arith.constant dense<0.000000e+00> : vector<32x256xf32>
    %1371 = tpu.matmul %1370, %1368, %cst_541 {dimension_numbers = #tpu.dot_dimension_numbers<[1], [0], [0], [1], [0, 0, 1, 1], [], []>} : vector<32x8xbf16>, vector<8x256xbf16>, vector<32x256xf32> -> vector<32x256xf32>
    %1372 = arith.addf %1349, %1371 : vector<32x256xf32>
    %c1_i32_542 = arith.constant 1 : i32
    %1373 = vector.broadcast %c1_i32_542 : i32 to vector<1x256xi32>
    %1374 = arith.cmpi sge, %1323, %1373 : vector<1x256xi32>
    %c17_i32_543 = arith.constant 17 : i32
    %1375 = vector.broadcast %c17_i32_543 : i32 to vector<1x256xi32>
    %1376 = arith.cmpi slt, %1323, %1375 : vector<1x256xi32>
    %1377 = arith.andi %1374, %1376 : vector<1x256xi1>
    %c-1_i32_544 = arith.constant -1 : i32
    %1378 = vector.broadcast %c-1_i32_544 : i32 to vector<1x256xi32>
    %1379 = arith.cmpi sge, %1324, %1378 : vector<1x256xi32>
    %1380 = arith.andi %1377, %1379 : vector<1x256xi1>
    %c15_i32_545 = arith.constant 15 : i32
    %1381 = vector.broadcast %c15_i32_545 : i32 to vector<1x256xi32>
    %1382 = arith.cmpi slt, %1324, %1381 : vector<1x256xi32>
    %1383 = arith.andi %1380, %1382 : vector<1x256xi1>
    %1384 = vector.extract_strided_slice %1325 {offsets = [0, 241], sizes = [8, 15], strides = [1, 1]} : vector<8x256xbf16> to vector<8x15xbf16>
    %1385 = vector.extract_strided_slice %1325 {offsets = [0, 0], sizes = [8, 241], strides = [1, 1]} : vector<8x256xbf16> to vector<8x241xbf16>
    %1386 = tpu.concatenate %1384, %1385 in 1 : vector<8x15xbf16>, vector<8x241xbf16> -> vector<8x256xbf16>
    %c0_i32_546 = arith.constant 0 : i32
    %1387 = arith.sitofp %c0_i32_546 : i32 to bf16
    %1388 = vector.shape_cast %1383 : vector<1x256xi1> to vector<1x256xi1>
    %1389 = vector.broadcast %1388 : vector<1x256xi1> to vector<8x256xi1>
    %1390 = vector.broadcast %1387 : bf16 to vector<8x256xbf16>
    %1391 = arith.select %1389, %1386, %1390 : vector<8x256xi1>, vector<8x256xbf16>
    %c2_547 = arith.constant 2 : index
    %c0_548 = arith.constant 0 : index
    %c0_549 = arith.constant 0 : index
    %1392 = vector.load %arg15[%c2_547, %c0_548, %c0_549] : memref<9x32x8xbf16, #tpu.memory_space<vmem>>, vector<1x32x8xbf16>
    %1393 = vector.shape_cast %1392 : vector<1x32x8xbf16> to vector<32x8xbf16>
    %cst_550 = arith.constant dense<0.000000e+00> : vector<32x256xf32>
    %1394 = tpu.matmul %1393, %1391, %cst_550 {dimension_numbers = #tpu.dot_dimension_numbers<[1], [0], [0], [1], [0, 0, 1, 1], [], []>} : vector<32x8xbf16>, vector<8x256xbf16>, vector<32x256xf32> -> vector<32x256xf32>
    %1395 = arith.addf %1372, %1394 : vector<32x256xf32>
    %c0_i32_551 = arith.constant 0 : i32
    %1396 = vector.broadcast %c0_i32_551 : i32 to vector<1x256xi32>
    %1397 = arith.cmpi sge, %1323, %1396 : vector<1x256xi32>
    %c16_i32_552 = arith.constant 16 : i32
    %1398 = vector.broadcast %c16_i32_552 : i32 to vector<1x256xi32>
    %1399 = arith.cmpi slt, %1323, %1398 : vector<1x256xi32>
    %1400 = arith.andi %1397, %1399 : vector<1x256xi1>
    %c1_i32_553 = arith.constant 1 : i32
    %1401 = vector.broadcast %c1_i32_553 : i32 to vector<1x256xi32>
    %1402 = arith.cmpi sge, %1324, %1401 : vector<1x256xi32>
    %1403 = arith.andi %1400, %1402 : vector<1x256xi1>
    %c17_i32_554 = arith.constant 17 : i32
    %1404 = vector.broadcast %c17_i32_554 : i32 to vector<1x256xi32>
    %1405 = arith.cmpi slt, %1324, %1404 : vector<1x256xi32>
    %1406 = arith.andi %1403, %1405 : vector<1x256xi1>
    %1407 = vector.extract_strided_slice %1325 {offsets = [0, 255], sizes = [8, 1], strides = [1, 1]} : vector<8x256xbf16> to vector<8x1xbf16>
    %1408 = vector.extract_strided_slice %1325 {offsets = [0, 0], sizes = [8, 255], strides = [1, 1]} : vector<8x256xbf16> to vector<8x255xbf16>
    %1409 = tpu.concatenate %1407, %1408 in 1 : vector<8x1xbf16>, vector<8x255xbf16> -> vector<8x256xbf16>
    %c0_i32_555 = arith.constant 0 : i32
    %1410 = arith.sitofp %c0_i32_555 : i32 to bf16
    %1411 = vector.shape_cast %1406 : vector<1x256xi1> to vector<1x256xi1>
    %1412 = vector.broadcast %1411 : vector<1x256xi1> to vector<8x256xi1>
    %1413 = vector.broadcast %1410 : bf16 to vector<8x256xbf16>
    %1414 = arith.select %1412, %1409, %1413 : vector<8x256xi1>, vector<8x256xbf16>
    %c3_556 = arith.constant 3 : index
    %c0_557 = arith.constant 0 : index
    %c0_558 = arith.constant 0 : index
    %1415 = vector.load %arg15[%c3_556, %c0_557, %c0_558] : memref<9x32x8xbf16, #tpu.memory_space<vmem>>, vector<1x32x8xbf16>
    %1416 = vector.shape_cast %1415 : vector<1x32x8xbf16> to vector<32x8xbf16>
    %cst_559 = arith.constant dense<0.000000e+00> : vector<32x256xf32>
    %1417 = tpu.matmul %1416, %1414, %cst_559 {dimension_numbers = #tpu.dot_dimension_numbers<[1], [0], [0], [1], [0, 0, 1, 1], [], []>} : vector<32x8xbf16>, vector<8x256xbf16>, vector<32x256xf32> -> vector<32x256xf32>
    %1418 = arith.addf %1395, %1417 : vector<32x256xf32>
    %c0_i32_560 = arith.constant 0 : i32
    %1419 = vector.broadcast %c0_i32_560 : i32 to vector<1x256xi32>
    %1420 = arith.cmpi sge, %1323, %1419 : vector<1x256xi32>
    %c16_i32_561 = arith.constant 16 : i32
    %1421 = vector.broadcast %c16_i32_561 : i32 to vector<1x256xi32>
    %1422 = arith.cmpi slt, %1323, %1421 : vector<1x256xi32>
    %1423 = arith.andi %1420, %1422 : vector<1x256xi1>
    %c0_i32_562 = arith.constant 0 : i32
    %1424 = vector.broadcast %c0_i32_562 : i32 to vector<1x256xi32>
    %1425 = arith.cmpi sge, %1324, %1424 : vector<1x256xi32>
    %1426 = arith.andi %1423, %1425 : vector<1x256xi1>
    %c16_i32_563 = arith.constant 16 : i32
    %1427 = vector.broadcast %c16_i32_563 : i32 to vector<1x256xi32>
    %1428 = arith.cmpi slt, %1324, %1427 : vector<1x256xi32>
    %1429 = arith.andi %1426, %1428 : vector<1x256xi1>
    %c0_i32_564 = arith.constant 0 : i32
    %1430 = arith.sitofp %c0_i32_564 : i32 to bf16
    %1431 = vector.shape_cast %1429 : vector<1x256xi1> to vector<1x256xi1>
    %1432 = vector.broadcast %1431 : vector<1x256xi1> to vector<8x256xi1>
    %1433 = vector.broadcast %1430 : bf16 to vector<8x256xbf16>
    %1434 = arith.select %1432, %1325, %1433 : vector<8x256xi1>, vector<8x256xbf16>
    %c4_565 = arith.constant 4 : index
    %c0_566 = arith.constant 0 : index
    %c0_567 = arith.constant 0 : index
    %1435 = vector.load %arg15[%c4_565, %c0_566, %c0_567] : memref<9x32x8xbf16, #tpu.memory_space<vmem>>, vector<1x32x8xbf16>
    %1436 = vector.shape_cast %1435 : vector<1x32x8xbf16> to vector<32x8xbf16>
    %cst_568 = arith.constant dense<0.000000e+00> : vector<32x256xf32>
    %1437 = tpu.matmul %1436, %1434, %cst_568 {dimension_numbers = #tpu.dot_dimension_numbers<[1], [0], [0], [1], [0, 0, 1, 1], [], []>} : vector<32x8xbf16>, vector<8x256xbf16>, vector<32x256xf32> -> vector<32x256xf32>
    %1438 = arith.addf %1418, %1437 : vector<32x256xf32>
    %c0_i32_569 = arith.constant 0 : i32
    %1439 = vector.broadcast %c0_i32_569 : i32 to vector<1x256xi32>
    %1440 = arith.cmpi sge, %1323, %1439 : vector<1x256xi32>
    %c16_i32_570 = arith.constant 16 : i32
    %1441 = vector.broadcast %c16_i32_570 : i32 to vector<1x256xi32>
    %1442 = arith.cmpi slt, %1323, %1441 : vector<1x256xi32>
    %1443 = arith.andi %1440, %1442 : vector<1x256xi1>
    %c-1_i32_571 = arith.constant -1 : i32
    %1444 = vector.broadcast %c-1_i32_571 : i32 to vector<1x256xi32>
    %1445 = arith.cmpi sge, %1324, %1444 : vector<1x256xi32>
    %1446 = arith.andi %1443, %1445 : vector<1x256xi1>
    %c15_i32_572 = arith.constant 15 : i32
    %1447 = vector.broadcast %c15_i32_572 : i32 to vector<1x256xi32>
    %1448 = arith.cmpi slt, %1324, %1447 : vector<1x256xi32>
    %1449 = arith.andi %1446, %1448 : vector<1x256xi1>
    %1450 = vector.extract_strided_slice %1325 {offsets = [0, 1], sizes = [8, 255], strides = [1, 1]} : vector<8x256xbf16> to vector<8x255xbf16>
    %1451 = vector.extract_strided_slice %1325 {offsets = [0, 0], sizes = [8, 1], strides = [1, 1]} : vector<8x256xbf16> to vector<8x1xbf16>
    %1452 = tpu.concatenate %1450, %1451 in 1 : vector<8x255xbf16>, vector<8x1xbf16> -> vector<8x256xbf16>
    %c0_i32_573 = arith.constant 0 : i32
    %1453 = arith.sitofp %c0_i32_573 : i32 to bf16
    %1454 = vector.shape_cast %1449 : vector<1x256xi1> to vector<1x256xi1>
    %1455 = vector.broadcast %1454 : vector<1x256xi1> to vector<8x256xi1>
    %1456 = vector.broadcast %1453 : bf16 to vector<8x256xbf16>
    %1457 = arith.select %1455, %1452, %1456 : vector<8x256xi1>, vector<8x256xbf16>
    %c5_574 = arith.constant 5 : index
    %c0_575 = arith.constant 0 : index
    %c0_576 = arith.constant 0 : index
    %1458 = vector.load %arg15[%c5_574, %c0_575, %c0_576] : memref<9x32x8xbf16, #tpu.memory_space<vmem>>, vector<1x32x8xbf16>
    %1459 = vector.shape_cast %1458 : vector<1x32x8xbf16> to vector<32x8xbf16>
    %cst_577 = arith.constant dense<0.000000e+00> : vector<32x256xf32>
    %1460 = tpu.matmul %1459, %1457, %cst_577 {dimension_numbers = #tpu.dot_dimension_numbers<[1], [0], [0], [1], [0, 0, 1, 1], [], []>} : vector<32x8xbf16>, vector<8x256xbf16>, vector<32x256xf32> -> vector<32x256xf32>
    %1461 = arith.addf %1438, %1460 : vector<32x256xf32>
    %c-1_i32_578 = arith.constant -1 : i32
    %1462 = vector.broadcast %c-1_i32_578 : i32 to vector<1x256xi32>
    %1463 = arith.cmpi sge, %1323, %1462 : vector<1x256xi32>
    %c15_i32_579 = arith.constant 15 : i32
    %1464 = vector.broadcast %c15_i32_579 : i32 to vector<1x256xi32>
    %1465 = arith.cmpi slt, %1323, %1464 : vector<1x256xi32>
    %1466 = arith.andi %1463, %1465 : vector<1x256xi1>
    %c1_i32_580 = arith.constant 1 : i32
    %1467 = vector.broadcast %c1_i32_580 : i32 to vector<1x256xi32>
    %1468 = arith.cmpi sge, %1324, %1467 : vector<1x256xi32>
    %1469 = arith.andi %1466, %1468 : vector<1x256xi1>
    %c17_i32_581 = arith.constant 17 : i32
    %1470 = vector.broadcast %c17_i32_581 : i32 to vector<1x256xi32>
    %1471 = arith.cmpi slt, %1324, %1470 : vector<1x256xi32>
    %1472 = arith.andi %1469, %1471 : vector<1x256xi1>
    %1473 = vector.extract_strided_slice %1325 {offsets = [0, 15], sizes = [8, 241], strides = [1, 1]} : vector<8x256xbf16> to vector<8x241xbf16>
    %1474 = vector.extract_strided_slice %1325 {offsets = [0, 0], sizes = [8, 15], strides = [1, 1]} : vector<8x256xbf16> to vector<8x15xbf16>
    %1475 = tpu.concatenate %1473, %1474 in 1 : vector<8x241xbf16>, vector<8x15xbf16> -> vector<8x256xbf16>
    %c0_i32_582 = arith.constant 0 : i32
    %1476 = arith.sitofp %c0_i32_582 : i32 to bf16
    %1477 = vector.shape_cast %1472 : vector<1x256xi1> to vector<1x256xi1>
    %1478 = vector.broadcast %1477 : vector<1x256xi1> to vector<8x256xi1>
    %1479 = vector.broadcast %1476 : bf16 to vector<8x256xbf16>
    %1480 = arith.select %1478, %1475, %1479 : vector<8x256xi1>, vector<8x256xbf16>
    %c6_583 = arith.constant 6 : index
    %c0_584 = arith.constant 0 : index
    %c0_585 = arith.constant 0 : index
    %1481 = vector.load %arg15[%c6_583, %c0_584, %c0_585] : memref<9x32x8xbf16, #tpu.memory_space<vmem>>, vector<1x32x8xbf16>
    %1482 = vector.shape_cast %1481 : vector<1x32x8xbf16> to vector<32x8xbf16>
    %cst_586 = arith.constant dense<0.000000e+00> : vector<32x256xf32>
    %1483 = tpu.matmul %1482, %1480, %cst_586 {dimension_numbers = #tpu.dot_dimension_numbers<[1], [0], [0], [1], [0, 0, 1, 1], [], []>} : vector<32x8xbf16>, vector<8x256xbf16>, vector<32x256xf32> -> vector<32x256xf32>
    %1484 = arith.addf %1461, %1483 : vector<32x256xf32>
    %c-1_i32_587 = arith.constant -1 : i32
    %1485 = vector.broadcast %c-1_i32_587 : i32 to vector<1x256xi32>
    %1486 = arith.cmpi sge, %1323, %1485 : vector<1x256xi32>
    %c15_i32_588 = arith.constant 15 : i32
    %1487 = vector.broadcast %c15_i32_588 : i32 to vector<1x256xi32>
    %1488 = arith.cmpi slt, %1323, %1487 : vector<1x256xi32>
    %1489 = arith.andi %1486, %1488 : vector<1x256xi1>
    %c0_i32_589 = arith.constant 0 : i32
    %1490 = vector.broadcast %c0_i32_589 : i32 to vector<1x256xi32>
    %1491 = arith.cmpi sge, %1324, %1490 : vector<1x256xi32>
    %1492 = arith.andi %1489, %1491 : vector<1x256xi1>
    %c16_i32_590 = arith.constant 16 : i32
    %1493 = vector.broadcast %c16_i32_590 : i32 to vector<1x256xi32>
    %1494 = arith.cmpi slt, %1324, %1493 : vector<1x256xi32>
    %1495 = arith.andi %1492, %1494 : vector<1x256xi1>
    %1496 = vector.extract_strided_slice %1325 {offsets = [0, 16], sizes = [8, 240], strides = [1, 1]} : vector<8x256xbf16> to vector<8x240xbf16>
    %1497 = vector.extract_strided_slice %1325 {offsets = [0, 0], sizes = [8, 16], strides = [1, 1]} : vector<8x256xbf16> to vector<8x16xbf16>
    %1498 = tpu.concatenate %1496, %1497 in 1 : vector<8x240xbf16>, vector<8x16xbf16> -> vector<8x256xbf16>
    %c0_i32_591 = arith.constant 0 : i32
    %1499 = arith.sitofp %c0_i32_591 : i32 to bf16
    %1500 = vector.shape_cast %1495 : vector<1x256xi1> to vector<1x256xi1>
    %1501 = vector.broadcast %1500 : vector<1x256xi1> to vector<8x256xi1>
    %1502 = vector.broadcast %1499 : bf16 to vector<8x256xbf16>
    %1503 = arith.select %1501, %1498, %1502 : vector<8x256xi1>, vector<8x256xbf16>
    %c7_592 = arith.constant 7 : index
    %c0_593 = arith.constant 0 : index
    %c0_594 = arith.constant 0 : index
    %1504 = vector.load %arg15[%c7_592, %c0_593, %c0_594] : memref<9x32x8xbf16, #tpu.memory_space<vmem>>, vector<1x32x8xbf16>
    %1505 = vector.shape_cast %1504 : vector<1x32x8xbf16> to vector<32x8xbf16>
    %cst_595 = arith.constant dense<0.000000e+00> : vector<32x256xf32>
    %1506 = tpu.matmul %1505, %1503, %cst_595 {dimension_numbers = #tpu.dot_dimension_numbers<[1], [0], [0], [1], [0, 0, 1, 1], [], []>} : vector<32x8xbf16>, vector<8x256xbf16>, vector<32x256xf32> -> vector<32x256xf32>
    %1507 = arith.addf %1484, %1506 : vector<32x256xf32>
    %c-1_i32_596 = arith.constant -1 : i32
    %1508 = vector.broadcast %c-1_i32_596 : i32 to vector<1x256xi32>
    %1509 = arith.cmpi sge, %1323, %1508 : vector<1x256xi32>
    %c15_i32_597 = arith.constant 15 : i32
    %1510 = vector.broadcast %c15_i32_597 : i32 to vector<1x256xi32>
    %1511 = arith.cmpi slt, %1323, %1510 : vector<1x256xi32>
    %1512 = arith.andi %1509, %1511 : vector<1x256xi1>
    %c-1_i32_598 = arith.constant -1 : i32
    %1513 = vector.broadcast %c-1_i32_598 : i32 to vector<1x256xi32>
    %1514 = arith.cmpi sge, %1324, %1513 : vector<1x256xi32>
    %1515 = arith.andi %1512, %1514 : vector<1x256xi1>
    %c15_i32_599 = arith.constant 15 : i32
    %1516 = vector.broadcast %c15_i32_599 : i32 to vector<1x256xi32>
    %1517 = arith.cmpi slt, %1324, %1516 : vector<1x256xi32>
    %1518 = arith.andi %1515, %1517 : vector<1x256xi1>
    %1519 = vector.extract_strided_slice %1325 {offsets = [0, 17], sizes = [8, 239], strides = [1, 1]} : vector<8x256xbf16> to vector<8x239xbf16>
    %1520 = vector.extract_strided_slice %1325 {offsets = [0, 0], sizes = [8, 17], strides = [1, 1]} : vector<8x256xbf16> to vector<8x17xbf16>
    %1521 = tpu.concatenate %1519, %1520 in 1 : vector<8x239xbf16>, vector<8x17xbf16> -> vector<8x256xbf16>
    %c0_i32_600 = arith.constant 0 : i32
    %1522 = arith.sitofp %c0_i32_600 : i32 to bf16
    %1523 = vector.shape_cast %1518 : vector<1x256xi1> to vector<1x256xi1>
    %1524 = vector.broadcast %1523 : vector<1x256xi1> to vector<8x256xi1>
    %1525 = vector.broadcast %1522 : bf16 to vector<8x256xbf16>
    %1526 = arith.select %1524, %1521, %1525 : vector<8x256xi1>, vector<8x256xbf16>
    %c8_601 = arith.constant 8 : index
    %c0_602 = arith.constant 0 : index
    %c0_603 = arith.constant 0 : index
    %1527 = vector.load %arg15[%c8_601, %c0_602, %c0_603] : memref<9x32x8xbf16, #tpu.memory_space<vmem>>, vector<1x32x8xbf16>
    %1528 = vector.shape_cast %1527 : vector<1x32x8xbf16> to vector<32x8xbf16>
    %cst_604 = arith.constant dense<0.000000e+00> : vector<32x256xf32>
    %1529 = tpu.matmul %1528, %1526, %cst_604 {dimension_numbers = #tpu.dot_dimension_numbers<[1], [0], [0], [1], [0, 0, 1, 1], [], []>} : vector<32x8xbf16>, vector<8x256xbf16>, vector<32x256xf32> -> vector<32x256xf32>
    %1530 = arith.addf %1507, %1529 : vector<32x256xf32>
    %c0_605 = arith.constant 0 : index
    %c0_606 = arith.constant 0 : index
    %1531 = vector.load %arg16[%c0_605, %c0_606] : memref<32x1xf32, #tpu.memory_space<vmem>>, vector<32x1xf32>
    %1532 = vector.broadcast %1531 : vector<32x1xf32> to vector<32x256xf32>
    %1533 = arith.addf %1530, %1532 : vector<32x256xf32>
    %c0_607 = arith.constant 0 : index
    %c0_608 = arith.constant 0 : index
    %c0_609 = arith.constant 0 : index
    %1534 = vector.load %arg1[%c0_607, %c0_608, %c0_609] : memref<1x2x8xf32, #tpu.memory_space<vmem>>, vector<1x2x8xf32>
    %1535 = vector.shape_cast %1534 : vector<1x2x8xf32> to vector<2x8xf32>
    %cst_610 = arith.constant 1.000000e+00 : f32
    %1536 = vector.broadcast %cst_610 : f32 to vector<2x8xf32>
    %1537 = arith.addf %1535, %1536 : vector<2x8xf32>
    %cst_611 = arith.constant 1.600000e+01 : f32
    %1538 = vector.broadcast %cst_611 : f32 to vector<2x8xf32>
    %1539 = arith.mulf %1537, %1538 : vector<2x8xf32>
    %cst_612 = arith.constant 5.000000e-01 : f32
    %1540 = vector.broadcast %cst_612 : f32 to vector<2x8xf32>
    %1541 = arith.mulf %1539, %1540 : vector<2x8xf32>
    %1542 = arith.fptosi %1541 : vector<2x8xf32> to vector<2x8xi32>
    %c0_i32_613 = arith.constant 0 : i32
    %c15_i32_614 = arith.constant 15 : i32
    %1543 = vector.broadcast %c0_i32_613 : i32 to vector<2x8xi32>
    %1544 = arith.maxsi %1543, %1542 : vector<2x8xi32>
    %1545 = vector.broadcast %c15_i32_614 : i32 to vector<2x8xi32>
    %1546 = arith.minsi %1545, %1544 : vector<2x8xi32>
    %1547 = vector.extract_strided_slice %1546 {offsets = [0, 0], sizes = [1, 8], strides = [1, 1]} : vector<2x8xi32> to vector<1x8xi32>
    %c16_i32_615 = arith.constant 16 : i32
    %1548 = vector.broadcast %c16_i32_615 : i32 to vector<1x8xi32>
    %1549 = arith.muli %1547, %1548 : vector<1x8xi32>
    %1550 = vector.extract_strided_slice %1546 {offsets = [1, 0], sizes = [1, 8], strides = [1, 1]} : vector<2x8xi32> to vector<1x8xi32>
    %1551 = arith.addi %1549, %1550 : vector<1x8xi32>
    %1552 = tpu.iota {dimensions = array<i32: 0>} : vector<256x8xi32>
    %1553 = vector.broadcast %1551 : vector<1x8xi32> to vector<256x8xi32>
    %1554 = arith.cmpi eq, %1552, %1553 : vector<256x8xi32>
    %1555 = arith.extui %1554 : vector<256x8xi1> to vector<256x8xi32>
    %1556 = arith.sitofp %1555 : vector<256x8xi32> to vector<256x8xf32>
    %cst_616 = arith.constant dense<0.000000e+00> : vector<32x8xf32>
    %1557 = tpu.matmul %1533, %1556, %cst_616 {dimension_numbers = #tpu.dot_dimension_numbers<[1], [0], [0], [1], [0, 0, 1, 1], [], []>, precision = #tpu.contract_precision<fp32>} : vector<32x256xf32>, vector<256x8xf32>, vector<32x8xf32> -> vector<32x8xf32>
    %c0_617 = arith.constant 0 : index
    %c0_618 = arith.constant 0 : index
    %c0_619 = arith.constant 0 : index
    %1558 = vector.load %arg24[%c0_617, %c0_618, %c0_619] : memref<1x32x8xf32, #tpu.memory_space<vmem>>, vector<1x32x8xf32>
    %1559 = vector.shape_cast %1558 : vector<1x32x8xf32> to vector<32x8xf32>
    %1560 = vector.shape_cast %1557 : vector<32x8xf32> to vector<1x32x8xf32>
    tpu.vector_store %arg24[%c0_617, %c0_618, %c0_619], %1560 {strides = array<i32>} : memref<1x32x8xf32, #tpu.memory_space<vmem>>, vector<1x32x8xf32>,
    return
  }
  func.func @transform_0(%arg0: i32) -> (i32, i32, i32) {
    %c0_i32 = arith.constant 0 : i32
    %c0_i32_0 = arith.constant 0 : i32
    %c0_i32_1 = arith.constant 0 : i32
    return %arg0, %c0_i32, %c0_i32_0 : i32, i32, i32
  }
  func.func @transform_1(%arg0: i32) -> (i32, i32, i32) {
    %c0_i32 = arith.constant 0 : i32
    %c0_i32_0 = arith.constant 0 : i32
    %c0_i32_1 = arith.constant 0 : i32
    return %arg0, %c0_i32, %c0_i32_0 : i32, i32, i32
  }
  func.func @transform_2(%arg0: i32) -> (i32, i32, i32) {
    %c0_i32 = arith.constant 0 : i32
    %c0_i32_0 = arith.constant 0 : i32
    %c0_i32_1 = arith.constant 0 : i32
    %c0_i32_2 = arith.constant 0 : i32
    return %c0_i32, %c0_i32_0, %c0_i32_1 : i32, i32, i32
  }
  func.func @transform_3(%arg0: i32) -> (i32, i32) {
    %c0_i32 = arith.constant 0 : i32
    %c0_i32_0 = arith.constant 0 : i32
    %c0_i32_1 = arith.constant 0 : i32
    return %c0_i32, %c0_i32_0 : i32, i32
  }
  func.func @transform_4(%arg0: i32) -> (i32, i32, i32) {
    %c0_i32 = arith.constant 0 : i32
    %c0_i32_0 = arith.constant 0 : i32
    %c0_i32_1 = arith.constant 0 : i32
    %c0_i32_2 = arith.constant 0 : i32
    return %c0_i32, %c0_i32_0, %c0_i32_1 : i32, i32, i32
  }
  func.func @transform_5(%arg0: i32) -> (i32, i32) {
    %c0_i32 = arith.constant 0 : i32
    %c0_i32_0 = arith.constant 0 : i32
    %c0_i32_1 = arith.constant 0 : i32
    return %c0_i32, %c0_i32_0 : i32, i32
  }
  func.func @transform_6(%arg0: i32) -> (i32, i32, i32) {
    %c0_i32 = arith.constant 0 : i32
    %c0_i32_0 = arith.constant 0 : i32
    %c0_i32_1 = arith.constant 0 : i32
    %c0_i32_2 = arith.constant 0 : i32
    return %c0_i32, %c0_i32_0, %c0_i32_1 : i32, i32, i32
  }
  func.func @transform_7(%arg0: i32) -> (i32, i32) {
    %c0_i32 = arith.constant 0 : i32
    %c0_i32_0 = arith.constant 0 : i32
    %c0_i32_1 = arith.constant 0 : i32
    return %c0_i32, %c0_i32_0 : i32, i32
  }
  func.func @transform_8(%arg0: i32) -> (i32, i32, i32) {
    %c0_i32 = arith.constant 0 : i32
    %c0_i32_0 = arith.constant 0 : i32
    %c0_i32_1 = arith.constant 0 : i32
    %c0_i32_2 = arith.constant 0 : i32
    return %c0_i32, %c0_i32_0, %c0_i32_1 : i32, i32, i32
  }
  func.func @transform_9(%arg0: i32) -> (i32, i32, i32) {
    %c0_i32 = arith.constant 0 : i32
    %c0_i32_0 = arith.constant 0 : i32
    %c0_i32_1 = arith.constant 0 : i32
    %c0_i32_2 = arith.constant 0 : i32
    return %c0_i32, %c0_i32_0, %c0_i32_1 : i32, i32, i32
  }
  func.func @transform_10(%arg0: i32) -> (i32, i32) {
    %c0_i32 = arith.constant 0 : i32
    %c0_i32_0 = arith.constant 0 : i32
    %c0_i32_1 = arith.constant 0 : i32
    return %c0_i32, %c0_i32_0 : i32, i32
  }
  func.func @transform_11(%arg0: i32) -> (i32, i32, i32) {
    %c0_i32 = arith.constant 0 : i32
    %c0_i32_0 = arith.constant 0 : i32
    %c0_i32_1 = arith.constant 0 : i32
    %c0_i32_2 = arith.constant 0 : i32
    return %c0_i32, %c0_i32_0, %c0_i32_1 : i32, i32, i32
  }
  func.func @transform_12(%arg0: i32) -> (i32, i32, i32) {
    %c0_i32 = arith.constant 0 : i32
    %c0_i32_0 = arith.constant 0 : i32
    %c0_i32_1 = arith.constant 0 : i32
    %c0_i32_2 = arith.constant 0 : i32
    return %c0_i32, %c0_i32_0, %c0_i32_1 : i32, i32, i32
  }
  func.func @transform_13(%arg0: i32) -> (i32, i32) {
    %c0_i32 = arith.constant 0 : i32
    %c0_i32_0 = arith.constant 0 : i32
    %c0_i32_1 = arith.constant 0 : i32
    return %c0_i32, %c0_i32_0 : i32, i32
  }
  func.func @transform_14(%arg0: i32) -> (i32, i32, i32) {
    %c0_i32 = arith.constant 0 : i32
    %c0_i32_0 = arith.constant 0 : i32
    %c0_i32_1 = arith.constant 0 : i32
    %c0_i32_2 = arith.constant 0 : i32
    return %c0_i32, %c0_i32_0, %c0_i32_1 : i32, i32, i32
  }
  func.func @transform_15(%arg0: i32) -> (i32, i32) {
    %c0_i32 = arith.constant 0 : i32
    %c0_i32_0 = arith.constant 0 : i32
    %c0_i32_1 = arith.constant 0 : i32
    return %c0_i32, %c0_i32_0 : i32, i32
  }
  func.func @transform_16(%arg0: i32) -> (i32, i32) {
    %c0_i32 = arith.constant 0 : i32
    %c0_i32_0 = arith.constant 0 : i32
    %c0_i32_1 = arith.constant 0 : i32
    return %c0_i32, %c0_i32_0 : i32, i32
  }
  func.func @transform_17(%arg0: i32) -> (i32, i32) {
    %c0_i32 = arith.constant 0 : i32
    %c0_i32_0 = arith.constant 0 : i32
    %c0_i32_1 = arith.constant 0 : i32
    return %c0_i32, %c0_i32_0 : i32, i32
  }
  func.func @transform_18(%arg0: i32) -> (i32, i32) {
    %c0_i32 = arith.constant 0 : i32
    %c0_i32_0 = arith.constant 0 : i32
    %c0_i32_1 = arith.constant 0 : i32
    return %c0_i32, %c0_i32_0 : i32, i32
  }
  func.func @transform_19(%arg0: i32) -> (i32, i32) {
    %c0_i32 = arith.constant 0 : i32
    %c0_i32_0 = arith.constant 0 : i32
    %c0_i32_1 = arith.constant 0 : i32
    return %c0_i32, %c0_i32_0 : i32, i32
  }
  func.func @transform_20(%arg0: i32) -> (i32, i32) {
    %c0_i32 = arith.constant 0 : i32
    %c0_i32_0 = arith.constant 0 : i32
    %c0_i32_1 = arith.constant 0 : i32
    return %c0_i32, %c0_i32_0 : i32, i32
  }
  func.func @transform_21(%arg0: i32) -> (i32, i32) {
    %c0_i32 = arith.constant 0 : i32
    %c0_i32_0 = arith.constant 0 : i32
    %c0_i32_1 = arith.constant 0 : i32
    return %c0_i32, %c0_i32_0 : i32, i32
  }
  func.func @transform_22(%arg0: i32) -> (i32, i32) {
    %c0_i32 = arith.constant 0 : i32
    %c0_i32_0 = arith.constant 0 : i32
    %c0_i32_1 = arith.constant 0 : i32
    return %c0_i32, %c0_i32_0 : i32, i32
  }
  func.func @transform_23(%arg0: i32) -> (i32, i32, i32) {
    %c0_i32 = arith.constant 0 : i32
    %c0_i32_0 = arith.constant 0 : i32
    %c0_i32_1 = arith.constant 0 : i32
    return %arg0, %c0_i32, %c0_i32_0 : i32, i32, i32
  }
}

</mosaic_0001>

<bundles_post_ra>
// kernel: unet_encoder_forward.1
= control target key start
LH: loop header
LB: loop body
LE: loop exit
PB: predicated region body
PF: predicated region fallthrough
CT: control target
= control target key end

     0   :  { %s13179_s0 = inlined_call_operand.vmem [shape: f32[2,2,8], index: 0, kind: input, shape index: {}]   ;;  %s13180_s1 = inlined_call_operand.vmem [shape: f32[2,1,256], index: 1, kind: input, shape index: {}]   ;;  %s13181_s2 = inlined_call_operand.vmem [shape: bf16[9,8,1], index: 2, kind: input, shape index: {}]   ;;  %s13182_s3 = inlined_call_operand.vmem [shape: f32[8,1], index: 3, kind: input, shape index: {}]   ;;  %s13183_s4 = inlined_call_operand.vmem [shape: bf16[9,16,8], index: 4, kind: input, shape index: {}]   ;;  %s13184_s5 = inlined_call_operand.vmem [shape: f32[16,1], index: 5, kind: input, shape index: {}]   ;;  %s13185_s6 = inlined_call_operand.vmem [shape: bf16[9,32,16], index: 6, kind: input, shape index: {}]   ;;  %s13186_s7 = inlined_call_operand.vmem [shape: f32[32,1], index: 7, kind: input, shape index: {}]   ;;  %s13187_s8 = inlined_call_operand.vmem [shape: bf16[9,16,32], index: 8, kind: input, shape index: {}]   ;;  %s13188_s9 = inlined_call_operand.vmem [shape: bf16[9,16,16], index: 9, kind: input, shape index: {}]   ;;  %s13189_s10 = inlined_call_operand.vmem [shape: f32[16,1], index: 10, kind: input, shape index: {}]   ;;  %s13190_s11 = inlined_call_operand.vmem [shape: bf16[9,8,16], index: 11, kind: input, shape index: {}]   ;;  %s13191_s12 = inlined_call_operand.vmem [shape: bf16[9,8,8], index: 12, kind: input, shape index: {}]   ;;  %s13192_s13 = inlined_call_operand.vmem [shape: f32[8,1], index: 13, kind: input, shape index: {}]   ;;  %s13193_s14 = inlined_call_operand.vmem [shape: bf16[9,32,8], index: 14, kind: input, shape index: {}]   ;;  %s13194_s15 = inlined_call_operand.vmem [shape: f32[32,1], index: 15, kind: input, shape index: {}]   ;;  %s13195_s16 = inlined_call_operand.vmem [shape: s32[2,256], index: 16, kind: input, shape index: {}]   ;;  %s13196_s17 = inlined_call_operand.vmem [shape: s32[2,64], index: 17, kind: input, shape index: {}]   ;;  %s13197_s18 = inlined_call_operand.vmem [shape: s32[2,16], index: 18, kind: input, shape index: {}]   ;;  %s13198_s19 = inlined_call_operand.vmem [shape: bf16[256,64], index: 19, kind: input, shape index: {}]   ;;  %s13199_s20 = inlined_call_operand.vmem [shape: bf16[64,16], index: 20, kind: input, shape index: {}]   ;;  %s13200_s21 = inlined_call_operand.vmem [shape: bf16[16,64], index: 21, kind: input, shape index: {}]   ;;  %s13201_s22 = inlined_call_operand.vmem [shape: bf16[64,256], index: 22, kind: input, shape index: {}]   ;;  %s13202_s23 = inlined_call_operand.vmem [shape: f32[2,32,8], index: 23, kind: output, shape index: {}]  }
   0x1   :  { %13456 = sst [smem:[#allocation30_spill]] %s13179_s0 }
   0x2   :  { %13457 = sst [smem:[#allocation31_spill]] %s13180_s1 }
   0x3   :  { %13458 = sst [smem:[#allocation32_spill]] %s13181_s2 }
   0x4   :  { %13459 = sst [smem:[#allocation33_spill]] %s13182_s3 }
   0x5   :  { %13460 = sst [smem:[#allocation34_spill]] %s13183_s4  ;;  %s9873_s4 = smov 0  }
   0x6   :  { %13461 = sst [smem:[#allocation35_spill]] %s13184_s5 }
   0x7   :  { %13462 = sst [smem:[#allocation36_spill]] %s13185_s6 }
   0x8   :  { %13463 = sst [smem:[#allocation37_spill]] %s13186_s7 }
   0x9   :  { %13464 = sst [smem:[#allocation38_spill]] %s13193_s14 }
   0xa   :  { %13465 = sst [smem:[#allocation39_spill]] %s13194_s15 }
   0xb   :  { %13466 = sst [smem:[#allocation40_spill]] %s13195_s16 }
   0xc   :  { %13467 = sst [smem:[#allocation41_spill]] %s13196_s17 }
   0xd   :  { %13468 = sst [smem:[#allocation42_spill]] %s13197_s18 }
   0xe   :  { %13469 = sst [smem:[#allocation43_spill]] %s13198_s19 }
   0xf   :  { %13470 = sst [smem:[#allocation44_spill]] %s13199_s20 }
  0x10   :  { %13471 = sst [smem:[#allocation45_spill]] %s13202_s23 }
  0x11 LB: > { %13472 = sst [smem:[#allocation2_spill]] %s9712_s4  ;;  %s8085_s30 = sadd.s32 4294967295, %s9712_s4   ;;  %s9712_s4 = sphi %s9873_s4, %s33_s4  }
  0x12   : > { %p8089_p0 = scmp.ge.s32.totalorder %s9712_s4, 1  ;;  %p645_p1 = scmp.lt.s32.totalorder %s9712_s4, 3 }
  0x14   : > { %p646_p2 = pnand %p8089_p0, %p645_p1 }
  0x16   : > { %649 = sbr.rel (%p646_p2) target bundleno = 3851 (0xf0b), region = 112 }
  0x1d   : > { %p712_p3 = scmp.lt.s32.totalorder %s8085_s30, 1  ;;  %v740_v0 = vlaneseq  ;;  %v9714_v1 = vmov 0   ;;  %s13473_s1 = sld [smem:[#allocation31_spill]]  ;;  %v9723_v41 = vmov 1966171168   ;;  %vm13225_vm0 = vcmask 130048  }
  0x1e   : > { %9548 = vset.pattern.permute.xlu0 %v9714_v1  ;;  %9559 = vset.pattern.permute.xlu1 %v9714_v1  ;;  %s13209_s2 = smov 16   ;;  %s13211_s6 = smov 17   ;;  %v760_v42 = vunpack.c.l.s4 %v9723_v41  ;;  %vm13223_vm1 = vcmask 138240   ;;  %vm13224_vm2 = vcmask 121856   ;;  %vm13226_vm5 = vcmask 7168  }
  0x1f   : > { %s14094_s30 = smov (!%p712_p3, %s8085_s30), 1  ;;  %v9885_v2 = vshrl.u32 %v740_v0, 7  ;;  %s13474_s28 = sld [smem:[#allocation32_spill]] }
  0x20   : > { %s13208_s24 = sshll.u32 %s14094_s30, 1  ;;  %s13213_s0 = smov 15   ;;  %v761_v43 = vunpack.c.0.s8 %v760_v42 }
  0x21   : > { %v9889_v3 = vsub.s32 1, %v9885_v2  ;;  %v9897_v4 = vsub.s32 0, %v9885_v2  ;;  %s13217_s25 = smov 1   ;;  %s13215_s27 = smov 113  }
  0x22   : > { %s13230_s3 = smov 112   ;;  %s13476_s19 = sld [smem:[#allocation43_spill]]  ;;  %v9988_v54 = vsub.s32 %v761_v43, %v9885_v2 }
  0x23   : > { %s719_s26 = scalar_lea.vmem %s13473_s1, %s13208_s24  ;;  %s13219_s24 = smov 111  }
  0x24   : > { %v9899_v5 = vld [vmem:[%s719_s26] sm:$0x3]  ;;  %s13221_s26 = smov 127   ;;  %s13477_s16 = sld [smem:[#allocation40_spill]] }
  0x25   : > { %v743_v6 = vrot.slane %v9899_v5, %v9889_v3  ;;  %v750_v7 = vrot.slane %v9899_v5, %v9897_v4  ;;  %v775_v8 = vld [vmem:[%s13474_s28] sm:$0xff]   ;;  %v8096_v11 = vld [vmem:[%s13474_s28 + $0x8] sm:$0xff]   ;;  %v8098_v16 = vld [vmem:[%s13474_s28 + $0x10] sm:$0xff]   ;;  %s13246_s1 = smov 9   ;;  %s13232_s7 = smov 7  }
  0x26   : > { %v776_v9 = vunpack.c.l.bf16 %v775_v8  ;;  %v830_v10 = vunpack.c.h.bf16 %v775_v8  ;;  %v884_v13 = vunpack.c.l.bf16 %v8096_v11  ;;  %v939_v14 = vunpack.c.h.bf16 %v8096_v11  ;;  %v8100_v20 = vld [vmem:[%s13474_s28 + $0x18] sm:$0xff]   ;;  %v8102_v22 = vld [vmem:[%s13474_s28 + $0x20] sm:$0xf]  ;;  %s13236_s29 = smov 65   ;;  %s13250_s5 = smov 63  }
  0x27   : > { %801 = vrot.lane.b32.xlu1 %v743_v6, %s13209_s2  ;;  %744 = vrot.lane.b32.xlu0 %v743_v6, %s13211_s6  ;;  %v965_v17 = vunpack.c.l.bf16 %v8098_v16  ;;  %v1017_v18 = vunpack.c.h.bf16 %v8098_v16  ;;  %v1072_v21 = vunpack.c.l.bf16 %v8100_v20  ;;  %v1124_v23 = vunpack.c.h.bf16 %v8100_v20  ;;  %s13513_s17 = sld [smem:[#allocation41_spill]]  ;;  %s13564_s20 = sld [smem:[#allocation44_spill]] }
  0x28   : > { %v9549_v12 = vpack.i.bf16 %v830_v10, %v776_v9  ;;  %v9554_v15 = vpack.i.bf16 %v939_v14, %v884_v13  ;;  %v1176_v24 = vunpack.c.l.bf16 %v8102_v22  ;;  %v9610_v26 = vld [vmem:[%s13476_s19 + $0x40] sm:$0xff]   ;;  %v9612_v28 = vld [vmem:[%s13476_s19 + $0x48] sm:$0xff]   ;;  %v9614_v30 = vld [vmem:[%s13476_s19 + $0x50] sm:$0xff]   ;;  %v13478_v9 = vmov 0  ;;  %s13575_s18 = sld [smem:[#allocation42_spill]]  ;;  %s13582_s4 = sld [smem:[#allocation37_spill]] }
  0x29   : > { %v9560_v19 = vpack.i.bf16 %v1017_v18, %v965_v17  ;;  %v9611_v27 = vld [vmem:[%s13476_s19] sm:$0xff]   ;;  %8566 = vmatprep.subr.bf16.mxu0 %v9610_v26  ;;  %v9613_v29 = vld [vmem:[%s13476_s19 + $0x8] sm:$0xff]   ;;  %v9615_v31 = vld [vmem:[%s13476_s19 + $0x10] sm:$0xff]   ;;  %v13480_v11 = vmov 0  ;;  %v13482_v13 = vmov 0  ;;  %s13585_s14 = smov 73  }
  0x2a   : > { %8567 = vmatpush3.bf16.msra.mxu0 %v9611_v27  ;;  %v9616_v32 = vld [vmem:[%s13476_s19 + $0x58] sm:$0xff]   ;;  %v9618_v34 = vld [vmem:[%s13476_s19 + $0x60] sm:$0xff]   ;;  %s13636_s28 = smov 8  }
  0x2b   : > { %804 = vrot.lane.b32.xlu1 %v750_v7, %s13209_s2  ;;  %751 = vrot.lane.b32.xlu0 %v750_v7, %s13211_s6  ;;  %s13475_s2 = sld [smem:[#allocation33_spill]]  ;;  %v9617_v33 = vld [vmem:[%s13476_s19 + $0x18] sm:$0xff]   ;;  %v9619_v35 = vld [vmem:[%s13476_s19 + $0x20] sm:$0xff]   ;;  %s13234_s6 = smov 71  }
  0x2c   : > { %8568 = vmatprep.subr.bf16.mxu0 %v9612_v28  ;;  %v9972_v46 = vld [vmem:[%s13477_s16] ss:$2 sm:$0x3]  ;;  %v9983_v53 = vld [vmem:[%s13477_s16 + $0x1] ss:$2 sm:$0x3] }
  0x2d   : > { %vm732_vm3 = vcmp.ge.s32.totalorder %v9972_v46, 1  ;;  %vm733_vm4 = vcmp.lt.s32.totalorder %v9972_v46, 17  ;;  %vm735_vm7 = vcmp.ge.s32.totalorder %v9983_v53, 1  ;;  %vm797_vm8 = vcmp.ge.s32.totalorder %v9983_v53, 0  ;;  %s13567_s16 = smov 120  }
  0x2e   : > { %8569 = vmatpush3.bf16.msra.mxu0 %v9613_v29  ;;  %vm734_vm6 = vmand %vm732_vm3, %vm733_vm4  ;;  %vm851_vm9 = vcmp.ge.s32.totalorder %v9983_v53, 4294967295  ;;  %vm737_vm11 = vcmp.lt.s32.totalorder %v9983_v53, 17  ;;  %vm13228_vm13 = vcmp.lt.s32.totalorder %v9983_v53, 16  ;;  %vm853_vm15 = vcmp.lt.s32.totalorder %v9983_v53, 15  ;;  %s13583_s23 = smov %s13582_s4 }
  0x2f   : > { %858 = vrot.lane.b32.xlu1 %v750_v7, %s13213_s0  ;;  %855 = vrot.lane.b32.xlu0 %v743_v6, %s13213_s0  ;;  %vm736_vm10 = vmand %vm734_vm6, %vm735_vm7  ;;  %vm905_vm3 = vcmp.ge.s32.totalorder %v9972_v46, 0  ;;  %s13511_s0 = smov 1  }
  0x30   : > { %8570 = vmatprep.subr.bf16.mxu0 %v9614_v30  ;;  %vm798_vm12 = vmand %vm734_vm6, %vm797_vm8  ;;  %v13488_v30 = vmov 0 }
  0x31   : > { %v1197_v25 = vld [vmem:[%s13475_s2] sm:$0xff]  ;;  %vm852_vm14 = vmand %vm734_vm6, %vm851_vm9  ;;  %s13244_s2 = smov 73  }
  0x32   : > { %8571 = vmatpush3.bf16.msra.mxu0 %v9615_v31  ;;  %vm10012_vm4 = vmand %vm736_vm10, %vm737_vm11  ;;  %vm13227_vm10 = vcmask 1039360  }
  0x33   : > { %910 = vrot.lane.b32.xlu1 %v743_v6, %s13217_s25  ;;  %9550 = vperm.xlu0 %9548, %v9549_v12   ;;  %v13479_v9 = vsel %vm10012_vm4, 4294967295, %v13478_v9  ;;  %vm10021_vm6 = vmand %vm798_vm12, %vm13228_vm13 }
  0x34   : > { %8572 = vmatprep.subr.bf16.mxu0 %v9616_v32  ;;  %v13481_v11 = vsel %vm10021_vm6, 4294967295, %v13480_v11 }
  0x36   : > { %8573 = vmatpush3.bf16.msra.mxu0 %v9617_v33 }
  0x37   : > { %913 = vrot.lane.b32.xlu1 %v750_v7, %s13217_s25  ;;  %9555 = vperm.xlu0 %9548, %v9554_v15   ;;  %s13507_s25 = smov 127  }
  0x38   : > { %8574 = vmatprep.subr.bf16.mxu0 %v9618_v34 }
  0x3a   : > { %8575 = vmatpush3.bf16.msra.mxu0 %v9619_v35 }
  0x3b   : > { %988 = vrot.lane.b32.xlu1 %v750_v7, %s13221_s26  ;;  %990 = vrot.lane.b32.xlu0 %v743_v6, %s13221_s26  ;;  %s13238_s26 = smov 72  }
  0x3f   : > { %9561 = vperm.xlu1 %9559, %v9560_v19   ;;  %1043 = vrot.lane.b32.xlu0 %v750_v7, %s13215_s27 }
  0x43   : > { %1045 = vrot.lane.b32.xlu1 %v743_v6, %s13215_s27  ;;  %1095 = vrot.lane.b32.xlu0 %v750_v7, %s13230_s3  ;;  %s13508_s27 = smov 111  }
  0x47   : > { %1097 = vrot.lane.b32.xlu1 %v743_v6, %s13230_s3  ;;  %1075 = vperm.xlu0 %9548, %v1072_v21  }
  0x4b   : > { %1147 = vrot.lane.b32.xlu1 %v750_v7, %s13219_s24  ;;  %1149 = vrot.lane.b32.xlu0 %v743_v6, %s13219_s24  ;;  %s13240_s24 = smov 8  }
  0x4f   : > { %1127 = vperm.xlu1 %9559, %v1124_v23   ;;  %1179 = vperm.xlu0 %9548, %v1176_v24  }
  0x53   : > { %1200 = vperm.xlu1 %9559, %v1197_v25  }
  0x99   : > { %v802_v36 = vpop.permute.xlu1 %801  ;;  %v745_v37 = vpop.permute.xlu0 %744 }
  0x9d   : > { %v805_v38 = vpop.permute.xlu1 %804  ;;  %v752_v39 = vpop.permute.xlu0 %751 }
  0x9e   : > { %v807_v47 = vsel %vm13225_vm0, %v805_v38, %v802_v36  ;;  %v809_v48 = vsel %vm13225_vm0, %v802_v36, %v805_v38  ;;  %v754_v49 = vsel %vm13223_vm1, %v752_v39, %v745_v37  ;;  %v756_v50 = vsel %vm13223_vm1, %v745_v37, %v752_v39 }
  0x9f   : > { %v811_v55 = vcombine.low %v809_v48, %v807_v47  ;;  %v758_v56 = vcombine.low %v756_v50, %v754_v49  ;;  %vm906_vm1 = vcmp.lt.s32.totalorder %v9972_v46, 16  ;;  %v13505_v47 = vmov 0 }
  0xa0   : > { %vm10032_vm0 = vmand %vm905_vm3, %vm906_vm1 }
  0xa1   : > { %v859_v40 = vpop.permute.xlu1 %858  ;;  %v856_v44 = vpop.permute.xlu0 %855  ;;  %v818_v59 = vrot.slane %v811_v55, %v9988_v54  ;;  %v765_v60 = vrot.slane %v758_v56, %v9988_v54  ;;  %vm960_vm12 = vmand %vm10032_vm0, %vm797_vm8 }
  0xa2   : > { %v861_v51 = vsel %vm13224_vm2, %v859_v40, %v856_v44  ;;  %v863_v52 = vsel %vm13224_vm2, %v856_v44, %v859_v40  ;;  %vm10028_vm2 = vmand %vm852_vm14, %vm853_vm15  ;;  %vm1038_vm14 = vcmp.ge.s32.totalorder %v9972_v46, 4294967295  ;;  %v13490_v40 = vmov 0 }
  0xa3   : > { %v865_v57 = vcombine.low %v863_v52, %v861_v51  ;;  %v825_v6 = vrot.slane %v818_v59, %v9988_v54  ;;  %v772_v7 = vrot.slane %v765_v60, %v9988_v54  ;;  %v13483_v13 = vsel %vm10028_vm2, 4294967295, %v13482_v13  ;;  %vm10053_vm1 = vmand %vm10032_vm0, %vm735_vm7 }
  0xa4   : > { %vm10063_vm3 = vmand %vm960_vm12, %vm13228_vm13  ;;  %vm13229_vm13 = vcmask 924672  }
  0xa5   : > { %v911_v45 = vpop.permute.xlu1 %910  ;;  %v872_v0 = vrot.slane %v865_v57, %v9988_v54  ;;  %v774_v17 = vsel %vm10012_vm4, %v772_v7, 0.0  ;;  %v827_v18 = vsel %vm10021_vm6, %v825_v6, 0.0  ;;  %v13489_v30 = vsel %vm10063_vm3, 4294967295, %v13488_v30  ;;  %vm10079_vm12 = vmand %vm10053_vm1, %vm737_vm11 }
  0xa6   : > { %v786_v27 = vrot.slane %v774_v17, %v9897_v4  ;;  %v840_v28 = vrot.slane %v827_v18, %v9897_v4  ;;  %v790_v32 = vrot.slane %v774_v17, %v9889_v3  ;;  %v844_v33 = vrot.slane %v827_v18, %v9889_v3 }
  0xa7   : > { %v879_v12 = vrot.slane %v872_v0, %v9988_v54  ;;  %v13491_v40 = vsel %vm10079_vm12, 4294967295, %v13490_v40  ;;  %v962_v44 = vsel %vm10063_vm3, %v9899_v5, 0.0  ;;  %vm13549_vm6 = vcmask 1043456  }
  0xa8   : > { %v975_v56 = vrot.slane %v962_v44, %v9897_v4  ;;  %vm13557_vm4 = vcmask 1043456  }
  0xa9   : > { %v914_v58 = vpop.permute.xlu1 %913  ;;  %v881_v24 = vsel %vm10028_vm2, %v879_v12, 0.0 }
  0xaa   : > { %v916_v62 = vsel %vm13226_vm5, %v914_v58, %v911_v45  ;;  %v918_v63 = vsel %vm13226_vm5, %v911_v45, %v914_v58  ;;  %vm1039_vm5 = vcmp.lt.s32.totalorder %v9972_v46, 15  ;;  %v894_v39 = vrot.slane %v881_v24, %v9897_v4 }
  0xab   : > { %v920_v8 = vcombine.low %v918_v63, %v916_v62  ;;  %v898_v43 = vrot.slane %v881_v24, %v9889_v3  ;;  %vm10095_vm1 = vmand %vm1038_vm14, %vm1039_vm5  ;;  %v13494_v46 = vmov 0  ;;  %vm13259_vm5 = vcmask 916480  }
  0xac   : > { %vm10116_vm14 = vmand %vm10095_vm1, %vm735_vm7  ;;  %v979_v63 = vrot.slane %v962_v44, %v9889_v3 }
  0xad   : > { %v927_v15 = vrot.slane %v920_v8, %v9988_v54  ;;  %v989_v16 = vpop.permute.xlu1 %988  ;;  %vm10133_vm7 = vmand %vm10116_vm14, %vm737_vm11 }
  0xae   : > { %vm1145_vm14 = vmand %vm10095_vm1, %vm851_vm9 }
  0xaf   : > { %v934_v31 = vrot.slane %v927_v15, %v9988_v54 }
  0xb1   : > { %v936_v48 = vsel %vm10079_vm12, %v934_v31, 0.0 }
  0xb2   : > { %v9551_v61 = vpop.permute.xlu0 %9550  ;;  %v953_v6 = vrot.slane %v936_v48, %v9889_v3 }
  0xb3   : > { %v9553_v20 = vunpack.i.h.bf16 %v9551_v61  ;;  %v9552_v21 = vunpack.i.l.bf16 %v9551_v61  ;;  %v949_v61 = vrot.slane %v936_v48, %v9897_v4 }
  0xb5   : > { %v847_v37 = vmul.f32 %v9553_v20, %v840_v28  ;;  %v793_v38 = vmul.f32 %v9552_v21, %v786_v27  ;;  %v848_v41 = vmul.f32 %v9553_v20, %v844_v33  ;;  %v794_v42 = vmul.f32 %v9552_v21, %v790_v32 }
  0xb6   : > { %v10017_v10 = vpop.permute.xlu0 %9555 }
  0xb7   : > { %v9557_v29 = vunpack.i.l.bf16 %v10017_v10  ;;  %v849_v52 = vadd.f32 %v847_v37, %v793_v38  ;;  %v9558_v55 = vunpack.i.h.bf16 %v10017_v10  ;;  %v850_v57 = vadd.f32 %v848_v41, %v794_v42 }
  0xb9   : > { %v901_v45 = vmul.f32 %v9557_v29, %v894_v39  ;;  %v902_v49 = vmul.f32 %v9557_v29, %v898_v43  ;;  %v956_v15 = vmul.f32 %v9558_v55, %v949_v61  ;;  %v957_v20 = vmul.f32 %v9558_v55, %v953_v6 }
  0xba   : > { %v991_v19 = vpop.permute.xlu0 %990  ;;  %v13503_v39 = vmov 0 }
  0xbb   : > { %v993_v22 = vsel %vm13227_vm10, %v989_v16, %v991_v19  ;;  %v996_v23 = vsel %vm13227_vm10, %v991_v19, %v989_v16  ;;  %vm986_vm10 = vmand %vm10032_vm0, %vm851_vm9  ;;  %v903_v62 = vadd.f32 %v901_v45, %v849_v52  ;;  %v904_v7 = vadd.f32 %v902_v49, %v850_v57 }
  0xbc   : > { %v998_v26 = vcombine.low %v993_v22, %v996_v23  ;;  %vm10106_vm0 = vmand %vm986_vm10, %vm853_vm15  ;;  %v13498_v19 = vmov 0  ;;  %vm13258_vm10 = vcmask 908288   ;;  %vm13509_vm9 = vcmask 1039360  }
  0xbd   : > { %v13495_v46 = vsel %vm10106_vm0, 4294967295, %v13494_v46  ;;  %v13499_v19 = vsel %vm10133_vm7, 4294967295, %v13498_v19  ;;  %v958_v23 = vadd.f32 %v956_v15, %v903_v62  ;;  %v959_v27 = vadd.f32 %v957_v20, %v904_v7  ;;  %v9624_v20 = vld [vmem:[%s13476_s19 + $0x78] sm:$0xff]  }
  0xbe   : > { %v1005_v34 = vrot.slane %v998_v26, %v9988_v54  ;;  %v10072_v35 = vpop.permute.xlu1 %9561  ;;  %v1044_v36 = vpop.permute.xlu0 %1043 }
  0xbf   : > { %v9563_v8 = vunpack.i.l.bf16 %v10072_v35 }
  0xc0   : > { %v1012_v5 = vrot.slane %v1005_v34, %v9988_v54  ;;  %v9564_v34 = vunpack.i.h.bf16 %v10072_v35 }
  0xc1   : > { %v982_v28 = vmul.f32 %v9563_v8, %v975_v56  ;;  %v983_v29 = vmul.f32 %v9563_v8, %v979_v63 }
  0xc2   : > { %v1046_v50 = vpop.permute.xlu1 %1045  ;;  %v1096_v51 = vpop.permute.xlu0 %1095  ;;  %v1014_v10 = vsel %vm10106_vm0, %v1012_v5, 0.0 }
  0xc3   : > { %v1048_v58 = vsel %vm13229_vm13, %v1044_v36, %v1046_v50  ;;  %v1051_v59 = vsel %vm13229_vm13, %v1046_v50, %v1044_v36  ;;  %vm10141_vm13 = vmand %vm10095_vm1, %vm797_vm8  ;;  %v1027_v24 = vrot.slane %v1014_v10, %v9897_v4  ;;  %v1031_v25 = vrot.slane %v1014_v10, %v9889_v3 }
  0xc4   : > { %v1053_v0 = vcombine.low %v1048_v58, %v1051_v59  ;;  %vm13502_vm8 = vcmp.lt.s32.totalorder %v9983_v53, 16  ;;  %v984_v48 = vadd.f32 %v982_v28, %v958_v23  ;;  %v985_v49 = vadd.f32 %v983_v29, %v959_v27  ;;  %v9621_v53 = vld [vmem:[%s13476_s19 + $0x28] sm:$0xff]  }
  0xc5   : > { %vm10158_vm11 = vmand %vm10141_vm13, %vm13502_vm8  ;;  %v1034_v44 = vmul.f32 %v9564_v34, %v1027_v24  ;;  %v1035_v45 = vmul.f32 %v9564_v34, %v1031_v25  ;;  %vm13260_vm1 = vmmov 0  }
  0xc6   : > { %v1098_v12 = vpop.permute.xlu1 %1097  ;;  %v1076_v14 = vpop.permute.xlu0 %1075  ;;  %v1060_v16 = vrot.slane %v1053_v0, %v9988_v54  ;;  %v13504_v39 = vsel %vm10158_vm11, 4294967295, %v13503_v39  ;;  %vm10176_vm13 = vmand %vm1145_vm14, %vm853_vm15  ;;  %v9620_v0 = vld [vmem:[%s13476_s19 + $0x68] sm:$0xff]  }
  0xc7   : > { %v1100_v17 = vsel %vm13259_vm5, %v1096_v51, %v1098_v12  ;;  %v1103_v18 = vsel %vm13259_vm5, %v1098_v12, %v1096_v51  ;;  %v13506_v47 = vsel %vm10176_vm13, 4294967295, %v13505_v47  ;;  %v1036_v59 = vadd.f32 %v1034_v44, %v984_v48  ;;  %8576 = vmatprep.subr.bf16.mxu0 %v9620_v0  ;;  %vm13510_vm15 = vmmov %vm13509_vm9 }
  0xc8   : > { %v1105_v21 = vcombine.low %v1100_v17, %v1103_v18  ;;  %v1067_v26 = vrot.slane %v1060_v16, %v9988_v54  ;;  %v1037_v60 = vadd.f32 %v1035_v45, %v985_v49  ;;  %8577 = vmatpush3.bf16.msra.mxu0 %v9621_v53  ;;  %v9622_v17 = vld [vmem:[%s13476_s19 + $0x70] sm:$0xff]  }
  0xc9   : > { %v9623_v18 = vld [vmem:[%s13476_s19 + $0x30] sm:$0xff]   ;;  %8578 = vmatprep.subr.bf16.mxu0 %v9622_v17 }
  0xca   : > { %v1112_v31 = vrot.slane %v1105_v21, %v9988_v54  ;;  %v1148_v32 = vpop.permute.xlu1 %1147  ;;  %v1150_v33 = vpop.permute.xlu0 %1149  ;;  %v1069_v36 = vsel %vm10133_vm7, %v1067_v26, 0.0  ;;  %v9625_v26 = vld [vmem:[%s13476_s19 + $0x38] sm:$0xff]   ;;  %s9745_s19 = smov 115  }
  0xcb   : > { %v1152_v37 = vsel %vm13258_vm10, %v1148_v32, %v1150_v33  ;;  %v1155_v38 = vsel %vm13258_vm10, %v1150_v33, %v1148_v32  ;;  %v1082_v41 = vrot.slane %v1069_v36, %v9897_v4  ;;  %v1086_v42 = vrot.slane %v1069_v36, %v9889_v3 }
  0xcc   : > { %v1157_v35 = vcombine.low %v1152_v37, %v1155_v38  ;;  %v1119_v43 = vrot.slane %v1112_v31, %v9988_v54  ;;  %8579 = vmatpush3.bf16.msra.mxu0 %v9623_v18 }
  0xcd   : > { %v1089_v51 = vmul.f32 %v1082_v41, %v1076_v14  ;;  %v1090_v52 = vmul.f32 %v1086_v42, %v1076_v14  ;;  %8580 = vmatprep.subr.bf16.mxu0 %v9624_v20 }
  0xce   : > { %v1164_v5 = vrot.slane %v1157_v35, %v9988_v54  ;;  %v1121_v50 = vsel %vm10158_vm11, %v1119_v43, 0.0  ;;  %v1128_v57 = vpop.permute.xlu1 %1127  ;;  %v1180_v10 = vpop.permute.xlu0 %1179 }
  0xcf   : > { %v1134_v55 = vrot.slane %v1121_v50, %v9897_v4  ;;  %v1138_v56 = vrot.slane %v1121_v50, %v9889_v3  ;;  %v1091_v6 = vadd.f32 %v1089_v51, %v1036_v59  ;;  %v1092_v7 = vadd.f32 %v1090_v52, %v1037_v60 }
  0xd0   : > { %v1171_v58 = vrot.slane %v1164_v5, %v9988_v54  ;;  %8581 = vmatpush3.bf16.msra.mxu0 %v9625_v26  ;;  %v13384_v59 = vmov 0.0  }
  0xd1   : > { %v1141_v61 = vmul.f32 %v1134_v55, %v1128_v57  ;;  %v1142_v62 = vmul.f32 %v1138_v56, %v1128_v57  ;;  %8950 = vmatprep.subr.bf16.mxu1 %v13384_v59  ;;  %8980 = vmatprep.subr.bf16.mxu0 %v13384_v59 }
  0xd2   : > { %v1173_v63 = vsel %vm10176_vm13, %v1171_v58, 0.0  ;;  %v1201_v23 = vpop.permute.xlu1 %1200  ;;  %8952 = vmatprep.mubr.msk.bf16.mxu1 %vm13260_vm1, %v13384_v59 }
  0xd3   : > { %v1186_v8 = vrot.slane %v1173_v63, %v9897_v4  ;;  %v1190_v54 = vrot.slane %v1173_v63, %v9889_v3  ;;  %v1143_v12 = vadd.f32 %v1141_v61, %v1091_v6  ;;  %v1144_v14 = vadd.f32 %v1142_v62, %v1092_v7 }
  0xd5   : > { %v1193_v15 = vmul.f32 %v1186_v8, %v1180_v10  ;;  %v1194_v16 = vmul.f32 %v1190_v54, %v1180_v10  ;;  %v1412_v8 = vld [vmem:[%s13513_s17] sm:$0x1]  ;;  %v10272_v54 = vld [vmem:[%s13513_s17 + $0x1] sm:$0x1]  ;;  %s9744_s17 = smov 3  }
  0xd6   : > { %vm1415_vm8 = vcmp.ge.s32.totalorder %v1412_v8, 1  ;;  %vm1416_vm14 = vcmp.lt.s32.totalorder %v1412_v8, 9  ;;  %vm13269_vm7 = vcmp.lt.s32.totalorder %v10272_v54, 9  ;;  %vm13521_vm3 = vcmp.lt.s32.totalorder %v10272_v54, 7 }
  0xd7   : > { %v1195_v21 = vadd.f32 %v1193_v15, %v1143_v12  ;;  %v1196_v22 = vadd.f32 %v1194_v16, %v1144_v14  ;;  %v13514_v16 = vmov 0  ;;  %vm1871_vm2 = vcmp.lt.s32.totalorder %v1412_v8, 7 }
  0xd9   : > { %v1203_v24 = vadd.f32 %v1201_v23, %v1195_v21  ;;  %v1204_v25 = vadd.f32 %v1201_v23, %v1196_v22 }
  0xdb   : > { %v10203_v27 = vmax.f32 %v1203_v24, 0.0  ;;  %v10205_v28 = vmax.f32 %v1204_v25, 0.0 }
  0xdd   : > { %v9570_v29 = vpack.i.bf16 %v10205_v28, %v10203_v27 }
  0xdf   : > { %9571 = vrot.lane.b32.xlu1 %v9570_v29, %s13230_s3  ;;  %9566 = vrot.lane.b32.xlu0 %v9570_v29, %s13507_s25  ;;  %s13242_s3 = smov 57  }
  0xe3   : > { %9576 = vrot.lane.b32.xlu0 %v9570_v29, %s13508_s27 }
 0x151   : > { %v9572_v31 = vpop.permute.xlu1 %9571  ;;  %v9567_v32 = vpop.permute.xlu0 %9566 }
 0x152   : > { %v9569_v33 = vunpack.i.h.bf16 %v9567_v32  ;;  %v9568_v34 = vunpack.i.l.bf16 %v9567_v32  ;;  %v9574_v36 = vunpack.i.h.bf16 %v9572_v31  ;;  %v9573_v37 = vunpack.i.l.bf16 %v9572_v31 }
 0x154   : > { %v1217_v35 = vsel %vm13509_vm9, %v9569_v33, %v9568_v34  ;;  %v1213_v43 = vsel %vm13510_vm15, %v9568_v34, %v9569_v33  ;;  %v1228_v44 = vsel %vm13259_vm5, %v9574_v36, %v9573_v37  ;;  %v1224_v48 = vsel %vm13259_vm5, %v9573_v37, %v9574_v36  ;;  %vm1417_vm9 = vmand %vm1415_vm8, %vm1416_vm14 }
 0x155   : > { %v9577_v38 = vpop.permute.xlu0 %9576  ;;  %v1219_v5 = vmax.f32 %v10205_v28, %v1217_v35  ;;  %v1218_v51 = vmax.f32 %v10203_v27, %v1213_v43  ;;  %vm13265_vm15 = vcmp.ge.s32.totalorder %v10272_v54, 0  ;;  %vm13267_vm5 = vcmp.ge.s32.totalorder %v10272_v54, 1 }
 0x156   : > { %v9579_v41 = vunpack.i.h.bf16 %v9577_v38  ;;  %v9578_v42 = vunpack.i.l.bf16 %v9577_v38  ;;  %vm1419_vm11 = vmand %vm1417_vm9, %vm13267_vm5  ;;  %vm13271_vm14 = vcmp.ge.s32.totalorder %v10272_v54, 4294967295  ;;  %vm1650_vm5 = vcmp.lt.s32.totalorder %v1412_v8, 8 }
 0x157   : > { %vm1421_vm8 = vmand %vm1419_vm11, %vm13269_vm7  ;;  %v13525_v37 = vmov 0 }
 0x158   : > { %v1237_v45 = vsel %vm13258_vm10, %v9579_v41, %v9578_v42  ;;  %v1233_v49 = vsel %vm13258_vm10, %v9578_v42, %v9579_v41  ;;  %vm1443_vm10 = vmand %vm1417_vm9, %vm13265_vm15  ;;  %v1432_v14 = vsel %vm1421_vm8, 1, %v9714_v1  ;;  %vm13274_vm8 = vcmask 64512  }
 0x159   : > { %v1239_v50 = vmax.f32 %v1228_v44, %v1237_v45  ;;  %v1238_v52 = vmax.f32 %v1224_v48, %v1233_v49  ;;  %vm1572_vm15 = vmand %vm1417_vm9, %vm13271_vm14  ;;  %v1436_v15 = vrot.slane %v1432_v14, %v9897_v4 }
 0x15b   : > { %v1241_v55 = vmax.f32 %v1219_v5, %v1239_v50  ;;  %v1240_v56 = vmax.f32 %v1218_v51, %v1238_v52  ;;  %vm10307_vm7 = vcmp.eq.s32.totalorder %v1436_v15, 1  ;;  %v13535_v52 = vmov 0 }
 0x15d   : > { %v1243_v57 = vpack.c.bf16 %v1241_v55, %v1241_v55  ;;  %v1242_v58 = vpack.c.bf16 %v1240_v56, %v1240_v56  ;;  %v13537_v55 = vmov 0 }
 0x15f   : > { %1404 = vmatprep.mubr.bf16.mxu0 %v1243_v57 }
 0x160   : > { %1405 = vmatmul.mubr.bf16.vlgmr.msra.gmra.mrb[0].mxu0 %v1242_v58 }
 0x161   : > { %8982 = vmatprep.mubr.msk.bf16.mxu0 %vm13260_vm1, %v13384_v59  ;;  %vm13266_vm1 = vcmp.lt.s32.totalorder %v10272_v54, 8 }
 0x162   : > { %vm1445_vm13 = vmand %vm1443_vm10, %vm13266_vm1  ;;  %vm13270_vm10 = vcmp.lt.s32.totalorder %v10272_v54, 7  ;;  %vm1649_vm1 = vcmp.ge.s32.totalorder %v1412_v8, 0 }
 0x163   : > { %v1455_v10 = vsel %vm1445_vm13, 1, %v9714_v1  ;;  %vm1574_vm11 = vmand %vm1572_vm15, %vm13270_vm10  ;;  %vm1870_vm10 = vcmp.ge.s32.totalorder %v1412_v8, 4294967295 }
 0x164   : > { %v1459_v12 = vrot.slane %v1455_v10, %v9897_v4  ;;  %vm10300_vm13 = vmand %vm1649_vm1, %vm1650_vm5  ;;  %v1584_v20 = vsel %vm1574_vm11, 1, %v9714_v1  ;;  %vm13520_vm5 = vcmp.ge.s32.totalorder %v10272_v54, 1  ;;  %vm13278_vm11 = vcmask 1043456  }
 0x165   : > { %vm1794_vm15 = vmand %vm10300_vm13, %vm13271_vm14  ;;  %vm13277_vm14 = vcmask 72704   ;;  %v1588_v25 = vrot.slane %v1584_v20, %v9897_v4  ;;  %v13544_v20 = vmov 0 }
 0x166   : > { %vm10294_vm0 = vcmp.eq.s32.totalorder %v1459_v12, 1  ;;  %vm1652_vm1 = vmand %vm10300_vm13, %vm13520_vm5  ;;  %vm13523_vm5 = vcmp.lt.s32.totalorder %v10272_v54, 9 }
 0x167   : > { %v13515_v16 = vsel %vm10294_vm0, 4294967295, %v13514_v16  ;;  %vm13276_vm9 = vmpackc.low %vm10294_vm0, %vm10294_vm0 }
 0x168   : > { %vm1795_vm12 = vmand %vm1794_vm15, %vm13521_vm3  ;;  %vm13279_vm15 = vcmask 56320  }
 0x169   : > { %v1805_v34 = vsel %vm1795_vm12, 1, %v9714_v1  ;;  %vm13524_vm3 = vmpackc.low %vm10307_vm7, %vm10307_vm7  ;;  %vm13530_vm12 = vcmp.ge.s32.totalorder %v10272_v54, 0 }
 0x16a   : > { %v1809_v44 = vrot.slane %v1805_v34, %v9897_v4 }
 0x233   : > { %v8582_v60 = vpop.f32.mrb[0].mxu0 }
 0x234   : > { %v8583_v61 = vpop.f32.mrb[1].mxu0 }
 0x235   : > { %v8584_v62 = vadd.f32 %v8583_v61, %v8582_v60  ;;  %v8585_v63 = vpop.f32.mrb[2].mxu0 }
 0x236   : > { %v8586_v0 = vpop.f32.mrb[3].mxu0 }
 0x237   : > { %v10226_v53 = vpack.c.bf16 %v8584_v62, %v8584_v62 }
 0x239   : > { %1448 = vrot.lane.b32.xlu0 %v10226_v53, %s13240_s24  ;;  %1446 = vrot.lane.b32.xlu1 %v10226_v53, %s13238_s26  ;;  %s13256_s26 = smov 55   ;;  %s13291_s24 = smov 119  }
 0x23d   : > { %1425 = vrot.lane.b32.xlu0 %v10226_v53, %s13246_s1  ;;  %1423 = vrot.lane.b32.xlu1 %v10226_v53, %s13244_s2  ;;  %s13512_s1 = sld [smem:[#allocation35_spill]]  ;;  %s9742_s2 = smov 5  }
 0x241   : > { %1577 = vrot.lane.b32.xlu0 %v10226_v53, %s13232_s7  ;;  %1575 = vrot.lane.b32.xlu1 %v10226_v53, %s13234_s6  ;;  %s13248_s7 = smov 121   ;;  %s13252_s6 = smov 56  }
 0x243   : > { %v2102_v6 = vld [vmem:[%s13512_s1 + $0x8] sm:$0xff]  ;;  %v2101_v7 = vld [vmem:[%s13512_s1] sm:$0xff]  ;;  %s9741_s1 = smov 116  }
 0x245   : > { %1656 = vrot.lane.b32.xlu0 %v10226_v53, %s13511_s0  ;;  %1654 = vrot.lane.b32.xlu1 %v10226_v53, %s13236_s29  ;;  %s13254_s29 = smov 120  }
 0x249   : > { %1798 = vrot.lane.b32.xlu0 %v10226_v53, %s13250_s5  ;;  %1796 = vrot.lane.b32.xlu1 %v10226_v53, %s13507_s25  ;;  %s13566_s5 = smov 56  }
 0x24d   : > { %1877 = vrot.lane.b32.xlu0 %v10226_v53, %s13242_s3  ;;  %1875 = vrot.lane.b32.xlu1 %v10226_v53, %s13248_s7  ;;  %s13565_s7 = smov 63   ;;  %s13568_s3 = smov 55  }
 0x251   : > { %1953 = vrot.lane.b32.xlu0 %v10226_v53, %s13252_s6  ;;  %1951 = vrot.lane.b32.xlu1 %v10226_v53, %s13254_s29  ;;  %s13573_s29 = sld [smem:[#allocation36_spill]]  ;;  %s9743_s6 = smov 117  }
 0x255   : > { %2029 = vrot.lane.b32.xlu0 %v10226_v53, %s13256_s26  ;;  %2027 = vrot.lane.b32.xlu1 %v10226_v53, %s13291_s24  ;;  %s13522_s26 = sld [smem:[#allocation34_spill]] }
 0x259   : > { %2110 = vperm.xlu0 %9548, %v2102_v6   ;;  %2105 = vperm.xlu1 %9559, %v2101_v7  }
 0x25b   : > { %v9626_v29 = vld [vmem:[%s13522_s26 + $0x8] sm:$0xff]   ;;  %v9627_v49 = vld [vmem:[%s13522_s26] sm:$0xff]   ;;  %v9628_v10 = vld [vmem:[%s13522_s26 + $0x10] sm:$0xff]  }
 0x25c   : > { %v9629_v12 = vld [vmem:[%s13522_s26 + $0x28] sm:$0xff]   ;;  %v9633_v34 = vld [vmem:[%s13522_s26 + $0x38] sm:$0xff]  }
 0x2ab   : > { %v1449_v21 = vpop.permute.xlu0 %1448  ;;  %v1447_v22 = vpop.permute.xlu1 %1446 }
 0x2ac   : > { %v1453_v23 = vsel %vm13274_vm8, %v1447_v22, %v1449_v21  ;;  %vm1653_vm8 = vmand %vm1652_vm1, %vm13523_vm5  ;;  %vm13529_vm5 = vcmask 64512   ;;  %v13546_v21 = vmov 0 }
 0x2ad   : > { %v1462_v24 = vsel %vm13276_vm9, %v1453_v23, 0  ;;  %vm10346_vm9 = vcmp.eq.s32.totalorder %v1588_v25, 1  ;;  %v1662_v38 = vsel %vm1653_vm8, 1, %v9714_v1  ;;  %vm10351_vm1 = vmand %vm1870_vm10, %vm1871_vm2 }
 0x2ae   : > { %v1476_v26 = vsel %vm13278_vm11, %v1462_v24, 0  ;;  %v13526_v37 = vsel %vm10346_vm9, 4294967295, %v13525_v37  ;;  %vm13532_vm2 = vmmov %vm13530_vm12  ;;  %v1666_v48 = vrot.slane %v1662_v38, %v9897_v4  ;;  %v13554_v38 = vmov 0 }
 0x2af   : > { %v1426_v31 = vpop.permute.xlu0 %1425  ;;  %8951 = vmatpush3.bf16.msra.mxu1 %v1476_v26  ;;  %v1424_v32 = vpop.permute.xlu1 %1423  ;;  %vm1727_vm10 = vmand %vm10300_vm13, %vm13532_vm2  ;;  %vm10386_vm2 = vcmp.eq.s32.totalorder %v1809_v44, 1 }
 0x2b0   : > { %v1430_v33 = vsel %vm13277_vm14, %v1424_v32, %v1426_v31  ;;  %8956 = vmatprep.subr.bf16.mxu1 %v13384_v59  ;;  %vm13531_vm14 = vmmov 0   ;;  %vm13280_vm8 = vmpackc.low %vm10346_vm9, %vm10346_vm9  ;;  %v13536_v52 = vsel %vm10386_vm2, 4294967295, %v13535_v52 }
 0x2b1   : > { %v1439_v36 = vsel %vm13524_vm3, %v1430_v33, 0  ;;  %vm1949_vm3 = vmand %vm10351_vm1, %vm13530_vm12  ;;  %v9630_v33 = vld [vmem:[%s13522_s26 + $0x18] sm:$0xff]  }
 0x2b2   : > { %8953 = vmatmul.mubr.msk.bf16.vlgmr.msra.gmra.mrb[0].mxu1 %vm13529_vm5, %v9626_v29  ;;  %v1528_v42 = vsel %vm13278_vm11, %v1439_v36, 0  ;;  %vm13533_vm5 = vcmp.lt.s32.totalorder %v10272_v54, 8 }
 0x2b3   : > { %v1578_v35 = vpop.permute.xlu0 %1577  ;;  %8957 = vmatpush3.bf16.msra.mxu1 %v1528_v42  ;;  %v1576_v43 = vpop.permute.xlu1 %1575  ;;  %8958 = vmatprep.mubr.msk.bf16.mxu1 %vm13531_vm14, %v13384_v59  ;;  %vm1950_vm12 = vmand %vm1949_vm3, %vm13533_vm5  ;;  %vm10390_vm3 = vcmp.eq.s32.totalorder %v1666_v48, 1 }
 0x2b4   : > { %v1582_v45 = vsel %vm13279_vm15, %v1576_v43, %v1578_v35  ;;  %8962 = vmatprep.subr.bf16.mxu1 %v13384_v59  ;;  %vm13534_vm11 = vmmov %vm13533_vm5  ;;  %v13538_v55 = vsel %vm10390_vm3, 4294967295, %v13537_v55  ;;  %v1960_v56 = vsel %vm1950_vm12, 1, %v9714_v1  ;;  %vm13282_vm5 = vcmask 515072   ;;  %v9631_v35 = vld [vmem:[%s13522_s26 + $0x20] sm:$0xff]  }
 0x2b5   : > { %vm1728_vm13 = vmand %vm1727_vm10, %vm13534_vm11  ;;  %v1591_v5 = vsel %vm13280_vm8, %v1582_v45, 0  ;;  %vm13539_vm11 = vcmask 64512   ;;  %vm13540_vm10 = vcmask 1043456   ;;  %v1964_v62 = vrot.slane %v1960_v56, %v9897_v4 }
 0x2b6   : > { %v1729_v57 = vsel %vm1728_vm13, 1, %v9714_v1  ;;  %v1604_v58 = vsel %vm13540_vm10, %v1591_v5, 0  ;;  %vm13281_vm15 = vmpackc.low %vm10386_vm2, %vm10386_vm2  ;;  %vm13541_vm12 = vcmask 7168   ;;  %vm13542_vm13 = vcmp.ge.s32.totalorder %v10272_v54, 1 }
 0x2b7   : > { %v1657_v50 = vpop.permute.xlu0 %1656  ;;  %v1655_v51 = vpop.permute.xlu1 %1654  ;;  %vm13283_vm8 = vmpackc.low %vm10390_vm3, %vm10390_vm3  ;;  %v1733_v6 = vrot.slane %v1729_v57, %v9897_v4  ;;  %v13559_v45 = vmov 0  ;;  %v9634_v57 = vld [vmem:[%s13522_s26 + $0x40] sm:$0xff]  }
 0x2b8   : > { %v1660_v63 = vsel %vm13541_vm12, %v1655_v51, %v1657_v50  ;;  %vm13543_vm12 = vcmp.lt.s32.totalorder %v10272_v54, 9  ;;  %v9632_v50 = vld [vmem:[%s13522_s26 + $0x30] sm:$0xff]   ;;  %s13637_s26 = smov 72  }
 0x2b9   : > { %v1669_v14 = vsel %vm13283_vm8, %v1660_v63, 0  ;;  %vm13548_vm8 = vcmask 64512  }
 0x2ba   : > { %8959 = vmatmul.mubr.msk.bf16.vlgmr.msra.gmra.mrb[4].mxu1 %vm13539_vm11, %v9627_v49  ;;  %vm1873_vm11 = vmand %vm10351_vm1, %vm13542_vm13  ;;  %v1682_v23 = vsel %vm13549_vm6, %v1669_v14, 0  ;;  %vm13551_vm6 = vcmp.ge.s32.totalorder %v10272_v54, 4294967295 }
 0x2bb   : > { %8963 = vmatpush3.bf16.msra.mxu1 %v1604_v58  ;;  %v1799_v60 = vpop.permute.xlu0 %1798  ;;  %v1797_v61 = vpop.permute.xlu1 %1796  ;;  %8964 = vmatprep.mubr.msk.bf16.mxu1 %vm13531_vm14, %v13384_v59  ;;  %vm1874_vm13 = vmand %vm1873_vm11, %vm13543_vm12 }
 0x2bc   : > { %v1803_v0 = vsel %vm13282_vm5, %v1797_v61, %v1799_v60  ;;  %8968 = vmatprep.subr.bf16.mxu1 %v13384_v59  ;;  %vm13286_vm5 = vcmask 457728   ;;  %v1884_v22 = vsel %vm1874_vm13, 1, %v9714_v1  ;;  %vm13550_vm12 = vmmov %vm13548_vm8 }
 0x2bd   : > { %v1812_v7 = vsel %vm13281_vm15, %v1803_v0, 0  ;;  %vm10439_vm15 = vcmp.eq.s32.totalorder %v1733_v6, 1  ;;  %v1888_v29 = vrot.slane %v1884_v22, %v9897_v4 }
 0x2be   : > { %v1825_v8 = vsel %vm13540_vm10, %v1812_v7, 0  ;;  %vm10434_vm10 = vcmp.eq.s32.totalorder %v1964_v62, 1  ;;  %v13547_v21 = vsel %vm10439_vm15, 4294967295, %v13546_v21  ;;  %vm13296_vm13 = vmpackc.low %vm10439_vm15, %vm10439_vm15 }
 0x2bf   : > { %v1878_v15 = vpop.permute.xlu0 %1877  ;;  %8981 = vmatpush3.bf16.msra.mxu0 %v1825_v8  ;;  %v1876_v17 = vpop.permute.xlu1 %1875  ;;  %v13545_v20 = vsel %vm10434_vm10, 4294967295, %v13544_v20  ;;  %vm13285_vm11 = vmpackc.low %vm10434_vm10, %vm10434_vm10  ;;  %v1736_v36 = vsel %vm13296_vm13, %v10226_v53, 0 }
 0x2c0   : > { %8992 = vmatprep.subr.bf16.mxu0 %v13384_v59 }
 0x2c2   : > { %8965 = vmatmul.mubr.msk.bf16.vlgmr.msra.gmra.mrb[8].mxu1 %vm13548_vm8, %v9628_v10  ;;  %8983 = vmatmul.mubr.msk.bf16.vlgmr.msra.gmra.mrb[4].mxu0 %vm13550_vm12, %v9629_v12  ;;  %vm2025_vm8 = vmand %vm10351_vm1, %vm13551_vm6  ;;  %vm13552_vm12 = vcmask 1043456   ;;  %vm13553_vm1 = vcmp.lt.s32.totalorder %v10272_v54, 7  ;;  %v1749_v54 = vsel %vm13557_vm4, %v1736_v36, 0  ;;  %vm13295_vm4 = vcmask 449536  }
 0x2c3   : > { %8969 = vmatpush3.bf16.msra.mxu1 %v1682_v23  ;;  %v1954_v24 = vpop.permute.xlu0 %1953  ;;  %v1952_v25 = vpop.permute.xlu1 %1951  ;;  %8970 = vmatprep.mubr.msk.bf16.mxu1 %vm13531_vm14, %v13384_v59  ;;  %vm2026_vm6 = vmand %vm2025_vm8, %vm13553_vm1 }
 0x2c4   : > { %v1958_v26 = vsel %vm13286_vm5, %v1952_v25, %v1954_v24  ;;  %8974 = vmatprep.subr.bf16.mxu1 %v13384_v59  ;;  %8994 = vmatprep.mubr.msk.bf16.mxu0 %vm13531_vm14, %v13384_v59  ;;  %v2036_v41 = vsel %vm2026_vm6, 1, %v9714_v1  ;;  %vm13556_vm5 = vcmask 64512  }
 0x2c5   : > { %v1967_v31 = vsel %vm13285_vm11, %v1958_v26, 0  ;;  %vm10485_vm11 = vcmp.eq.s32.totalorder %v1888_v29, 1  ;;  %vm13558_vm8 = vmmov %vm13556_vm5  ;;  %v2040_v42 = vrot.slane %v2036_v41, %v9897_v4 }
 0x2c6   : > { %v1980_v32 = vsel %vm13552_vm12, %v1967_v31, 0  ;;  %vm13288_vm12 = vcmask 465920   ;;  %v13555_v38 = vsel %vm10485_vm11, 4294967295, %v13554_v38  ;;  %vm13289_vm1 = vmpackc.low %vm10485_vm11, %vm10485_vm11 }
 0x2c7   : > { %8993 = vmatpush3.bf16.msra.mxu0 %v1980_v32  ;;  %v1882_v53 = vsel %vm13288_vm12, %v1876_v17, %v1878_v15  ;;  %v2030_v44 = vpop.permute.xlu0 %2029  ;;  %v2028_v48 = vpop.permute.xlu1 %2027  ;;  %vm13561_vm6 = vmmov %vm13558_vm8 }
 0x2c8   : > { %9004 = vmatprep.subr.bf16.mxu0 %v13384_v59  ;;  %v1891_v43 = vsel %vm13289_vm1, %v1882_v53, 0  ;;  %v2034_v5 = vsel %vm13295_vm4, %v2028_v48, %v2030_v44  ;;  %vm13563_vm1 = vmmov %vm13561_vm6 }
 0x2ca   : > { %8971 = vmatmul.mubr.msk.bf16.vlgmr.msra.gmra.mrb[12].mxu1 %vm13556_vm5, %v9630_v33  ;;  %8995 = vmatmul.mubr.msk.bf16.vlgmr.msra.gmra.mrb[8].mxu0 %vm13558_vm8, %v9633_v34  ;;  %vm10511_vm5 = vcmp.eq.s32.totalorder %v2040_v42, 1  ;;  %vm13562_vm8 = vcmask 1043456  }
 0x2cb   : > { %8975 = vmatpush3.bf16.msra.mxu1 %v1749_v54  ;;  %8976 = vmatprep.mubr.msk.bf16.mxu1 %vm13531_vm14, %v13384_v59  ;;  %v13560_v45 = vsel %vm10511_vm5, 4294967295, %v13559_v45  ;;  %v1904_v49 = vsel %vm13562_vm8, %v1891_v43, 0  ;;  %vm13290_vm12 = vmpackc.low %vm10511_vm5, %vm10511_vm5 }
 0x2cc   : > { %8986 = vmatprep.subr.bf16.mxu1 %v13384_v59  ;;  %9012 = vmatprep.mubr.msk.bf16.mxu0 %vm13531_vm14, %v13384_v59  ;;  %v2043_v51 = vsel %vm13290_vm12, %v2034_v5, 0 }
 0x2cd   : > { %v2056_v56 = vsel %vm13562_vm8, %v2043_v51, 0  ;;  %vm13571_vm8 = vcmask 457728  }
 0x2ce   : > { %vm13572_vm12 = vmmov %vm13571_vm8 }
 0x2d2   : > { %8977 = vmatmul.mubr.msk.bf16.vlgmr.msra.gmra.mrb[16].mxu1 %vm13561_vm6, %v9631_v35 }
 0x2d3   : > { %8987 = vmatpush3.bf16.msra.mxu1 %v1904_v49  ;;  %8988 = vmatprep.mubr.msk.bf16.mxu1 %vm13531_vm14, %v13384_v59 }
 0x2d4   : > { %8998 = vmatprep.subr.bf16.mxu1 %v13384_v59 }
 0x2da   : > { %8989 = vmatmul.mubr.msk.bf16.vlgmr.msra.gmra.mrb[20].mxu1 %vm13561_vm6, %v9632_v50 }
 0x2db   : > { %8999 = vmatpush3.bf16.msra.mxu1 %v2056_v56  ;;  %9000 = vmatprep.mubr.msk.bf16.mxu1 %vm13531_vm14, %v13384_v59 }
 0x2e2   : > { %9001 = vmatmul.mubr.msk.bf16.vlgmr.msra.gmra.mrb[24].mxu1 %vm13563_vm1, %v9634_v57  ;;  %vm13569_vm1 = vcmask 515072  }
 0x2e3   : > { %vm13570_vm6 = vmmov %vm13569_vm1 }
 0x385   : > { %v1512_v58 = vpop.f32.mrb[0].mxu1 }
 0x386   : > { %v8954_v60 = vpop.f32.mrb[1].mxu1 }
 0x387   : > { %v1515_v61 = vpop.f32.mrb[2].mxu1 }
 0x388   : > { %v8955_v62 = vpop.f32.mrb[3].mxu1 }
 0x38d   : > { %v1564_v63 = vpop.f32.mrb[4].mxu1 }
 0x38e   : > { %v1565_v0 = vadd.f32 %v1564_v63, %v1512_v58  ;;  %v8960_v6 = vpop.f32.mrb[5].mxu1 }
 0x38f   : > { %v1567_v7 = vpop.f32.mrb[6].mxu1 }
 0x390   : > { %v1568_v8 = vadd.f32 %v1567_v7, %v1515_v61  ;;  %v8961_v10 = vpop.f32.mrb[7].mxu1  ;;  %v9635_v7 = vld [vmem:[%s13564_s20] sm:$0xff]  }
 0x391   : > { %9005 = vmatpush3.bf16.msra.mxu0 %v9635_v7 }
 0x392   : > { %9006 = vmatprep.subr.bf16.mxu0 %v13384_v59 }
 0x395   : > { %v1640_v12 = vpop.f32.mrb[8].mxu1  ;;  %v1861_v14 = vpop.f32.mrb[4].mxu0 }
 0x396   : > { %v1647_v15 = vadd.f32 %v1640_v12, %v1565_v0  ;;  %v8966_v17 = vpop.f32.mrb[9].mxu1  ;;  %v8984_v22 = vpop.f32.mrb[5].mxu0 }
 0x397   : > { %v1643_v23 = vpop.f32.mrb[10].mxu1  ;;  %v1864_v24 = vpop.f32.mrb[6].mxu0 }
 0x398   : > { %v1648_v25 = vadd.f32 %v1643_v23, %v1568_v8  ;;  %v8967_v26 = vpop.f32.mrb[11].mxu1  ;;  %v8985_v29 = vpop.f32.mrb[7].mxu0 }
 0x39d   : > { %v1718_v31 = vpop.f32.mrb[12].mxu1  ;;  %v2016_v32 = vpop.f32.mrb[8].mxu0 }
 0x39e   : > { %v1725_v33 = vadd.f32 %v1718_v31, %v1647_v15  ;;  %v8972_v34 = vpop.f32.mrb[13].mxu1  ;;  %v8996_v36 = vpop.f32.mrb[9].mxu0 }
 0x39f   : > { %v1721_v41 = vpop.f32.mrb[14].mxu1  ;;  %v2019_v54 = vpop.f32.mrb[10].mxu0  ;;  %v9638_v34 = vld [vmem:[%s13564_s20 + $0x18] sm:$0xff]  }
 0x3a0   : > { %v1726_v53 = vadd.f32 %v1721_v41, %v1648_v25  ;;  %v8973_v42 = vpop.f32.mrb[15].mxu1  ;;  %v8997_v35 = vpop.f32.mrb[11].mxu0 }
 0x3a1   : > { %v2106_v15 = vpop.permute.xlu1 %2105  ;;  %v2111_v25 = vpop.permute.xlu0 %2110 }
 0x3a5   : > { %v1785_v43 = vpop.f32.mrb[16].mxu1 }
 0x3a6   : > { %v1792_v44 = vadd.f32 %v1785_v43, %v1725_v33  ;;  %v8978_v48 = vpop.f32.mrb[17].mxu1 }
 0x3a7   : > { %v1788_v49 = vpop.f32.mrb[18].mxu1 }
 0x3a8   : > { %v1793_v5 = vadd.f32 %v1788_v49, %v1726_v53  ;;  %v1868_v50 = vadd.f32 %v1861_v14, %v1792_v44  ;;  %v8979_v51 = vpop.f32.mrb[19].mxu1 }
 0x3aa   : > { %v1869_v56 = vadd.f32 %v1864_v24, %v1793_v5  ;;  %v9636_v24 = vld [vmem:[%s13564_s20 + $0x8] sm:$0xff]  }
 0x3ab   : > { %9007 = vmatpush3.bf16.msra.mxu0 %v9636_v24  ;;  %v9639_v24 = vld [vmem:[%s13573_s29 + $0x10] sm:$0xff]  }
 0x3ac   : > { %9008 = vmatprep.subr.bf16.mxu0 %v13384_v59 }
 0x3ad   : > { %v1940_v57 = vpop.f32.mrb[20].mxu1 }
 0x3ae   : > { %v1947_v58 = vadd.f32 %v1940_v57, %v1868_v50  ;;  %v8990_v60 = vpop.f32.mrb[21].mxu1 }
 0x3af   : > { %v1943_v61 = vpop.f32.mrb[22].mxu1 }
 0x3b0   : > { %v1948_v62 = vadd.f32 %v1943_v61, %v1869_v56  ;;  %v2023_v63 = vadd.f32 %v2016_v32, %v1947_v58  ;;  %v8991_v0 = vpop.f32.mrb[23].mxu1  ;;  %v9637_v32 = vld [vmem:[%s13564_s20 + $0x10] sm:$0xff]   ;;  %s13580_s20 = smov 113  }
 0x3b1   : > { %9009 = vmatpush3.bf16.msra.mxu0 %v9637_v32 }
 0x3b2   : > { %v2024_v6 = vadd.f32 %v2019_v54, %v1948_v62  ;;  %9010 = vmatprep.subr.bf16.mxu0 %v13384_v59 }
 0x3b5   : > { %v2092_v8 = vpop.f32.mrb[24].mxu1  ;;  %9011 = vmatpush3.bf16.msra.mxu0 %v9638_v34 }
 0x3b6   : > { %v2099_v10 = vadd.f32 %v2092_v8, %v2023_v63  ;;  %v9002_v12 = vpop.f32.mrb[25].mxu1 }
 0x3b7   : > { %v2095_v14 = vpop.f32.mrb[26].mxu1 }
 0x3b8   : > { %v2113_v17 = vadd.f32 %v2106_v15, %v2099_v10  ;;  %v2100_v22 = vadd.f32 %v2095_v14, %v2024_v6  ;;  %v9003_v23 = vpop.f32.mrb[27].mxu1 }
 0x3ba   : > { %v2114_v26 = vadd.f32 %v2111_v25, %v2100_v22  ;;  %v10548_v29 = vmax.f32 %v2113_v17, 0.0 }
 0x3bc   : > { %v10550_v31 = vmax.f32 %v2114_v26, 0.0 }
 0x3be   : > { %v9585_v33 = vpack.i.bf16 %v10550_v31, %v10548_v29 }
 0x3c0   : > { %9586 = vrot.lane.b32.xlu0 %v9585_v33, %s13565_s7  ;;  %9581 = vrot.lane.b32.xlu1 %v9585_v33, %s13507_s25 }
 0x3c4   : > { %9596 = vrot.lane.b32.xlu0 %v9585_v33, %s13566_s5  ;;  %9591 = vrot.lane.b32.xlu1 %v9585_v33, %s13567_s16 }
 0x3c8   : > { %9606 = vrot.lane.b32.xlu0 %v9585_v33, %s13568_s3  ;;  %9601 = vrot.lane.b32.xlu1 %v9585_v33, %s13291_s24  ;;  %s9740_s24 = smov 4  }
 0x432   : > { %v9587_v36 = vpop.permute.xlu0 %9586  ;;  %v9582_v41 = vpop.permute.xlu1 %9581 }
 0x433   : > { %v9589_v54 = vunpack.i.h.bf16 %v9587_v36  ;;  %v9588_v53 = vunpack.i.l.bf16 %v9587_v36  ;;  %v9584_v42 = vunpack.i.h.bf16 %v9582_v41  ;;  %v9583_v35 = vunpack.i.l.bf16 %v9582_v41  ;;  %v10587_v36 = vld [vmem:[%s13575_s18] sm:$0x1]  ;;  %v10596_v41 = vld [vmem:[%s13575_s18 + $0x1] sm:$0x1]  ;;  %s9751_s18 = smov 123  }
 0x434   : > { %vm13320_vm10 = vcmp.ge.s32.totalorder %v10596_v41, 1  ;;  %vm13319_vm11 = vcmp.lt.s32.totalorder %v10596_v41, 4  ;;  %vm13321_vm3 = vcmp.lt.s32.totalorder %v10596_v41, 5  ;;  %vm13587_vm9 = vcmp.lt.s32.totalorder %v10596_v41, 3 }
 0x435   : > { %v2132_v51 = vsel %vm13569_vm1, %v9584_v42, %v9589_v54  ;;  %v2131_v56 = vsel %vm13570_vm6, %v9583_v35, %v9588_v53  ;;  %vm13294_vm1 = vcmask 523264   ;;  %vm2835_vm6 = vcmp.ge.s32.totalorder %v10587_v36, 4294967295  ;;  %v3136_v42 = vld [vmem:[%s13582_s4 + $0x8] sm:$0xff]  ;;  %v3135_v35 = vld [vmem:[%s13583_s23] sm:$0xff] }
 0x436   : > { %v9597_v43 = vpop.permute.xlu0 %9596  ;;  %v9592_v44 = vpop.permute.xlu1 %9591  ;;  %v2134_v10 = vmax.f32 %v10550_v31, %v2132_v51  ;;  %v2133_v12 = vmax.f32 %v10548_v29, %v2131_v56 }
 0x437   : > { %v9599_v48 = vunpack.i.h.bf16 %v9597_v43  ;;  %v9598_v49 = vunpack.i.l.bf16 %v9597_v43  ;;  %v9594_v5 = vunpack.i.h.bf16 %v9592_v44  ;;  %v9593_v50 = vunpack.i.l.bf16 %v9592_v44  ;;  %v3138_v43 = vld [vmem:[%s13583_s23 + $0x18] sm:$0xff]  ;;  %v3137_v44 = vld [vmem:[%s13583_s23 + $0x10] sm:$0xff] }
 0x439   : > { %v2148_v0 = vsel %vm13571_vm8, %v9594_v5, %v9599_v48  ;;  %v2147_v6 = vsel %vm13572_vm12, %v9593_v50, %v9598_v49  ;;  %vm13574_vm12 = vcmask 130048   ;;  %vm2836_vm8 = vcmp.lt.s32.totalorder %v10587_v36, 3 }
 0x43a   : > { %v9607_v57 = vpop.permute.xlu0 %9606  ;;  %v9602_v58 = vpop.permute.xlu1 %9601  ;;  %9018 = vmatprep.mubr.msk.bf16.mxu1 %vm13574_vm12, %v9639_v24  ;;  %vm13305_vm12 = vcmp.ge.s32.totalorder %v10596_v41, 4294967295  ;;  %v10644_v48 = vpack.c.bf16 %v10550_v31, %v10548_v29 }
 0x43b   : > { %v9609_v60 = vunpack.i.h.bf16 %v9607_v57  ;;  %v9608_v61 = vunpack.i.l.bf16 %v9607_v57  ;;  %v9604_v62 = vunpack.i.h.bf16 %v9602_v58  ;;  %v9603_v63 = vunpack.i.l.bf16 %v9602_v58 }
 0x43d   : > { %v2162_v7 = vsel %vm13295_vm4, %v9604_v62, %v9609_v60  ;;  %v2161_v8 = vsel %vm13295_vm4, %v9603_v63, %v9608_v61  ;;  %vm13304_vm4 = vcmp.lt.s32.totalorder %v10596_v41, 3 }
 0x43e   : > { %v2163_v15 = vmax.f32 %v2147_v6, %v2161_v8  ;;  %v2164_v14 = vmax.f32 %v2148_v0, %v2162_v7 }
 0x440   : > { %v2165_v17 = vmax.f32 %v2133_v12, %v2163_v15  ;;  %v2166_v22 = vmax.f32 %v2134_v10, %v2164_v14  ;;  %v9640_v10 = vld [vmem:[%s13573_s29 + $0x18] sm:$0xff]   ;;  %v9641_v14 = vld [vmem:[%s13573_s29] sm:$0xff]  }
 0x442   : > { %v2167_v23 = vpack.c.bf16 %v2166_v22, %v2165_v17 }
 0x444   : > { %9013 = vmatmul.mubr.msk.bf16.vlgmr.msra.gmra.mrb[12].mxu0 %vm13294_vm1, %v2167_v23  ;;  %vm10599_vm1 = vmand %vm2835_vm6, %vm2836_vm8  ;;  %vm2249_vm6 = vcmp.lt.s32.totalorder %v10587_v36, 5 }
 0x445   : > { %vm3036_vm13 = vmand %vm10599_vm1, %vm13305_vm12 }
 0x446   : > { %vm10610_vm5 = vmand %vm3036_vm13, %vm13304_vm4  ;;  %vm2248_vm13 = vcmp.ge.s32.totalorder %v10587_v36, 1  ;;  %vm13316_vm4 = vcmp.ge.s32.totalorder %v10596_v41, 0 }
 0x447   : > { %vm2250_vm8 = vmand %vm2248_vm13, %vm2249_vm6  ;;  %vm13586_vm6 = vcmp.ge.s32.totalorder %v10596_v41, 4294967295 }
 0x448   : > { %vm2284_vm12 = vmand %vm2250_vm8, %vm13316_vm4 }
 0x449   : > { %vm2286_vm2 = vmand %vm2284_vm12, %vm13319_vm11 }
 0x44a   : > { %vm2252_vm15 = vmand %vm2250_vm8, %vm13320_vm10  ;;  %v2296_v29 = vsel %vm2286_vm2, 1, %v9714_v1  ;;  %vm2546_vm2 = vcmp.ge.s32.totalorder %v10587_v36, 0  ;;  %vm2547_vm10 = vcmp.lt.s32.totalorder %v10587_v36, 4 }
 0x44b   : > { %vm2254_vm13 = vmand %vm2252_vm15, %vm13321_vm3  ;;  %v2300_v31 = vrot.slane %v2296_v29, %v9897_v4  ;;  %v9643_v29 = vld [vmem:[%s13573_s29 + $0x20] sm:$0xff]  }
 0x44c   : > { %vm2446_vm4 = vmand %vm2250_vm8, %vm13586_vm6  ;;  %v2265_v49 = vsel %vm2254_vm13, 1, %v9714_v1 }
 0x44d   : > { %vm2448_vm12 = vmand %vm2446_vm4, %vm13587_vm9  ;;  %v2269_v5 = vrot.slane %v2265_v49, %v9897_v4  ;;  %vm2301_vm11 = vcmp.eq.s32.totalorder %v2300_v31, 1  ;;  %vm13590_vm4 = vcmp.ge.s32.totalorder %v10596_v41, 1 }
 0x44e   : > { %v2458_v50 = vsel %vm2448_vm12, 1, %v9714_v1  ;;  %vm2302_vm15 = vmpackc.low %vm2301_vm11, %vm2301_vm11  ;;  %vm13591_vm11 = vcmp.lt.s32.totalorder %v10596_v41, 5 }
 0x44f   : > { %vm2270_vm3 = vcmp.eq.s32.totalorder %v2269_v5, 1  ;;  %v2462_v51 = vrot.slane %v2458_v50, %v9897_v4  ;;  %vm10676_vm8 = vmand %vm2546_vm2, %vm2547_vm10  ;;  %v2303_v57 = vsel %vm2302_vm15, 65537, %v9714_v1  ;;  %vm2291_vm2 = vcmask 31744   ;;  %v9651_v50 = vld [vmem:[%s13573_s29 + $0x60] sm:$0xff]  }
 0x450   : > { %vm2271_vm9 = vmpackc.low %vm2270_vm3, %vm2270_vm3  ;;  %v2307_v58 = vrot.slane %v2303_v57, %v9897_v4  ;;  %vm2260_vm3 = vcmask 39936  }
 0x451   : > { %vm2549_vm13 = vmand %vm10676_vm8, %vm13590_vm4  ;;  %vm2463_vm6 = vcmp.eq.s32.totalorder %v2462_v51, 1  ;;  %v2272_v60 = vsel %vm2271_vm9, 65537, %v9714_v1  ;;  %vm13593_vm4 = vcmask 130048  }
 0x452   : > { %vm2550_vm12 = vmand %vm2549_vm13, %vm13591_vm11  ;;  %vm2308_vm0 = vcmp.ne.s16.totalorder %v2307_v58, 0  ;;  %v2276_v61 = vrot.slane %v2272_v60, %v9897_v4  ;;  %vm2453_vm13 = vcmask 23552   ;;  %v9644_v60 = vld [vmem:[%s13573_s29 + $0x28] sm:$0xff]  }
 0x453   : > { %vm2464_vm10 = vmpackc.low %vm2463_vm6, %vm2463_vm6  ;;  %v2559_v62 = vsel %vm2550_vm12, 1, %v9714_v1 }
 0x454   : > { %v2465_v6 = vsel %vm2464_vm10, 65537, %v9714_v1  ;;  %v2563_v12 = vrot.slane %v2559_v62, %v9897_v4  ;;  %vm2277_vm15 = vcmp.ne.s16.totalorder %v2276_v61, 0  ;;  %vm13596_vm12 = vmmov %vm13593_vm4  ;;  %vm13597_vm10 = vcmp.lt.s32.totalorder %v10596_v41, 4  ;;  %v9645_v62 = vld [vmem:[%s13573_s29 + $0x30] sm:$0xff]  }
 0x455   : > { %v2469_v15 = vrot.slane %v2465_v6, %v9897_v4 }
 0x456   : > { %vm2564_vm6 = vcmp.eq.s32.totalorder %v2563_v12, 1 }
 0x457   : > { %vm10705_vm11 = vcmp.ne.s16.totalorder %v2469_v15, 0  ;;  %v9647_v15 = vld [vmem:[%s13573_s29 + $0x40] sm:$0xff]  }
 0x517   : > { %v2238_v25 = vpop.f32.mrb[12].mxu0 }
 0x518   : > { %v9014_v26 = vpop.f32.mrb[13].mxu0 }
 0x519   : > { %v2241_v32 = vpop.f32.mrb[14].mxu0 }
 0x51a   : > { %v10580_v33 = vpack.c.bf16 %v2241_v32, %v2238_v25  ;;  %v9015_v34 = vpop.f32.mrb[15].mxu0 }
 0x51c   : > { %2289 = vrot.lane.b32.xlu0 %v10580_v33, %s9740_s24  ;;  %2287 = vrot.lane.b32.xlu1 %v10580_v33, %s9741_s1  ;;  %s13581_s1 = smov 15   ;;  %s9748_s24 = smov 12  }
 0x520   : > { %2258 = vrot.lane.b32.xlu0 %v10580_v33, %s9742_s2  ;;  %2256 = vrot.lane.b32.xlu1 %v10580_v33, %s9743_s6  ;;  %s9746_s2 = smov 13   ;;  %s9747_s6 = smov 125  }
 0x524   : > { %2451 = vrot.lane.b32.xlu0 %v10580_v33, %s9744_s17  ;;  %2449 = vrot.lane.b32.xlu1 %v10580_v33, %s9745_s19  ;;  %s9749_s17 = smov 124   ;;  %s9750_s19 = smov 11  }
 0x528   : > { %2553 = vrot.lane.b32.xlu0 %v10580_v33, %s13511_s0  ;;  %2551 = vrot.lane.b32.xlu1 %v10580_v33, %s13580_s20 }
 0x52c   : > { %2741 = vrot.lane.b32.xlu0 %v10580_v33, %s13581_s1  ;;  %2739 = vrot.lane.b32.xlu1 %v10580_v33, %s13507_s25 }
 0x530   : > { %2842 = vrot.lane.b32.xlu0 %v10580_v33, %s9746_s2  ;;  %2840 = vrot.lane.b32.xlu1 %v10580_v33, %s9747_s6  ;;  %s13641_s2 = smov 57   ;;  %s13642_s6 = smov 121  }
 0x534   : > { %2941 = vrot.lane.b32.xlu0 %v10580_v33, %s9748_s24  ;;  %2939 = vrot.lane.b32.xlu1 %v10580_v33, %s9749_s17 }
 0x538   : > { %3040 = vrot.lane.b32.xlu0 %v10580_v33, %s9750_s19  ;;  %3038 = vrot.lane.b32.xlu1 %v10580_v33, %s9751_s18  ;;  %s13584_s18 = smov 9   ;;  %s13640_s19 = smov 65  }
 0x53c   : > { %3146 = vperm.xlu0 %9548, %v3136_v42   ;;  %3141 = vperm.xlu1 %9559, %v3135_v35   ;;  %v9642_v35 = vld [vmem:[%s13573_s29 + $0x8] sm:$0xff]  }
 0x540   : > { %3156 = vperm.xlu0 %9548, %v3138_v43   ;;  %3151 = vperm.xlu1 %9559, %v3137_v44  }
 0x544   : > { %3266 = vrot.lane.b32.xlu0 %v10644_v48, %s13584_s18  ;;  %3264 = vrot.lane.b32.xlu1 %v10644_v48, %s13585_s14 }
 0x58e   : > { %v2290_v63 = vpop.permute.xlu0 %2289  ;;  %v2288_v0 = vpop.permute.xlu1 %2287 }
 0x58f   : > { %v2294_v7 = vsel %vm2291_vm2, %v2288_v0, %v2290_v63 }
 0x590   : > { %v2309_v8 = vsel %vm2308_vm0, %v2294_v7, 0  ;;  %9490 = vmatprep.subr.msk.bf16.mxu1 %vm2308_vm0, %v2294_v7  ;;  %vm13592_vm0 = vcmp.ge.s32.totalorder %v10596_v41, 0 }
 0x591   : > { %9017 = vmatpush3.bf16.msra.mxu1 %v2309_v8  ;;  %vm2647_vm9 = vmand %vm10676_vm8, %vm13592_vm0 }
 0x592   : > { %v2259_v17 = vpop.permute.xlu0 %2258  ;;  %v2257_v22 = vpop.permute.xlu1 %2256  ;;  %vm2648_vm2 = vmand %vm2647_vm9, %vm13597_vm10  ;;  %vm13604_vm10 = vcmp.lt.s32.totalorder %v10596_v41, 3 }
 0x593   : > { %v2263_v23 = vsel %vm2260_vm3, %v2257_v22, %v2259_v17  ;;  %vm2565_vm3 = vmpackc.low %vm2564_vm6, %vm2564_vm6  ;;  %v2649_v36 = vsel %vm2648_vm2, 1, %v9714_v1  ;;  %vm13602_vm6 = vcmask 7168  }
 0x594   : > { %v2278_v24 = vsel %vm2277_vm15, %v2263_v23, 0  ;;  %9019 = vmatmul.mubr.msk.bf16.vlgmr.msra.gmra.mrb[28].mxu1 %vm13593_vm4, %v9640_v10  ;;  %9491 = vmatprep.subr.msk.bf16.mxu1 %vm2277_vm15, %v2263_v23  ;;  %v2566_v42 = vsel %vm2565_vm3, 65537, %v9714_v1  ;;  %v2653_v43 = vrot.slane %v2649_v36, %v9897_v4  ;;  %vm13598_vm15 = vcmp.ge.s32.totalorder %v10596_v41, 4294967295  ;;  %vm13599_vm9 = vmmov %vm13593_vm4  ;;  %v9646_v10 = vld [vmem:[%s13573_s29 + $0x38] sm:$0xff]  }
 0x595   : > { %9023 = vmatpush3.bf16.msra.mxu1 %v2278_v24  ;;  %9024 = vmatprep.mubr.msk.bf16.mxu1 %vm13596_vm12, %v9641_v14  ;;  %v2570_v44 = vrot.slane %v2566_v42, %v9897_v4  ;;  %vm2737_vm0 = vmand %vm10676_vm8, %vm13598_vm15 }
 0x596   : > { %v2452_v26 = vpop.permute.xlu0 %2451  ;;  %v2450_v32 = vpop.permute.xlu1 %2449  ;;  %vm2654_vm4 = vcmp.eq.s32.totalorder %v2653_v43, 1  ;;  %vm13603_vm12 = vmmov %vm13599_vm9 }
 0x597   : > { %v2456_v34 = vsel %vm2453_vm13, %v2450_v32, %v2452_v26  ;;  %vm10731_vm13 = vcmp.ne.s16.totalorder %v2570_v44, 0  ;;  %vm2738_vm2 = vmand %vm2737_vm0, %vm13604_vm10  ;;  %v9648_v26 = vld [vmem:[%s13573_s29 + $0x48] sm:$0xff]   ;;  %v3047_v44 = vsel %vm10610_vm5, 1, %v9714_v1 }
 0x598   : > { %9492 = vmatprep.subr.msk.bf16.mxu1 %vm10705_vm11, %v2456_v34  ;;  %v2471_v5 = vsel %vm10705_vm11, %v2456_v34, 0  ;;  %vm2655_vm8 = vmpackc.low %vm2654_vm4, %vm2654_vm4  ;;  %v2747_v56 = vsel %vm2738_vm2, 1, %v9714_v1  ;;  %vm13605_vm11 = vcmp.ge.s32.totalorder %v10596_v41, 1 }
 0x599   : > { %v2656_v57 = vsel %vm2655_vm8, 65537, %v9714_v1  ;;  %v2751_v58 = vrot.slane %v2747_v56, %v9897_v4  ;;  %vm2838_vm3 = vmand %vm10599_vm1, %vm13605_vm11 }
 0x59a   : > { %v2554_v31 = vpop.permute.xlu0 %2553  ;;  %v2552_v49 = vpop.permute.xlu1 %2551  ;;  %v2660_v61 = vrot.slane %v2656_v57, %v9897_v4  ;;  %vm13606_vm0 = vmmov %vm13599_vm9 }
 0x59b   : > { %v2557_v51 = vsel %vm13602_vm6, %v2552_v49, %v2554_v31  ;;  %vm2752_vm15 = vcmp.eq.s32.totalorder %v2751_v58, 1  ;;  %vm13609_vm4 = vmmov %vm13606_vm0  ;;  %vm13610_vm6 = vcmp.lt.s32.totalorder %v10596_v41, 5  ;;  %v3051_v31 = vrot.slane %v3047_v44, %v9897_v4  ;;  %v9650_v49 = vld [vmem:[%s13573_s29 + $0x58] sm:$0xff]  }
 0x59c   : > { %v2572_v63 = vsel %vm10731_vm13, %v2557_v51, 0  ;;  %vm2753_vm10 = vmpackc.low %vm2752_vm15, %vm2752_vm15  ;;  %vm13615_vm15 = vcmask 121856  }
 0x59d   : > { %v2754_v7 = vsel %vm2753_vm10, 65537, %v9714_v1  ;;  %vm13612_vm11 = vmmov %vm13606_vm0  ;;  %vm3052_vm5 = vcmp.eq.s32.totalorder %v3051_v31, 1 }
 0x59e   : > { %v2758_v12 = vrot.slane %v2754_v7, %v9897_v4  ;;  %v2742_v14 = vpop.permute.xlu0 %2741  ;;  %v2740_v17 = vpop.permute.xlu1 %2739  ;;  %vm13617_vm10 = vmmov %vm13606_vm0 }
 0x59f   : > { %v2745_v24 = vsel %vm13615_vm15, %v2740_v17, %v2742_v14  ;;  %v9656_v14 = vld [vmem:[%s13573_s29 + $0x88] sm:$0xff]   ;;  %v9657_v17 = vld [vmem:[%s13200_s21] sm:$0xff]  }
 0x5a0   : > { %9025 = vmatmul.mubr.msk.bf16.vlgmr.msra.gmra.mrb[28].mxu1 %vm13599_vm9, %v9642_v35  ;;  %vm10758_vm9 = vcmp.ne.s16.totalorder %v2660_v61, 0  ;;  %v9652_v61 = vld [vmem:[%s13573_s29 + $0x68] sm:$0xff]   ;;  %9070 = vmatprep.subr.bf16.mxu0 %v9657_v17 }
 0x5a1   : > { %9029 = vmatpush3.bf16.msra.mxu1 %v2471_v5  ;;  %9030 = vmatprep.mubr.msk.bf16.mxu1 %vm13603_vm12, %v9643_v29  ;;  %vm2839_vm12 = vmand %vm2838_vm3, %vm13610_vm6  ;;  %v2662_v22 = vsel %vm10758_vm9, %v10580_v33, 0  ;;  %vm10786_vm3 = vcmp.ne.s16.totalorder %v2758_v12, 0  ;;  %v9655_v12 = vld [vmem:[%s13573_s29 + $0x80] sm:$0xff]  }
 0x5a2   : > { %9493 = vmatprep.subr.msk.bf16.mxu1 %vm10731_vm13, %v2557_v51  ;;  %v2849_v6 = vsel %vm2839_vm12, 1, %v9714_v1  ;;  %vm13611_vm13 = vcmp.ge.s32.totalorder %v10596_v41, 0  ;;  %v2843_v34 = vpop.permute.xlu0 %2842  ;;  %v2841_v36 = vpop.permute.xlu1 %2840  ;;  %v2760_v42 = vsel %vm10786_vm3, %v2745_v24, 0  ;;  %9071 = vmatpush3.bf16.msra.mxu0 %v9657_v17 }
 0x5a3   : > { %v2853_v8 = vrot.slane %v2849_v6, %v9897_v4  ;;  %vm2937_vm2 = vmand %vm10599_vm1, %vm13611_vm13  ;;  %9076 = vmatprep.subr.bf16.mxu0 %v13384_v59 }
 0x5a5   : > { %vm2854_vm8 = vcmp.eq.s32.totalorder %v2853_v8, 1 }
 0x5a6   : > { %vm2855_vm1 = vmpackc.low %vm2854_vm8, %vm2854_vm8  ;;  %v2942_v51 = vpop.permute.xlu0 %2941  ;;  %v2940_v56 = vpop.permute.xlu1 %2939 }
 0x5aa   : > { %v3041_v0 = vpop.permute.xlu0 %3040  ;;  %v3039_v6 = vpop.permute.xlu1 %3038 }
 0x5ac   : > { %9031 = vmatmul.mubr.msk.bf16.vlgmr.msra.gmra.mrb[28].mxu1 %vm13606_vm0, %v9644_v60 }
 0x5ad   : > { %9035 = vmatpush3.bf16.msra.mxu1 %v2572_v63  ;;  %9036 = vmatprep.mubr.msk.bf16.mxu1 %vm13609_vm4, %v9645_v62  ;;  %vm13616_vm4 = vcmp.lt.s32.totalorder %v10596_v41, 4  ;;  %v9649_v41 = vld [vmem:[%s13573_s29 + $0x50] sm:$0xff]  }
 0x5ae   : > { %9494 = vmatprep.subr.msk.bf16.mxu1 %vm10758_vm9, %v10580_v33  ;;  %vm2938_vm6 = vmand %vm2937_vm2, %vm13616_vm4  ;;  %v2856_v33 = vsel %vm2855_vm1, 65537, %v9714_v1  ;;  %vm2844_vm9 = vcmask 105472   ;;  %v9653_v63 = vld [vmem:[%s13573_s29 + $0x70] sm:$0xff]  }
 0x5af   : > { %v2948_v54 = vsel %vm2938_vm6, 1, %v9714_v1  ;;  %v2860_v32 = vrot.slane %v2856_v33, %v9897_v4  ;;  %v2847_v43 = vsel %vm2844_vm9, %v2841_v36, %v2843_v34  ;;  %vm13620_vm2 = vmmov %vm13606_vm0  ;;  %vm3042_vm6 = vcmask 89088  }
 0x5b0   : > { %v2952_v25 = vrot.slane %v2948_v54, %v9897_v4  ;;  %vm3053_vm4 = vmpackc.low %vm3052_vm5, %vm3052_vm5  ;;  %v3045_v8 = vsel %vm3042_vm6, %v3039_v6, %v3041_v0 }
 0x5b1   : > { %vm10809_vm13 = vcmp.ne.s16.totalorder %v2860_v32, 0  ;;  %v3054_v60 = vsel %vm3053_vm4, 65537, %v9714_v1  ;;  %vm13624_vm1 = vmmov %vm13606_vm0 }
 0x5b2   : > { %vm2953_vm12 = vcmp.eq.s32.totalorder %v2952_v25, 1  ;;  %v2862_v53 = vsel %vm10809_vm13, %v2847_v43, 0  ;;  %v3058_v62 = vrot.slane %v3054_v60, %v9897_v4  ;;  %vm13633_vm5 = vmmov %vm13606_vm0 }
 0x5b3   : > { %vm2954_vm8 = vmpackc.low %vm2953_vm12, %vm2953_vm12 }
 0x5b4   : > { %v2955_v29 = vsel %vm2954_vm8, 65537, %v9714_v1  ;;  %vm3059_vm9 = vcmp.ne.s16.totalorder %v3058_v62, 0  ;;  %vm13625_vm12 = vmmov %vm13606_vm0 }
 0x5b5   : > { %v2959_v5 = vrot.slane %v2955_v29, %v9897_v4  ;;  %vm13629_vm8 = vmpackc.low %vm10307_vm7, %vm10307_vm7  ;;  %vm13632_vm7 = vcmask 72704  }
 0x5b6   : > { %v3253_v25 = vsel %vm13629_vm8, 65537, %v9714_v1  ;;  %vm13647_vm6 = vmmov %vm13632_vm7  ;;  %vm13654_vm8 = vnez %v13526_v37  ;;  %v9661_v37 = vld [vmem:[%s13188_s9 + $0x8] sm:$0xff]  }
 0x5b7   : > { %vm10831_vm15 = vcmp.ne.s16.totalorder %v2959_v5, 0  ;;  %v3257_v35 = vrot.slane %v3253_v25, %v9897_v4 }
 0x5b8   : > { %9037 = vmatmul.mubr.msk.bf16.vlgmr.msra.gmra.mrb[28].mxu1 %vm13612_vm11, %v9646_v10  ;;  %vm2943_vm11 = vcmask 97280   ;;  %v9654_v10 = vld [vmem:[%s13573_s29 + $0x78] sm:$0xff]  }
 0x5b9   : > { %9041 = vmatpush3.bf16.msra.mxu1 %v2662_v22  ;;  %9042 = vmatprep.mubr.msk.bf16.mxu1 %vm13606_vm0, %v9647_v15  ;;  %v2946_v58 = vsel %vm2943_vm11, %v2940_v56, %v2942_v51  ;;  %v3060_v15 = vsel %vm3059_vm9, %v3045_v8, 0  ;;  %vm10876_vm11 = vcmp.ne.s16.totalorder %v3257_v35, 0 }
 0x5ba   : > { %9495 = vmatprep.subr.msk.bf16.mxu1 %vm10786_vm3, %v2745_v24  ;;  %vm13621_vm3 = vmmov %vm13606_vm0  ;;  %v2961_v7 = vsel %vm10831_vm15, %v2946_v58, 0 }
 0x5bb   : > { %v3147_v22 = vpop.permute.xlu0 %3146  ;;  %v3142_v23 = vpop.permute.xlu1 %3141 }
 0x5bf   : > { %v3157_v24 = vpop.permute.xlu0 %3156  ;;  %v3152_v54 = vpop.permute.xlu1 %3151 }
 0x5c3   : > { %v3267_v44 = vpop.permute.xlu0 %3266  ;;  %v3265_v29 = vpop.permute.xlu1 %3264 }
 0x5c4   : > { %9043 = vmatmul.mubr.msk.bf16.vlgmr.msra.gmra.mrb[28].mxu1 %vm13617_vm10, %v9648_v26  ;;  %vm13626_vm10 = vmmov %vm13606_vm0  ;;  %v3270_v56 = vsel %vm13632_vm7, %v3265_v29, %v3267_v44  ;;  %v9660_v44 = vld [vmem:[%s13187_s8 + $0x8] sm:$0xff]  }
 0x5c5   : > { %9047 = vmatpush3.bf16.msra.mxu1 %v2760_v42  ;;  %9048 = vmatprep.mubr.msk.bf16.mxu1 %vm13620_vm2, %v9649_v41  ;;  %vm13628_vm2 = vmmov %vm13606_vm0  ;;  %v3272_v57 = vsel %vm10876_vm11, %v3270_v56, 0 }
 0x5c6   : > { %9496 = vmatprep.subr.msk.bf16.mxu1 %vm10809_vm13, %v2847_v43  ;;  %vm13627_vm13 = vmmov %vm13606_vm0 }
 0x5d0   : > { %9049 = vmatmul.mubr.msk.bf16.vlgmr.msra.gmra.mrb[28].mxu1 %vm13621_vm3, %v9650_v49  ;;  %vm13634_vm3 = vmmov %vm13606_vm0 }
 0x5d1   : > { %9053 = vmatpush3.bf16.msra.mxu1 %v2862_v53  ;;  %9054 = vmatprep.mubr.msk.bf16.mxu1 %vm13606_vm0, %v9651_v50 }
 0x5d2   : > { %9497 = vmatprep.subr.msk.bf16.mxu1 %vm10831_vm15, %v2946_v58  ;;  %v9658_v58 = vld [vmem:[%s13188_s9] sm:$0xff]   ;;  %vm13635_vm15 = vmmov %vm13606_vm0  ;;  %vm13645_vm0 = vnez %v13515_v16 }
 0x5d3   : > { %vm13646_vm4 = vmpackc.low %vm13645_vm0, %vm13645_vm0  ;;  %vm13660_vm0 = vnez %v13538_v55 }
 0x5dc   : > { %9055 = vmatmul.mubr.msk.bf16.vlgmr.msra.gmra.mrb[28].mxu1 %vm13624_vm1, %v9652_v61  ;;  %vm13648_vm1 = vmmov %vm13647_vm6 }
 0x5dd   : > { %9059 = vmatpush3.bf16.msra.mxu1 %v2961_v7  ;;  %9060 = vmatprep.mubr.msk.bf16.mxu1 %vm13625_vm12, %v9653_v63  ;;  %v4479_v7 = vld [vmem:[%s13189_s10 + $0x8] sm:$0xff]  ;;  %vm3329_vm12 = vcmask 261120  }
 0x5de   : > { %9498 = vmatprep.subr.msk.bf16.mxu1 %vm3059_vm9, %v3045_v8  ;;  %v4478_v8 = vld [vmem:[%s13189_s10] sm:$0xff] }
 0x5e8   : > { %9061 = vmatmul.mubr.msk.bf16.vlgmr.msra.gmra.mrb[28].mxu1 %vm13626_vm10, %v9654_v10  ;;  %v10998_v10 = vpack.c.bf16 %v10203_v27, %v10203_v27  ;;  %vm13651_vm10 = vcmask 64512  }
 0x5e9   : > { %9065 = vmatpush3.bf16.msra.mxu1 %v3060_v15  ;;  %9066 = vmatprep.mubr.msk.bf16.mxu1 %vm13627_vm13, %v9655_v12  ;;  %v11002_v12 = vpack.c.bf16 %v10205_v28, %v10205_v28  ;;  %v3390_v15 = vsel %vm13646_vm4, 65537, %v9714_v1  ;;  %vm13652_vm13 = vmmov %vm13651_vm10 }
 0x5ea   : > { %9126 = vmatprep.subr.bf16.mxu1 %v13384_v59  ;;  %vm13661_vm4 = vmpackc.low %vm13660_vm0, %vm13660_vm0 }
 0x5f4   : > { %9067 = vmatmul.mubr.msk.bf16.vlgmr.msra.gmra.mrb[28].mxu1 %vm13628_vm2, %v9656_v14  ;;  %vm13653_vm2 = vmmov %vm13651_vm10 }
 0x5f5   : > { %9128 = vmatprep.mubr.msk.bf16.mxu1 %vm13531_vm14, %v13384_v59 }
 0x6c7   : > { %v9068_v33 = vpop.f32.mrb[28].mxu1 }
 0x6c8   : > { %v3161_v26 = vadd.f32 %v9068_v33, %v3152_v54  ;;  %v3116_v32 = vpop.f32.mrb[29].mxu1  ;;  %v9659_v33 = vld [vmem:[%s13187_s8] sm:$0xff]  }
 0x6c9   : > { %v3159_v41 = vadd.f32 %v3142_v23, %v3116_v32  ;;  %v9069_v34 = vpop.f32.mrb[30].mxu1 }
 0x6ca   : > { %v3162_v36 = vadd.f32 %v9069_v34, %v3157_v24  ;;  %v3119_v42 = vpop.f32.mrb[31].mxu1  ;;  %v3165_v31 = vmax.f32 %v3161_v26, 0.0 }
 0x6cb   : > { %v3160_v43 = vadd.f32 %v3147_v22, %v3119_v42  ;;  %v3163_v5 = vmax.f32 %v3159_v41, 0.0  ;;  %v3394_v22 = vrot.slane %v3390_v15, %v9897_v4 }
 0x6cc   : > { %v3166_v49 = vmax.f32 %v3162_v36, 0.0 }
 0x6cd   : > { %v3164_v50 = vmax.f32 %v3160_v43, 0.0  ;;  %vm11025_vm9 = vcmp.ne.s16.totalorder %v3394_v22, 0 }
 0x6ce   : > { %v3168_v51 = vpack.c.bf16 %v3166_v49, %v3165_v31 }
 0x6cf   : > { %v3167_v53 = vpack.c.bf16 %v3164_v50, %v3163_v5 }
 0x6d1   : > { %9072 = vmatprep.mubr.msk.bf16.mxu0 %vm13633_vm5, %v3167_v53  ;;  %vm13658_vm5 = vcmask 56320  }
 0x6d2   : > { %9073 = vmatmul.mubr.msk.bf16.vlgmr.msra.gmra.mrb[16].mxu0 %vm13634_vm3, %v3168_v51 }
 0x6d3   : > { %9077 = vmatpush3.bf16.msra.mxu0 %v3272_v57  ;;  %9078 = vmatprep.mubr.msk.bf16.mxu0 %vm13531_vm14, %v13384_v59 }
 0x6d4   : > { %9082 = vmatprep.subr.bf16.mxu0 %v13384_v59 }
 0x6da   : > { %9079 = vmatmul.mubr.msk.bf16.vlgmr.msra.gmra.mrb[20].mxu0 %vm13635_vm15, %v9658_v58  ;;  %vm13659_vm15 = vmmov %vm13658_vm5 }
 0x6db   : > { %9086 = vmatprep.mubr.msk.bf16.mxu0 %vm13531_vm14, %v13384_v59 }
 0x7a5   : > { %v9074_v60 = vpop.f32.mrb[16].mxu0 }
 0x7a6   : > { %v3217_v61 = vpop.f32.mrb[17].mxu0 }
 0x7a7   : > { %v9075_v62 = vpop.f32.mrb[18].mxu0 }
 0x7a8   : > { %v10894_v63 = vpack.c.bf16 %v9075_v62, %v9074_v60  ;;  %v3220_v0 = vpop.f32.mrb[19].mxu0 }
 0x7a9   : > { %v10896_v6 = vpack.c.bf16 %v3220_v0, %v3217_v61 }
 0x7ab   : > { %3241 = vrot.lane.b32.xlu0 %v10896_v6, %s13584_s18  ;;  %3237 = vrot.lane.b32.xlu1 %v10896_v6, %s13585_s14 }
 0x7af   : > { %3243 = vrot.lane.b32.xlu0 %v10894_v63, %s13584_s18  ;;  %3239 = vrot.lane.b32.xlu1 %v10894_v63, %s13585_s14  ;;  %s13638_s18 = smov 7   ;;  %s13639_s14 = smov 71  }
 0x7b3   : > { %3378 = vrot.lane.b32.xlu0 %v10896_v6, %s13636_s28  ;;  %3374 = vrot.lane.b32.xlu1 %v10896_v6, %s13637_s26 }
 0x7b7   : > { %3380 = vrot.lane.b32.xlu0 %v10894_v63, %s13636_s28  ;;  %3376 = vrot.lane.b32.xlu1 %v10894_v63, %s13637_s26 }
 0x7bb   : > { %3454 = vrot.lane.b32.xlu0 %v10644_v48, %s13636_s28  ;;  %3452 = vrot.lane.b32.xlu1 %v10644_v48, %s13637_s26  ;;  %s13845_s28 = sld [smem:[#allocation30_spill]] }
 0x7bf   : > { %3521 = vrot.lane.b32.xlu0 %v10894_v63, %s13638_s18  ;;  %3517 = vrot.lane.b32.xlu1 %v10894_v63, %s13639_s14 }
 0x7c3   : > { %3519 = vrot.lane.b32.xlu0 %v10896_v6, %s13638_s18  ;;  %3515 = vrot.lane.b32.xlu1 %v10896_v6, %s13639_s14 }
 0x7c7   : > { %3595 = vrot.lane.b32.xlu0 %v10644_v48, %s13638_s18  ;;  %3593 = vrot.lane.b32.xlu1 %v10644_v48, %s13639_s14  ;;  %s8565_s18 = sshll.u32 %s14094_s30, 5 }
 0x7cb   : > { %3662 = vrot.lane.b32.xlu0 %v10894_v63, %s13511_s0  ;;  %3658 = vrot.lane.b32.xlu1 %v10894_v63, %s13640_s19 }
 0x7cf   : > { %3736 = vrot.lane.b32.xlu0 %v10644_v48, %s13511_s0  ;;  %3734 = vrot.lane.b32.xlu1 %v10644_v48, %s13640_s19 }
 0x7d3   : > { %3660 = vrot.lane.b32.xlu0 %v10896_v6, %s13511_s0  ;;  %3656 = vrot.lane.b32.xlu1 %v10896_v6, %s13640_s19  ;;  %s13849_s19 = sld [smem:[#allocation38_spill]] }
 0x7d7   : > { %3920 = vrot.lane.b32.xlu0 %v10894_v63, %s13565_s7  ;;  %3916 = vrot.lane.b32.xlu1 %v10894_v63, %s13507_s25 }
 0x7db   : > { %3994 = vrot.lane.b32.xlu0 %v10644_v48, %s13565_s7  ;;  %3992 = vrot.lane.b32.xlu1 %v10644_v48, %s13507_s25 }
 0x7df   : > { %4061 = vrot.lane.b32.xlu0 %v10894_v63, %s13641_s2  ;;  %4057 = vrot.lane.b32.xlu1 %v10894_v63, %s13642_s6 }
 0x7e3   : > { %3918 = vrot.lane.b32.xlu0 %v10896_v6, %s13565_s7  ;;  %3914 = vrot.lane.b32.xlu1 %v10896_v6, %s13507_s25  ;;  %s13643_s7 = smov 119  }
 0x7e7   : > { %4135 = vrot.lane.b32.xlu0 %v10644_v48, %s13641_s2  ;;  %4133 = vrot.lane.b32.xlu1 %v10644_v48, %s13642_s6 }
 0x7eb   : > { %4059 = vrot.lane.b32.xlu0 %v10896_v6, %s13641_s2  ;;  %4055 = vrot.lane.b32.xlu1 %v10896_v6, %s13642_s6  ;;  %s14087_s6 = sld [smem:[#allocation45_spill]] }
 0x7ef   : > { %4202 = vrot.lane.b32.xlu0 %v10894_v63, %s13566_s5  ;;  %4198 = vrot.lane.b32.xlu1 %v10894_v63, %s13567_s16 }
 0x7f3   : > { %4200 = vrot.lane.b32.xlu0 %v10896_v6, %s13566_s5  ;;  %4196 = vrot.lane.b32.xlu1 %v10896_v6, %s13567_s16 }
 0x7f7   : > { %4276 = vrot.lane.b32.xlu0 %v10644_v48, %s13566_s5  ;;  %4274 = vrot.lane.b32.xlu1 %v10644_v48, %s13567_s16  ;;  %s13717_s5 = smov 16   ;;  %s13718_s16 = smov 112  }
 0x7fb   : > { %4341 = vrot.lane.b32.xlu0 %v10896_v6, %s13568_s3  ;;  %4337 = vrot.lane.b32.xlu1 %v10896_v6, %s13643_s7 }
 0x7ff   : > { %4343 = vrot.lane.b32.xlu0 %v10894_v63, %s13568_s3  ;;  %4339 = vrot.lane.b32.xlu1 %v10894_v63, %s13643_s7 }
 0x803   : > { %4417 = vrot.lane.b32.xlu0 %v10644_v48, %s13568_s3  ;;  %4415 = vrot.lane.b32.xlu1 %v10644_v48, %s13643_s7  ;;  %s13644_s3 = smov 17   ;;  %s724_s7 = scalar_lea.vmem %s14087_s6, %s8565_s18 }
 0x807   : > { %4487 = vperm.xlu0 %9548, %v4479_v7   ;;  %4482 = vperm.xlu1 %9559, %v4478_v8   ;;  %v3672_v8 = vsel %vm13661_vm4, 65537, %v9714_v1  ;;  %vm13677_vm4 = vcmask 515072  }
 0x808   : > { %v3676_v22 = vrot.slane %v3672_v8, %v9897_v4 }
 0x80b   : > { %4633 = vrot.lane.b32.xlu1 %v11002_v12, %s13644_s3  ;;  %4636 = vrot.lane.b32.xlu0 %v10998_v10, %s13644_s3 }
 0x81d   : > { %v3242_v14 = vpop.permute.xlu0 %3241  ;;  %v3238_v27 = vpop.permute.xlu1 %3237 }
 0x81e   : > { %v3247_v17 = vsel %vm13647_vm6, %v3238_v27, %v3242_v14  ;;  %v9662_v14 = vld [vmem:[%s13187_s8 + $0x10] sm:$0xff]   ;;  %vm13662_vm6 = vmmov %vm13658_vm5 }
 0x81f   : > { %v3259_v28 = vsel %vm10876_vm11, %v3247_v17, 0 }
 0x820   : > { %9083 = vmatpush3.bf16.msra.mxu0 %v3259_v28 }
 0x821   : > { %v3244_v23 = vpop.permute.xlu0 %3243  ;;  %v3240_v24 = vpop.permute.xlu1 %3239  ;;  %9084 = vmatprep.subr.bf16.mxu0 %v13384_v59 }
 0x822   : > { %v3251_v54 = vsel %vm13648_vm1, %v3240_v24, %v3244_v23  ;;  %vm13663_vm1 = vnez %v13547_v21 }
 0x823   : > { %v3260_v16 = vsel %vm10876_vm11, %v3251_v54, 0  ;;  %vm13655_vm11 = vmpackc.low %vm13654_vm8, %vm13654_vm8 }
 0x824   : > { %9085 = vmatpush3.bf16.msra.mxu0 %v3260_v16  ;;  %v3531_v5 = vsel %vm13655_vm11, 65537, %v9714_v1  ;;  %vm13671_vm11 = vnez %v13536_v52 }
 0x825   : > { %v3379_v26 = vpop.permute.xlu0 %3378  ;;  %v3375_v32 = vpop.permute.xlu1 %3374  ;;  %9090 = vmatprep.subr.bf16.mxu0 %v13384_v59  ;;  %v3535_v56 = vrot.slane %v3531_v5, %v9897_v4  ;;  %v9665_v5 = vld [vmem:[%s13187_s8 + $0x18] sm:$0xff]  }
 0x826   : > { %v3384_v41 = vsel %vm13651_vm10, %v3375_v32, %v3379_v26  ;;  %vm11100_vm10 = vcmp.ne.s16.totalorder %v3676_v22, 0  ;;  %v9663_v26 = vld [vmem:[%s13188_s9 + $0x10] sm:$0xff]   ;;  %v9664_v32 = vld [vmem:[%s13188_s9 + $0x18] sm:$0xff]  }
 0x827   : > { %v3396_v34 = vsel %vm11025_vm9, %v3384_v41, 0  ;;  %9087 = vmatmul.mubr.msk.bf16.vlgmr.msra.gmra.mrb[24].mxu0 %vm3329_vm12, %v9659_v33  ;;  %vm11061_vm7 = vcmp.ne.s16.totalorder %v3535_v56, 0  ;;  %v9672_v56 = vld [vmem:[%s13187_s8 + $0x38] sm:$0xff]  }
 0x828   : > { %9091 = vmatpush3.bf16.msra.mxu0 %v3396_v34  ;;  %9094 = vmatprep.mubr.msk.bf16.mxu0 %vm13531_vm14, %v13384_v59 }
 0x829   : > { %v3381_v36 = vpop.permute.xlu0 %3380  ;;  %v3377_v42 = vpop.permute.xlu1 %3376  ;;  %9092 = vmatprep.subr.bf16.mxu0 %v13384_v59 }
 0x82a   : > { %v3388_v35 = vsel %vm13652_vm13, %v3377_v42, %v3381_v36  ;;  %vm13667_vm13 = vcmask 7168  }
 0x82b   : > { %v3397_v43 = vsel %vm11025_vm9, %v3388_v35, 0  ;;  %vm13670_vm8 = vmmov %vm13667_vm13 }
 0x82c   : > { %9093 = vmatpush3.bf16.msra.mxu0 %v3397_v43 }
 0x82d   : > { %v3455_v29 = vpop.permute.xlu0 %3454  ;;  %v3453_v31 = vpop.permute.xlu1 %3452  ;;  %9098 = vmatprep.subr.bf16.mxu0 %v13384_v59 }
 0x82e   : > { %v3458_v49 = vsel %vm13653_vm2, %v3453_v31, %v3455_v29 }
 0x82f   : > { %v3460_v50 = vsel %vm11025_vm9, %v3458_v49, 0  ;;  %9095 = vmatmul.mubr.msk.bf16.vlgmr.msra.gmra.mrb[28].mxu0 %vm3329_vm12, %v9660_v44  ;;  %vm13664_vm9 = vmpackc.low %vm13663_vm1, %vm13663_vm1  ;;  %vm13679_vm1 = vnez %v13555_v38 }
 0x830   : > { %9099 = vmatpush3.bf16.msra.mxu0 %v3460_v50  ;;  %9100 = vmatprep.mubr.msk.bf16.mxu0 %vm13531_vm14, %v13384_v59  ;;  %v3797_v17 = vsel %vm13664_vm9, 65537, %v9714_v1  ;;  %v9666_v50 = vld [vmem:[%s13188_s9 + $0x20] sm:$0xff]   ;;  %vm13680_vm9 = vmpackc.low %vm13679_vm1, %vm13679_vm1 }
 0x831   : > { %v3522_v51 = vpop.permute.xlu0 %3521  ;;  %v3518_v18 = vpop.permute.xlu1 %3517  ;;  %9104 = vmatprep.subr.bf16.mxu0 %v13384_v59  ;;  %v3801_v24 = vrot.slane %v3797_v17, %v9897_v4 }
 0x832   : > { %v3529_v62 = vsel %vm13659_vm15, %v3518_v18, %v3522_v51  ;;  %vm13674_vm15 = vmmov %vm13670_vm8 }
 0x833   : > { %v3538_v15 = vsel %vm11061_vm7, %v3529_v62, 0  ;;  %vm11113_vm2 = vcmp.ne.s16.totalorder %v3801_v24, 0  ;;  %v9667_v62 = vld [vmem:[%s13187_s8 + $0x20] sm:$0xff]   ;;  %v9669_v24 = vld [vmem:[%s13187_s8 + $0x28] sm:$0xff]  }
 0x834   : > { %v3859_v44 = vsel %vm11113_vm2, %v10644_v48, 0 }
 0x835   : > { %v3520_v53 = vpop.permute.xlu0 %3519  ;;  %v3516_v57 = vpop.permute.xlu1 %3515 }
 0x836   : > { %v3525_v60 = vsel %vm13658_vm5, %v3516_v57, %v3520_v53  ;;  %vm13673_vm5 = vmmov %vm13634_vm3  ;;  %v3803_v57 = vsel %vm11113_vm2, %v10896_v6, 0  ;;  %v4071_v6 = vsel %vm13680_vm9, 65537, %v9714_v1  ;;  %vm13696_vm9 = vcmask 457728  }
 0x837   : > { %v3537_v61 = vsel %vm11061_vm7, %v3525_v60, 0  ;;  %9101 = vmatmul.mubr.msk.bf16.vlgmr.msra.gmra.mrb[32].mxu0 %vm13634_vm3, %v9661_v37  ;;  %v4075_v38 = vrot.slane %v4071_v6, %v9897_v4 }
 0x838   : > { %9105 = vmatpush3.bf16.msra.mxu0 %v3537_v61  ;;  %9108 = vmatprep.mubr.msk.bf16.mxu0 %vm13531_vm14, %v13384_v59  ;;  %v3804_v61 = vsel %vm11113_vm2, %v10894_v63, 0  ;;  %vm13683_vm2 = vmmov %vm13677_vm4 }
 0x839   : > { %v3596_v0 = vpop.permute.xlu0 %3595  ;;  %v3594_v7 = vpop.permute.xlu1 %3593  ;;  %9106 = vmatprep.subr.bf16.mxu0 %v13384_v59 }
 0x83a   : > { %v3599_v27 = vsel %vm13662_vm6, %v3594_v7, %v3596_v0  ;;  %vm13678_vm6 = vmmov %vm13634_vm3  ;;  %v9668_v0 = vld [vmem:[%s13188_s9 + $0x28] sm:$0xff]  }
 0x83b   : > { %v3601_v23 = vsel %vm11061_vm7, %v3599_v27, 0  ;;  %vm13672_vm7 = vmpackc.low %vm13671_vm11, %vm13671_vm11  ;;  %vm13686_vm11 = vcmask 465920  }
 0x83c   : > { %9107 = vmatpush3.bf16.msra.mxu0 %v3538_v15  ;;  %v3930_v35 = vsel %vm13672_vm7, 65537, %v9714_v1  ;;  %vm13687_vm7 = vmmov %vm13686_vm11 }
 0x83d   : > { %v3663_v55 = vpop.permute.xlu0 %3662  ;;  %v3659_v28 = vpop.permute.xlu1 %3658  ;;  %9112 = vmatprep.subr.bf16.mxu0 %v13384_v59  ;;  %v3934_v52 = vrot.slane %v3930_v35, %v9897_v4 }
 0x83e   : > { %v3670_v29 = vsel %vm13674_vm15, %v3659_v28, %v3663_v55  ;;  %vm13690_vm15 = vmmov %vm13678_vm6 }
 0x83f   : > { %9109 = vmatmul.mubr.msk.bf16.vlgmr.msra.gmra.mrb[36].mxu0 %vm3329_vm12, %v9662_v14  ;;  %v3679_v48 = vsel %vm11100_vm10, %v3670_v29, 0  ;;  %vm11149_vm0 = vcmp.ne.s16.totalorder %v3934_v52, 0  ;;  %v9676_v29 = vld [vmem:[%s13201_s22] ss:$8 sps:$4 sm:$0xff]  }
 0x840   : > { %9113 = vmatpush3.bf16.msra.mxu0 %v3601_v23  ;;  %9114 = vmatprep.mubr.msk.bf16.mxu0 %vm13531_vm14, %v13384_v59 }
 0x841   : > { %v3737_v21 = vpop.permute.xlu0 %3736  ;;  %v3735_v54 = vpop.permute.xlu1 %3734  ;;  %9118 = vmatprep.subr.bf16.mxu0 %v13384_v59 }
 0x842   : > { %v3740_v33 = vsel %vm13667_vm13, %v3735_v54, %v3737_v21  ;;  %vm13682_vm13 = vmmov %vm13634_vm3  ;;  %v9671_v21 = vld [vmem:[%s13188_s9 + $0x30] sm:$0xff]  }
 0x843   : > { %v3742_v25 = vsel %vm11100_vm10, %v3740_v33, 0 }
 0x844   : > { %9127 = vmatpush3.bf16.msra.mxu1 %v3742_v25 }
 0x845   : > { %v3661_v34 = vpop.permute.xlu0 %3660  ;;  %v3657_v36 = vpop.permute.xlu1 %3656  ;;  %9140 = vmatprep.subr.bf16.mxu1 %v13384_v59 }
 0x846   : > { %v3666_v42 = vsel %vm13670_vm8, %v3657_v36, %v3661_v34  ;;  %vm11195_vm8 = vcmp.ne.s16.totalorder %v4075_v38, 0  ;;  %v9674_v38 = vld [vmem:[%s13187_s8 + $0x40] sm:$0xff]  }
 0x847   : > { %v3678_v43 = vsel %vm11100_vm10, %v3666_v42, 0  ;;  %9115 = vmatmul.mubr.msk.bf16.vlgmr.msra.gmra.mrb[40].mxu0 %vm13673_vm5, %v9663_v26  ;;  %9129 = vmatmul.mubr.msk.bf16.vlgmr.msra.gmra.mrb[32].mxu1 %vm13634_vm3, %v9664_v32  ;;  %vm13681_vm10 = vmmov %vm13677_vm4  ;;  %vm13688_vm5 = vnez %v13545_v20  ;;  %v9670_v42 = vld [vmem:[%s13187_s8 + $0x30] sm:$0xff]  }
 0x848   : > { %9119 = vmatpush3.bf16.msra.mxu0 %v3678_v43  ;;  %9141 = vmatpush3.bf16.msra.mxu1 %v3859_v44  ;;  %vm13689_vm3 = vmpackc.low %vm13688_vm5, %vm13688_vm5  ;;  %vm13704_vm5 = vnez %v13479_v9 }
 0x849   : > { %v3921_v31 = vpop.permute.xlu0 %3920  ;;  %v3917_v49 = vpop.permute.xlu1 %3916  ;;  %9120 = vmatprep.subr.bf16.mxu0 %v13384_v59  ;;  %9122 = vmatprep.mubr.msk.bf16.mxu0 %vm13531_vm14, %v13384_v59  ;;  %v4212_v25 = vsel %vm13689_vm3, 65537, %v9714_v1 }
 0x84a   : > { %9142 = vmatprep.mubr.msk.bf16.mxu1 %vm13531_vm14, %v13384_v59  ;;  %9154 = vmatprep.subr.bf16.mxu1 %v13384_v59  ;;  %v3928_v14 = vsel %vm13683_vm2, %v3917_v49, %v3921_v31  ;;  %v4216_v20 = vrot.slane %v4212_v25, %v9897_v4 }
 0x84b   : > { %v3937_v22 = vsel %vm11149_vm0, %v3928_v14, 0 }
 0x84c   : > { %9121 = vmatpush3.bf16.msra.mxu0 %v3679_v48  ;;  %vm11242_vm1 = vcmp.ne.s16.totalorder %v4216_v20, 0 }
 0x84d   : > { %v3995_v51 = vpop.permute.xlu0 %3994  ;;  %v3993_v18 = vpop.permute.xlu1 %3992  ;;  %9132 = vmatprep.subr.bf16.mxu0 %v13384_v59 }
 0x84e   : > { %v3998_v37 = vsel %vm13677_vm4, %v3993_v18, %v3995_v51  ;;  %vm13692_vm4 = vnez %v13560_v45 }
 0x84f   : > { %v4000_v53 = vsel %vm11149_vm0, %v3998_v37, 0  ;;  %9123 = vmatmul.mubr.msk.bf16.vlgmr.msra.gmra.mrb[44].mxu0 %vm3329_vm12, %v9665_v5  ;;  %9143 = vmatmul.mubr.msk.bf16.vlgmr.msra.gmra.mrb[36].mxu1 %vm13678_vm6, %v9666_v50  ;;  %vm13693_vm6 = vmpackc.low %vm13692_vm4, %vm13692_vm4  ;;  %v9673_v37 = vld [vmem:[%s13188_s9 + $0x38] sm:$0xff]  }
 0x850   : > { %9133 = vmatpush3.bf16.msra.mxu0 %v3803_v57  ;;  %9155 = vmatpush3.bf16.msra.mxu1 %v4000_v53  ;;  %v4353_v35 = vsel %vm13693_vm6, 65537, %v9714_v1 }
 0x851   : > { %v4062_v58 = vpop.permute.xlu0 %4061  ;;  %v4058_v60 = vpop.permute.xlu1 %4057  ;;  %9134 = vmatprep.subr.bf16.mxu0 %v13384_v59  ;;  %9136 = vmatprep.mubr.msk.bf16.mxu0 %vm13531_vm14, %v13384_v59  ;;  %v4357_v45 = vrot.slane %v4353_v35, %v9897_v4 }
 0x852   : > { %9156 = vmatprep.mubr.msk.bf16.mxu1 %vm13531_vm14, %v13384_v59  ;;  %9168 = vmatprep.subr.bf16.mxu1 %v13384_v59 }
 0x853   : > { %vm11266_vm2 = vcmp.ne.s16.totalorder %v4357_v45, 0  ;;  %v9684_v45 = vld [vmem:[%s13201_s22 + $0x24] ss:$8 sps:$4 sm:$0xff]  }
 0x854   : > { %9135 = vmatpush3.bf16.msra.mxu0 %v3804_v61 }
 0x855   : > { %v3919_v7 = vpop.permute.xlu0 %3918  ;;  %v3915_v8 = vpop.permute.xlu1 %3914  ;;  %9146 = vmatprep.subr.bf16.mxu0 %v13384_v59 }
 0x856   : > { %v3924_v15 = vsel %vm13681_vm10, %v3915_v8, %v3919_v7  ;;  %vm13697_vm10 = vmmov %vm13696_vm9  ;;  %v3317_v7 = vpop.f32.mrb[20].mxu0 }
 0x857   : > { %v3936_v63 = vsel %vm11149_vm0, %v3924_v15, 0  ;;  %9137 = vmatmul.mubr.msk.bf16.vlgmr.msra.gmra.mrb[48].mxu0 %vm3329_vm12, %v9667_v62  ;;  %9157 = vmatmul.mubr.msk.bf16.vlgmr.msra.gmra.mrb[40].mxu1 %vm13682_vm13, %v9668_v0  ;;  %vm13691_vm0 = vmmov %vm13687_vm7  ;;  %v9080_v15 = vpop.f32.mrb[21].mxu0 }
 0x858   : > { %9147 = vmatpush3.bf16.msra.mxu0 %v3936_v63  ;;  %9150 = vmatprep.mubr.msk.bf16.mxu0 %vm13531_vm14, %v13384_v59  ;;  %v4069_v32 = vsel %vm13691_vm0, %v4058_v60, %v4062_v58  ;;  %vm13698_vm13 = vmmov %vm13696_vm9  ;;  %v3320_v63 = vpop.f32.mrb[22].mxu0 }
 0x859   : > { %v4136_v27 = vpop.permute.xlu0 %4135  ;;  %v4134_v17 = vpop.permute.xlu1 %4133  ;;  %9148 = vmatprep.subr.bf16.mxu0 %v13384_v59  ;;  %9170 = vmatprep.mubr.msk.bf16.mxu1 %vm13531_vm14, %v13384_v59  ;;  %v4078_v36 = vsel %vm11195_vm8, %v4069_v32, 0 }
 0x85a   : > { %v4139_v28 = vsel %vm13686_vm11, %v4134_v17, %v4136_v27  ;;  %vm13702_vm11 = vmmov %vm13690_vm15  ;;  %v4606_v17 = vsel %vm13704_vm5, 1, %v9714_v1 }
 0x85b   : > { %v4141_v23 = vsel %vm11195_vm8, %v4139_v28, 0  ;;  %v9081_v28 = vpop.f32.mrb[23].mxu0  ;;  %vm13706_vm3 = vmmov %vm13702_vm11 }
 0x85c   : > { %9149 = vmatpush3.bf16.msra.mxu0 %v3937_v22  ;;  %9169 = vmatpush3.bf16.msra.mxu1 %v4141_v23  ;;  %v9675_v23 = vld [vmem:[%s13188_s9 + $0x40] sm:$0xff]  }
 0x85d   : > { %v4060_v54 = vpop.permute.xlu0 %4059  ;;  %v4056_v16 = vpop.permute.xlu1 %4055  ;;  %9160 = vmatprep.subr.bf16.mxu0 %v13384_v59  ;;  %9182 = vmatprep.subr.bf16.mxu1 %v13384_v59 }
 0x85e   : > { %v4065_v33 = vsel %vm13687_vm7, %v4056_v16, %v4060_v54  ;;  %v11305_v54 = vsub.s32 4, %v9885_v2 }
 0x85f   : > { %v4077_v26 = vsel %vm11195_vm8, %v4065_v33, 0  ;;  %9151 = vmatmul.mubr.msk.bf16.vlgmr.msra.gmra.mrb[52].mxu0 %vm3329_vm12, %v9669_v24  ;;  %9171 = vmatmul.mubr.msk.bf16.vlgmr.msra.gmra.mrb[44].mxu1 %vm13690_vm15, %v9671_v21  ;;  %vm13701_vm8 = vcmask 449536   ;;  %v4610_v24 = vrot.slane %v4606_v17, %v9897_v4  ;;  %v4614_v21 = vrot.slane %v4606_v17, %v9889_v3 }
 0x860   : > { %9161 = vmatpush3.bf16.msra.mxu0 %v4077_v26  ;;  %9164 = vmatprep.mubr.msk.bf16.mxu0 %vm13531_vm14, %v13384_v59  ;;  %vm13703_vm7 = vmmov %vm13701_vm8 }
 0x861   : > { %v4203_v41 = vpop.permute.xlu0 %4202  ;;  %v4199_v34 = vpop.permute.xlu1 %4198  ;;  %9162 = vmatprep.subr.bf16.mxu0 %v13384_v59  ;;  %9184 = vmatprep.mubr.msk.bf16.mxu1 %vm13531_vm14, %v13384_v59  ;;  %vm4615_vm15 = vcmp.eq.s32.totalorder %v4610_v24, 1  ;;  %vm4616_vm0 = vcmp.eq.s32.totalorder %v4614_v21, 1 }
 0x862   : > { %v4210_v52 = vsel %vm13697_vm10, %v4199_v34, %v4203_v41  ;;  %vm4617_vm4 = vmpackc.low %vm4616_vm0, %vm4615_vm15  ;;  %vm13713_vm10 = vcmask 1043456   ;;  %v9689_v41 = vld [vmem:[%s13849_s19 + $0x18] sm:$0xff]  }
 0x863   : > { %v4219_v51 = vsel %vm11242_vm1, %v4210_v52, 0  ;;  %v4618_v9 = vsel %vm4617_vm4, 65537, %v9714_v1  ;;  %v9679_v52 = vld [vmem:[%s13201_s22 + $0x10] ss:$8 sps:$4 sm:$0xff]   ;;  %vm13725_vm4 = vnez %v13491_v40 }
 0x864   : > { %9163 = vmatpush3.bf16.msra.mxu0 %v4078_v36  ;;  %v4622_v16 = vrot.slane %v4618_v9, %v9897_v4  ;;  %v4626_v33 = vrot.slane %v4618_v9, %v11305_v54 }
 0x865   : > { %v4201_v43 = vpop.permute.xlu0 %4200  ;;  %v4197_v44 = vpop.permute.xlu1 %4196  ;;  %9174 = vmatprep.subr.bf16.mxu0 %v13384_v59 }
 0x866   : > { %v4206_v31 = vsel %vm13696_vm9, %v4197_v44, %v4201_v43  ;;  %vm11317_vm6 = vcmp.ne.s16.totalorder %v4626_v33, 0 }
 0x867   : > { %v4218_v49 = vsel %vm11242_vm1, %v4206_v31, 0  ;;  %9165 = vmatmul.mubr.msk.bf16.vlgmr.msra.gmra.mrb[56].mxu0 %vm3329_vm12, %v9670_v42  ;;  %v9678_v31 = vld [vmem:[%s13201_s22 + $0x4] ss:$8 sps:$4 sm:$0xff]  }
 0x868   : > { %9175 = vmatpush3.bf16.msra.mxu0 %v4218_v49  ;;  %9178 = vmatprep.mubr.msk.bf16.mxu0 %vm13531_vm14, %v13384_v59  ;;  %v9681_v49 = vld [vmem:[%s13201_s22 + $0x14] ss:$8 sps:$4 sm:$0xff]  }
 0x869   : > { %v4277_v48 = vpop.permute.xlu0 %4276  ;;  %v4275_v5 = vpop.permute.xlu1 %4274  ;;  %9176 = vmatprep.subr.bf16.mxu0 %v13384_v59 }
 0x86a   : > { %v4280_v50 = vsel %vm13698_vm13, %v4275_v5, %v4277_v48  ;;  %vm13714_vm13 = vmmov %vm13713_vm10  ;;  %v9682_v48 = vld [vmem:[%s13201_s22 + $0x20] ss:$8 sps:$4 sm:$0xff]   ;;  %v9687_v5 = vld [vmem:[%s13201_s22 + $0x34] ss:$8 sps:$4 sm:$0xff]  }
 0x86b   : > { %v4282_v18 = vsel %vm11242_vm1, %v4280_v50, 0  ;;  %vm13711_vm1 = vcmask 138240   ;;  %v9685_v50 = vld [vmem:[%s13201_s22 + $0x30] ss:$8 sps:$4 sm:$0xff]  }
 0x86c   : > { %9177 = vmatpush3.bf16.msra.mxu0 %v4219_v51  ;;  %9183 = vmatpush3.bf16.msra.mxu1 %v4282_v18  ;;  %vm13712_vm9 = vmmov %vm13711_vm1 }
 0x86d   : > { %v4342_v57 = vpop.permute.xlu0 %4341  ;;  %v4338_v58 = vpop.permute.xlu1 %4337  ;;  %9188 = vmatprep.subr.bf16.mxu0 %v13384_v59  ;;  %9196 = vmatprep.subr.bf16.mxu1 %v13384_v59 }
 0x86e   : > { %v4347_v60 = vsel %vm13701_vm8, %v4338_v58, %v4342_v57  ;;  %vm13716_vm8 = vcmask 64512  }
 0x86f   : > { %v4359_v6 = vsel %vm11266_vm2, %v4347_v60, 0  ;;  %9179 = vmatmul.mubr.msk.bf16.vlgmr.msra.gmra.mrb[60].mxu0 %vm3329_vm12, %v9672_v56  ;;  %9185 = vmatmul.mubr.msk.bf16.vlgmr.msra.gmra.mrb[48].mxu1 %vm13702_vm11, %v9673_v37  ;;  %vm13719_vm11 = vnez %v13481_v11 }
 0x870   : > { %9189 = vmatpush3.bf16.msra.mxu0 %v4359_v6  ;;  %9192 = vmatprep.mubr.msk.bf16.mxu0 %vm13531_vm14, %v13384_v59 }
 0x871   : > { %v4344_v61 = vpop.permute.xlu0 %4343  ;;  %v4340_v62 = vpop.permute.xlu1 %4339  ;;  %9190 = vmatprep.subr.bf16.mxu0 %v13384_v59  ;;  %9198 = vmatprep.mubr.msk.bf16.mxu1 %vm13531_vm14, %v13384_v59  ;;  %vm13705_vm14 = vmmov %vm13703_vm7 }
 0x872   : > { %v4351_v0 = vsel %vm13703_vm7, %v4340_v62, %v4344_v61 }
 0x873   : > { %v4360_v8 = vsel %vm11266_vm2, %v4351_v0, 0 }
 0x874   : > { %9191 = vmatpush3.bf16.msra.mxu0 %v4360_v8 }
 0x875   : > { %v4418_v14 = vpop.permute.xlu0 %4417  ;;  %v4416_v27 = vpop.permute.xlu1 %4415  ;;  %4546 = vmatprep.subr.bf16.mxu0 %v9678_v31 }
 0x876   : > { %v4421_v55 = vsel %vm13705_vm14, %v4416_v27, %v4418_v14  ;;  %vm13720_vm14 = vnez %v13483_v13 }
 0x877   : > { %v4423_v22 = vsel %vm11266_vm2, %v4421_v55, 0  ;;  %9193 = vmatmul.mubr.msk.bf16.vlgmr.msra.gmra.mrb[64].mxu0 %vm3329_vm12, %v9674_v38  ;;  %vm11313_vm12 = vcmp.ne.s16.totalorder %v4622_v16, 0  ;;  %vm13715_vm2 = vcmask 523264  }
 0x878   : > { %9197 = vmatpush3.bf16.msra.mxu1 %v4423_v22  ;;  %4578 = vmatprep.mubr.bf16.mxu0 %v9714_v1 }
 0x879   : > { %4547 = vmatpush1.bf16.msra.mxu0 %v9676_v29 }
 0x87a   : > { %4548 = vmatprep.subr.bf16.mxu0 %v9681_v49 }
 0x87b   : > { %9199 = vmatmul.mubr.msk.bf16.vlgmr.msra.gmra.mrb[52].mxu1 %vm13706_vm3, %v9675_v23 }
 0x87c   : > { %4688 = vmatprep.mubr.bf16.mxu1 %v9714_v1 }
 0x87d   : > { %4549 = vmatpush1.bf16.msra.mxu0 %v9679_v52 }
 0x87e   : > { %4550 = vmatprep.subr.bf16.mxu0 %v9684_v45 }
 0x881   : > { %4551 = vmatpush1.bf16.msra.mxu0 %v9682_v48 }
 0x882   : > { %4552 = vmatprep.subr.bf16.mxu0 %v9687_v5 }
 0x885   : > { %4553 = vmatpush1.bf16.msra.mxu0 %v9685_v50 }
 0x886   : > { %v11309_v25 = vpop.permute.xlu0 %4487  ;;  %v11311_v26 = vpop.permute.xlu1 %4482 }
 0x88a   : > { %v4634_v34 = vpop.permute.xlu1 %4633  ;;  %v4637_v20 = vpop.permute.xlu0 %4636 }
 0x88b   : > { %v4638_v36 = vsel %vm13711_vm1, %v4637_v20, %v4634_v34  ;;  %v4642_v42 = vsel %vm13712_vm9, %v4634_v34, %v4637_v20  ;;  %vm13726_vm9 = vmmov %vm13711_vm1 }
 0x88c   : > { %v4644_v35 = vsel %vm11313_vm12, %v4642_v42, 0  ;;  %v4645_v43 = vsel %vm11317_vm6, %v4638_v36, 0 }
 0x88d   : > { %8306 = vmatprep.subr.msk.bf16.mxu1 %vm13713_vm10, %v4645_v43  ;;  %v4651_v44 = vsel %vm13714_vm13, %v4644_v35, 0  ;;  %vm13727_vm13 = vnez %v13489_v30 }
 0x88e   : > { %4657 = vmatpush1.bf16.msra.mxu1 %v4651_v44 }
 0x8fa   : > { %v3367_v51 = vpop.f32.mrb[24].mxu0 }
 0x8fb   : > { %v3368_v18 = vadd.f32 %v3367_v51, %v3317_v7  ;;  %v9088_v56 = vpop.f32.mrb[25].mxu0 }
 0x8fc   : > { %v3370_v37 = vpop.f32.mrb[26].mxu0 }
 0x8fd   : > { %v3371_v53 = vadd.f32 %v3370_v37, %v3320_v63  ;;  %v9089_v57 = vpop.f32.mrb[27].mxu0 }
 0x902   : > { %v3443_v58 = vpop.f32.mrb[28].mxu0 }
 0x903   : > { %v3450_v60 = vadd.f32 %v3443_v58, %v3368_v18  ;;  %v9096_v6 = vpop.f32.mrb[29].mxu0 }
 0x904   : > { %v3446_v61 = vpop.f32.mrb[30].mxu0 }
 0x905   : > { %v3451_v62 = vadd.f32 %v3446_v61, %v3371_v53  ;;  %v9097_v0 = vpop.f32.mrb[31].mxu0 }
 0x90a   : > { %v3506_v8 = vpop.f32.mrb[32].mxu0 }
 0x90b   : > { %v3513_v38 = vadd.f32 %v3506_v8, %v3450_v60  ;;  %v9102_v15 = vpop.f32.mrb[33].mxu0 }
 0x90c   : > { %v3509_v14 = vpop.f32.mrb[34].mxu0 }
 0x90d   : > { %v3514_v27 = vadd.f32 %v3509_v14, %v3451_v62  ;;  %v9103_v17 = vpop.f32.mrb[35].mxu0 }
 0x912   : > { %v3584_v55 = vpop.f32.mrb[36].mxu0 }
 0x913   : > { %v3591_v28 = vadd.f32 %v3584_v55, %v3513_v38  ;;  %v9110_v22 = vpop.f32.mrb[37].mxu0 }
 0x914   : > { %v3587_v7 = vpop.f32.mrb[38].mxu0 }
 0x915   : > { %v3592_v23 = vadd.f32 %v3587_v7, %v3514_v27  ;;  %v9111_v24 = vpop.f32.mrb[39].mxu0 }
 0x91a   : > { %v3647_v63 = vpop.f32.mrb[40].mxu0  ;;  %v3788_v21 = vpop.f32.mrb[32].mxu1 }
 0x91b   : > { %v3654_v9 = vadd.f32 %v3647_v63, %v3591_v28  ;;  %v9116_v16 = vpop.f32.mrb[41].mxu0  ;;  %v9130_v33 = vpop.f32.mrb[33].mxu1 }
 0x91c   : > { %v3650_v34 = vpop.f32.mrb[42].mxu0  ;;  %v3791_v20 = vpop.f32.mrb[34].mxu1 }
 0x91d   : > { %v3655_v36 = vadd.f32 %v3650_v34, %v3592_v23  ;;  %v9117_v42 = vpop.f32.mrb[43].mxu0  ;;  %v9131_v35 = vpop.f32.mrb[35].mxu1 }
 0x922   : > { %v3725_v43 = vpop.f32.mrb[44].mxu0  ;;  %v3905_v44 = vpop.f32.mrb[36].mxu1 }
 0x923   : > { %v3732_v29 = vadd.f32 %v3725_v43, %v3654_v9  ;;  %v9124_v31 = vpop.f32.mrb[45].mxu0  ;;  %v9144_v49 = vpop.f32.mrb[37].mxu1 }
 0x924   : > { %v3728_v52 = vpop.f32.mrb[46].mxu0  ;;  %v3908_v45 = vpop.f32.mrb[38].mxu1 }
 0x925   : > { %v3795_v48 = vadd.f32 %v3788_v21, %v3732_v29  ;;  %v3733_v5 = vadd.f32 %v3728_v52, %v3655_v36  ;;  %v9125_v50 = vpop.f32.mrb[47].mxu0  ;;  %v9145_v51 = vpop.f32.mrb[39].mxu1 }
 0x927   : > { %v3796_v18 = vadd.f32 %v3791_v20, %v3733_v5 }
 0x92a   : > { %v3850_v56 = vpop.f32.mrb[48].mxu0  ;;  %v4046_v37 = vpop.f32.mrb[40].mxu1 }
 0x92b   : > { %v3857_v53 = vadd.f32 %v3850_v56, %v3795_v48  ;;  %v9138_v57 = vpop.f32.mrb[49].mxu0  ;;  %v9158_v58 = vpop.f32.mrb[41].mxu1 }
 0x92c   : > { %v3853_v60 = vpop.f32.mrb[50].mxu0  ;;  %v4049_v6 = vpop.f32.mrb[42].mxu1 }
 0x92d   : > { %v3912_v61 = vadd.f32 %v3905_v44, %v3857_v53  ;;  %v3858_v62 = vadd.f32 %v3853_v60, %v3796_v18  ;;  %v9139_v0 = vpop.f32.mrb[51].mxu0  ;;  %v9159_v8 = vpop.f32.mrb[43].mxu1 }
 0x92f   : > { %v3913_v38 = vadd.f32 %v3908_v45, %v3858_v62 }
 0x932   : > { %v3983_v15 = vpop.f32.mrb[52].mxu0  ;;  %v4187_v14 = vpop.f32.mrb[44].mxu1 }
 0x933   : > { %v3990_v27 = vadd.f32 %v3983_v15, %v3912_v61  ;;  %v9152_v17 = vpop.f32.mrb[53].mxu0  ;;  %v9172_v55 = vpop.f32.mrb[45].mxu1 }
 0x934   : > { %v3986_v28 = vpop.f32.mrb[54].mxu0  ;;  %v4190_v22 = vpop.f32.mrb[46].mxu1 }
 0x935   : > { %v4053_v7 = vadd.f32 %v4046_v37, %v3990_v27  ;;  %v3991_v23 = vadd.f32 %v3986_v28, %v3913_v38  ;;  %v9153_v24 = vpop.f32.mrb[55].mxu0  ;;  %v9173_v63 = vpop.f32.mrb[47].mxu1  ;;  %v4646_v28 = vld [vmem:[%s13191_s12] sm:$0xf] }
 0x936   : > { %8307 = vmatmul.mubr.msk.bf16.vlgmr.msra.gmra.mrb[56].mxu1 %vm13716_vm8, %v4646_v28  ;;  %v5920_v63 = vld [vmem:[%s13192_s13] sm:$0xff] }
 0x937   : > { %v4054_v21 = vadd.f32 %v4049_v6, %v3991_v23  ;;  %4732 = vmatprep.mubr.bf16.mxu1 %v9714_v1 }
 0x93a   : > { %v4124_v9 = vpop.f32.mrb[56].mxu0 }
 0x93b   : > { %v4131_v16 = vadd.f32 %v4124_v9, %v4053_v7  ;;  %v9166_v33 = vpop.f32.mrb[57].mxu0 }
 0x93c   : > { %v4127_v34 = vpop.f32.mrb[58].mxu0  ;;  %v4902_v33 = vsel %vm13720_vm14, 1, %v9714_v1 }
 0x93d   : > { %v4194_v20 = vadd.f32 %v4187_v14, %v4131_v16  ;;  %v4132_v36 = vadd.f32 %v4127_v34, %v4054_v21  ;;  %v9167_v42 = vpop.f32.mrb[59].mxu0  ;;  %v4752_v21 = vsel %vm13719_vm11, 1, %v9714_v1  ;;  %v4906_v34 = vrot.slane %v4902_v33, %v9897_v4 }
 0x93e   : > { %v4756_v9 = vrot.slane %v4752_v21, %v9897_v4  ;;  %v4760_v16 = vrot.slane %v4752_v21, %v9889_v3  ;;  %vm13732_vm11 = vcmask 130048   ;;  %v8325_v42 = vld [vmem:[%s13191_s12 + $0xc] sm:$0xf] }
 0x93f   : > { %v4195_v35 = vadd.f32 %v4190_v22, %v4132_v36  ;;  %vm11440_vm15 = vcmp.eq.s32.totalorder %v4906_v34, 1 }
 0x940   : > { %vm4761_vm7 = vcmp.eq.s32.totalorder %v4756_v9, 1  ;;  %vm4762_vm5 = vcmp.eq.s32.totalorder %v4760_v16, 1  ;;  %v11962_v9 = vadd.s32 8, %v9885_v2 }
 0x941   : > { %vm4763_vm3 = vmpackc.low %vm4762_vm5, %vm4761_vm7 }
 0x942   : > { %v4265_v43 = vpop.f32.mrb[60].mxu0  ;;  %v4328_v44 = vpop.f32.mrb[48].mxu1  ;;  %v4764_v36 = vsel %vm4763_vm3, 65537, %v9714_v1  ;;  %vm13733_vm7 = vmmov %vm13732_vm11 }
 0x943   : > { %v4272_v29 = vadd.f32 %v4265_v43, %v4194_v20  ;;  %v9180_v31 = vpop.f32.mrb[61].mxu0  ;;  %v9186_v49 = vpop.f32.mrb[49].mxu1  ;;  %v4910_v20 = vrot.slane %v4902_v33, %v9889_v3  ;;  %v4768_v43 = vrot.slane %v4764_v36, %v9897_v4  ;;  %v4772_v13 = vrot.slane %v4764_v36, %v11305_v54  ;;  %vm13734_vm5 = vmmov %vm13733_vm7  ;;  %v8313_v33 = vld [vmem:[%s13191_s12 + $0x4] sm:$0xf] }
 0x944   : > { %v4268_v52 = vpop.f32.mrb[62].mxu0  ;;  %v4331_v45 = vpop.f32.mrb[50].mxu1 }
 0x945   : > { %v4335_v48 = vadd.f32 %v4328_v44, %v4272_v29  ;;  %v4273_v5 = vadd.f32 %v4268_v52, %v4195_v35  ;;  %v9181_v50 = vpop.f32.mrb[63].mxu0  ;;  %v9187_v51 = vpop.f32.mrb[51].mxu1  ;;  %vm11444_vm0 = vcmp.eq.s32.totalorder %v4910_v20, 1  ;;  %v5052_v44 = vsel %vm13725_vm4, 1, %v9714_v1 }
 0x946   : > { %vm4913_vm10 = vmpackc.low %vm11444_vm0, %vm11440_vm15  ;;  %v5060_v40 = vrot.slane %v5052_v44, %v9889_v3  ;;  %v4631_v51 = vld [vmem:[%s13190_s11] sm:$0xf]  ;;  %vm11475_vm8 = vcmp.ne.s16.totalorder %v4772_v13, 0  ;;  %vm13739_vm15 = vnez %v13495_v46 }
 0x947   : > { %v4336_v18 = vadd.f32 %v4331_v45, %v4273_v5  ;;  %v5056_v45 = vrot.slane %v5052_v44, %v9897_v4  ;;  %vm13740_vm0 = vmmov %vm13734_vm5  ;;  %v8316_v44 = vld [vmem:[%s13190_s11 + $0x8] sm:$0xf] }
 0x948   : > { %vm11493_vm3 = vcmp.eq.s32.totalorder %v5060_v40, 1  ;;  %vm13741_vm4 = vmmov %vm13740_vm0 }
 0x949   : > { %vm11489_vm14 = vcmp.eq.s32.totalorder %v5056_v45, 1 }
 0x94a   : > { %v4406_v56 = vpop.f32.mrb[64].mxu0 }
 0x94b   : > { %v4413_v37 = vadd.f32 %v4406_v56, %v4335_v48  ;;  %v9194_v53 = vpop.f32.mrb[65].mxu0  ;;  %v5191_v48 = vsel %vm13727_vm13, 1, %v9714_v1  ;;  %vm13746_vm13 = vmmov %vm13740_vm0 }
 0x94c   : > { %v4409_v57 = vpop.f32.mrb[66].mxu0 }
 0x94d   : > { %v4414_v58 = vadd.f32 %v4409_v57, %v4336_v18  ;;  %v9195_v60 = vpop.f32.mrb[67].mxu0  ;;  %v5195_v57 = vrot.slane %v5191_v48, %v9897_v4 }
 0x94e   : > { %v4469_v6 = vpop.f32.mrb[52].mxu1 }
 0x94f   : > { %v4476_v61 = vadd.f32 %v4469_v6, %v4413_v37  ;;  %v9200_v62 = vpop.f32.mrb[53].mxu1  ;;  %v4914_v37 = vsel %vm4913_vm10, 65537, %v9714_v1 }
 0x950   : > { %v4472_v0 = vpop.f32.mrb[54].mxu1 }
 0x951   : > { %v4490_v8 = vadd.f32 %v11311_v26, %v4476_v61  ;;  %v4477_v38 = vadd.f32 %v4472_v0, %v4414_v58  ;;  %v9201_v15 = vpop.f32.mrb[55].mxu1  ;;  %v5199_v58 = vrot.slane %v5191_v48, %v9889_v3  ;;  %v8310_v0 = vld [vmem:[%s13190_s11 + $0x4] sm:$0xf] }
 0x952   : > { %v5331_v15 = vsel %vm13739_vm15, 1, %v9714_v1 }
 0x953   : > { %v4491_v14 = vadd.f32 %v11309_v25, %v4477_v38  ;;  %v4492_v27 = vmax.f32 %v4490_v8, 0.0  ;;  %v4918_v8 = vrot.slane %v4914_v37, %v9897_v4  ;;  %v4922_v38 = vrot.slane %v4914_v37, %v11305_v54 }
 0x954   : > { %vm11516_vm10 = vcmp.eq.s32.totalorder %v5199_v58, 1  ;;  %v13765_v37 = vmov 0 }
 0x955   : > { %v4493_v17 = vmax.f32 %v4491_v14, 0.0  ;;  %vm11533_vm15 = vcmp.ne.s16.totalorder %v4922_v38, 0 }
 0x957   : > { %v4494_v55 = vpack.c.bf16 %v4493_v17, %v4492_v27 }
 0x959   : > { %8305 = vmatmul.mubr.msk.bf16.vlgmr.msra.gmra.mrb[68].mxu0 %vm13715_vm2, %v4494_v55  ;;  %vm11468_vm2 = vcmp.ne.s16.totalorder %v4768_v43, 0  ;;  %v8322_v55 = vld [vmem:[%s13190_s11 + $0xc] sm:$0xf] }
 0x95a   : > { %4814 = vmatprep.mubr.bf16.mxu0 %v9714_v1 }
 0xa2c   : > { %v4580_v26 = vpop.f32.mrb[68].mxu0 }
 0xa2d   : > { %v4582_v22 = vpop.f32.mrb[69].mxu0 }
 0xa2e   : > { %v4584_v7 = vpop.f32.mrb[70].mxu0 }
 0xa2f   : > { %v11362_v23 = vpack.c.bf16 %v4584_v7, %v4580_v26  ;;  %v4586_v25 = vpop.f32.mrb[71].mxu0  ;;  %v5339_v7 = vrot.slane %v5331_v15, %v9889_v3 }
 0xa30   : > { %v11364_v24 = vpack.c.bf16 %v4586_v25, %v4582_v22  ;;  %v5335_v22 = vrot.slane %v5331_v15, %v9897_v4  ;;  %v8331_v15 = vld [vmem:[%s13191_s12 + $0x10] sm:$0xf] }
 0xa31   : > { %4597 = vrot.lane.b32.xlu0 %v11362_v23, %s13644_s3 }
 0xa32   : > { %4594 = vrot.lane.b32.xlu1 %v11364_v24, %s13644_s3 }
 0xa35   : > { %4743 = vrot.lane.b32.xlu0 %v11362_v23, %s13717_s5 }
 0xa36   : > { %4741 = vrot.lane.b32.xlu1 %v11364_v24, %s13717_s5 }
 0xa39   : > { %4827 = vrot.lane.b32.xlu0 %v10998_v10, %s13717_s5 }
 0xa3a   : > { %4825 = vrot.lane.b32.xlu1 %v11002_v12, %s13717_s5 }
 0xa3d   : > { %4893 = vrot.lane.b32.xlu0 %v11362_v23, %s13581_s1 }
 0xa3e   : > { %4891 = vrot.lane.b32.xlu1 %v11364_v24, %s13581_s1 }
 0xa41   : > { %4977 = vrot.lane.b32.xlu0 %v10998_v10, %s13581_s1 }
 0xa42   : > { %4975 = vrot.lane.b32.xlu1 %v11002_v12, %s13581_s1 }
 0xa45   : > { %5043 = vrot.lane.b32.xlu0 %v11362_v23, %s13511_s0 }
 0xa46   : > { %5041 = vrot.lane.b32.xlu1 %v11364_v24, %s13511_s0 }
 0xa49   : > { %5127 = vrot.lane.b32.xlu0 %v10998_v10, %s13511_s0 }
 0xa4a   : > { %5125 = vrot.lane.b32.xlu1 %v11002_v12, %s13511_s0 }
 0xa4d   : > { %5322 = vrot.lane.b32.xlu0 %v11364_v24, %s13507_s25 }
 0xa4e   : > { %5320 = vrot.lane.b32.xlu1 %v11362_v23, %s13507_s25 }
 0xa51   : > { %5406 = vrot.lane.b32.xlu0 %v11002_v12, %s13507_s25 }
 0xa52   : > { %5404 = vrot.lane.b32.xlu1 %v10998_v10, %s13507_s25 }
 0xa55   : > { %5472 = vrot.lane.b32.xlu0 %v11364_v24, %s13580_s20 }
 0xa56   : > { %5470 = vrot.lane.b32.xlu1 %v11362_v23, %s13580_s20 }
 0xa59   : > { %5556 = vrot.lane.b32.xlu0 %v11002_v12, %s13580_s20 }
 0xa5a   : > { %5554 = vrot.lane.b32.xlu1 %v10998_v10, %s13580_s20 }
 0xa5d   : > { %5622 = vrot.lane.b32.xlu0 %v11364_v24, %s13718_s16 }
 0xa5e   : > { %5620 = vrot.lane.b32.xlu1 %v11362_v23, %s13718_s16 }
 0xa61   : > { %5706 = vrot.lane.b32.xlu0 %v11002_v12, %s13718_s16 }
 0xa62   : > { %5704 = vrot.lane.b32.xlu1 %v10998_v10, %s13718_s16 }
 0xa65   : > { %5772 = vrot.lane.b32.xlu0 %v11364_v24, %s13508_s27 }
 0xa66   : > { %5770 = vrot.lane.b32.xlu1 %v11362_v23, %s13508_s27 }
 0xa69   : > { %5856 = vrot.lane.b32.xlu0 %v11002_v12, %s13508_s27 }
 0xa6a   : > { %5854 = vrot.lane.b32.xlu1 %v10998_v10, %s13508_s27 }
 0xa6e   : > { %5923 = vperm.xlu1 %9559, %v5920_v63   ;;  %v13865_v63 = vmov 0 }
 0xaa3   : > { %v4598_v35 = vpop.permute.xlu0 %4597 }
 0xaa4   : > { %v4595_v29 = vpop.permute.xlu1 %4594 }
 0xaa5   : > { %v4600_v31 = vsel %vm13711_vm1, %v4598_v35, %v4595_v29  ;;  %v4604_v49 = vsel %vm13726_vm9, %v4595_v29, %v4598_v35  ;;  %vm5063_vm1 = vmpackc.low %vm11493_vm3, %vm11489_vm14  ;;  %vm11512_vm9 = vcmp.eq.s32.totalorder %v5195_v57, 1  ;;  %vm11561_vm14 = vcmp.eq.s32.totalorder %v5339_v7, 1 }
 0xaa6   : > { %v4629_v52 = vsel %vm11313_vm12, %v4604_v49, 0  ;;  %8308 = vmatprep.subr.msk.bf16.mxu1 %vm11317_vm6, %v4600_v31  ;;  %v5064_v34 = vsel %vm5063_vm1, 65537, %v9714_v1  ;;  %vm13759_vm3 = vnez %v13499_v19  ;;  %vm13760_vm1 = vcmask 64512  }
 0xaa7   : > { %4701 = vmatpush1.bf16.msra.mxu1 %v4629_v52  ;;  %v4744_v5 = vpop.permute.xlu0 %4743  ;;  %v5481_v43 = vsel %vm13759_vm3, 1, %v9714_v1  ;;  %v5068_v29 = vrot.slane %v5064_v34, %v9897_v4  ;;  %v5072_v31 = vrot.slane %v5064_v34, %v11305_v54 }
 0xaa8   : > { %v4742_v56 = vpop.permute.xlu1 %4741 }
 0xaa9   : > { %v4746_v30 = vsel %vm13732_vm11, %v4744_v5, %v4742_v56  ;;  %v4750_v53 = vsel %vm13733_vm7, %v4742_v56, %v4744_v5  ;;  %vm13747_vm11 = vcmask 1043456   ;;  %vm11528_vm7 = vcmp.ne.s16.totalorder %v4918_v8, 0 }
 0xaaa   : > { %v4775_v60 = vsel %vm11468_vm2, %v4750_v53, 0  ;;  %8309 = vmatmul.mubr.msk.bf16.vlgmr.msra.gmra.mrb[60].mxu1 %vm13734_vm5, %v4631_v51  ;;  %8311 = vmatprep.subr.msk.bf16.mxu0 %vm11475_vm8, %v4746_v30  ;;  %vm13750_vm5 = vmmov %vm13747_vm11  ;;  %v5485_v5 = vrot.slane %v5481_v43, %v9897_v4  ;;  %v5489_v51 = vrot.slane %v5481_v43, %v9889_v3  ;;  %v12046_v53 = vadd.s32 32, %v9885_v2 }
 0xaab   : > { %4783 = vmatpush1.bf16.msra.mxu0 %v4775_v60  ;;  %v4828_v62 = vpop.permute.xlu0 %4827  ;;  %4880 = vmatprep.mubr.bf16.mxu1 %v9714_v1  ;;  %v8319_v60 = vld [vmem:[%s13191_s12 + $0x8] sm:$0xf] }
 0xaac   : > { %v4826_v14 = vpop.permute.xlu1 %4825 }
 0xaad   : > { %v4829_v27 = vsel %vm13740_vm0, %v4828_v62, %v4826_v14  ;;  %v4833_v17 = vsel %vm13741_vm4, %v4826_v14, %v4828_v62  ;;  %vm13753_vm0 = vcmask 121856  }
 0xaae   : > { %v4835_v46 = vsel %vm11468_vm2, %v4833_v17, 0  ;;  %v4836_v26 = vsel %vm11475_vm8, %v4829_v27, 0  ;;  %8312 = vmatmul.mubr.msk.bf16.vlgmr.msra.gmra.mrb[72].mxu0 %vm13746_vm13, %v8310_v0  ;;  %vm13754_vm4 = vmmov %vm13753_vm0  ;;  %v13778_v17 = vmov 0 }
 0xaaf   : > { %8314 = vmatprep.subr.msk.bf16.mxu1 %vm13747_vm11, %v4836_v26  ;;  %v4894_v25 = vpop.permute.xlu0 %4893  ;;  %v4843_v21 = vsel %vm13750_vm5, %v4835_v46, 0  ;;  %4964 = vmatprep.mubr.bf16.mxu0 %v9714_v1  ;;  %vm5202_vm13 = vmpackc.low %vm11516_vm10, %vm11512_vm9  ;;  %vm11557_vm11 = vcmp.eq.s32.totalorder %v5335_v22, 1 }
 0xab0   : > { %v4892_v16 = vpop.permute.xlu1 %4891  ;;  %4849 = vmatpush1.bf16.msra.mxu1 %v4843_v21  ;;  %v5203_v52 = vsel %vm5202_vm13, 65537, %v9714_v1  ;;  %vm13761_vm9 = vmmov %vm13753_vm0  ;;  %vm11590_vm13 = vcmp.ne.s16.totalorder %v5068_v29, 0  ;;  %v11699_v29 = vpop.f32.mrb[56].mxu1 }
 0xab1   : > { %v4896_v20 = vsel %vm13753_vm0, %v4894_v25, %v4892_v16  ;;  %v4900_v36 = vsel %vm13754_vm4, %v4892_v16, %v4894_v25  ;;  %vm13762_vm10 = vmmov %vm13753_vm0  ;;  %vm13763_vm0 = vcmask 130048   ;;  %vm13764_vm4 = vcmask 1043456  }
 0xab2   : > { %v4925_v11 = vsel %vm11528_vm7, %v4900_v36, 0  ;;  %8317 = vmatprep.subr.msk.bf16.mxu0 %vm11533_vm15, %v4896_v20  ;;  %vm5342_vm5 = vmpackc.low %vm11561_vm14, %vm11557_vm11  ;;  %v13766_v37 = vsel %vm11590_vm13, 4294967295, %v13765_v37  ;;  %v5211_v57 = vrot.slane %v5203_v52, %v11305_v54  ;;  %v5207_v6 = vrot.slane %v5203_v52, %v9897_v4 }
 0xab3   : > { %8315 = vmatmul.mubr.msk.bf16.vlgmr.msra.gmra.mrb[64].mxu1 %vm13760_vm1, %v8313_v33  ;;  %4933 = vmatpush1.bf16.msra.mxu0 %v4925_v11  ;;  %v4978_v13 = vpop.permute.xlu0 %4977  ;;  %vm13767_vm3 = vmmov %vm13764_vm4  ;;  %vm11595_vm1 = vcmp.ne.s16.totalorder %v5072_v31, 0  ;;  %v5343_v61 = vsel %vm5342_vm5, 65537, %v9714_v1  ;;  %vm13776_vm11 = vnez %v13504_v39  ;;  %vm13777_vm14 = vcmask 64512  }
 0xab4   : > { %v4976_v49 = vpop.permute.xlu1 %4975  ;;  %5030 = vmatprep.mubr.bf16.mxu1 %v9714_v1  ;;  %v5631_v14 = vsel %vm13776_vm11, 1, %v9714_v1  ;;  %vm11629_vm5 = vcmp.ne.s16.totalorder %v5211_v57, 0  ;;  %v5351_v28 = vrot.slane %v5343_v61, %v11305_v54  ;;  %v13780_v39 = vmov 0 }
 0xab5   : > { %v4979_v19 = vsel %vm13761_vm9, %v4978_v13, %v4976_v49  ;;  %v4983_v45 = vsel %vm13762_vm10, %v4976_v49, %v4978_v13  ;;  %vm13770_vm9 = vcmask 7168   ;;  %v13779_v17 = vsel %vm11629_vm5, 4294967295, %v13778_v17 }
 0xab6   : > { %v4985_v40 = vsel %vm11528_vm7, %v4983_v45, 0  ;;  %v4986_v48 = vsel %vm11533_vm15, %v4979_v19, 0  ;;  %8318 = vmatmul.mubr.msk.bf16.vlgmr.msra.gmra.mrb[76].mxu0 %vm13763_vm0, %v8316_v44  ;;  %vm13771_vm10 = vmmov %vm13770_vm9  ;;  %vm11617_vm0 = vcmp.eq.s32.totalorder %v5485_v5, 1  ;;  %v5635_v21 = vrot.slane %v5631_v14, %v9897_v4  ;;  %v8328_v19 = vld [vmem:[%s13190_s11 + $0x10] sm:$0xf] }
 0xab7   : > { %8320 = vmatprep.subr.msk.bf16.mxu1 %vm13764_vm4, %v4986_v48  ;;  %v5044_v56 = vpop.permute.xlu0 %5043  ;;  %v4993_v30 = vsel %vm13767_vm3, %v4985_v40, 0  ;;  %5114 = vmatprep.mubr.bf16.mxu0 %v9714_v1  ;;  %vm11621_vm4 = vcmp.eq.s32.totalorder %v5489_v51, 1  ;;  %vm11640_vm3 = vcmp.ne.s16.totalorder %v5207_v6, 0  ;;  %v5639_v16 = vrot.slane %v5631_v14, %v9889_v3  ;;  %v11712_v40 = vpop.f32.mrb[57].mxu1 }
 0xab8   : > { %v5042_v58 = vpop.permute.xlu1 %5041  ;;  %4999 = vmatpush1.bf16.msra.mxu1 %v4993_v30  ;;  %v13781_v39 = vsel %vm11640_vm3, 4294967295, %v13780_v39  ;;  %v5214_v7 = vsel %vm11640_vm3, %v11362_v23, 0  ;;  %v5347_v33 = vrot.slane %v5343_v61, %v9897_v4  ;;  %vm11664_vm11 = vcmp.ne.s16.totalorder %v5351_v28, 0  ;;  %v4694_v5 = vpop.f32.mrb[58].mxu1 }
 0xab9   : > { %v5046_v62 = vsel %vm13770_vm9, %v5044_v56, %v5042_v58  ;;  %v5050_v0 = vsel %vm13771_vm10, %v5042_v58, %v5044_v56  ;;  %vm13782_vm10 = vmmov %vm13770_vm9  ;;  %v13786_v20 = vmov 0  ;;  %v5265_v11 = vsel %vm11629_vm5, %v11002_v12, 0  ;;  %v4695_v30 = vpop.f32.mrb[59].mxu1 }
 0xaba   : > { %v5075_v8 = vsel %vm11590_vm13, %v5050_v0, 0  ;;  %8323 = vmatprep.subr.msk.bf16.mxu0 %vm11595_vm1, %v5046_v62  ;;  %v13787_v20 = vsel %vm11664_vm11, 4294967295, %v13786_v20  ;;  %v5264_v35 = vsel %vm11640_vm3, %v10998_v10, 0  ;;  %vm11691_vm3 = vcmp.eq.s32.totalorder %v5635_v21, 1  ;;  %v9698_v0 = vld [vmem:[%s13849_s19 + $0x50] sm:$0xff]  }
 0xabb   : > { %8321 = vmatmul.mubr.msk.bf16.vlgmr.msra.gmra.mrb[68].mxu1 %vm13777_vm14, %v8319_v60  ;;  %5083 = vmatpush1.bf16.msra.mxu0 %v5075_v8  ;;  %v5128_v27 = vpop.permute.xlu0 %5127  ;;  %vm13783_vm14 = vcmask 130048   ;;  %v13795_v31 = vmov 0  ;;  %v13821_v10 = vmov 0 }
 0xabc   : > { %v5126_v46 = vpop.permute.xlu1 %5125  ;;  %8329 = vmatprep.subr.msk.bf16.mxu0 %vm11629_vm5, %v11364_v24  ;;  %5180 = vmatprep.mubr.bf16.mxu1 %v9714_v1  ;;  %vm13790_vm5 = vnez %v13506_v47 }
 0xabd   : > { %v5129_v26 = vsel %vm13770_vm9, %v5128_v27, %v5126_v46  ;;  %v5133_v22 = vsel %vm13782_vm10, %v5126_v46, %v5128_v27  ;;  %vm13784_vm9 = vcmask 1043456   ;;  %v5781_v12 = vsel %vm13790_vm5, 1, %v9714_v1 }
 0xabe   : > { %v5135_v24 = vsel %vm11590_vm13, %v5133_v22, 0  ;;  %v5136_v25 = vsel %vm11595_vm1, %v5129_v26, 0  ;;  %8324 = vmatmul.mubr.msk.bf16.vlgmr.msra.gmra.mrb[80].mxu0 %vm13783_vm14, %v8322_v55  ;;  %vm13785_vm10 = vmmov %vm13784_vm9  ;;  %vm11695_vm13 = vcmp.eq.s32.totalorder %v5639_v16, 1  ;;  %vm13798_vm5 = vcmask 64512  }
 0xabf   : > { %8326 = vmatprep.subr.msk.bf16.mxu1 %vm13784_vm9, %v5136_v25  ;;  %5222 = vmatpush1.bf16.msra.mxu0 %v5214_v7  ;;  %v5323_v23 = vpop.permute.xlu0 %5322  ;;  %v5143_v34 = vsel %vm13785_vm10, %v5135_v24, 0  ;;  %vm13788_vm14 = vmpackc.low %vm11621_vm4, %vm11617_vm0  ;;  %vm13789_vm9 = vcmask 1039360   ;;  %vm11701_vm0 = vcmp.ne.s16.totalorder %v5347_v33, 0  ;;  %v5785_v60 = vrot.slane %v5781_v12, %v9897_v4  ;;  %v8334_v7 = vld [vmem:[%s13190_s11 + $0x14] sm:$0xf] }
 0xac0   : > { %v5321_v36 = vpop.permute.xlu1 %5320  ;;  %5149 = vmatpush1.bf16.msra.mxu1 %v5143_v34  ;;  %5253 = vmatprep.mubr.bf16.mxu0 %v9714_v1  ;;  %v5493_v43 = vsel %vm13788_vm14, 65537, %v9714_v1  ;;  %v13796_v31 = vsel %vm11701_vm0, 4294967295, %v13795_v31  ;;  %vm13797_vm4 = vmmov %vm13789_vm9  ;;  %v5789_v6 = vrot.slane %v5781_v12, %v9889_v3 }
 0xac1   : > { %v5329_v13 = vsel %vm13789_vm9, %v5323_v23, %v5321_v36  ;;  %8332 = vmatprep.subr.msk.bf16.mxu1 %vm13785_vm10, %v5265_v11  ;;  %v5325_v47 = vsel %vm13797_vm4, %v5321_v36, %v5323_v23  ;;  %vm13799_vm14 = vmmov %vm13785_vm10  ;;  %v5501_v45 = vrot.slane %v5493_v43, %v11305_v54  ;;  %v5497_v62 = vrot.slane %v5493_v43, %v9897_v4  ;;  %v8337_v43 = vld [vmem:[%s13191_s12 + $0x14] sm:$0xf] }
 0xac2   : > { %8335 = vmatprep.subr.msk.bf16.mxu0 %vm11664_vm11, %v5329_v13  ;;  %v5272_v52 = vsel %vm13799_vm14, %v5264_v35, 0  ;;  %vm13800_vm9 = vmmov %vm13797_vm4  ;;  %v5354_v57 = vsel %vm11701_vm0, %v5325_v47, 0  ;;  %v13818_v11 = vmov 0 }
 0xac3   : > { %8327 = vmatmul.mubr.msk.bf16.vlgmr.msra.gmra.mrb[72].mxu1 %vm13798_vm5, %v8325_v42  ;;  %v5407_v49 = vpop.permute.xlu0 %5406  ;;  %vm13801_vm10 = vmmov %vm13797_vm4  ;;  %vm13802_vm5 = vcmask 130048  }
 0xac4   : > { %v5405_v48 = vpop.permute.xlu1 %5404  ;;  %5278 = vmatpush1.bf16.msra.mxu1 %v5272_v52  ;;  %5309 = vmatprep.mubr.bf16.mxu1 %v9714_v1  ;;  %vm5642_vm4 = vmpackc.low %vm11695_vm13, %vm11691_vm3  ;;  %vm13813_vm13 = vcmask 64512   ;;  %vm13814_vm3 = vcmask 1043456   ;;  %v8340_v52 = vld [vmem:[%s13190_s11 + $0x18] sm:$0xf] }
 0xac5   : > { %v5408_v51 = vsel %vm13800_vm9, %v5405_v48, %v5407_v49  ;;  %v5412_v56 = vsel %vm13801_vm10, %v5407_v49, %v5405_v48  ;;  %vm11730_vm9 = vcmp.ne.s16.totalorder %v5501_v45, 0  ;;  %v5643_v3 = vsel %vm5642_vm4, 65537, %v9714_v1 }
 0xac6   : > { %v5415_v58 = vsel %vm11664_vm11, %v5412_v56, 0  ;;  %8330 = vmatmul.mubr.msk.bf16.vlgmr.msra.gmra.mrb[84].mxu0 %vm13802_vm5, %v8328_v19  ;;  %v5414_v8 = vsel %vm11701_vm0, %v5408_v51, 0  ;;  %vm13805_vm10 = vcmask 924672   ;;  %vm11749_vm5 = vcmp.eq.s32.totalorder %v5785_v60, 1 }
 0xac7   : > { %5362 = vmatpush1.bf16.msra.mxu0 %v5354_v57  ;;  %v5473_v61 = vpop.permute.xlu0 %5472  ;;  %8338 = vmatprep.subr.msk.bf16.mxu1 %vm13799_vm14, %v5415_v58  ;;  %vm11753_vm14 = vcmp.eq.s32.totalorder %v5789_v6, 1  ;;  %vm11757_vm0 = vcmp.ne.s16.totalorder %v5497_v62, 0  ;;  %vm13812_vm11 = vmmov %vm13805_vm10  ;;  %v5422_v22 = vsel %vm13814_vm3, %v5414_v8, 0  ;;  %v5651_v24 = vrot.slane %v5643_v3, %v11305_v54  ;;  %v8343_v6 = vld [vmem:[%s13191_s12 + $0x18] sm:$0xf]  ;;  %v9702_v57 = vld [vmem:[%s13849_s19 + $0x70] sm:$0xff]  }
 0xac8   : > { %v5471_v38 = vpop.permute.xlu1 %5470  ;;  %5393 = vmatprep.mubr.bf16.mxu0 %v9714_v1  ;;  %vm13815_vm4 = vmmov %vm13805_vm10  ;;  %v5647_v36 = vrot.slane %v5643_v3, %v9897_v4  ;;  %v13831_v62 = vmov 0  ;;  %v8346_v3 = vld [vmem:[%s13190_s11 + $0x1c] sm:$0xf] }
 0xac9   : > { %v5479_v14 = vsel %vm13805_vm10, %v5473_v61, %v5471_v38  ;;  %v5475_v46 = vsel %vm13812_vm11, %v5471_v38, %v5473_v61  ;;  %vm13816_vm10 = vmmov %vm13815_vm4 }
 0xaca   : > { %8341 = vmatprep.subr.msk.bf16.mxu0 %vm11730_vm9, %v5479_v14  ;;  %vm5792_vm11 = vmpackc.low %vm11753_vm14, %vm11749_vm5  ;;  %v5504_v23 = vsel %vm11757_vm0, %v5475_v46, 0  ;;  %vm13820_vm5 = vcmask 916480   ;;  %vm11796_vm14 = vcmp.ne.s16.totalorder %v5647_v36, 0 }
 0xacb   : > { %v5557_v26 = vpop.permute.xlu0 %5556  ;;  %8333 = vmatmul.mubr.msk.bf16.vlgmr.msra.gmra.mrb[76].mxu1 %vm13813_vm13, %v8331_v15  ;;  %vm13817_vm13 = vcmask 130048   ;;  %v5793_v13 = vsel %vm5792_vm11, 65537, %v9714_v1  ;;  %v13822_v10 = vsel %vm11796_vm14, 4294967295, %v13821_v10  ;;  %vm13825_vm11 = vmmov %vm13820_vm5 }
 0xacc   : > { %5428 = vmatpush1.bf16.msra.mxu1 %v5422_v22  ;;  %v5555_v25 = vpop.permute.xlu1 %5554  ;;  %5459 = vmatprep.mubr.bf16.mxu1 %v9714_v1  ;;  %v5801_v19 = vrot.slane %v5793_v13, %v11305_v54  ;;  %v5797_v54 = vrot.slane %v5793_v13, %v9897_v4 }
 0xacd   : > { %v5558_v21 = vsel %vm13815_vm4, %v5555_v25, %v5557_v26  ;;  %v5562_v16 = vsel %vm13816_vm10, %v5557_v26, %v5555_v25  ;;  %vm11782_vm4 = vcmp.ne.s16.totalorder %v5651_v24, 0  ;;  %vm13823_vm10 = vmmov %vm13820_vm5  ;;  %v8352_v25 = vld [vmem:[%s13190_s11 + $0x20] sm:$0xf] }
 0xace   : > { %v5565_v33 = vsel %vm11730_vm9, %v5562_v16, 0  ;;  %8336 = vmatmul.mubr.msk.bf16.vlgmr.msra.gmra.mrb[88].mxu0 %vm13817_vm13, %v8334_v7  ;;  %v13819_v11 = vsel %vm11782_vm4, 4294967295, %v13818_v11  ;;  %v5564_v42 = vsel %vm11757_vm0, %v5558_v21, 0  ;;  %vm13824_vm13 = vcmask 64512   ;;  %v8349_v7 = vld [vmem:[%s13191_s12 + $0x1c] sm:$0xf] }
 0xacf   : > { %5512 = vmatpush1.bf16.msra.mxu0 %v5504_v23  ;;  %v5623_v34 = vpop.permute.xlu0 %5622  ;;  %8344 = vmatprep.subr.msk.bf16.mxu1 %vm13814_vm3, %v5565_v33  ;;  %v5572_v49 = vsel %vm13814_vm3, %v5564_v42, 0  ;;  %v8355_v21 = vld [vmem:[%s13191_s12 + $0x20] sm:$0xf] }
 0xad0   : > { %v5621_v35 = vpop.permute.xlu1 %5620  ;;  %5543 = vmatprep.mubr.bf16.mxu0 %v9714_v1 }
 0xad1   : > { %v5629_v12 = vsel %vm13820_vm5, %v5623_v34, %v5621_v35  ;;  %v5625_v44 = vsel %vm13823_vm10, %v5621_v35, %v5623_v34  ;;  %vm13826_vm10 = vcmask 130048  }
 0xad2   : > { %8347 = vmatprep.subr.msk.bf16.mxu0 %vm11782_vm4, %v5629_v12  ;;  %v5654_v51 = vsel %vm11796_vm14, %v5625_v44, 0 }
 0xad3   : > { %v5707_v47 = vpop.permute.xlu0 %5706  ;;  %8339 = vmatmul.mubr.msk.bf16.vlgmr.msra.gmra.mrb[80].mxu1 %vm13824_vm13, %v8337_v43  ;;  %vm13827_vm13 = vmmov %vm13814_vm3  ;;  %vm11817_vm3 = vcmp.ne.s16.totalorder %v5801_v19, 0 }
 0xad4   : > { %5578 = vmatpush1.bf16.msra.mxu1 %v5572_v49  ;;  %v5705_v45 = vpop.permute.xlu1 %5704  ;;  %5609 = vmatprep.mubr.bf16.mxu1 %v9714_v1 }
 0xad5   : > { %v5708_v48 = vsel %vm13825_vm11, %v5705_v45, %v5707_v47  ;;  %v5712_v5 = vsel %vm13820_vm5, %v5707_v47, %v5705_v45  ;;  %vm13830_vm11 = vcmask 908288   ;;  %vm11830_vm5 = vcmp.ne.s16.totalorder %v5797_v54, 0 }
 0xad6   : > { %v5715_v56 = vsel %vm11782_vm4, %v5712_v5, 0  ;;  %8342 = vmatmul.mubr.msk.bf16.vlgmr.msra.gmra.mrb[92].mxu0 %vm13826_vm10, %v8340_v52  ;;  %v5714_v58 = vsel %vm11796_vm14, %v5708_v48, 0  ;;  %v13832_v62 = vsel %vm11830_vm5, 4294967295, %v13831_v62  ;;  %vm13833_vm10 = vmmov %vm13830_vm11  ;;  %vm13835_vm14 = vcmask 1043456  }
 0xad7   : > { %5662 = vmatpush1.bf16.msra.mxu0 %v5654_v51  ;;  %v5773_v30 = vpop.permute.xlu0 %5772  ;;  %8350 = vmatprep.subr.msk.bf16.mxu1 %vm13827_vm13, %v5715_v56  ;;  %vm13834_vm13 = vcmask 64512   ;;  %v5722_v15 = vsel %vm13835_vm14, %v5714_v58, 0  ;;  %vm13837_vm4 = vmmov %vm13833_vm10 }
 0xad8   : > { %v5771_v60 = vpop.permute.xlu1 %5770  ;;  %5693 = vmatprep.mubr.bf16.mxu0 %v9714_v1 }
 0xad9   : > { %v5779_v61 = vsel %vm13830_vm11, %v5773_v30, %v5771_v60  ;;  %v5775_v8 = vsel %vm13833_vm10, %v5771_v60, %v5773_v30  ;;  %vm13836_vm11 = vmmov %vm13833_vm10  ;;  %vm13838_vm10 = vcmask 130048  }
 0xada   : > { %8353 = vmatprep.subr.msk.bf16.mxu0 %vm11817_vm3, %v5779_v61  ;;  %v5804_v46 = vsel %vm11830_vm5, %v5775_v8, 0 }
 0xadb   : > { %v5857_v38 = vpop.permute.xlu0 %5856  ;;  %8345 = vmatmul.mubr.msk.bf16.vlgmr.msra.gmra.mrb[84].mxu1 %vm13834_vm13, %v8343_v6 }
 0xadc   : > { %5728 = vmatpush1.bf16.msra.mxu1 %v5722_v15  ;;  %v5855_v14 = vpop.permute.xlu1 %5854  ;;  %5759 = vmatprep.mubr.bf16.mxu1 %v9714_v1 }
 0xadd   : > { %v5858_v27 = vsel %vm13836_vm11, %v5855_v14, %v5857_v38  ;;  %v5862_v55 = vsel %vm13837_vm4, %v5857_v38, %v5855_v14  ;;  %vm13839_vm4 = vmmov %vm13834_vm13 }
 0xade   : > { %v5865_v26 = vsel %vm11817_vm3, %v5862_v55, 0  ;;  %8348 = vmatmul.mubr.msk.bf16.vlgmr.msra.gmra.mrb[96].mxu0 %vm13838_vm10, %v8346_v3  ;;  %v5864_v22 = vsel %vm11830_vm5, %v5858_v27, 0  ;;  %vm13840_vm13 = vmmov %vm13835_vm14 }
 0xadf   : > { %5812 = vmatpush1.bf16.msra.mxu0 %v5804_v46  ;;  %8356 = vmatprep.subr.msk.bf16.mxu1 %vm13835_vm14, %v5865_v26  ;;  %v5872_v24 = vsel %vm13840_vm13, %v5864_v22, 0  ;;  %vm13841_vm11 = vmmov %vm13838_vm10 }
 0xae0   : > { %5843 = vmatprep.mubr.bf16.mxu0 %v9714_v1  ;;  %vm13842_vm10 = vmmov %vm13839_vm4 }
 0xae1   : > { %vm13846_vm13 = vmmov %vm13841_vm11 }
 0xae3   : > { %8351 = vmatmul.mubr.msk.bf16.vlgmr.msra.gmra.mrb[88].mxu1 %vm13839_vm4, %v8349_v7 }
 0xae4   : > { %5878 = vmatpush1.bf16.msra.mxu1 %v5872_v24  ;;  %5909 = vmatprep.mubr.bf16.mxu1 %v9714_v1 }
 0xae6   : > { %8354 = vmatmul.mubr.msk.bf16.vlgmr.msra.gmra.mrb[100].mxu0 %vm13841_vm11, %v8352_v25 }
 0xae7   : > { %6021 = vmatprep.mubr.bf16.mxu0 %v9714_v1 }
 0xaeb   : > { %8357 = vmatmul.mubr.msk.bf16.vlgmr.msra.gmra.mrb[92].mxu1 %vm13842_vm10, %v8355_v21  ;;  %vm13847_vm10 = vcmask 1043456  }
 0xaec   : > { %vm13848_vm5 = vmmov %vm13847_vm10 }
 0xb7d   : > { %v4734_v16 = vpop.f32.mrb[60].mxu1 }
 0xb7e   : > { %v4735_v23 = vadd.f32 %v4734_v16, %v11699_v29  ;;  %v4736_v33 = vpop.f32.mrb[61].mxu1 }
 0xb7f   : > { %v4737_v34 = vadd.f32 %v4736_v33, %v11712_v40  ;;  %v4738_v36 = vpop.f32.mrb[62].mxu1 }
 0xb80   : > { %v4739_v42 = vpop.f32.mrb[63].mxu1 }
 0xb81   : > { %v4816_v35 = vpop.f32.mrb[72].mxu0 }
 0xb82   : > { %v4823_v43 = vadd.f32 %v4816_v35, %v4735_v23  ;;  %v4818_v13 = vpop.f32.mrb[73].mxu0 }
 0xb83   : > { %v4824_v12 = vadd.f32 %v4818_v13, %v4737_v34  ;;  %v4820_v44 = vpop.f32.mrb[74].mxu0 }
 0xb84   : > { %v4821_v47 = vpop.f32.mrb[75].mxu0 }
 0xb86   : > { %v4882_v49 = vpop.f32.mrb[64].mxu1 }
 0xb87   : > { %v4889_v52 = vadd.f32 %v4882_v49, %v4823_v43  ;;  %v4884_v19 = vpop.f32.mrb[65].mxu1 }
 0xb88   : > { %v4890_v45 = vadd.f32 %v4884_v19, %v4824_v12  ;;  %v4886_v48 = vpop.f32.mrb[66].mxu1 }
 0xb89   : > { %v4887_v5 = vpop.f32.mrb[67].mxu1  ;;  %v4966_v51 = vpop.f32.mrb[76].mxu0 }
 0xb8a   : > { %v4973_v56 = vadd.f32 %v4966_v51, %v4889_v52  ;;  %v4968_v29 = vpop.f32.mrb[77].mxu0 }
 0xb8b   : > { %v4974_v30 = vadd.f32 %v4968_v29, %v4890_v45  ;;  %v4970_v54 = vpop.f32.mrb[78].mxu0 }
 0xb8c   : > { %v4971_v40 = vpop.f32.mrb[79].mxu0 }
 0xb8e   : > { %v5032_v58 = vpop.f32.mrb[68].mxu1 }
 0xb8f   : > { %v5039_v60 = vadd.f32 %v5032_v58, %v4973_v56  ;;  %v5034_v6 = vpop.f32.mrb[69].mxu1 }
 0xb90   : > { %v5040_v61 = vadd.f32 %v5034_v6, %v4974_v30  ;;  %v5036_v8 = vpop.f32.mrb[70].mxu1 }
 0xb91   : > { %v5037_v38 = vpop.f32.mrb[71].mxu1  ;;  %v5116_v15 = vpop.f32.mrb[80].mxu0 }
 0xb92   : > { %v5123_v3 = vadd.f32 %v5116_v15, %v5039_v60  ;;  %v5118_v14 = vpop.f32.mrb[81].mxu0 }
 0xb93   : > { %v5124_v27 = vadd.f32 %v5118_v14, %v5040_v61  ;;  %v5120_v55 = vpop.f32.mrb[82].mxu0 }
 0xb94   : > { %v5121_v46 = vpop.f32.mrb[83].mxu0 }
 0xb96   : > { %v5182_v26 = vpop.f32.mrb[72].mxu1 }
 0xb97   : > { %v5189_v22 = vadd.f32 %v5182_v26, %v5123_v3  ;;  %v5184_v7 = vpop.f32.mrb[73].mxu1 }
 0xb98   : > { %v5190_v24 = vadd.f32 %v5184_v7, %v5124_v27  ;;  %v5186_v25 = vpop.f32.mrb[74].mxu1 }
 0xb99   : > { %v5187_v21 = vpop.f32.mrb[75].mxu1  ;;  %v5255_v16 = vpop.f32.mrb[84].mxu0 }
 0xb9a   : > { %v5262_v23 = vadd.f32 %v5255_v16, %v5189_v22  ;;  %v5257_v33 = vpop.f32.mrb[85].mxu0 }
 0xb9b   : > { %v5263_v34 = vadd.f32 %v5257_v33, %v5190_v24  ;;  %v5259_v36 = vpop.f32.mrb[86].mxu0 }
 0xb9c   : > { %v5260_v42 = vpop.f32.mrb[87].mxu0 }
 0xb9e   : > { %v5311_v35 = vpop.f32.mrb[76].mxu1 }
 0xb9f   : > { %v5318_v43 = vadd.f32 %v5311_v35, %v5262_v23  ;;  %v5313_v13 = vpop.f32.mrb[77].mxu1 }
 0xba0   : > { %v5319_v12 = vadd.f32 %v5313_v13, %v5263_v34  ;;  %v5315_v44 = vpop.f32.mrb[78].mxu1 }
 0xba1   : > { %v5316_v47 = vpop.f32.mrb[79].mxu1  ;;  %v5395_v49 = vpop.f32.mrb[88].mxu0 }
 0xba2   : > { %v5402_v52 = vadd.f32 %v5395_v49, %v5318_v43  ;;  %v5397_v19 = vpop.f32.mrb[89].mxu0 }
 0xba3   : > { %v5403_v45 = vadd.f32 %v5397_v19, %v5319_v12  ;;  %v5399_v48 = vpop.f32.mrb[90].mxu0 }
 0xba4   : > { %v5400_v5 = vpop.f32.mrb[91].mxu0 }
 0xba6   : > { %v5461_v51 = vpop.f32.mrb[80].mxu1 }
 0xba7   : > { %v5468_v56 = vadd.f32 %v5461_v51, %v5402_v52  ;;  %v5463_v29 = vpop.f32.mrb[81].mxu1 }
 0xba8   : > { %v5469_v30 = vadd.f32 %v5463_v29, %v5403_v45  ;;  %v5465_v54 = vpop.f32.mrb[82].mxu1  ;;  %v5924_v45 = vpop.permute.xlu1 %5923 }
 0xba9   : > { %v5466_v40 = vpop.f32.mrb[83].mxu1  ;;  %v5545_v58 = vpop.f32.mrb[92].mxu0 }
 0xbaa   : > { %v5552_v60 = vadd.f32 %v5545_v58, %v5468_v56  ;;  %v5547_v6 = vpop.f32.mrb[93].mxu0 }
 0xbab   : > { %v5553_v61 = vadd.f32 %v5547_v6, %v5469_v30  ;;  %v5549_v8 = vpop.f32.mrb[94].mxu0 }
 0xbac   : > { %v5550_v38 = vpop.f32.mrb[95].mxu0 }
 0xbae   : > { %v5611_v15 = vpop.f32.mrb[84].mxu1 }
 0xbaf   : > { %v5618_v3 = vadd.f32 %v5611_v15, %v5552_v60  ;;  %v5613_v14 = vpop.f32.mrb[85].mxu1 }
 0xbb0   : > { %v5619_v27 = vadd.f32 %v5613_v14, %v5553_v61  ;;  %v5615_v55 = vpop.f32.mrb[86].mxu1 }
 0xbb1   : > { %v5616_v46 = vpop.f32.mrb[87].mxu1  ;;  %v5695_v26 = vpop.f32.mrb[96].mxu0 }
 0xbb2   : > { %v5702_v22 = vadd.f32 %v5695_v26, %v5618_v3  ;;  %v5697_v7 = vpop.f32.mrb[97].mxu0 }
 0xbb3   : > { %v5703_v24 = vadd.f32 %v5697_v7, %v5619_v27  ;;  %v5699_v25 = vpop.f32.mrb[98].mxu0 }
 0xbb4   : > { %v5700_v21 = vpop.f32.mrb[99].mxu0 }
 0xbb6   : > { %v5761_v16 = vpop.f32.mrb[88].mxu1 }
 0xbb7   : > { %v5768_v23 = vadd.f32 %v5761_v16, %v5702_v22  ;;  %v5763_v33 = vpop.f32.mrb[89].mxu1 }
 0xbb8   : > { %v5769_v34 = vadd.f32 %v5763_v33, %v5703_v24  ;;  %v5765_v36 = vpop.f32.mrb[90].mxu1 }
 0xbb9   : > { %v5766_v42 = vpop.f32.mrb[91].mxu1  ;;  %v5845_v35 = vpop.f32.mrb[100].mxu0 }
 0xbba   : > { %v5852_v43 = vadd.f32 %v5845_v35, %v5768_v23  ;;  %v5847_v13 = vpop.f32.mrb[101].mxu0 }
 0xbbb   : > { %v5853_v12 = vadd.f32 %v5847_v13, %v5769_v34  ;;  %v5849_v44 = vpop.f32.mrb[102].mxu0  ;;  %v9688_v34 = vld [vmem:[%s13849_s19 + $0x10] sm:$0xff]  }
 0xbbc   : > { %v5850_v47 = vpop.f32.mrb[103].mxu0 }
 0xbbe   : > { %v5911_v49 = vpop.f32.mrb[92].mxu1 }
 0xbbf   : > { %v5918_v52 = vadd.f32 %v5911_v49, %v5852_v43  ;;  %v5913_v19 = vpop.f32.mrb[93].mxu1 }
 0xbc0   : > { %v5919_v48 = vadd.f32 %v5913_v19, %v5853_v12  ;;  %v5915_v5 = vpop.f32.mrb[94].mxu1 }
 0xbc1   : > { %v5926_v51 = vadd.f32 %v5924_v45, %v5918_v52  ;;  %v5916_v56 = vpop.f32.mrb[95].mxu1  ;;  %v11965_v5 = vadd.s32 144, %v9885_v2 }
 0xbc2   : > { %v5927_v29 = vadd.f32 %v5924_v45, %v5919_v48  ;;  %v11955_v45 = vadd.s32 128, %v9885_v2  ;;  %v11958_v48 = vadd.s32 136, %v9885_v2 }
 0xbc3   : > { %v5928_v30 = vmax.f32 %v5926_v51, 0.0  ;;  %v11968_v51 = vadd.s32 152, %v9885_v2 }
 0xbc4   : > { %v5929_v54 = vmax.f32 %v5927_v29, 0.0 }
 0xbc5   : > { %v11869_v40 = vpack.c.bf16 %v5928_v30, %v5928_v30  ;;  %v13858_v30 = vmov 0 }
 0xbc6   : > { %v11871_v58 = vpack.c.bf16 %v5929_v54, %v5929_v54  ;;  %v9690_v54 = vld [vmem:[%s13849_s19] sm:$0xff]  }
 0xbc7   : > { %5952 = vrot.lane.b32.xlu1 %v11869_v40, %s13717_s5 }
 0xbc8   : > { %5950 = vrot.lane.b32.xlu0 %v11871_v58, %s13717_s5 }
 0xbcb   : > { %5936 = vrot.lane.b32.xlu1 %v11869_v40, %s13644_s3 }
 0xbcc   : > { %5933 = vrot.lane.b32.xlu0 %v11871_v58, %s13644_s3 }
 0xbcf   : > { %6119 = vrot.lane.b32.xlu1 %v11869_v40, %s13581_s1 }
 0xbd0   : > { %6117 = vrot.lane.b32.xlu0 %v11871_v58, %s13581_s1  ;;  %s13843_s1 = sld [smem:[#allocation39_spill]] }
 0xbd3   : > { %6219 = vrot.lane.b32.xlu1 %v11869_v40, %s13511_s0 }
 0xbd4   : > { %6217 = vrot.lane.b32.xlu0 %v11871_v58, %s13511_s0 }
 0xbd6   : > { %v6808_v60 = vld [vmem:[%s13843_s1 + $0x8] sm:$0xff]  ;;  %v6807_v6 = vld [vmem:[%s13843_s1] sm:$0xff]  ;;  %v6810_v61 = vld [vmem:[%s13843_s1 + $0x18] sm:$0xff] }
 0xbd7   : > { %6409 = vrot.lane.b32.xlu1 %v11871_v58, %s13507_s25  ;;  %v6809_v8 = vld [vmem:[%s13843_s1 + $0x10] sm:$0xff] }
 0xbd8   : > { %6407 = vrot.lane.b32.xlu0 %v11869_v40, %s13507_s25 }
 0xbdb   : > { %6509 = vrot.lane.b32.xlu1 %v11871_v58, %s13580_s20 }
 0xbdc   : > { %6507 = vrot.lane.b32.xlu0 %v11869_v40, %s13580_s20 }
 0xbdf   : > { %6609 = vrot.lane.b32.xlu1 %v11871_v58, %s13718_s16 }
 0xbe0   : > { %6607 = vrot.lane.b32.xlu0 %v11869_v40, %s13718_s16 }
 0xbe3   : > { %6709 = vrot.lane.b32.xlu1 %v11871_v58, %s13508_s27 }
 0xbe4   : > { %6707 = vrot.lane.b32.xlu0 %v11869_v40, %s13508_s27  ;;  %s13844_s27 = sshll.u32 %s14094_s30, 1 }
 0xbe5   : > { %s715_s26 = scalar_lea.vmem %s13845_s28, %s13844_s27 }
 0xbe6   : > { %v6839_v38 = vld [vmem:[%s715_s26] sm:$0x3] }
 0xbe7   : > { %6818 = vperm.xlu1 %9559, %v6808_v60   ;;  %v6840_v15 = vadd.f32 1.0, %v6839_v38  ;;  %v13381_v60 = vmov 1.0|1.0  }
 0xbe8   : > { %6813 = vperm.xlu0 %9548, %v6807_v6  }
 0xbe9   : > { %v6841_v3 = vmul.f32 16.0, %v6840_v15 }
 0xbeb   : > { %6828 = vperm.xlu1 %9559, %v6810_v61   ;;  %v6842_v14 = vmul.f32 0.5, %v6841_v3  ;;  %v12033_v3 = vadd.s32 16, %v9885_v2 }
 0xbec   : > { %6823 = vperm.xlu0 %9548, %v6809_v8   ;;  %v13862_v8 = vmov 0 }
 0xbed   : > { %v9499_v27 = vtrunc.f32 %v6842_v14  ;;  %v12037_v14 = vadd.s32 24, %v9885_v2 }
 0xbef   : > { %v9500_v55 = vcvt.f32.s32 %v9499_v27  ;;  %v12040_v27 = vadd.s32 160, %v9885_v2 }
 0xbf1   : > { %vm6844_vm14 = vcmp.gt.s32.totalorder %v9500_v55, 0 }
 0xbf2   : > { %v6845_v46 = vsel %vm6844_vm14, %v9500_v55, 0  ;;  %vm13850_vm14 = vcmask 138240   ;;  %v12043_v55 = vadd.s32 168, %v9885_v2 }
 0xbf3   : > { %vm6846_vm4 = vcmp.lt.s32.totalorder %v6845_v46, 15 }
 0xbf4   : > { %v6847_v25 = vsel %vm6846_vm4, %v6845_v46, 15  ;;  %vm13851_vm4 = vmmov %vm13850_vm14  ;;  %v12054_v46 = vadd.s32 40, %v9885_v2 }
 0xbf5   : > { %v6848_v42 = vmul.u32 16, %v6847_v25  ;;  %v6849_v35 = vrot.slane %v6847_v25, 1  ;;  %v12105_v25 = vadd.s32 176, %v9885_v2 }
 0xbf7   : > { %v6850_v49 = vadd.s32 %v6849_v35, %v6848_v42  ;;  %v12134_v42 = vadd.s32 64, %v9885_v2  ;;  %v9692_v35 = vld [vmem:[%s13849_s19 + $0x20] sm:$0xff]  }
 0xbf9   : > { %v11951_v19 = vrot.slane %v6850_v49, %v9897_v4 }
 0xc39   : > { %v5953_v26 = vpop.permute.xlu1 %5952 }
 0xc3a   : > { %v5951_v22 = vpop.permute.xlu0 %5950 }
 0xc3b   : > { %v5954_v7 = vsel %vm13846_vm13, %v5953_v26, %v5951_v22  ;;  %v5958_v24 = vsel %vm13841_vm11, %v5951_v22, %v5953_v26  ;;  %vm13854_vm13 = vcmask 121856   ;;  %vm13343_vm11 = vcmp.eq.s32.totalorder %v11955_v45, %v11951_v19  ;;  %v9691_v26 = vld [vmem:[%s13849_s19 + $0x8] sm:$0xff]  }
 0xc3c   : > { %v5960_v21 = vsel %vm11468_vm2, %v5958_v24, 0  ;;  %v5961_v16 = vsel %vm11475_vm8, %v5954_v7, 0  ;;  %vm13852_vm2 = vcmask 64512   ;;  %vm13853_vm8 = vmmov %vm13848_vm5  ;;  %v13870_v22 = vmov 0 }
 0xc3d   : > { %v5937_v23 = vpop.permute.xlu1 %5936  ;;  %8364 = vmatprep.subr.msk.bf16.mxu0 %vm13847_vm10, %v5961_v16  ;;  %v5984_v33 = vsel %vm13848_vm5, %v5960_v21, 0  ;;  %vm13342_vm10 = vcmp.eq.s32.totalorder %v11958_v48, %v11951_v19  ;;  %v13873_v7 = vmov 0  ;;  %v13877_v24 = vmov 0 }
 0xc3e   : > { %5990 = vmatpush1.bf16.msra.mxu0 %v5984_v33  ;;  %v5934_v36 = vpop.permute.xlu0 %5933  ;;  %v12110_v16 = vadd.s32 184, %v9885_v2  ;;  %v12121_v33 = vadd.s32 56, %v9885_v2 }
 0xc3f   : > { %v5938_v43 = vsel %vm13850_vm14, %v5937_v23, %v5934_v36  ;;  %v5942_v50 = vsel %vm13851_vm4, %v5934_v36, %v5937_v23  ;;  %vm13337_vm14 = vcmp.eq.s32.totalorder %v9885_v2, %v11951_v19  ;;  %vm11983_vm4 = vmpackc.low %vm13342_vm10, %vm13343_vm11  ;;  %v12113_v23 = vadd.s32 48, %v9885_v2 }
 0xc40   : > { %v5944_v18 = vsel %vm11313_vm12, %v5942_v50, 0  ;;  %v5945_v13 = vsel %vm11317_vm6, %v5938_v43, 0  ;;  %vm13855_vm12 = vmmov %vm13848_vm5  ;;  %v13859_v30 = vsel %vm11983_vm4, 4294967295, %v13858_v30  ;;  %9203 = vmatprep.subr.msk.bf16.mxu1 %vm11983_vm4, %v13381_v60  ;;  %v12127_v36 = vadd.s32 200, %v9885_v2 }
 0xc41   : > { %v6120_v12 = vpop.permute.xlu1 %6119  ;;  %8365 = vmatmul.mubr.msk.bf16.vlgmr.msra.gmra.mrb[104].mxu0 %vm13852_vm2, %v9688_v34  ;;  %8369 = vmatprep.subr.msk.bf16.mxu0 %vm13853_vm8, %v5945_v13  ;;  %v6059_v44 = vsel %vm13848_vm5, %v5944_v18, 0  ;;  %vm13856_vm6 = vmmov %vm13852_vm2  ;;  %13860 = vst [vmem:[#allocation3_spill] sm:$0xff] %v13859_v30  ;;  %vm13336_vm2 = vcmp.eq.s32.totalorder %v11962_v9, %v11951_v19  ;;  %vm13861_vm8 = vcmask 7168   ;;  %v12124_v34 = vadd.s32 192, %v9885_v2 }
 0xc42   : > { %6065 = vmatpush1.bf16.msra.mxu0 %v6059_v44  ;;  %v6118_v47 = vpop.permute.xlu0 %6117  ;;  %6031 = vmatprep.mubr.bf16.mxu0 %v9714_v1  ;;  %vm12004_vm5 = vmpackc.low %vm13336_vm2, %vm13337_vm14  ;;  %vm13876_vm2 = vcmask 64512   ;;  %v13881_v43 = vmov 0  ;;  %vm13884_vm10 = vnez %v13766_v37  ;;  %v13885_v18 = vmov 0 }
 0xc43   : > { %v6121_v52 = vsel %vm13854_vm13, %v6120_v12, %v6118_v47  ;;  %v13863_v8 = vsel %vm12004_vm5, 4294967295, %v13862_v8  ;;  %9205 = vmatpush3.bf16.msk.msra.mxu1 %vm12004_vm5, %v13381_v60  ;;  %v12171_v37 = vadd.s32 72, %v9885_v2  ;;  %v13888_v13 = vmov 0 }
 0xc44   : > { %v6128_v32 = vsel %vm11533_vm15, %v6121_v52, 0  ;;  %vm13857_vm15 = vmmov %vm13854_vm13  ;;  %13864 = vst [vmem:[#allocation4_spill] sm:$0xff] %v13863_v8  ;;  %vm13333_vm13 = vcmp.eq.s32.totalorder %v11965_v5, %v11951_v19  ;;  %v13894_v52 = vmov 0 }
 0xc45   : > { %8378 = vmatprep.subr.msk.bf16.mxu0 %vm13855_vm12, %v6128_v32  ;;  %v6125_v4 = vsel %vm13857_vm15, %v6118_v47, %v6120_v12  ;;  %v6220_v56 = vpop.permute.xlu1 %6219  ;;  %vm13332_vm12 = vcmp.eq.s32.totalorder %v11968_v51, %v11951_v19  ;;  %vm13868_vm15 = vcmask 1043456   ;;  %v12189_v12 = vadd.s32 208, %v9885_v2 }
 0xc46   : > { %v6218_v29 = vpop.permute.xlu0 %6217  ;;  %v6127_v6 = vsel %vm11528_vm7, %v6125_v4, 0  ;;  %vm12018_vm7 = vmpackc.low %vm13332_vm12, %vm13333_vm13  ;;  %vm13338_vm12 = vcmp.eq.s32.totalorder %v12043_v55, %v11951_v19  ;;  %vm13340_vm13 = vcmp.eq.s32.totalorder %v12046_v53, %v11951_v19  ;;  %v12196_v47 = vadd.s32 216, %v9885_v2  ;;  %v9693_v4 = vld [vmem:[%s13849_s19 + $0x28] sm:$0xff]  }
 0xc47   : > { %v6221_v61 = vsel %vm13861_vm8, %v6220_v56, %v6218_v29  ;;  %v13866_v63 = vsel %vm12018_vm7, 4294967295, %v13865_v63  ;;  %9207 = vmatprep.subr.msk.bf16.mxu1 %vm12018_vm7, %v13381_v60  ;;  %v6151_v15 = vsel %vm13868_vm15, %v6127_v6, 0  ;;  %vm13335_vm8 = vcmp.eq.s32.totalorder %v12033_v3, %v11951_v19 }
 0xc48   : > { %13867 = vst [vmem:[#allocation5_spill] sm:$0xff] %v13866_v63  ;;  %v6228_v38 = vsel %vm11595_vm1, %v6221_v61, 0  ;;  %vm13869_vm1 = vmmov %vm13868_vm15  ;;  %v12218_v32 = vadd.s32 80, %v9885_v2 }
 0xc49   : > { %8366 = vmatmul.mubr.msk.bf16.gmra.mrb[108].mxu0 %vm13856_vm6, %v9689_v41  ;;  %v12242_v41 = vadd.s32 224, %v9885_v2  ;;  %v6410_v6 = vpop.permute.xlu1 %6409 }
 0xc4a   : > { %6096 = vmatprep.mubr.bf16.mxu0 %v9714_v1  ;;  %v6408_v61 = vpop.permute.xlu0 %6407 }
 0xc51   : > { %8370 = vmatmul.mubr.msk.bf16.vlgmr.msra.gmra.mrb[104].mxu0 %vm13856_vm6, %v9690_v54  ;;  %vm13334_vm6 = vcmp.eq.s32.totalorder %v12037_v14, %v11951_v19  ;;  %v13904_v54 = vmov 0 }
 0xc52   : > { %6157 = vmatpush1.bf16.msra.mxu0 %v6151_v15  ;;  %6106 = vmatprep.mubr.bf16.mxu0 %v9714_v1  ;;  %vm12065_vm15 = vmpackc.low %vm13334_vm6, %vm13335_vm8  ;;  %vm13339_vm8 = vcmp.eq.s32.totalorder %v12054_v46, %v11951_v19 }
 0xc53   : > { %8387 = vmatprep.subr.msk.bf16.mxu0 %vm13869_vm1, %v6228_v38  ;;  %v13871_v22 = vsel %vm12065_vm15, 4294967295, %v13870_v22  ;;  %vm13341_vm1 = vcmp.eq.s32.totalorder %v12040_v27, %v11951_v19  ;;  %9209 = vmatpush3.bf16.msk.msra.mxu1 %vm12065_vm15, %v13381_v60  ;;  %vm12100_vm14 = vmpackc.low %vm13339_vm8, %vm13340_vm13  ;;  %vm13346_vm8 = vcmp.eq.s32.totalorder %v12113_v23, %v11951_v19  ;;  %v9694_v38 = vld [vmem:[%s13849_s19 + $0x30] sm:$0xff]  }
 0xc54   : > { %13872 = vst [vmem:[#allocation6_spill] sm:$0xff] %v13871_v22  ;;  %vm12084_vm6 = vmpackc.low %vm13338_vm12, %vm13341_vm1  ;;  %v13878_v24 = vsel %vm12100_vm14, 4294967295, %v13877_v24  ;;  %vm13880_vm12 = vcmask 7168   ;;  %vm13345_vm1 = vcmp.eq.s32.totalorder %v12121_v33, %v11951_v19 }
 0xc55   : > { %v13874_v7 = vsel %vm12084_vm6, 4294967295, %v13873_v7  ;;  %9211 = vmatprep.subr.msk.bf16.mxu1 %vm12084_vm6, %v13381_v60  ;;  %13879 = vst [vmem:[#allocation8_spill] sm:$0xff] %v13878_v24  ;;  %v6225_v21 = vsel %vm13880_vm12, %v6218_v29, %v6220_v56  ;;  %vm13344_vm12 = vcmp.eq.s32.totalorder %v12110_v16, %v11951_v19  ;;  %vm12159_vm11 = vmpackc.low %vm13345_vm1, %vm13346_vm8  ;;  %vm13355_vm8 = vcmp.eq.s32.totalorder %v12134_v42, %v11951_v19 }
 0xc56   : > { %13875 = vst [vmem:[#allocation7_spill] sm:$0xff] %v13874_v7  ;;  %v6227_v50 = vsel %vm13884_vm10, %v6225_v21, 0  ;;  %v13886_v18 = vsel %vm12159_vm11, 4294967295, %v13885_v18  ;;  %vm13352_vm10 = vcmp.eq.s32.totalorder %v12127_v36, %v11951_v19  ;;  %v12250_v56 = vadd.s32 232, %v9885_v2 }
 0xc57   : > { %9213 = vmatpush3.bf16.msk.msra.mxu1 %vm12100_vm14, %v13381_v60  ;;  %13887 = vst [vmem:[#allocation10_spill] sm:$0xff] %v13886_v18  ;;  %v13901_v29 = vmov 0 }
 0xc59   : > { %8371 = vmatmul.mubr.msk.bf16.gmra.mrb[108].mxu0 %vm13876_vm2, %v9691_v26  ;;  %vm13347_vm2 = vcmp.eq.s32.totalorder %v12105_v25, %v11951_v19 }
 0xc5a   : > { %6188 = vmatprep.mubr.bf16.mxu0 %v9714_v1  ;;  %vm12145_vm13 = vmpackc.low %vm13344_vm12, %vm13347_vm2  ;;  %vm13353_vm12 = vcmp.eq.s32.totalorder %v12124_v34, %v11951_v19  ;;  %vm13891_vm2 = vcmask 64512  }
 0xc5b   : > { %v13882_v43 = vsel %vm12145_vm13, 4294967295, %v13881_v43  ;;  %9215 = vmatprep.subr.msk.bf16.mxu1 %vm12145_vm13, %v13381_v60  ;;  %vm12182_vm1 = vmpackc.low %vm13352_vm10, %vm13353_vm12  ;;  %vm13892_vm13 = vcmask 1043456   ;;  %vm13893_vm10 = vnez %v13779_v17  ;;  %vm13897_vm12 = vcmask 1043456  }
 0xc5c   : > { %13883 = vst [vmem:[#allocation9_spill] sm:$0xff] %v13882_v43  ;;  %9217 = vmatpush3.bf16.msk.msra.mxu1 %vm12159_vm11, %v13381_v60  ;;  %v13889_v13 = vsel %vm12182_vm1, 4294967295, %v13888_v13  ;;  %v6251_v44 = vsel %vm13892_vm13, %v6227_v50, 0  ;;  %vm13354_vm11 = vcmp.eq.s32.totalorder %v12171_v37, %v11951_v19  ;;  %v6318_v49 = vsel %vm13893_vm10, %v11871_v58, 0  ;;  %v9695_v50 = vld [vmem:[%s13849_s19 + $0x38] sm:$0xff]  }
 0xc5d   : > { %13890 = vst [vmem:[#allocation11_spill] sm:$0xff] %v13889_v13  ;;  %9219 = vmatprep.subr.msk.bf16.mxu1 %vm12182_vm1, %v13381_v60  ;;  %vm12211_vm13 = vmpackc.low %vm13354_vm11, %vm13355_vm8  ;;  %vm13356_vm10 = vcmp.eq.s32.totalorder %v12196_v47, %v11951_v19  ;;  %v12224_v17 = vadd.s32 88, %v9885_v2  ;;  %v13898_v58 = vmov 0 }
 0xc5e   : > { %v13895_v52 = vsel %vm12211_vm13, 4294967295, %v13894_v52 }
 0xc5f   : > { %13896 = vst [vmem:[#allocation12_spill] sm:$0xff] %v13895_v52  ;;  %vm13360_vm8 = vcmp.eq.s32.totalorder %v12224_v17, %v11951_v19 }
 0xc60   : > { %9221 = vmatpush3.bf16.msk.msra.mxu1 %vm12211_vm13, %v13381_v60  ;;  %vm13362_vm13 = vcmp.eq.s32.totalorder %v12250_v56, %v11951_v19 }
 0xc61   : > { %8379 = vmatmul.mubr.msk.bf16.vlgmr.msra.gmra.mrb[104].mxu0 %vm13891_vm2, %v9692_v35  ;;  %vm13357_vm2 = vcmp.eq.s32.totalorder %v12189_v12, %v11951_v19 }
 0xc62   : > { %6257 = vmatpush1.bf16.msra.mxu0 %v6251_v44  ;;  %6198 = vmatprep.mubr.bf16.mxu0 %v9714_v1  ;;  %vm12235_vm11 = vmpackc.low %vm13356_vm10, %vm13357_vm2  ;;  %vm13363_vm2 = vcmp.eq.s32.totalorder %v12242_v41, %v11951_v19  ;;  %v6508_v44 = vpop.permute.xlu0 %6507 }
 0xc63   : > { %8396 = vmatprep.subr.msk.bf16.mxu0 %vm13897_vm12, %v6318_v49  ;;  %v13899_v58 = vsel %vm12235_vm11, 4294967295, %v13898_v58  ;;  %vm13361_vm12 = vcmp.eq.s32.totalorder %v12218_v32, %v11951_v19  ;;  %9223 = vmatprep.subr.msk.bf16.mxu1 %vm12235_vm11, %v13381_v60 }
 0xc64   : > { %13900 = vst [vmem:[#allocation13_spill] sm:$0xff] %v13899_v58  ;;  %vm12261_vm10 = vmpackc.low %vm13360_vm8, %vm13361_vm12  ;;  %vm13907_vm12 = vcmask 64512  }
 0xc65   : > { %v13902_v29 = vsel %vm12261_vm10, 4294967295, %v13901_v29  ;;  %9225 = vmatpush3.bf16.msk.msra.mxu1 %vm12261_vm10, %v13381_v60  ;;  %vm12278_vm8 = vmpackc.low %vm13362_vm13, %vm13363_vm2  ;;  %vm13908_vm13 = vnez %v13781_v39  ;;  %vm13909_vm2 = vcmask 1039360  }
 0xc66   : > { %13903 = vst [vmem:[#allocation14_spill] sm:$0xff] %v13902_v29  ;;  %v13905_v54 = vsel %vm12278_vm8, 4294967295, %v13904_v54  ;;  %9227 = vmatprep.subr.msk.bf16.mxu1 %vm12278_vm8, %v13381_v60  ;;  %v6317_v15 = vsel %vm13908_vm13, %v11869_v40, 0  ;;  %v6415_v26 = vsel %vm13909_vm2, %v6410_v6, %v6408_v61  ;;  %vm13910_vm10 = vmmov %vm13907_vm12  ;;  %vm13912_vm8 = vnez %v13787_v20  ;;  %v6510_v40 = vpop.permute.xlu1 %6509  ;;  %v9696_v20 = vld [vmem:[%s13849_s19 + $0x40] sm:$0xff]  }
 0xc67   : > { %13906 = vst [vmem:[#allocation15_spill] sm:$0xff] %v13905_v54  ;;  %v6418_v35 = vsel %vm13912_vm8, %v6415_v26, 0  ;;  %vm13914_vm1 = vmmov %vm13910_vm10  ;;  %vm13916_vm8 = vnez %v13796_v31  ;;  %v6608_v26 = vpop.permute.xlu0 %6607 }
 0xc68   : > { %vm13915_vm13 = vmmov %vm13909_vm2 }
 0xc69   : > { %8380 = vmatmul.mubr.msk.bf16.gmra.mrb[108].mxu0 %vm13907_vm12, %v9693_v4  ;;  %vm13911_vm12 = vcmask 1043456   ;;  %v6411_v39 = vsel %vm13915_vm13, %v6408_v61, %v6410_v6  ;;  %vm13918_vm2 = vmmov %vm13914_vm1  ;;  %v9697_v6 = vld [vmem:[%s13849_s19 + $0x48] sm:$0xff]  }
 0xc6a   : > { %6288 = vmatprep.mubr.bf16.mxu0 %v9714_v1  ;;  %v6341_v21 = vsel %vm13911_vm12, %v6317_v15, 0  ;;  %vm13913_vm11 = vmmov %vm13911_vm12  ;;  %v6417_v49 = vsel %vm13916_vm8, %v6411_v39, 0  ;;  %v6610_v61 = vpop.permute.xlu1 %6609 }
 0xc6b   : > { %vm13924_vm8 = vmmov %vm13918_vm2 }
 0xc71   : > { %8388 = vmatmul.mubr.msk.bf16.vlgmr.msra.gmra.mrb[104].mxu0 %vm13910_vm10, %v9694_v38  ;;  %vm13919_vm10 = vmmov %vm13911_vm12 }
 0xc72   : > { %6347 = vmatpush1.bf16.msra.mxu0 %v6341_v21  ;;  %6298 = vmatprep.mubr.bf16.mxu0 %v9714_v1  ;;  %v6441_v38 = vsel %vm13919_vm10, %v6417_v49, 0  ;;  %vm13921_vm12 = vmmov %vm13918_vm2 }
 0xc73   : > { %8405 = vmatprep.subr.msk.bf16.mxu0 %vm13913_vm11, %v6418_v35  ;;  %vm13917_vm11 = vcmask 924672  }
 0xc74   : > { %v6515_v4 = vsel %vm13917_vm11, %v6510_v40, %v6508_v44  ;;  %vm13922_vm13 = vmmov %vm13917_vm11 }
 0xc75   : > { %v6518_v15 = vsel %vm11730_vm9, %v6515_v4, 0  ;;  %v6511_v31 = vsel %vm13922_vm13, %v6508_v44, %v6510_v40  ;;  %vm13923_vm9 = vcmask 916480   ;;  %v9699_v40 = vld [vmem:[%s13849_s19 + $0x58] sm:$0xff]   ;;  %v6710_v44 = vpop.permute.xlu1 %6709  ;;  %vm13931_vm13 = vcmask 908288  }
 0xc76   : > { %v6517_v21 = vsel %vm11757_vm0, %v6511_v31, 0  ;;  %v6615_v35 = vsel %vm13923_vm9, %v6610_v61, %v6608_v26  ;;  %vm13929_vm0 = vmmov %vm13923_vm9 }
 0xc77   : > { %v6611_v28 = vsel %vm13929_vm0, %v6608_v26, %v6610_v61  ;;  %v9703_v26 = vld [vmem:[%s13849_s19 + $0x78] sm:$0xff]  }
 0xc79   : > { %8389 = vmatmul.mubr.msk.bf16.gmra.mrb[108].mxu0 %vm13914_vm1, %v9695_v50  ;;  %vm13920_vm1 = vmmov %vm13919_vm10 }
 0xc7a   : > { %6378 = vmatprep.mubr.bf16.mxu0 %v9714_v1  ;;  %vm13925_vm11 = vmmov %vm13920_vm1 }
 0xc7b   : > { %v6541_v50 = vsel %vm13925_vm11, %v6517_v21, 0  ;;  %vm13927_vm10 = vmmov %vm13920_vm1 }
 0xc81   : > { %8397 = vmatmul.mubr.msk.bf16.vlgmr.msra.gmra.mrb[104].mxu0 %vm13918_vm2, %v9696_v20  ;;  %vm13926_vm2 = vnez %v13819_v11  ;;  %v6708_v20 = vpop.permute.xlu0 %6707  ;;  %v9700_v11 = vld [vmem:[%s13849_s19 + $0x60] sm:$0xff]  }
 0xc82   : > { %6447 = vmatpush1.bf16.msra.mxu0 %v6441_v38  ;;  %6388 = vmatprep.mubr.bf16.mxu0 %v9714_v1  ;;  %v6618_v39 = vsel %vm13926_vm2, %v6615_v35, 0  ;;  %v6715_v4 = vsel %vm13931_vm13, %v6710_v44, %v6708_v20 }
 0xc83   : > { %8414 = vmatprep.subr.msk.bf16.mxu0 %vm13920_vm1, %v6518_v15  ;;  %vm13928_vm1 = vmmov %vm13924_vm8  ;;  %v6718_v15 = vsel %vm11817_vm3, %v6715_v4, 0  ;;  %vm13937_vm3 = vnez %v13832_v62  ;;  %v9704_v62 = vld [vmem:[%s13849_s19 + $0x80] sm:$0xff]  }
 0xc84   : > { %vm13932_vm9 = vmmov %vm13928_vm1 }
 0xc85   : > { %vm13935_vm2 = vmmov %vm13928_vm1 }
 0xc89   : > { %8398 = vmatmul.mubr.msk.bf16.gmra.mrb[108].mxu0 %vm13921_vm12, %v9697_v6  ;;  %vm13930_vm12 = vnez %v13822_v10  ;;  %v9701_v6 = vld [vmem:[%s13849_s19 + $0x68] sm:$0xff]  }
 0xc8a   : > { %6478 = vmatprep.mubr.bf16.mxu0 %v9714_v1  ;;  %v6617_v49 = vsel %vm13930_vm12, %v6611_v28, 0  ;;  %vm13939_vm12 = vmmov %vm13928_vm1 }
 0xc91   : > { %8406 = vmatmul.mubr.msk.bf16.vlgmr.msra.gmra.mrb[104].mxu0 %vm13924_vm8, %v9698_v0  ;;  %vm13933_vm8 = vmmov %vm13927_vm10  ;;  %v9705_v0 = vld [vmem:[%s13849_s19 + $0x88] sm:$0xff]  }
 0xc92   : > { %6547 = vmatpush1.bf16.msra.mxu0 %v6541_v50  ;;  %6488 = vmatprep.mubr.bf16.mxu0 %v9714_v1  ;;  %v6641_v38 = vsel %vm13933_vm8, %v6617_v49, 0  ;;  %vm13934_vm11 = vmmov %vm13933_vm8  ;;  %v6865_v49 = vadd.s32 104, %v9885_v2 }
 0xc93   : > { %8423 = vmatprep.subr.msk.bf16.mxu0 %vm13927_vm10, %v6618_v39  ;;  %vm13936_vm10 = vmmov %vm13931_vm13 }
 0xc94   : > { %v6711_v10 = vsel %vm13936_vm10, %v6708_v20, %v6710_v44  ;;  %vm13938_vm0 = vmmov %vm13933_vm8  ;;  %vm13942_vm8 = vnez %v13882_v43  ;;  %vm13945_vm10 = vnez %v13895_v52 }
 0xc95   : > { %v6717_v31 = vsel %vm13937_vm3, %v6711_v10, 0  ;;  %vm13940_vm13 = vmmov %vm13928_vm1  ;;  %vm13946_vm3 = vnez %v13899_v58  ;;  %v13996_v58 = vmov 0.0  }
 0xc96   : > { %v6741_v61 = vsel %vm13938_vm0, %v6717_v31, 0  ;;  %vm13948_vm0 = vnez %v13905_v54  ;;  %v13963_v31 = vmov 0 }
 0xc99   : > { %8407 = vmatmul.mubr.msk.bf16.gmra.mrb[108].mxu0 %vm13928_vm1, %v9699_v40 }
 0xc9a   : > { %6578 = vmatprep.mubr.bf16.mxu0 %v9714_v1 }
 0xca1   : > { %8415 = vmatmul.mubr.msk.bf16.vlgmr.msra.gmra.mrb[104].mxu0 %vm13932_vm9, %v9700_v11  ;;  %vm13941_vm9 = vmmov %vm13928_vm1 }
 0xca2   : > { %6647 = vmatpush1.bf16.msra.mxu0 %v6641_v38  ;;  %6588 = vmatprep.mubr.bf16.mxu0 %v9714_v1 }
 0xca3   : > { %8432 = vmatprep.subr.msk.bf16.mxu0 %vm13934_vm11, %v6718_v15  ;;  %vm13943_vm11 = vnez %v13886_v18 }
 0xca9   : > { %8416 = vmatmul.mubr.msk.bf16.gmra.mrb[108].mxu0 %vm13935_vm2, %v9701_v6  ;;  %vm13944_vm2 = vnez %v13889_v13 }
 0xcaa   : > { %6678 = vmatprep.mubr.bf16.mxu0 %v9714_v1 }
 0xcb1   : > { %8424 = vmatmul.mubr.msk.bf16.vlgmr.msra.gmra.mrb[104].mxu0 %vm13928_vm1, %v9702_v57  ;;  %vm13947_vm1 = vnez %v13902_v29 }
 0xcb2   : > { %6747 = vmatpush1.bf16.msra.mxu0 %v6741_v61  ;;  %6688 = vmatprep.mubr.bf16.mxu0 %v9714_v1  ;;  %v6882_v61 = vadd.s32 240, %v9885_v2 }
 0xcb3   : > { %9363 = vmatprep.subr.msk.bf16.mxu0 %vm11983_vm4, %v13381_v60 }
 0xcb9   : > { %8425 = vmatmul.mubr.msk.bf16.gmra.mrb[108].mxu0 %vm13939_vm12, %v9703_v26  ;;  %vm13949_vm12 = vcmp.eq.s32.totalorder %v11955_v45, %v11951_v19  ;;  %v6883_v26 = vadd.s32 248, %v9885_v2 }
 0xcba   : > { %6778 = vmatprep.mubr.bf16.mxu0 %v9714_v1 }
 0xcc1   : > { %8433 = vmatmul.mubr.msk.bf16.vlgmr.msra.gmra.mrb[104].mxu0 %vm13940_vm13, %v9704_v62  ;;  %vm13950_vm13 = vcmp.eq.s32.totalorder %v11958_v48, %v11951_v19  ;;  %v12527_v62 = vadd.s32 112, %v9885_v2 }
 0xcc2   : > { %6788 = vmatprep.mubr.bf16.mxu0 %v9714_v1  ;;  %9365 = vmatpush3.bf16.msk.msra.mxu0 %vm12004_vm5, %v13381_v60  ;;  %v8451_v1 = vsel %vm13949_vm12, 1.0, %v13384_v59  ;;  %v8452_v21 = vsel %vm13950_vm13, 1.0, %v13384_v59  ;;  %vm13953_vm12 = vcmp.eq.s32.totalorder %v11965_v5, %v11951_v19  ;;  %vm13954_vm13 = vcmp.eq.s32.totalorder %v11968_v51, %v11951_v19 }
 0xcc3   : > { %9367 = vmatprep.subr.msk.bf16.mxu0 %vm12018_vm7, %v13381_v60  ;;  %v12437_v39 = vsub.f32 %v8451_v1, %v8451_v1  ;;  %v12439_v40 = vsub.f32 %v8452_v21, %v8452_v21  ;;  %v8453_v45 = vsel %vm13953_vm12, 1.0, %v13384_v59  ;;  %v8454_v48 = vsel %vm13954_vm13, 1.0, %v13384_v59 }
 0xcc4   : > { %vm13958_vm12 = vcmp.eq.s32.totalorder %v12043_v55, %v11951_v19  ;;  %vm13959_vm13 = vcmp.eq.s32.totalorder %v12046_v53, %v11951_v19  ;;  %v12479_v11 = vsub.f32 %v8454_v48, %v8454_v48  ;;  %v6864_v55 = vadd.s32 96, %v9885_v2 }
 0xcc5   : > { %v8456_v51 = vsel %vm13958_vm12, 1.0, %v13384_v59  ;;  %vm13961_vm12 = vcmp.eq.s32.totalorder %v12105_v25, %v11951_v19 }
 0xcc6   : > { %9369 = vmatpush3.bf16.msk.msra.mxu0 %vm12065_vm15, %v13381_v60  ;;  %v12489_v53 = vsub.f32 %v8456_v51, %v8456_v51  ;;  %v8457_v10 = vsel %vm13961_vm12, 1.0, %v13384_v59  ;;  %vm13966_vm12 = vcmp.eq.s32.totalorder %v12113_v23, %v11951_v19 }
 0xcc7   : > { %9371 = vmatprep.subr.msk.bf16.mxu0 %vm12084_vm6, %v13381_v60  ;;  %v8441_v25 = vsel %vm13966_vm12, 1.0, %v13384_v59  ;;  %vm13968_vm12 = vcmp.eq.s32.totalorder %v12124_v34, %v11951_v19  ;;  %v13971_v34 = vmov 0 }
 0xcc8   : > { %v8459_v23 = vsel %vm13968_vm12, 1.0, %v13384_v59  ;;  %v12565_v21 = vsub.f32 %v8441_v25, %v8441_v25 }
 0xcc9   : > { %8434 = vmatmul.mubr.msk.bf16.gmra.mrb[108].mxu0 %vm13941_vm9, %v9705_v0  ;;  %vm13951_vm9 = vcmp.eq.s32.totalorder %v9885_v2, %v11951_v19  ;;  %v12530_v0 = vadd.s32 120, %v9885_v2  ;;  %v12545_v2 = vsub.f32 %v8457_v10, %v8457_v10 }
 0xcca   : > { %9373 = vmatpush3.bf16.msk.msra.mxu0 %vm12100_vm14, %v13381_v60  ;;  %v8435_v35 = vsel %vm13951_vm9, 1.0, %v13384_v59  ;;  %vm13955_vm9 = vcmp.eq.s32.totalorder %v12033_v3, %v11951_v19  ;;  %v8439_v3 = vsel %vm13959_vm13, 1.0, %v13384_v59  ;;  %vm13962_vm13 = vcmp.eq.s32.totalorder %v12110_v16, %v11951_v19 }
 0xccb   : > { %9375 = vmatprep.subr.msk.bf16.mxu0 %vm13942_vm8, %v13381_v60  ;;  %v12465_v44 = vsub.f32 %v8435_v35, %v8435_v35  ;;  %v12491_v6 = vsub.f32 %v8439_v3, %v8439_v3  ;;  %v8458_v57 = vsel %vm13962_vm13, 1.0, %v13384_v59  ;;  %vm13967_vm13 = vcmp.eq.s32.totalorder %v12121_v33, %v11951_v19 }
 0xccc   : > { %v8442_v16 = vsel %vm13967_vm13, 1.0, %v13384_v59  ;;  %vm13969_vm13 = vcmp.eq.s32.totalorder %v12127_v36, %v11951_v19  ;;  %v12563_v36 = vsub.f32 %v8458_v57, %v8458_v57  ;;  %v13974_v35 = vmov 0 }
 0xccd   : > { %v8460_v33 = vsel %vm13969_vm13, 1.0, %v13384_v59  ;;  %vm13377_vm13 = vcmp.eq.s32.totalorder %v12527_v62, %v11951_v19  ;;  %v13380_v3 = vand.u32 4294901760, %v12437_v39 }
 0xcce   : > { %9377 = vmatpush3.bf16.msk.msra.mxu0 %vm13943_vm11, %v13381_v60 }
 0xccf   : > { %9379 = vmatprep.subr.msk.bf16.mxu0 %vm13944_vm2, %v13381_v60 }
 0xcd2   : > { %9381 = vmatpush3.bf16.msk.msra.mxu0 %vm13945_vm10, %v13381_v60 }
 0xcd3   : > { %9383 = vmatprep.subr.msk.bf16.mxu0 %vm13946_vm3, %v13381_v60  ;;  %vm13376_vm3 = vcmp.eq.s32.totalorder %v12530_v0, %v11951_v19 }
 0xcd6   : > { %9385 = vmatpush3.bf16.msk.msra.mxu0 %vm13947_vm1, %v13381_v60  ;;  %vm13952_vm1 = vcmp.eq.s32.totalorder %v11962_v9, %v11951_v19  ;;  %v8437_v9 = vsel %vm13955_vm9, 1.0, %v13384_v59  ;;  %vm13960_vm9 = vcmp.eq.s32.totalorder %v12054_v46, %v11951_v19 }
 0xcd7   : > { %9387 = vmatprep.subr.msk.bf16.mxu0 %vm13948_vm0, %v13381_v60  ;;  %v8436_v50 = vsel %vm13952_vm1, 1.0, %v13384_v59  ;;  %vm13956_vm1 = vcmp.eq.s32.totalorder %v12037_v14, %v11951_v19  ;;  %vm13957_vm0 = vcmp.eq.s32.totalorder %v12040_v27, %v11951_v19  ;;  %v8440_v14 = vsel %vm13960_vm9, 1.0, %v13384_v59 }
 0xcd8   : > { %v8438_v28 = vsel %vm13956_vm1, 1.0, %v13384_v59  ;;  %v8455_v5 = vsel %vm13957_vm0, 1.0, %v13384_v59  ;;  %v12467_v20 = vsub.f32 %v8436_v50, %v8436_v50  ;;  %v12477_v27 = vsub.f32 %v8453_v45, %v8453_v45 }
 0xcd9   : > { %v12483_v4 = vsub.f32 %v8437_v9, %v8437_v9  ;;  %v12485_v38 = vsub.f32 %v8438_v28, %v8438_v28  ;;  %v12487_v15 = vsub.f32 %v8455_v5, %v8455_v5  ;;  %v12493_v46 = vsub.f32 %v8440_v14, %v8440_v14 }
 0xcda   : > { %vm13373_vm0 = vcmp.eq.s32.totalorder %v6864_v55, %v11951_v19  ;;  %vm13372_vm1 = vcmp.eq.s32.totalorder %v6865_v49, %v11951_v19  ;;  %v12585_v50 = vsub.f32 %v8459_v23, %v8459_v23  ;;  %v12587_v45 = vsub.f32 %v8460_v33, %v8460_v33 }
 0xcdb   : > { %vm12509_vm9 = vmpackc.low %vm13372_vm1, %vm13373_vm0  ;;  %vm13378_vm1 = vcmp.eq.s32.totalorder %v6882_v61, %v11951_v19  ;;  %vm13375_vm0 = vcmp.eq.s32.totalorder %v6883_v26, %v11951_v19  ;;  %v13387_v57 = vand.u32 4294901760, %v12467_v20 }
 0xcdc   : > { %v13964_v31 = vsel %vm12509_vm9, 4294967295, %v13963_v31  ;;  %9389 = vmatpush3.bf16.msk.msra.mxu0 %vm12509_vm9, %v13381_v60  ;;  %9229 = vmatpush3.bf16.msk.msra.mxu1 %vm12509_vm9, %v13381_v60  ;;  %vm13970_vm9 = vcmp.eq.s32.totalorder %v12134_v42, %v11951_v19  ;;  %vm12555_vm12 = vmpackc.low %vm13375_vm0, %vm13378_vm1  ;;  %v12567_v42 = vsub.f32 %v8442_v16, %v8442_v16  ;;  %vm13977_vm0 = vcmp.eq.s32.totalorder %v12171_v37, %v11951_v19 }
 0xcdd   : > { %13965 = vst [vmem:[#allocation16_spill] sm:$0xff] %v13964_v31  ;;  %v8443_v1 = vsel %vm13970_vm9, 1.0, %v13384_v59  ;;  %v13972_v34 = vsel %vm12555_vm12, 4294967295, %v13971_v34  ;;  %9391 = vmatprep.subr.msk.bf16.mxu0 %vm12555_vm12, %v13381_v60  ;;  %vm12578_vm9 = vmpackc.low %vm13376_vm3, %vm13377_vm13  ;;  %9231 = vmatprep.subr.msk.bf16.mxu1 %vm12555_vm12, %v13381_v60  ;;  %v8444_v48 = vsel %vm13977_vm0, 1.0, %v13384_v59  ;;  %vm13978_vm3 = vcmp.eq.s32.totalorder %v12189_v12, %v11951_v19 }
 0xcde   : > { %13973 = vst [vmem:[#allocation17_spill] sm:$0xff] %v13972_v34  ;;  %v13975_v35 = vsel %vm12578_vm9, 4294967295, %v13974_v35  ;;  %v8461_v9 = vsel %vm13978_vm3, 1.0, %v13384_v59  ;;  %v12603_v28 = vsub.f32 %v8443_v1, %v8443_v1  ;;  %vm13979_vm13 = vcmp.eq.s32.totalorder %v12196_v47, %v11951_v19 }
 0xcdf   : > { %13976 = vst [vmem:[#allocation18_spill] sm:$0xff] %v13975_v35  ;;  %v8462_v37 = vsel %vm13979_vm13, 1.0, %v13384_v59  ;;  %vm13980_vm0 = vcmp.eq.s32.totalorder %v12218_v32, %v11951_v19  ;;  %vm13981_vm3 = vcmp.eq.s32.totalorder %v12224_v17, %v11951_v19  ;;  %vm13982_vm1 = vcmp.eq.s32.totalorder %v12242_v41, %v11951_v19 }
 0xce0   : > { %9393 = vmatpush3.bf16.msk.msra.mxu0 %vm12578_vm9, %v13381_v60  ;;  %9233 = vmatpush3.bf16.msk.msra.mxu1 %vm12578_vm9, %v13381_v60  ;;  %v8445_v12 = vsel %vm13980_vm0, 1.0, %v13384_v59  ;;  %v8446_v5 = vsel %vm13981_vm3, 1.0, %v13384_v59  ;;  %v8463_v51 = vsel %vm13982_vm1, 1.0, %v13384_v59  ;;  %vm13983_vm9 = vcmp.eq.s32.totalorder %v12250_v56, %v11951_v19 }
 0xce1   : > { %v8464_v47 = vsel %vm13983_vm9, 1.0, %v13384_v59  ;;  %v13383_v32 = vand.u32 4294901760, %v12439_v40  ;;  %v12627_v14 = vsub.f32 %v8444_v48, %v8444_v48  ;;  %v12629_v10 = vsub.f32 %v8461_v9, %v8461_v9 }
 0xce2   : > { %v13386_v17 = vand.u32 4294901760, %v12465_v44  ;;  %v12633_v25 = vsub.f32 %v8462_v37, %v8462_v37  ;;  %vm13984_vm1 = vcmp.eq.s32.totalorder %v6864_v55, %v11951_v19  ;;  %vm13985_vm13 = vcmp.eq.s32.totalorder %v6865_v49, %v11951_v19 }
 0xce3   : > { %v8447_v41 = vsel %vm13984_vm1, 1.0, %v13384_v59  ;;  %v8448_v56 = vsel %vm13985_vm13, 1.0, %v13384_v59  ;;  %vm13986_vm9 = vcmp.eq.s32.totalorder %v6882_v61, %v11951_v19  ;;  %v12644_v23 = vsub.f32 %v8445_v12, %v8445_v12 }
 0xce4   : > { %v8465_v16 = vsel %vm13986_vm9, 1.0, %v13384_v59  ;;  %v12646_v33 = vsub.f32 %v8446_v5, %v8446_v5  ;;  %v12648_v1 = vsub.f32 %v8463_v51, %v8463_v51  ;;  %v12650_v48 = vsub.f32 %v8464_v47, %v8464_v47 }
 0xce5   : > { %13987 = vst [vmem:[#allocation19_spill] sm:$0xff] %v12644_v23  ;;  %v12652_v9 = vsub.f32 %v8447_v41, %v8447_v41  ;;  %vm13992_vm0 = vcmp.eq.s32.totalorder %v6883_v26, %v11951_v19  ;;  %v7257_v49 = vsub.f32 %v12437_v39, %v13380_v3  ;;  %v7264_v61 = vsub.f32 %v12439_v40, %v13383_v32 }
 0xce6   : > { %13988 = vst [vmem:[#allocation20_spill] sm:$0xff] %v12646_v33  ;;  %13989 = vst [vmem:[#allocation21_spill] sm:$0xff] %v12648_v1  ;;  %v8466_v55 = vsel %vm13992_vm0, 1.0, %v13384_v59  ;;  %v12663_v37 = vsub.f32 %v8448_v56, %v8448_v56  ;;  %v12665_v12 = vsub.f32 %v8465_v16, %v8465_v16  ;;  %v7145_v5 = vsub.f32 %v12465_v44, %v13386_v17 }
 0xce7   : > { %13990 = vst [vmem:[#allocation22_spill] sm:$0xff] %v12650_v48  ;;  %13991 = vst [vmem:[#allocation23_spill] sm:$0xff] %v12652_v9  ;;  %v7152_v26 = vsub.f32 %v12467_v20, %v13387_v57  ;;  %v7258_v51 = vand.u32 4294901760, %v7257_v49  ;;  %v7265_v47 = vand.u32 4294901760, %v7264_v61  ;;  %v13388_v41 = vand.u32 4294901760, %v12477_v27 }
 0xce8   : > { %13993 = vst [vmem:[#allocation24_spill] sm:$0xff] %v12663_v37  ;;  %13994 = vst [vmem:[#allocation25_spill] sm:$0xff] %v12665_v12  ;;  %v13389_v3 = vand.u32 4294901760, %v12479_v11  ;;  %v7146_v60 = vand.u32 4294901760, %v7145_v5  ;;  %v13391_v56 = vand.u32 4294901760, %v12483_v4  ;;  %v13393_v16 = vand.u32 4294901760, %v12485_v38 }
 0xce9   : > { %v7153_v32 = vand.u32 4294901760, %v7152_v26  ;;  %v9234_v59 = vpack.c.bf16 %v7265_v47, %v7258_v51  ;;  %v7271_v17 = vsub.f32 %v12477_v27, %v13388_v41  ;;  %v13395_v61 = vand.u32 4294901760, %v12487_v15 }
 0xcea   : > { %v7278_v49 = vsub.f32 %v12479_v11, %v13389_v3  ;;  %v7159_v5 = vsub.f32 %v12483_v4, %v13391_v56  ;;  %v7166_v26 = vsub.f32 %v12485_v38, %v13393_v16  ;;  %v13396_v51 = vand.u32 4294901760, %v12489_v53 }
 0xceb   : > { %v12684_v57 = vpack.c.bf16 %v7153_v32, %v7146_v60  ;;  %9235 = vmatprep.subr.bf16.mxu1 %v9234_v59  ;;  %v7272_v47 = vand.u32 4294901760, %v7271_v17  ;;  %v7285_v3 = vsub.f32 %v12487_v15, %v13395_v61  ;;  %v13397_v60 = vand.u32 4294901760, %v12491_v6 }
 0xcec   : > { %v7279_v41 = vand.u32 4294901760, %v7278_v49  ;;  %v7160_v32 = vand.u32 4294901760, %v7159_v5  ;;  %v7167_v35 = vand.u32 4294901760, %v7166_v26  ;;  %v7292_v56 = vsub.f32 %v12489_v53, %v13396_v51 }
 0xced   : > { %v13398_v34 = vand.u32 4294901760, %v12493_v46  ;;  %v7286_v31 = vand.u32 4294901760, %v7285_v3  ;;  %v7173_v59 = vsub.f32 %v12491_v6, %v13397_v60  ;;  %v13399_v17 = vand.u32 4294901760, %v12545_v2 }
 0xcee   : > { %v12701_v16 = vpack.c.bf16 %v7279_v41, %v7272_v47  ;;  %v12707_v49 = vpack.c.bf16 %v7167_v35, %v7160_v32  ;;  %v7293_v61 = vand.u32 4294901760, %v7292_v56  ;;  %v13402_v26 = vand.u32 4294901760, %v12563_v36 }
 0xcef   : > { %v7180_v5 = vsub.f32 %v12493_v46, %v13398_v34  ;;  %v7174_v51 = vand.u32 4294901760, %v7173_v59  ;;  %v7299_v3 = vsub.f32 %v12545_v2, %v13399_v17  ;;  %v13403_v41 = vand.u32 4294901760, %v12565_v21 }
 0xcf0   : > { %v13405_v47 = vand.u32 4294901760, %v12567_v42  ;;  %v12718_v60 = vsub.f32 %v8466_v55, %v8466_v55  ;;  %v12720_v35 = vpack.c.bf16 %v7293_v61, %v7286_v31  ;;  %v7306_v32 = vsub.f32 %v12563_v36, %v13402_v26 }
 0xcf1   : > { %v7181_v56 = vand.u32 4294901760, %v7180_v5  ;;  %v7300_v34 = vand.u32 4294901760, %v7299_v3  ;;  %v7187_v59 = vsub.f32 %v12565_v21, %v13403_v41  ;;  %v13406_v54 = vand.u32 4294901760, %v12585_v50 }
 0xcf2   : > { %13995 = vst [vmem:[#allocation26_spill] sm:$0xff] %v12718_v60  ;;  %v7194_v17 = vsub.f32 %v12567_v42, %v13405_v47  ;;  %v7307_v31 = vand.u32 4294901760, %v7306_v32  ;;  %v13412_v61 = vand.u32 4294901760, %v12587_v45  ;;  %v13409_v5 = vand.u32 4294901760, %v12603_v28 }
 0xcf3   : > { %v12732_v55 = vpack.c.bf16 %v7181_v56, %v7174_v51  ;;  %v7188_v29 = vand.u32 4294901760, %v7187_v59  ;;  %v7313_v3 = vsub.f32 %v12585_v50, %v13406_v54  ;;  %v13410_v41 = vand.u32 4294901760, %v12627_v14 }
 0xcf4   : > { %v7195_v26 = vand.u32 4294901760, %v7194_v17  ;;  %vm13997_vm3 = vcmp.eq.s32.totalorder %v12527_v62, %v11951_v19  ;;  %v12744_v51 = vpack.c.bf16 %v7307_v31, %v7300_v34  ;;  %v7320_v56 = vsub.f32 %v12587_v45, %v13412_v61 }
 0xcf5   : > { %v8449_v47 = vsel %vm13997_vm3, 1.0, %v13996_v58  ;;  %v7201_v17 = vsub.f32 %v12603_v28, %v13409_v5  ;;  %v7314_v59 = vand.u32 4294901760, %v7313_v3  ;;  %v7208_v54 = vsub.f32 %v12627_v14, %v13410_v41 }
 0xcf6   : > { %v12752_v32 = vpack.c.bf16 %v7195_v26, %v7188_v29  ;;  %v13411_v62 = vand.u32 4294901760, %v12629_v10  ;;  %v7321_v52 = vand.u32 4294901760, %v7320_v56  ;;  %v13413_v31 = vand.u32 4294901760, %v12633_v25 }
 0xcf7   : > { %v7202_v34 = vand.u32 4294901760, %v7201_v17  ;;  %v13417_v13 = vand.u32 4294901760, %v12644_v23  ;;  %vm13998_vm1 = vcmp.eq.s32.totalorder %v12530_v0, %v11951_v19  ;;  %v7209_v29 = vand.u32 4294901760, %v7208_v54 }
 0xcf8   : > { %v8450_v5 = vsel %vm13998_vm1, 1.0, %v13996_v58  ;;  %v7327_v26 = vsub.f32 %v12629_v10, %v13411_v62  ;;  %v13415_v3 = vand.u32 4294901760, %v12646_v33  ;;  %v12768_v41 = vsub.f32 %v8449_v47, %v8449_v47 }
 0xcf9   : > { %v12770_v56 = vpack.c.bf16 %v7321_v52, %v7314_v59  ;;  %v7334_v17 = vsub.f32 %v12633_v25, %v13413_v31  ;;  %v7215_v19 = vsub.f32 %v12644_v23, %v13417_v13  ;;  %v12778_v58 = vpack.c.bf16 %v7209_v29, %v7202_v34 }
 0xcfa   : > { %13999 = vst [vmem:[#allocation27_spill] sm:$0xff] %v12768_v41  ;;  %v7328_v54 = vand.u32 4294901760, %v7327_v26  ;;  %v7222_v0 = vsub.f32 %v12646_v33, %v13415_v3  ;;  %v13416_v47 = vand.u32 4294901760, %v12648_v1  ;;  %v13419_v59 = vand.u32 4294901760, %v12650_v48 }
 0xcfb   : > { %v7335_v62 = vand.u32 4294901760, %v7334_v17  ;;  %v7216_v52 = vand.u32 4294901760, %v7215_v19  ;;  %v13420_v61 = vand.u32 4294901760, %v12652_v9  ;;  %v12786_v31 = vsub.f32 %v8450_v5, %v8450_v5 }
 0xcfc   : > { %v7223_v18 = vand.u32 4294901760, %v7222_v0  ;;  %v7341_v34 = vsub.f32 %v12648_v1, %v13416_v47  ;;  %v13421_v29 = vand.u32 4294901760, %v12663_v37  ;;  %v7348_v17 = vsub.f32 %v12650_v48, %v13419_v59 }
 0xcfd   : > { %14000 = vst [vmem:[#allocation28_spill] sm:$0xff] %v12786_v31  ;;  %v12792_v26 = vpack.c.bf16 %v7335_v62, %v7328_v54  ;;  %v7229_v19 = vsub.f32 %v12652_v9, %v13420_v61  ;;  %v13422_v47 = vand.u32 4294901760, %v12665_v12  ;;  %v13425_v54 = vand.u32 4294901760, %v12718_v60 }
 0xcfe   : > { %v12800_v3 = vpack.c.bf16 %v7223_v18, %v7216_v52  ;;  %v7342_v5 = vand.u32 4294901760, %v7341_v34  ;;  %v7236_v0 = vsub.f32 %v12663_v37, %v13421_v29  ;;  %v7349_v13 = vand.u32 4294901760, %v7348_v17 }
 0xcff   : > { %v7230_v62 = vand.u32 4294901760, %v7229_v19  ;;  %v13426_v43 = vand.u32 4294901760, %v12768_v41  ;;  %v7355_v61 = vsub.f32 %v12665_v12, %v13422_v47  ;;  %v13427_v18 = vand.u32 4294901760, %v12786_v31 }
 0xd00   : > { %v7237_v59 = vand.u32 4294901760, %v7236_v0  ;;  %v12812_v52 = vpack.c.bf16 %v7349_v13, %v7342_v5  ;;  %v7362_v34 = vsub.f32 %v12718_v60, %v13425_v54 }
 0xd01   : > { %v7243_v17 = vsub.f32 %v12768_v41, %v13426_v43  ;;  %v7356_v29 = vand.u32 4294901760, %v7355_v61  ;;  %v7250_v0 = vsub.f32 %v12786_v31, %v13427_v18 }
 0xd02   : > { %v12820_v19 = vpack.c.bf16 %v7237_v59, %v7230_v62  ;;  %v7363_v47 = vand.u32 4294901760, %v7362_v34 }
 0xd03   : > { %v7244_v24 = vand.u32 4294901760, %v7243_v17  ;;  %v7251_v7 = vand.u32 4294901760, %v7250_v0  ;;  %v6819_v17 = vpop.permute.xlu1 %6818 }
 0xd04   : > { %v12825_v13 = vpack.c.bf16 %v7363_v47, %v7356_v29  ;;  %v6814_v47 = vpop.permute.xlu0 %6813 }
 0xd05   : > { %v12827_v5 = vpack.c.bf16 %v7251_v7, %v7244_v24 }
 0xd07   : > { %v6829_v41 = vpop.permute.xlu1 %6828 }
 0xd94   : > { %v6780_v34 = vpop.f32.mrb[104].mxu0 }
 0xd95   : > { %v6831_v62 = vadd.f32 %v6814_v47, %v6780_v34  ;;  %v6782_v59 = vpop.f32.mrb[105].mxu0 }
 0xd96   : > { %v6832_v61 = vadd.f32 %v6814_v47, %v6782_v59  ;;  %v6784_v43 = vpop.f32.mrb[106].mxu0 }
 0xd97   : > { %v12861_v0 = vand.u32 4294901760, %v6831_v62  ;;  %v6833_v54 = vadd.f32 %v6819_v17, %v6784_v43  ;;  %v6786_v18 = vpop.f32.mrb[107].mxu0 }
 0xd98   : > { %v12863_v22 = vand.u32 4294901760, %v6832_v61  ;;  %v6834_v7 = vadd.f32 %v6819_v17, %v6786_v18  ;;  %v6824_v18 = vpop.permute.xlu0 %6823 }
 0xd99   : > { %v12866_v63 = vsub.f32 %v6831_v62, %v12861_v0  ;;  %v12868_v24 = vand.u32 4294901760, %v6833_v54 }
 0xd9a   : > { %v12871_v29 = vsub.f32 %v6832_v61, %v12863_v22  ;;  %v12873_v34 = vand.u32 4294901760, %v6834_v7  ;;  %7986 = vmatprep.mubr.f32.mxu0 %v12863_v22 }
 0xd9b   : > { %14001 = vst [vmem:[#allocation29_spill] sm:$0xff] %v12866_v63  ;;  %v13446_v59 = vand.u32 4294901760, %v12866_v63  ;;  %v12878_v43 = vsub.f32 %v6833_v54, %v12868_v24  ;;  %7988 = vmatmul.mubr.f32.vlgmr.msra.gmra.mrb[112].mxu0 %v12861_v0 }
 0xd9c   : > { %v12882_v62 = vsub.f32 %v6834_v7, %v12873_v34  ;;  %v6790_v47 = vpop.f32.mrb[108].mxu0  ;;  %7993 = vmatprep.mubr.f32.mxu0 %v12873_v34  ;;  %v13449_v61 = vand.u32 4294901760, %v12871_v29 }
 0xd9d   : > { %v7089_v17 = vsub.f32 %v12866_v63, %v13446_v59  ;;  %v6835_v8 = vadd.f32 %v6824_v18, %v6790_v47  ;;  %v6792_v30 = vpop.f32.mrb[109].mxu0  ;;  %v14002_v48 = vand.u32 4294901760, %v12878_v43 }
 0xd9e   : > { %v6836_v31 = vadd.f32 %v6824_v18, %v6792_v30  ;;  %v6794_v12 = vpop.f32.mrb[110].mxu0  ;;  %v7083_v7 = vsub.f32 %v12871_v29, %v13449_v61  ;;  %v7097_v60 = vand.u32 4294901760, %v12882_v62 }
 0xd9f   : > { %v12894_v9 = vand.u32 4294901760, %v6835_v8  ;;  %v6837_v37 = vadd.f32 %v6829_v41, %v6794_v12  ;;  %v6796_v1 = vpop.f32.mrb[111].mxu0  ;;  %7995 = vmatmul.mubr.f32.gmra.mrb[114].mxu0 %v12868_v24  ;;  %v7090_v54 = vand.u32 4294901760, %v7089_v17  ;;  %v7104_v12 = vsub.f32 %v12878_v43, %v14002_v48 }
 0xda0   : > { %v12897_v59 = vand.u32 4294901760, %v6836_v31  ;;  %v6838_v47 = vadd.f32 %v6829_v41, %v6796_v1  ;;  %v7084_v63 = vand.u32 4294901760, %v7083_v7  ;;  %v7098_v30 = vsub.f32 %v12882_v62, %v7097_v60 }
 0xda1   : > { %v12903_v18 = vsub.f32 %v6835_v8, %v12894_v9  ;;  %v12905_v61 = vand.u32 4294901760, %v6837_v37 }
 0xda2   : > { %v12911_v23 = vsub.f32 %v6836_v31, %v12897_v59  ;;  %v12913_v33 = vand.u32 4294901760, %v6838_v47  ;;  %7085 = vmatprep.mubr.f32.mxu1 %v7084_v63  ;;  %8000 = vmatprep.mubr.f32.mxu0 %v12897_v59  ;;  %v7099_v1 = vand.u32 4294901760, %v7098_v30  ;;  %v7105_v63 = vand.u32 4294901760, %v7104_v12 }
 0xda3   : > { %v12917_v41 = vsub.f32 %v6837_v37, %v12905_v61  ;;  %7091 = vmatmul.mubr.f32.vlgmr.msra.gmra.mrb[96].mxu1 %v7090_v54  ;;  %8002 = vmatmul.mubr.f32.gmra.mrb[116].mxu0 %v12894_v9  ;;  %v7118_v8 = vand.u32 4294901760, %v12903_v18 }
 0xda4   : > { %v12922_v17 = vsub.f32 %v6838_v47, %v12913_v33  ;;  %9237 = vmatpush3.bf16.msra.mxu1 %v12684_v57  ;;  %7100 = vmatprep.mubr.f32.mxu1 %v7099_v1  ;;  %v7112_v48 = vand.u32 4294901760, %v12911_v23  ;;  %v14015_v1 = vld [vmem:[#allocation19_spill] sm:$0xff] }
 0xda5   : > { %8007 = vmatprep.mubr.f32.mxu0 %v12913_v33  ;;  %9239 = vmatprep.subr.bf16.mxu1 %v12701_v16  ;;  %v7119_v37 = vsub.f32 %v12903_v18, %v7118_v8  ;;  %v7133_v31 = vand.u32 4294901760, %v12917_v41 }
 0xda6   : > { %v7113_v54 = vsub.f32 %v12911_v23, %v7112_v48  ;;  %v7127_v57 = vand.u32 4294901760, %v12922_v17 }
 0xda7   : > { %7106 = vmatmul.mubr.f32.gmra.mrb[98].mxu1 %v7105_v63  ;;  %8009 = vmatmul.mubr.f32.gmra.mrb[118].mxu0 %v12905_v61  ;;  %v7120_v47 = vand.u32 4294901760, %v7119_v37  ;;  %v7134_v30 = vsub.f32 %v12917_v41, %v7133_v31  ;;  %v14017_v37 = vld [vmem:[#allocation22_spill] sm:$0xff] }
 0xda8   : > { %9241 = vmatpush3.bf16.msra.mxu1 %v12707_v49  ;;  %v7114_v7 = vand.u32 4294901760, %v7113_v54  ;;  %v7128_v16 = vsub.f32 %v12922_v17, %v7127_v57  ;;  %v14018_v54 = vld [vmem:[#allocation21_spill] sm:$0xff] }
 0xda9   : > { %9243 = vmatprep.subr.bf16.mxu1 %v12720_v35  ;;  %v7135_v49 = vand.u32 4294901760, %v7134_v30  ;;  %v14003_v35 = vpack.c.bf16 %v12439_v40, %v12437_v39 }
 0xdaa   : > { %7115 = vmatprep.mubr.f32.mxu1 %v7114_v7  ;;  %v7129_v12 = vand.u32 4294901760, %v7128_v16  ;;  %v14019_v7 = vpack.c.bf16 %v14017_v37, %v14018_v54  ;;  %v14020_v16 = vld [vmem:[#allocation24_spill] sm:$0xff] }
 0xdab   : > { %7121 = vmatmul.mubr.f32.gmra.mrb[100].mxu1 %v7120_v47  ;;  %v14021_v47 = vld [vmem:[#allocation23_spill] sm:$0xff] }
 0xdac   : > { %9245 = vmatpush3.bf16.msra.mxu1 %v12732_v55  ;;  %7130 = vmatprep.mubr.f32.mxu1 %v7129_v12  ;;  %v14004_v55 = vpack.c.bf16 %v12467_v20, %v12465_v44  ;;  %v14022_v30 = vpack.c.bf16 %v14020_v16, %v14021_v47  ;;  %v14023_v12 = vld [vmem:[#allocation26_spill] sm:$0xff] }
 0xdad   : > { %9247 = vmatprep.subr.bf16.mxu1 %v12744_v51  ;;  %v14005_v51 = vpack.c.bf16 %v12479_v11, %v12477_v27 }
 0xdaf   : > { %7136 = vmatmul.mubr.f32.gmra.mrb[102].mxu1 %v7135_v49  ;;  %v14024_v49 = vld [vmem:[#allocation25_spill] sm:$0xff] }
 0xdb0   : > { %9249 = vmatpush3.bf16.msra.mxu1 %v12752_v32  ;;  %7366 = vmatprep.mubr.f32.mxu1 %v12863_v22  ;;  %v14006_v32 = vpack.c.bf16 %v12485_v38, %v12483_v4 }
 0xdb1   : > { %9251 = vmatprep.subr.bf16.mxu1 %v12770_v56  ;;  %v14008_v56 = vpack.c.bf16 %v12493_v46, %v12491_v6 }
 0xdb4   : > { %9253 = vmatpush3.bf16.msra.mxu1 %v12778_v58  ;;  %v14009_v58 = vpack.c.bf16 %v12563_v36, %v12545_v2 }
 0xdb5   : > { %9255 = vmatprep.subr.bf16.mxu1 %v12792_v26  ;;  %v14010_v26 = vpack.c.bf16 %v12567_v42, %v12565_v21 }
 0xdb8   : > { %9257 = vmatpush3.bf16.msra.mxu1 %v12800_v3  ;;  %v14007_v3 = vpack.c.bf16 %v12489_v53, %v12487_v15 }
 0xdb9   : > { %9259 = vmatprep.subr.bf16.mxu1 %v12812_v52  ;;  %v14011_v52 = vpack.c.bf16 %v12587_v45, %v12585_v50 }
 0xdbc   : > { %9261 = vmatpush3.bf16.msra.mxu1 %v12820_v19  ;;  %v14012_v19 = vpack.c.bf16 %v12627_v14, %v12603_v28 }
 0xdbd   : > { %9263 = vmatprep.subr.bf16.mxu1 %v12825_v13  ;;  %v14013_v13 = vpack.c.bf16 %v12633_v25, %v12629_v10 }
 0xdc0   : > { %9265 = vmatpush3.bf16.msra.mxu1 %v12827_v5  ;;  %v14014_v5 = vld [vmem:[#allocation20_spill] sm:$0xff] }
 0xdc1   : > { %9267 = vmatprep.subr.bf16.mxu1 %v14003_v35  ;;  %v14016_v63 = vpack.c.bf16 %v14014_v5, %v14015_v1  ;;  %v14025_v35 = vpack.c.bf16 %v14023_v12, %v14024_v49 }
 0xdc3   : > { %7368 = vmatmul.mubr.f32.vlgmr.msra.gmra.mrb[104].mxu1 %v12861_v0 }
 0xdc4   : > { %7373 = vmatprep.mubr.f32.mxu1 %v12873_v34  ;;  %9269 = vmatpush3.bf16.msra.mxu1 %v14004_v55  ;;  %v14026_v55 = vld [vmem:[#allocation28_spill] sm:$0xff] }
 0xdc5   : > { %9271 = vmatprep.subr.bf16.mxu1 %v14005_v51  ;;  %v14027_v51 = vld [vmem:[#allocation27_spill] sm:$0xff] }
 0xdc7   : > { %7375 = vmatmul.mubr.f32.gmra.mrb[106].mxu1 %v12868_v24 }
 0xdc8   : > { %7380 = vmatprep.mubr.f32.mxu1 %v12897_v59  ;;  %9273 = vmatpush3.bf16.msra.mxu1 %v14006_v32  ;;  %v14028_v32 = vpack.c.bf16 %v14026_v55, %v14027_v51 }
 0xdc9   : > { %9275 = vmatprep.subr.bf16.mxu1 %v14007_v3  ;;  %v14029_v3 = vmov 1.0|1.0  }
 0xdcb   : > { %7382 = vmatmul.mubr.f32.gmra.mrb[108].mxu1 %v12894_v9 }
 0xdcc   : > { %7387 = vmatprep.mubr.f32.mxu1 %v12913_v33  ;;  %9277 = vmatpush3.bf16.msra.mxu1 %v14008_v56  ;;  %v14056_v56 = vand.u32 4294901760, %v12467_v20  ;;  %v14062_v20 = vand.u32 4294901760, %v12487_v15  ;;  %v14068_v15 = vand.u32 4294901760, %v12563_v36  ;;  %v14073_v36 = vand.u32 4294901760, %v12603_v28 }
 0xdcd   : > { %9279 = vmatprep.subr.bf16.mxu1 %v14009_v58  ;;  %v14031_v58 = vld [vmem:[#allocation29_spill] sm:$0xff]  ;;  %v14080_v28 = vand.u32 4294901760, %v14017_v37 }
 0xdcf   : > { %7389 = vmatmul.mubr.f32.gmra.mrb[110].mxu1 %v12905_v61 }
 0xdd0   : > { %9281 = vmatpush3.bf16.msra.mxu1 %v14010_v26  ;;  %7524 = vmatprep.mubr.f32.mxu1 %v12871_v29  ;;  %v14042_v26 = vld [vmem:[#allocation13_spill] sm:$0xff] }
 0xdd1   : > { %9283 = vmatprep.subr.bf16.mxu1 %v14011_v52  ;;  %v14044_v52 = vld [vmem:[#allocation14_spill] sm:$0xff] }
 0xdd4   : > { %9285 = vmatpush3.bf16.msra.mxu1 %v14012_v19  ;;  %v14046_v19 = vld [vmem:[#allocation15_spill] sm:$0xff] }
 0xdd5   : > { %9287 = vmatprep.subr.bf16.mxu1 %v14013_v13 }
 0xdd8   : > { %9289 = vmatpush3.bf16.msra.mxu1 %v14016_v63  ;;  %v14051_v63 = vand.u32 4294901760, %v12437_v39  ;;  %v14059_v39 = vand.u32 4294901760, %v14031_v58 }
 0xdd9   : > { %9291 = vmatprep.subr.bf16.mxu1 %v14019_v7  ;;  %v14052_v7 = vand.u32 4294901760, %v12439_v40  ;;  %v14060_v40 = vand.u32 4294901760, %v12483_v4  ;;  %v14066_v4 = vand.u32 4294901760, %v12493_v46  ;;  %v14071_v46 = vand.u32 4294901760, %v12585_v50 }
 0xddc   : > { %9293 = vmatpush3.bf16.msra.mxu1 %v14022_v30  ;;  %v9330_v30 = vpack.c.bf16 %v14052_v7, %v14051_v63 }
 0xddd   : > { %9295 = vmatprep.subr.bf16.mxu1 %v14025_v35  ;;  %v14039_v35 = vand.u32 4294901760, %v12871_v29  ;;  %v14048_v29 = vld [vmem:[#allocation16_spill] sm:$0xff] }
 0xde0   : > { %9297 = vmatpush3.bf16.msra.mxu1 %v14028_v32  ;;  %v14055_v32 = vand.u32 4294901760, %v12465_v44  ;;  %v14061_v44 = vand.u32 4294901760, %v12485_v38  ;;  %v14067_v38 = vand.u32 4294901760, %v12545_v2  ;;  %v14072_v2 = vand.u32 4294901760, %v12587_v45 }
 0xde1   : > { %9299 = vmatprep.subr.msk.bf16.mxu1 %vm11983_vm4, %v14029_v3  ;;  %vm14045_vm4 = vnez %v14044_v52  ;;  %v14057_v52 = vand.u32 4294901760, %v12477_v27  ;;  %v14063_v27 = vand.u32 4294901760, %v12489_v53  ;;  %v14069_v53 = vand.u32 4294901760, %v12565_v21 }
 0xde2   : > { %v14077_v45 = vand.u32 4294901760, %v14015_v1 }
 0xde3   : > { %7527 = vmatmul.mubr.f32.vlgmr.msra.gmra.mrb[112].mxu1 %v14031_v58  ;;  %v9338_v13 = vpack.c.bf16 %v14063_v27, %v14062_v20  ;;  %v9342_v58 = vpack.c.bf16 %v14068_v15, %v14067_v38 }
 0xde4   : > { %7533 = vmatprep.mubr.f32.mxu1 %v12882_v62  ;;  %9301 = vmatpush3.bf16.msk.msra.mxu1 %vm12004_vm5, %v14029_v3  ;;  %vm14047_vm5 = vnez %v14046_v19  ;;  %v14058_v19 = vand.u32 4294901760, %v12479_v11  ;;  %v14064_v11 = vand.u32 4294901760, %v12878_v43 }
 0xde5   : > { %9303 = vmatprep.subr.msk.bf16.mxu1 %vm12018_vm7, %v14029_v3  ;;  %vm14049_vm7 = vnez %v14048_v29 }
 0xde6   : > { %v9334_v29 = vpack.c.bf16 %v14058_v19, %v14057_v52 }
 0xde7   : > { %7536 = vmatmul.mubr.f32.gmra.mrb[114].mxu1 %v12878_v43  ;;  %v9346_v43 = vpack.c.bf16 %v14072_v2, %v14071_v46 }
 0xde8   : > { %7542 = vmatprep.mubr.f32.mxu1 %v12911_v23  ;;  %9305 = vmatpush3.bf16.msk.msra.mxu1 %vm12065_vm15, %v14029_v3  ;;  %vm14088_vm15 = vcmask 64512  }
 0xde9   : > { %9307 = vmatprep.subr.msk.bf16.mxu1 %vm12084_vm6, %v14029_v3 }
 0xdeb   : > { %7545 = vmatmul.mubr.f32.gmra.mrb[116].mxu1 %v12903_v18  ;;  %v14074_v18 = vand.u32 4294901760, %v12627_v14  ;;  %v14081_v14 = vand.u32 4294901760, %v14021_v47 }
 0xdec   : > { %7551 = vmatprep.mubr.f32.mxu1 %v12922_v17  ;;  %9309 = vmatpush3.bf16.msk.msra.mxu1 %vm12100_vm14, %v14029_v3  ;;  %vm14043_vm14 = vnez %v14042_v26  ;;  %v9332_v26 = vpack.c.bf16 %v14056_v56, %v14055_v32 }
 0xded   : > { %9311 = vmatprep.subr.msk.bf16.mxu1 %vm13942_vm8, %v14029_v3  ;;  %v9348_v21 = vpack.c.bf16 %v14074_v18, %v14073_v36  ;;  %vm14089_vm8 = vmmov %vm14088_vm15 }
 0xdef   : > { %7554 = vmatmul.mubr.f32.gmra.mrb[118].mxu1 %v12917_v41  ;;  %v14078_v41 = vand.u32 4294901760, %v14014_v5  ;;  %v14085_v5 = vand.u32 4294901760, %v14027_v51 }
 0xdf0   : > { %9313 = vmatpush3.bf16.msk.msra.mxu1 %vm13943_vm11, %v14029_v3  ;;  %7658 = vmatprep.mubr.f32.mxu1 %v14039_v35  ;;  %v14053_v35 = vld [vmem:[#allocation18_spill] sm:$0xff]  ;;  %vm14090_vm11 = vmmov %vm14089_vm8 }
 0xdf1   : > { %9315 = vmatprep.subr.msk.bf16.mxu1 %vm13944_vm2, %v14029_v3  ;;  %vm14054_vm6 = vnez %v14053_v35  ;;  %v9352_v17 = vpack.c.bf16 %v14078_v41, %v14077_v45  ;;  %vm14091_vm2 = vmmov %vm14089_vm8 }
 0xdf4   : > { %9317 = vmatpush3.bf16.msk.msra.mxu1 %vm13945_vm10, %v14029_v3 }
 0xdf5   : > { %9319 = vmatprep.subr.msk.bf16.mxu1 %vm14043_vm14, %v14029_v3 }
 0xdf8   : > { %9321 = vmatpush3.bf16.msk.msra.mxu1 %vm14045_vm4, %v14029_v3 }
 0xdf9   : > { %9323 = vmatprep.subr.msk.bf16.mxu1 %vm14047_vm5, %v14029_v3 }
 0xdfc   : > { %9325 = vmatpush3.bf16.msk.msra.mxu1 %vm14049_vm7, %v14029_v3 }
 0xdfd   : > { %9327 = vmatprep.subr.msk.bf16.mxu1 %vm12555_vm12, %v14029_v3 }
 0xe00   : > { %9329 = vmatpush3.bf16.msk.msra.mxu1 %vm14054_vm6, %v14029_v3  ;;  %v9336_v3 = vpack.c.bf16 %v14061_v44, %v14060_v40 }
 0xe01   : > { %9331 = vmatprep.subr.bf16.mxu1 %v9330_v30 }
 0xe03   : > { %7662 = vmatmul.mubr.f32.vlgmr.msra.gmra.mrb[120].mxu1 %v14059_v39 }
 0xe04   : > { %7669 = vmatprep.mubr.f32.mxu1 %v7097_v60  ;;  %9333 = vmatpush3.bf16.msra.mxu1 %v9332_v26  ;;  %v14065_v60 = vand.u32 4294901760, %v12491_v6  ;;  %v14070_v6 = vand.u32 4294901760, %v12567_v42  ;;  %v14075_v42 = vand.u32 4294901760, %v12629_v10  ;;  %v14082_v10 = vand.u32 4294901760, %v14020_v16 }
 0xe05   : > { %9335 = vmatprep.subr.bf16.mxu1 %v9334_v29 }
 0xe06   : > { %v9340_v62 = vpack.c.bf16 %v14066_v4, %v14065_v60  ;;  %v9344_v23 = vpack.c.bf16 %v14070_v6, %v14069_v53 }
 0xe07   : > { %7673 = vmatmul.mubr.f32.gmra.mrb[122].mxu1 %v14064_v11 }
 0xe08   : > { %7680 = vmatprep.mubr.f32.mxu1 %v7112_v48  ;;  %9337 = vmatpush3.bf16.msra.mxu1 %v9336_v3 }
 0xe09   : > { %9339 = vmatprep.subr.bf16.mxu1 %v9338_v13 }
 0xe0b   : > { %7684 = vmatmul.mubr.f32.gmra.mrb[124].mxu1 %v7118_v8  ;;  %v14076_v8 = vand.u32 4294901760, %v12633_v25  ;;  %v14083_v25 = vand.u32 4294901760, %v14024_v49 }
 0xe0c   : > { %7691 = vmatprep.mubr.f32.mxu1 %v7127_v57  ;;  %9341 = vmatpush3.bf16.msra.mxu1 %v9340_v62  ;;  %v14084_v57 = vand.u32 4294901760, %v14023_v12 }
 0xe0d   : > { %9343 = vmatprep.subr.bf16.mxu1 %v9342_v58  ;;  %v9350_v50 = vpack.c.bf16 %v14076_v8, %v14075_v42 }
 0xe0e   : > { %v9358_v1 = vpack.c.bf16 %v14084_v57, %v14083_v25 }
 0xe0f   : > { %7695 = vmatmul.mubr.f32.gmra.mrb[126].mxu1 %v7133_v31  ;;  %v9356_v31 = vpack.c.bf16 %v14082_v10, %v14081_v14 }
 0xe10   : > { %9345 = vmatpush3.bf16.msra.mxu1 %v9344_v23  ;;  %7861 = vmatprep.mubr.f32.mxu1 %v12863_v22  ;;  %v14079_v22 = vand.u32 4294901760, %v14018_v54  ;;  %v14086_v54 = vand.u32 4294901760, %v14026_v55 }
 0xe11   : > { %9347 = vmatprep.subr.bf16.mxu1 %v9346_v43 }
 0xe12   : > { %v9354_v48 = vpack.c.bf16 %v14080_v28, %v14079_v22  ;;  %v9360_v63 = vpack.c.bf16 %v14086_v54, %v14085_v5 }
 0xe14   : > { %9349 = vmatpush3.bf16.msra.mxu1 %v9348_v21 }
 0xe15   : > { %9351 = vmatprep.subr.bf16.mxu1 %v9350_v50 }
 0xe18   : > { %9353 = vmatpush3.bf16.msra.mxu1 %v9352_v17 }
 0xe19   : > { %9355 = vmatprep.subr.bf16.mxu1 %v9354_v48 }
 0xe1c   : > { %9357 = vmatpush3.bf16.msra.mxu1 %v9356_v31 }
 0xe1d   : > { %9359 = vmatprep.subr.bf16.mxu1 %v9358_v1 }
 0xe20   : > { %9361 = vmatpush3.bf16.msra.mxu1 %v9360_v63 }
 0xe23   : > { %7863 = vmatmul.mubr.f32.vlgmr.msra.gmra.mrb[128].mxu1 %v12861_v0 }
 0xe24   : > { %7868 = vmatprep.mubr.f32.mxu1 %v12873_v34 }
 0xe27   : > { %7870 = vmatmul.mubr.f32.gmra.mrb[130].mxu1 %v12868_v24 }
 0xe28   : > { %7875 = vmatprep.mubr.f32.mxu1 %v12897_v59 }
 0xe2b   : > { %7877 = vmatmul.mubr.f32.gmra.mrb[132].mxu1 %v12894_v9 }
 0xe2c   : > { %7882 = vmatprep.mubr.f32.mxu1 %v12913_v33 }
 0xe2f   : > { %7884 = vmatmul.mubr.f32.gmra.mrb[134].mxu1 %v12905_v61 }
 0xe6e   : > { %v8938_v37 = vpop.f32.mrb[112].mxu0 }
 0xe6f   : > { %v8939_v16 = vpop.f32.mrb[113].mxu0 }
 0xe70   : > { %v13156_v47 = vadd.f32 %v8939_v16, %v8938_v37 }
 0xe72   : > { %v8941_v12 = vpop.f32.mrb[114].mxu0 }
 0xe73   : > { %v8942_v49 = vpop.f32.mrb[115].mxu0 }
 0xe74   : > { %v13158_v55 = vadd.f32 %v8942_v49, %v8941_v12 }
 0xe76   : > { %v8718_v0 = vpop.f32.mrb[96].mxu1  ;;  %v8944_v34 = vpop.f32.mrb[116].mxu0 }
 0xe77   : > { %v8719_v51 = vpop.f32.mrb[97].mxu1  ;;  %v8945_v24 = vpop.f32.mrb[117].mxu0 }
 0xe78   : > { %v8720_v7 = vadd.f32 %v8719_v51, %v8718_v0  ;;  %v13160_v59 = vadd.f32 %v8945_v24, %v8944_v34 }
 0xe7a   : > { %v8721_v9 = vpop.f32.mrb[98].mxu1  ;;  %v8947_v30 = vpop.f32.mrb[118].mxu0 }
 0xe7b   : > { %v8722_v33 = vpop.f32.mrb[99].mxu1  ;;  %v8948_v35 = vpop.f32.mrb[119].mxu0 }
 0xe7c   : > { %v8723_v61 = vadd.f32 %v8722_v33, %v8721_v9  ;;  %v13162_v32 = vadd.f32 %v8948_v35, %v8947_v30 }
 0xe7e   : > { %v8724_v56 = vpop.f32.mrb[100].mxu1 }
 0xe7f   : > { %v8725_v26 = vpop.f32.mrb[101].mxu1 }
 0xe80   : > { %v8726_v52 = vadd.f32 %v8725_v26, %v8724_v56 }
 0xe82   : > { %v8727_v19 = vpop.f32.mrb[102].mxu1 }
 0xe83   : > { %v8728_v29 = vpop.f32.mrb[103].mxu1 }
 0xe84   : > { %v8729_v39 = vadd.f32 %v8728_v29, %v8727_v19 }
 0xe96   : > { %v8762_v40 = vpop.f32.mrb[104].mxu1 }
 0xe97   : > { %v8763_v44 = vpop.f32.mrb[105].mxu1 }
 0xe98   : > { %v8764_v3 = vadd.f32 %v8763_v44, %v8762_v40 }
 0xe9a   : > { %v7370_v20 = vadd.f32 %v8764_v3, %v8720_v7  ;;  %v8765_v27 = vpop.f32.mrb[106].mxu1 }
 0xe9b   : > { %v8766_v13 = vpop.f32.mrb[107].mxu1 }
 0xe9c   : > { %v8767_v11 = vadd.f32 %v8766_v13, %v8765_v27 }
 0xe9e   : > { %v7377_v60 = vadd.f32 %v8767_v11, %v8723_v61  ;;  %v8768_v4 = vpop.f32.mrb[108].mxu1 }
 0xe9f   : > { %v8769_v62 = vpop.f32.mrb[109].mxu1 }
 0xea0   : > { %v8770_v38 = vadd.f32 %v8769_v62, %v8768_v4 }
 0xea2   : > { %v7384_v15 = vadd.f32 %v8770_v38, %v8726_v52  ;;  %v8771_v58 = vpop.f32.mrb[110].mxu1 }
 0xea3   : > { %v8772_v53 = vpop.f32.mrb[111].mxu1 }
 0xea4   : > { %v8773_v6 = vadd.f32 %v8772_v53, %v8771_v58 }
 0xea6   : > { %v7391_v23 = vadd.f32 %v8773_v6, %v8729_v39 }
 0xeb6   : > { %v8806_v46 = vpop.f32.mrb[112].mxu1 }
 0xeb7   : > { %v8807_v2 = vpop.f32.mrb[113].mxu1 }
 0xeb8   : > { %v8808_v43 = vadd.f32 %v8807_v2, %v8806_v46 }
 0xeba   : > { %v7529_v36 = vadd.f32 %v8808_v43, %v7370_v20  ;;  %v8809_v18 = vpop.f32.mrb[114].mxu1 }
 0xebb   : > { %v8810_v21 = vpop.f32.mrb[115].mxu1 }
 0xebc   : > { %v8811_v42 = vadd.f32 %v8810_v21, %v8809_v18 }
 0xebe   : > { %v7538_v8 = vadd.f32 %v8811_v42, %v7377_v60  ;;  %v8812_v50 = vpop.f32.mrb[116].mxu1 }
 0xebf   : > { %v8813_v45 = vpop.f32.mrb[117].mxu1 }
 0xec0   : > { %v8814_v41 = vadd.f32 %v8813_v45, %v8812_v50 }
 0xec2   : > { %v7547_v17 = vadd.f32 %v8814_v41, %v7384_v15  ;;  %v8815_v22 = vpop.f32.mrb[118].mxu1 }
 0xec3   : > { %v8816_v28 = vpop.f32.mrb[119].mxu1 }
 0xec4   : > { %v8817_v48 = vadd.f32 %v8816_v28, %v8815_v22 }
 0xec6   : > { %v7556_v14 = vadd.f32 %v8817_v48, %v7391_v23 }
 0xed6   : > { %v8850_v10 = vpop.f32.mrb[120].mxu1 }
 0xed7   : > { %v8851_v31 = vpop.f32.mrb[121].mxu1 }
 0xed8   : > { %v8852_v25 = vadd.f32 %v8851_v31, %v8850_v10 }
 0xeda   : > { %v7664_v57 = vadd.f32 %v8852_v25, %v7529_v36  ;;  %v8853_v1 = vpop.f32.mrb[122].mxu1 }
 0xedb   : > { %v8854_v5 = vpop.f32.mrb[123].mxu1 }
 0xedc   : > { %v8855_v54 = vadd.f32 %v8854_v5, %v8853_v1 }
 0xede   : > { %v7675_v63 = vadd.f32 %v8855_v54, %v7538_v8  ;;  %v8856_v37 = vpop.f32.mrb[124].mxu1 }
 0xedf   : > { %v8857_v16 = vpop.f32.mrb[125].mxu1 }
 0xee0   : > { %v8858_v12 = vadd.f32 %v8857_v16, %v8856_v37 }
 0xee2   : > { %v7686_v49 = vadd.f32 %v8858_v12, %v7547_v17  ;;  %v8859_v0 = vpop.f32.mrb[126].mxu1 }
 0xee3   : > { %v8860_v34 = vpop.f32.mrb[127].mxu1 }
 0xee4   : > { %v8861_v51 = vadd.f32 %v8860_v34, %v8859_v0 }
 0xee6   : > { %v7697_v24 = vadd.f32 %v8861_v51, %v7556_v14 }
 0xef6   : > { %v8894_v7 = vpop.f32.mrb[128].mxu1 }
 0xef7   : > { %v8895_v9 = vpop.f32.mrb[129].mxu1 }
 0xef8   : > { %v8896_v30 = vadd.f32 %v8895_v9, %v8894_v7 }
 0xefa   : > { %v7865_v33 = vadd.f32 %v8896_v30, %v7664_v57  ;;  %v8897_v35 = vpop.f32.mrb[130].mxu1 }
 0xefb   : > { %v8898_v61 = vpop.f32.mrb[131].mxu1 }
 0xefc   : > { %v7990_v56 = vadd.f32 %v13156_v47, %v7865_v33  ;;  %v8899_v26 = vadd.f32 %v8898_v61, %v8897_v35 }
 0xefe   : > { %8014 = vst.msk [vmem:[%s724_s7] sm:$0xff] %vm14088_vm15, %v7990_v56  ;;  %v7872_v52 = vadd.f32 %v8899_v26, %v7675_v63  ;;  %v8900_v19 = vpop.f32.mrb[132].mxu1 }
 0xeff   : > { %v8901_v29 = vpop.f32.mrb[133].mxu1 }
 0xf00   : > { %v7997_v39 = vadd.f32 %v13158_v55, %v7872_v52  ;;  %v8902_v40 = vadd.f32 %v8901_v29, %v8900_v19 }
 0xf02   : > { %8015 = vst.msk [vmem:[%s724_s7 + $0x8] sm:$0xff] %vm14089_vm8, %v7997_v39  ;;  %v7879_v44 = vadd.f32 %v8902_v40, %v7686_v49  ;;  %v8903_v3 = vpop.f32.mrb[134].mxu1 }
 0xf03   : > { %v8904_v20 = vpop.f32.mrb[135].mxu1 }
 0xf04   : > { %v8004_v27 = vadd.f32 %v13160_v59, %v7879_v44  ;;  %v8905_v13 = vadd.f32 %v8904_v20, %v8903_v3 }
 0xf06   : > { %8016 = vst.msk [vmem:[%s724_s7 + $0x10] sm:$0xff] %vm14090_vm11, %v8004_v27  ;;  %v7886_v47 = vadd.f32 %v8905_v13, %v7697_v24 }
 0xf08   : > { %v8011_v11 = vadd.f32 %v13162_v32, %v7886_v47 }
 0xf0a   : > { %8017 = vst.msk [vmem:[%s724_s7 + $0x18] sm:$0xff] %vm14091_vm2, %v8011_v11 }
 0xf0b PF: > { %s14092_s30 = sld [smem:[#allocation2_spill]] }
 0xf11   : > { %s33_s4 = sadd.s32 1, %s14092_s30  }
 0xf12   : > { %p30_p4 = scmp.ge.s32.totalorder %s33_s4, 4  }
 0xf14   :  { %32 = sbr.rel (!%p30_p4) target bundleno = 17 (0x11), region = 210 }

</bundles_post_ra>
